<compile_context>
chip_gen: v5e
topology: v5e:2x2
jax: 0.10.0
libtpu: 0.0.40
codegen_flags: <defaults>
</compile_context>

<pallas_src>
import functools

import jax
import jax.numpy as jnp
import numpy as np
from jax.experimental import pallas as pl
from jax.experimental.pallas import tpu as pltpu

EPS = 1e-5
VMEM_LIMIT = 48 * 1024 * 1024   # safe on v5e/v6e (128 MiB) and v7x (64 MiB physical)


def _round_up(x, m):
    return (x + m - 1) // m * m


def _pick_tm(m):
    # Largest row tile in {1024, 512, 256} that still yields >= 2 grid steps
    # (keeps both v7x TensorCores busy); M is padded up to a multiple of it.
    for tm in (1024, 512, 256):
        if m >= 2 * tm:
            return tm
    return 256


def _pick_row_tile(h, w):
    # Target ~512-1024 output rows (th * w) per grid step; th must divide H.
    target = max(1, 1024 // max(w, 1))
    th = 1
    for cand in range(1, h + 1):
        if h % cand == 0 and cand <= target:
            th = cand
    return th


# ----------------------------- Pallas kernels ------------------------------- #

def _build_cat_kernel(fs_ref, aspp_ref, w1_ref, b1_ref, o_ref):
    """cat = [relu(fs @ w1 + b1) | aspp | zeros]  (lane-dense 128-multiple slab).

    w1/b1 are zero-padded to the full slab width and aspp is pre-shifted to
    columns [48:48+Cb], so a plain add reproduces the channel concat exactly.
    """
    skip = jnp.dot(fs_ref[...], w1_ref[...], preferred_element_type=jnp.float32)
    skip = jnp.maximum(skip + b1_ref[...], 0.0)
    o_ref[...] = (skip + aspp_ref[...].astype(jnp.float32)).astype(o_ref.dtype)


def _conv3x3_fused_kernel(catp_ref, w2_ref, b2_ref, w3_ref, b3_ref,
                          feat_ref, pred_ref, acc_ref, *, th, width, cp):
    """3x3 conv (+BN+ReLU) as 9 shifted bf16 matmuls, fused with the final 1x1 conv."""
    row0 = pl.program_id(1) * th
    acc_ref[...] = jnp.zeros_like(acc_ref)
    for dh in range(3):
        for dw in range(3):
            x = catp_ref[pl.ds(row0 + dh, th), pl.ds(dw, width), :]   # (th, W, Cp) bf16
            x2 = x.reshape(th * width, cp)
            acc_ref[...] += jnp.dot(x2, w2_ref[3 * dh + dw],
                                    preferred_element_type=jnp.float32)
    feat = jnp.maximum(acc_ref[...] + b2_ref[...], 0.0)                # (th*W, 256) f32
    feat_ref[...] = feat.astype(feat_ref.dtype)
    preds = jnp.dot(feat.astype(jnp.bfloat16), w3_ref[...],
                    preferred_element_type=jnp.float32) + b3_ref[...]  # (th*W, 128) f32
    pred_ref[...] = preds.astype(pred_ref.dtype)


# ------------------------------ kernel wrappers ------------------------------ #

def build_cat(fs_flat, aspp_shift, w1, b1, *, tm):
    mp, cs = fs_flat.shape
    cp = w1.shape[1]
    grid = (mp // tm,)
    return pl.pallas_call(
        _build_cat_kernel,
        out_shape=jax.ShapeDtypeStruct((mp, cp), jnp.bfloat16),
        grid_spec=pltpu.PrefetchScalarGridSpec(
            num_scalar_prefetch=0,
            grid=grid,
            in_specs=[
                pl.BlockSpec((tm, cs), lambda i: (i, 0)),
                pl.BlockSpec((tm, cp), lambda i: (i, 0)),
                pl.BlockSpec((cs, cp), lambda i: (0, 0)),
                pl.BlockSpec((1, cp), lambda i: (0, 0)),
            ],
            out_specs=pl.BlockSpec((tm, cp), lambda i: (i, 0)),
        ),
        compiler_params=pltpu.CompilerParams(
            dimension_semantics=("parallel",),
            vmem_limit_bytes=VMEM_LIMIT),
    )(fs_flat, aspp_shift, w1, b1)


def conv3x3_fused(catp, w2, b2, w3, b3):
    n, hp2, wp2, cp = catp.shape
    h, w = hp2 - 2, wp2 - 2
    assert w % 8 == 0, "width must be a multiple of 8 (typical DeepLab 4x maps are)"
    cout = w2.shape[-1]      # 256
    cop = w3.shape[-1]       # num_out_ch padded to 128
    th = _pick_row_tile(h, w)
    n_rt = h // th
    mtile = th * w
    m = n * h * w

    kernel = functools.partial(_conv3x3_fused_kernel, th=th, width=w, cp=cp)
    feat, preds = pl.pallas_call(
        kernel,
        out_shape=(jax.ShapeDtypeStruct((m, cout), jnp.float32),
                   jax.ShapeDtypeStruct((m, cop), jnp.float32)),
        grid_spec=pltpu.PrefetchScalarGridSpec(
            num_scalar_prefetch=0,
            grid=(n, n_rt),
            in_specs=[
                # Whole padded image per batch element; block index is constant in
                # the row-tile axis so Pallas keeps it resident (no re-DMA per tile).
                pl.BlockSpec((None, hp2, wp2, cp), lambda i, j: (i, 0, 0, 0)),
                pl.BlockSpec((9, cp, cout), lambda i, j: (0, 0, 0)),
                pl.BlockSpec((1, cout), lambda i, j: (0, 0)),
                pl.BlockSpec((cout, cop), lambda i, j: (0, 0)),
                pl.BlockSpec((1, cop), lambda i, j: (0, 0)),
            ],
            out_specs=[
                pl.BlockSpec((mtile, cout), lambda i, j: (i * n_rt + j, 0)),
                pl.BlockSpec((mtile, cop), lambda i, j: (i * n_rt + j, 0)),
            ],
            scratch_shapes=[pltpu.VMEM((mtile, cout), jnp.float32)],
        ),
        compiler_params=pltpu.CompilerParams(
            dimension_semantics=("parallel", "parallel"),
            vmem_limit_bytes=VMEM_LIMIT),
    )(catp, w2, b2, w3, b3)
    return feat, preds


# --------------------------- JAX glue (layout only) -------------------------- #

def _interp_coeffs(in_size, out_size):
    # Matches F.interpolate(mode='bilinear', align_corners=False).
    i = jnp.arange(out_size, dtype=jnp.float32)
    src = (i + 0.5) * (in_size / out_size) - 0.5
    src = jnp.maximum(src, 0.0)
    i0 = jnp.minimum(jnp.floor(src).astype(jnp.int32), in_size - 1)
    i1 = jnp.minimum(i0 + 1, in_size - 1)
    w1 = src - i0.astype(jnp.float32)
    return i0, i1, 1.0 - w1, w1


def bilinear_resize_nhwc(x, out_h, out_w):
    # TODO(synk): fold the bilinear gather/lerp (and the halo zero-pad below) into the
    # conv3x3 kernel's input path via SMEM-prefetched index tables; kept as XLA glue.
    _, h_in, w_in, _ = x.shape
    h0, h1, wh0, wh1 = _interp_coeffs(h_in, out_h)
    v0, v1, ww0, ww1 = _interp_coeffs(w_in, out_w)
    rows = x[:, h0] * wh0[None, :, None, None] + x[:, h1] * wh1[None, :, None, None]
    out = rows[:, :, v0] * ww0[None, None, :, None] + rows[:, :, v1] * ww1[None, None, :, None]
    return out


# ----------------------------- parameters ----------------------------------- #

def init_params(key, bottleneck_ch, skip_4x_ch, num_out_ch):
    ks = jax.random.split(key, 13)

    def n(k, shape, scale=0.1):
        return scale * jax.random.normal(k, shape, dtype=jnp.float32)

    cin2 = bottleneck_ch + 48
    return dict(
        conv1_w=n(ks[0], (48, skip_4x_ch, 1, 1)),           # Conv2d(skip_4x_ch, 48, 1)
        conv1_b=n(ks[1], (48,)),
        bn1_g=1.0 + 0.1 * jax.random.normal(ks[2], (48,), dtype=jnp.float32),
        bn1_b=n(ks[3], (48,)),
        bn1_m=n(ks[4], (48,)),
        bn1_v=1.0 + 0.1 * jax.random.uniform(ks[5], (48,), dtype=jnp.float32),
        conv2_w=n(ks[6], (256, cin2, 3, 3)),                 # Conv2d(cin2, 256, 3, pad=1, bias=False)
        bn2_g=1.0 + 0.1 * jax.random.normal(ks[7], (256,), dtype=jnp.float32),
        bn2_b=n(ks[8], (256,)),
        bn2_m=n(ks[9], (256,)),
        bn2_v=1.0 + 0.1 * jax.random.uniform(ks[10], (256,), dtype=jnp.float32),
        conv3_w=n(ks[11], (num_out_ch, 256, 1, 1)),          # Conv2d(256, num_out_ch, 1)
        conv3_b=n(ks[12], (num_out_ch,)),
    )


def fold_params(raw):
    """Fold BN into conv weights, pad to lane-dense widths, cast matmul operands to bf16."""
    # conv1 + BN1
    s1 = raw["bn1_g"] / jnp.sqrt(raw["bn1_v"] + EPS)
    w1 = raw["conv1_w"].reshape(48, -1).T * s1[None, :]            # (Cs, 48)
    b1 = (raw["conv1_b"] - raw["bn1_m"]) * s1 + raw["bn1_b"]       # (48,)

    # conv2 + BN2  (HWIO, input channels padded to the cat-slab width Cp)
    cin2 = raw["conv2_w"].shape[1]                                  # 48 + Cb
    cp = _round_up(cin2, 128)
    s2 = raw["bn2_g"] / jnp.sqrt(raw["bn2_v"] + EPS)
    w2 = jnp.transpose(raw["conv2_w"], (2, 3, 1, 0)) * s2[None, None, None, :]
    w2 = jnp.pad(w2, ((0, 0), (0, 0), (0, cp - cin2), (0, 0))).reshape(9, cp, 256)
    b2 = raw["bn2_b"] - raw["bn2_m"] * s2

    # conv3 (output channels padded to a 128 multiple for lane-dense stores)
    nout = raw["conv3_w"].shape[0]
    cop = _round_up(nout, 128)
    w3 = jnp.pad(raw["conv3_w"].reshape(nout, 256).T, ((0, 0), (0, cop - nout)))
    b3 = jnp.pad(raw["conv3_b"], (0, cop - nout))

    # conv1 weights/bias padded out to the full cat slab (cols [0:48]); padded output
    # channels produce relu(0)=0, which is exactly where the aspp slab gets added.
    w1p = jnp.pad(w1, ((0, 0), (0, cp - 48)))
    b1p = jnp.pad(b1, (0, cp - 48))

    return dict(
        w1=w1p.astype(jnp.bfloat16), b1=b1p.reshape(1, cp).astype(jnp.float32),
        w2=w2.astype(jnp.bfloat16),  b2=b2.reshape(1, 256).astype(jnp.float32),
        w3=w3.astype(jnp.bfloat16),  b3=b3.reshape(1, cop).astype(jnp.float32),
    )


# ----------------------------- forward pass --------------------------------- #

@functools.partial(jax.jit, static_argnames=("num_out_ch",))
def decoder_forward(params, features_bottleneck_nchw, features_skip_4x_nchw, *, num_out_ch):
    fb = jnp.transpose(features_bottleneck_nchw, (0, 2, 3, 1))   # NHWC
    fs = jnp.transpose(features_skip_4x_nchw, (0, 2, 3, 1))      # NHWC
    n, hs, ws, cs = fs.shape
    cb = fb.shape[-1]
    cp = params["w2"].shape[1]
    m = n * hs * ws

    # F.interpolate(features_bottleneck, size=skip spatial, bilinear, align_corners=False)
    aspp = bilinear_resize_nhwc(fb, hs, ws)                                  # (N,H,W,Cb) f32
    aspp_shift = jnp.pad(aspp.reshape(m, cb).astype(jnp.bfloat16),
                         ((0, 0), (48, cp - 48 - cb)))                       # cols [48:48+Cb]
    fs_flat = fs.reshape(m, cs).astype(jnp.bfloat16)

    # kernel 1: fused 1x1 conv + BN + ReLU, written straight into the lane-dense cat slab
    tm = _pick_tm(m)
    mp = pl.cdiv(m, tm) * tm
    if mp != m:
        fs_flat = jnp.pad(fs_flat, ((0, mp - m), (0, 0)))
        aspp_shift = jnp.pad(aspp_shift, ((0, mp - m), (0, 0)))
    cat_flat = build_cat(fs_flat, aspp_shift, params["w1"], params["b1"], tm=tm)[:m]

    # spatial zero pad = halo for the 3x3 "SAME" conv (bf16, cheap XLA copy)
    catp = jnp.pad(cat_flat.reshape(n, hs, ws, cp), ((0, 0), (1, 1), (1, 1), (0, 0)))

    # kernel 2: 3x3 conv + BN + ReLU fused with the 1x1 prediction conv
    feat_flat, preds_flat = conv3x3_fused(catp, params["w2"], params["b2"],
                                          params["w3"], params["b3"])

    feat = feat_flat.reshape(n, hs, ws, 256)
    preds = preds_flat[:, :num_out_ch].reshape(n, hs, ws, num_out_ch)
    return (jnp.transpose(preds, (0, 3, 1, 2)),   # predictions, NCHW
            jnp.transpose(feat, (0, 3, 1, 2)))    # features_cat, NCHW


# ----------------------------- pure-JAX reference --------------------------- #

def reference_forward(raw, features_bottleneck_nchw, features_skip_4x_nchw):
    fb = jnp.transpose(features_bottleneck_nchw, (0, 2, 3, 1))
    fs = jnp.transpose(features_skip_4x_nchw, (0, 2, 3, 1))
    _, hs, ws, _ = fs.shape
    dn = ("NHWC", "HWIO", "NHWC")

    def conv(x, w_oihw, pad):
        w_hwio = jnp.transpose(w_oihw, (2, 3, 1, 0))
        return jax.lax.conv_general_dilated(
            x, w_hwio, (1, 1), pad, dimension_numbers=dn,
            precision=jax.lax.Precision.HIGHEST)

    def bn(x, g, b, m, v):
        return (x - m) / jnp.sqrt(v + EPS) * g + b

    aspp = bilinear_resize_nhwc(fb, hs, ws)
    skip = conv(fs, raw["conv1_w"], "VALID") + raw["conv1_b"]
    skip = jnp.maximum(bn(skip, raw["bn1_g"], raw["bn1_b"], raw["bn1_m"], raw["bn1_v"]), 0.0)
    cat = jnp.concatenate([skip, aspp], axis=-1)
    feat = conv(cat, raw["conv2_w"], "SAME")
    feat = jnp.maximum(bn(feat, raw["bn2_g"], raw["bn2_b"], raw["bn2_m"], raw["bn2_v"]), 0.0)
    preds = conv(feat, raw["conv3_w"], "VALID") + raw["conv3_b"]
    return jnp.transpose(preds, (0, 3, 1, 2)), jnp.transpose(feat, (0, 3, 1, 2))


# --------------------------------- main -------------------------------------- #

if __name__ == "__main__":
    key = jax.random.PRNGKey(0)
    k_fb, k_fs, k_p = jax.random.split(key, 3)

    bottleneck_ch, skip_4x_ch, num_out_ch = 8, 4, 5
    # bottleneck at scale 8 (spatial 8x8), skip at scale 4 (spatial 16x16)
    features_bottleneck = jax.random.normal(k_fb, (2, bottleneck_ch, 8, 8), dtype=jnp.float32)
    features_skip_4x = jax.random.normal(k_fs, (2, skip_4x_ch, 16, 16), dtype=jnp.float32)

    raw = init_params(k_p, bottleneck_ch, skip_4x_ch, num_out_ch)
    params = fold_params(raw)

    preds, feat_cat = decoder_forward(params, features_bottleneck, features_skip_4x,
                                      num_out_ch=num_out_ch)
    preds, feat_cat = jax.block_until_ready((preds, feat_cat))

    assert preds.shape == (2, num_out_ch, 16, 16), preds.shape
    assert feat_cat.shape == (2, 256, 16, 16), feat_cat.shape

    ref_preds, ref_feat = reference_forward(raw, features_bottleneck, features_skip_4x)
    # bf16 matmul operands (f32 accumulation) vs pure-f32 reference -> relaxed tolerance.
    np.testing.assert_allclose(np.asarray(feat_cat), np.asarray(ref_feat), rtol=4e-2, atol=4e-2)
    np.testing.assert_allclose(np.asarray(preds), np.asarray(ref_preds), rtol=4e-2, atol=4e-2)

    print("KERNEL_OK")
</pallas_src>

<mosaic_0001>
module attributes {stable_mosaic.version = 11 : i64} {
  func.func @_build_cat_kernel(%arg0: i32, %arg1: memref<256x4xbf16, #tpu.memory_space<vmem>>, %arg2: memref<256x128xbf16, #tpu.memory_space<vmem>>, %arg3: memref<4x128xbf16, #tpu.memory_space<vmem>>, %arg4: memref<1x128xf32, #tpu.memory_space<vmem>>, %arg5: memref<256x128xbf16, #tpu.memory_space<vmem>>) attributes {dimension_semantics = [#tpu.dimension_semantics<parallel>], iteration_bounds = array<i64: 2>, scalar_prefetch = 0 : i64, scratch_operands = 0 : i64, tpu.core_type = #tpu.core_type<tc>, window_params = [{transform_indices = @transform_0, window_bounds = array<i64: 256, 4>}, {transform_indices = @transform_1, window_bounds = array<i64: 256, 128>}, {pipeline_mode = #tpu.pipeline_mode<synchronous>, transform_indices = @transform_2, window_bounds = array<i64: 4, 128>}, {pipeline_mode = #tpu.pipeline_mode<synchronous>, transform_indices = @transform_3, window_bounds = array<i64: 1, 128>}, {transform_indices = @transform_4, window_bounds = array<i64: 256, 128>}]} {
    %c0 = arith.constant 0 : index
    %c0_0 = arith.constant 0 : index
    %0 = vector.load %arg1[%c0, %c0_0] : memref<256x4xbf16, #tpu.memory_space<vmem>>, vector<256x4xbf16>
    %c0_1 = arith.constant 0 : index
    %c0_2 = arith.constant 0 : index
    %1 = vector.load %arg3[%c0_1, %c0_2] : memref<4x128xbf16, #tpu.memory_space<vmem>>, vector<4x128xbf16>
    %cst = arith.constant dense<0.000000e+00> : vector<256x128xf32>
    %2 = tpu.matmul %0, %1, %cst {dimension_numbers = #tpu.dot_dimension_numbers<[1], [0], [0], [1], [0, 0, 1, 1], [], []>} : vector<256x4xbf16>, vector<4x128xbf16>, vector<256x128xf32> -> vector<256x128xf32>
    %c0_3 = arith.constant 0 : index
    %c0_4 = arith.constant 0 : index
    %3 = vector.load %arg4[%c0_3, %c0_4] : memref<1x128xf32, #tpu.memory_space<vmem>>, vector<1x128xf32>
    %4 = vector.broadcast %3 : vector<1x128xf32> to vector<256x128xf32>
    %5 = arith.addf %2, %4 : vector<256x128xf32>
    %cst_5 = arith.constant 0.000000e+00 : f32
    %6 = vector.broadcast %cst_5 : f32 to vector<256x128xf32>
    %7 = arith.maximumf %5, %6 : vector<256x128xf32>
    %c0_6 = arith.constant 0 : index
    %c0_7 = arith.constant 0 : index
    %8 = vector.load %arg2[%c0_6, %c0_7] : memref<256x128xbf16, #tpu.memory_space<vmem>>, vector<256x128xbf16>
    %9 = arith.extf %8 : vector<256x128xbf16> to vector<256x128xf32>
    %10 = arith.addf %7, %9 : vector<256x128xf32>
    %11 = arith.truncf %10 : vector<256x128xf32> to vector<256x128xbf16>
    %c0_8 = arith.constant 0 : index
    %c0_9 = arith.constant 0 : index
    %12 = vector.load %arg5[%c0_8, %c0_9] : memref<256x128xbf16, #tpu.memory_space<vmem>>, vector<256x128xbf16>
    tpu.vector_store %arg5[%c0_8, %c0_9], %11 {strides = array<i32>} : memref<256x128xbf16, #tpu.memory_space<vmem>>, vector<256x128xbf16>,
    return
  }
  func.func @transform_0(%arg0: i32) -> (i32, i32) {
    %c0_i32 = arith.constant 0 : i32
    %c0_i32_0 = arith.constant 0 : i32
    return %arg0, %c0_i32 : i32, i32
  }
  func.func @transform_1(%arg0: i32) -> (i32, i32) {
    %c0_i32 = arith.constant 0 : i32
    %c0_i32_0 = arith.constant 0 : i32
    return %arg0, %c0_i32 : i32, i32
  }
  func.func @transform_2(%arg0: i32) -> (i32, i32) {
    %c0_i32 = arith.constant 0 : i32
    %c0_i32_0 = arith.constant 0 : i32
    %c0_i32_1 = arith.constant 0 : i32
    return %c0_i32, %c0_i32_0 : i32, i32
  }
  func.func @transform_3(%arg0: i32) -> (i32, i32) {
    %c0_i32 = arith.constant 0 : i32
    %c0_i32_0 = arith.constant 0 : i32
    %c0_i32_1 = arith.constant 0 : i32
    return %c0_i32, %c0_i32_0 : i32, i32
  }
  func.func @transform_4(%arg0: i32) -> (i32, i32) {
    %c0_i32 = arith.constant 0 : i32
    %c0_i32_0 = arith.constant 0 : i32
    return %arg0, %c0_i32 : i32, i32
  }
}

module attributes {stable_mosaic.version = 11 : i64} {
  func.func @_conv3x3_fused_kernel(%arg0: i32, %arg1: i32, %arg2: memref<1x18x18x128xbf16, #tpu.memory_space<vmem>>, %arg3: memref<9x128x256xbf16, #tpu.memory_space<vmem>>, %arg4: memref<1x256xf32, #tpu.memory_space<vmem>>, %arg5: memref<256x128xbf16, #tpu.memory_space<vmem>>, %arg6: memref<1x128xf32, #tpu.memory_space<vmem>>, %arg7: memref<256x256xf32, #tpu.memory_space<vmem>>, %arg8: memref<256x128xf32, #tpu.memory_space<vmem>>, %arg9: memref<256x256xf32, #tpu.memory_space<vmem>>) attributes {dimension_semantics = [#tpu.dimension_semantics<parallel>, #tpu.dimension_semantics<parallel>], iteration_bounds = array<i64: 2, 1>, scalar_prefetch = 0 : i64, scratch_operands = 1 : i64, tpu.core_type = #tpu.core_type<tc>, window_params = [{transform_indices = @transform_0, window_bounds = array<i64: 1, 18, 18, 128>}, {pipeline_mode = #tpu.pipeline_mode<synchronous>, transform_indices = @transform_1, window_bounds = array<i64: 9, 128, 256>}, {pipeline_mode = #tpu.pipeline_mode<synchronous>, transform_indices = @transform_2, window_bounds = array<i64: 1, 256>}, {pipeline_mode = #tpu.pipeline_mode<synchronous>, transform_indices = @transform_3, window_bounds = array<i64: 256, 128>}, {pipeline_mode = #tpu.pipeline_mode<synchronous>, transform_indices = @transform_4, window_bounds = array<i64: 1, 128>}, {transform_indices = @transform_5, window_bounds = array<i64: 256, 256>}, {transform_indices = @transform_6, window_bounds = array<i64: 256, 128>}]} {
    %c16_i32 = arith.constant 16 : i32
    %0 = arith.muli %arg1, %c16_i32 : i32
    %cst = arith.constant 0.000000e+00 : f32
    %1 = vector.broadcast %cst : f32 to vector<256x256xf32>
    %c0 = arith.constant 0 : index
    %c0_0 = arith.constant 0 : index
    %2 = vector.load %arg9[%c0, %c0_0] : memref<256x256xf32, #tpu.memory_space<vmem>>, vector<256x256xf32>
    tpu.vector_store %arg9[%c0, %c0_0], %1 {strides = array<i32>} : memref<256x256xf32, #tpu.memory_space<vmem>>, vector<256x256xf32>,
    %c0_i32 = arith.constant 0 : i32
    %3 = arith.addi %0, %c0_i32 : i32
    %c0_1 = arith.constant 0 : index
    %4 = arith.index_cast %3 : i32 to index
    %c0_2 = arith.constant 0 : index
    %c0_3 = arith.constant 0 : index
    %5 = vector.load %arg2[%c0_1, %4, %c0_2, %c0_3] : memref<1x18x18x128xbf16, #tpu.memory_space<vmem>>, vector<1x16x16x128xbf16>
    %6 = vector.shape_cast %5 : vector<1x16x16x128xbf16> to vector<16x16x128xbf16>
    %7 = vector.shape_cast %6 : vector<16x16x128xbf16> to vector<256x128xbf16>
    %c0_4 = arith.constant 0 : index
    %c0_5 = arith.constant 0 : index
    %8 = vector.load %arg9[%c0_4, %c0_5] : memref<256x256xf32, #tpu.memory_space<vmem>>, vector<256x256xf32>
    %c0_6 = arith.constant 0 : index
    %c0_7 = arith.constant 0 : index
    %c0_8 = arith.constant 0 : index
    %9 = vector.load %arg3[%c0_6, %c0_7, %c0_8] : memref<9x128x256xbf16, #tpu.memory_space<vmem>>, vector<1x128x256xbf16>
    %10 = vector.shape_cast %9 : vector<1x128x256xbf16> to vector<128x256xbf16>
    %cst_9 = arith.constant dense<0.000000e+00> : vector<256x256xf32>
    %11 = tpu.matmul %7, %10, %cst_9 {dimension_numbers = #tpu.dot_dimension_numbers<[1], [0], [0], [1], [0, 0, 1, 1], [], []>} : vector<256x128xbf16>, vector<128x256xbf16>, vector<256x256xf32> -> vector<256x256xf32>
    %12 = arith.addf %8, %11 : vector<256x256xf32>
    %c0_10 = arith.constant 0 : index
    %c0_11 = arith.constant 0 : index
    %13 = vector.load %arg9[%c0_10, %c0_11] : memref<256x256xf32, #tpu.memory_space<vmem>>, vector<256x256xf32>
    tpu.vector_store %arg9[%c0_10, %c0_11], %12 {strides = array<i32>} : memref<256x256xf32, #tpu.memory_space<vmem>>, vector<256x256xf32>,
    %c0_i32_12 = arith.constant 0 : i32
    %14 = arith.addi %0, %c0_i32_12 : i32
    %c0_13 = arith.constant 0 : index
    %15 = arith.index_cast %14 : i32 to index
    %c1 = arith.constant 1 : index
    %c0_14 = arith.constant 0 : index
    %16 = vector.load %arg2[%c0_13, %15, %c1, %c0_14] : memref<1x18x18x128xbf16, #tpu.memory_space<vmem>>, vector<1x16x16x128xbf16>
    %17 = vector.shape_cast %16 : vector<1x16x16x128xbf16> to vector<16x16x128xbf16>
    %18 = vector.shape_cast %17 : vector<16x16x128xbf16> to vector<256x128xbf16>
    %c0_15 = arith.constant 0 : index
    %c0_16 = arith.constant 0 : index
    %19 = vector.load %arg9[%c0_15, %c0_16] : memref<256x256xf32, #tpu.memory_space<vmem>>, vector<256x256xf32>
    %c1_17 = arith.constant 1 : index
    %c0_18 = arith.constant 0 : index
    %c0_19 = arith.constant 0 : index
    %20 = vector.load %arg3[%c1_17, %c0_18, %c0_19] : memref<9x128x256xbf16, #tpu.memory_space<vmem>>, vector<1x128x256xbf16>
    %21 = vector.shape_cast %20 : vector<1x128x256xbf16> to vector<128x256xbf16>
    %cst_20 = arith.constant dense<0.000000e+00> : vector<256x256xf32>
    %22 = tpu.matmul %18, %21, %cst_20 {dimension_numbers = #tpu.dot_dimension_numbers<[1], [0], [0], [1], [0, 0, 1, 1], [], []>} : vector<256x128xbf16>, vector<128x256xbf16>, vector<256x256xf32> -> vector<256x256xf32>
    %23 = arith.addf %19, %22 : vector<256x256xf32>
    %c0_21 = arith.constant 0 : index
    %c0_22 = arith.constant 0 : index
    %24 = vector.load %arg9[%c0_21, %c0_22] : memref<256x256xf32, #tpu.memory_space<vmem>>, vector<256x256xf32>
    tpu.vector_store %arg9[%c0_21, %c0_22], %23 {strides = array<i32>} : memref<256x256xf32, #tpu.memory_space<vmem>>, vector<256x256xf32>,
    %c0_i32_23 = arith.constant 0 : i32
    %25 = arith.addi %0, %c0_i32_23 : i32
    %c0_24 = arith.constant 0 : index
    %26 = arith.index_cast %25 : i32 to index
    %c2 = arith.constant 2 : index
    %c0_25 = arith.constant 0 : index
    %27 = vector.load %arg2[%c0_24, %26, %c2, %c0_25] : memref<1x18x18x128xbf16, #tpu.memory_space<vmem>>, vector<1x16x16x128xbf16>
    %28 = vector.shape_cast %27 : vector<1x16x16x128xbf16> to vector<16x16x128xbf16>
    %29 = vector.shape_cast %28 : vector<16x16x128xbf16> to vector<256x128xbf16>
    %c0_26 = arith.constant 0 : index
    %c0_27 = arith.constant 0 : index
    %30 = vector.load %arg9[%c0_26, %c0_27] : memref<256x256xf32, #tpu.memory_space<vmem>>, vector<256x256xf32>
    %c2_28 = arith.constant 2 : index
    %c0_29 = arith.constant 0 : index
    %c0_30 = arith.constant 0 : index
    %31 = vector.load %arg3[%c2_28, %c0_29, %c0_30] : memref<9x128x256xbf16, #tpu.memory_space<vmem>>, vector<1x128x256xbf16>
    %32 = vector.shape_cast %31 : vector<1x128x256xbf16> to vector<128x256xbf16>
    %cst_31 = arith.constant dense<0.000000e+00> : vector<256x256xf32>
    %33 = tpu.matmul %29, %32, %cst_31 {dimension_numbers = #tpu.dot_dimension_numbers<[1], [0], [0], [1], [0, 0, 1, 1], [], []>} : vector<256x128xbf16>, vector<128x256xbf16>, vector<256x256xf32> -> vector<256x256xf32>
    %34 = arith.addf %30, %33 : vector<256x256xf32>
    %c0_32 = arith.constant 0 : index
    %c0_33 = arith.constant 0 : index
    %35 = vector.load %arg9[%c0_32, %c0_33] : memref<256x256xf32, #tpu.memory_space<vmem>>, vector<256x256xf32>
    tpu.vector_store %arg9[%c0_32, %c0_33], %34 {strides = array<i32>} : memref<256x256xf32, #tpu.memory_space<vmem>>, vector<256x256xf32>,
    %c1_i32 = arith.constant 1 : i32
    %36 = arith.addi %0, %c1_i32 : i32
    %c0_34 = arith.constant 0 : index
    %37 = arith.index_cast %36 : i32 to index
    %c0_35 = arith.constant 0 : index
    %c0_36 = arith.constant 0 : index
    %38 = vector.load %arg2[%c0_34, %37, %c0_35, %c0_36] : memref<1x18x18x128xbf16, #tpu.memory_space<vmem>>, vector<1x16x16x128xbf16>
    %39 = vector.shape_cast %38 : vector<1x16x16x128xbf16> to vector<16x16x128xbf16>
    %40 = vector.shape_cast %39 : vector<16x16x128xbf16> to vector<256x128xbf16>
    %c0_37 = arith.constant 0 : index
    %c0_38 = arith.constant 0 : index
    %41 = vector.load %arg9[%c0_37, %c0_38] : memref<256x256xf32, #tpu.memory_space<vmem>>, vector<256x256xf32>
    %c3 = arith.constant 3 : index
    %c0_39 = arith.constant 0 : index
    %c0_40 = arith.constant 0 : index
    %42 = vector.load %arg3[%c3, %c0_39, %c0_40] : memref<9x128x256xbf16, #tpu.memory_space<vmem>>, vector<1x128x256xbf16>
    %43 = vector.shape_cast %42 : vector<1x128x256xbf16> to vector<128x256xbf16>
    %cst_41 = arith.constant dense<0.000000e+00> : vector<256x256xf32>
    %44 = tpu.matmul %40, %43, %cst_41 {dimension_numbers = #tpu.dot_dimension_numbers<[1], [0], [0], [1], [0, 0, 1, 1], [], []>} : vector<256x128xbf16>, vector<128x256xbf16>, vector<256x256xf32> -> vector<256x256xf32>
    %45 = arith.addf %41, %44 : vector<256x256xf32>
    %c0_42 = arith.constant 0 : index
    %c0_43 = arith.constant 0 : index
    %46 = vector.load %arg9[%c0_42, %c0_43] : memref<256x256xf32, #tpu.memory_space<vmem>>, vector<256x256xf32>
    tpu.vector_store %arg9[%c0_42, %c0_43], %45 {strides = array<i32>} : memref<256x256xf32, #tpu.memory_space<vmem>>, vector<256x256xf32>,
    %c1_i32_44 = arith.constant 1 : i32
    %47 = arith.addi %0, %c1_i32_44 : i32
    %c0_45 = arith.constant 0 : index
    %48 = arith.index_cast %47 : i32 to index
    %c1_46 = arith.constant 1 : index
    %c0_47 = arith.constant 0 : index
    %49 = vector.load %arg2[%c0_45, %48, %c1_46, %c0_47] : memref<1x18x18x128xbf16, #tpu.memory_space<vmem>>, vector<1x16x16x128xbf16>
    %50 = vector.shape_cast %49 : vector<1x16x16x128xbf16> to vector<16x16x128xbf16>
    %51 = vector.shape_cast %50 : vector<16x16x128xbf16> to vector<256x128xbf16>
    %c0_48 = arith.constant 0 : index
    %c0_49 = arith.constant 0 : index
    %52 = vector.load %arg9[%c0_48, %c0_49] : memref<256x256xf32, #tpu.memory_space<vmem>>, vector<256x256xf32>
    %c4 = arith.constant 4 : index
    %c0_50 = arith.constant 0 : index
    %c0_51 = arith.constant 0 : index
    %53 = vector.load %arg3[%c4, %c0_50, %c0_51] : memref<9x128x256xbf16, #tpu.memory_space<vmem>>, vector<1x128x256xbf16>
    %54 = vector.shape_cast %53 : vector<1x128x256xbf16> to vector<128x256xbf16>
    %cst_52 = arith.constant dense<0.000000e+00> : vector<256x256xf32>
    %55 = tpu.matmul %51, %54, %cst_52 {dimension_numbers = #tpu.dot_dimension_numbers<[1], [0], [0], [1], [0, 0, 1, 1], [], []>} : vector<256x128xbf16>, vector<128x256xbf16>, vector<256x256xf32> -> vector<256x256xf32>
    %56 = arith.addf %52, %55 : vector<256x256xf32>
    %c0_53 = arith.constant 0 : index
    %c0_54 = arith.constant 0 : index
    %57 = vector.load %arg9[%c0_53, %c0_54] : memref<256x256xf32, #tpu.memory_space<vmem>>, vector<256x256xf32>
    tpu.vector_store %arg9[%c0_53, %c0_54], %56 {strides = array<i32>} : memref<256x256xf32, #tpu.memory_space<vmem>>, vector<256x256xf32>,
    %c1_i32_55 = arith.constant 1 : i32
    %58 = arith.addi %0, %c1_i32_55 : i32
    %c0_56 = arith.constant 0 : index
    %59 = arith.index_cast %58 : i32 to index
    %c2_57 = arith.constant 2 : index
    %c0_58 = arith.constant 0 : index
    %60 = vector.load %arg2[%c0_56, %59, %c2_57, %c0_58] : memref<1x18x18x128xbf16, #tpu.memory_space<vmem>>, vector<1x16x16x128xbf16>
    %61 = vector.shape_cast %60 : vector<1x16x16x128xbf16> to vector<16x16x128xbf16>
    %62 = vector.shape_cast %61 : vector<16x16x128xbf16> to vector<256x128xbf16>
    %c0_59 = arith.constant 0 : index
    %c0_60 = arith.constant 0 : index
    %63 = vector.load %arg9[%c0_59, %c0_60] : memref<256x256xf32, #tpu.memory_space<vmem>>, vector<256x256xf32>
    %c5 = arith.constant 5 : index
    %c0_61 = arith.constant 0 : index
    %c0_62 = arith.constant 0 : index
    %64 = vector.load %arg3[%c5, %c0_61, %c0_62] : memref<9x128x256xbf16, #tpu.memory_space<vmem>>, vector<1x128x256xbf16>
    %65 = vector.shape_cast %64 : vector<1x128x256xbf16> to vector<128x256xbf16>
    %cst_63 = arith.constant dense<0.000000e+00> : vector<256x256xf32>
    %66 = tpu.matmul %62, %65, %cst_63 {dimension_numbers = #tpu.dot_dimension_numbers<[1], [0], [0], [1], [0, 0, 1, 1], [], []>} : vector<256x128xbf16>, vector<128x256xbf16>, vector<256x256xf32> -> vector<256x256xf32>
    %67 = arith.addf %63, %66 : vector<256x256xf32>
    %c0_64 = arith.constant 0 : index
    %c0_65 = arith.constant 0 : index
    %68 = vector.load %arg9[%c0_64, %c0_65] : memref<256x256xf32, #tpu.memory_space<vmem>>, vector<256x256xf32>
    tpu.vector_store %arg9[%c0_64, %c0_65], %67 {strides = array<i32>} : memref<256x256xf32, #tpu.memory_space<vmem>>, vector<256x256xf32>,
    %c2_i32 = arith.constant 2 : i32
    %69 = arith.addi %0, %c2_i32 : i32
    %c0_66 = arith.constant 0 : index
    %70 = arith.index_cast %69 : i32 to index
    %c0_67 = arith.constant 0 : index
    %c0_68 = arith.constant 0 : index
    %71 = vector.load %arg2[%c0_66, %70, %c0_67, %c0_68] : memref<1x18x18x128xbf16, #tpu.memory_space<vmem>>, vector<1x16x16x128xbf16>
    %72 = vector.shape_cast %71 : vector<1x16x16x128xbf16> to vector<16x16x128xbf16>
    %73 = vector.shape_cast %72 : vector<16x16x128xbf16> to vector<256x128xbf16>
    %c0_69 = arith.constant 0 : index
    %c0_70 = arith.constant 0 : index
    %74 = vector.load %arg9[%c0_69, %c0_70] : memref<256x256xf32, #tpu.memory_space<vmem>>, vector<256x256xf32>
    %c6 = arith.constant 6 : index
    %c0_71 = arith.constant 0 : index
    %c0_72 = arith.constant 0 : index
    %75 = vector.load %arg3[%c6, %c0_71, %c0_72] : memref<9x128x256xbf16, #tpu.memory_space<vmem>>, vector<1x128x256xbf16>
    %76 = vector.shape_cast %75 : vector<1x128x256xbf16> to vector<128x256xbf16>
    %cst_73 = arith.constant dense<0.000000e+00> : vector<256x256xf32>
    %77 = tpu.matmul %73, %76, %cst_73 {dimension_numbers = #tpu.dot_dimension_numbers<[1], [0], [0], [1], [0, 0, 1, 1], [], []>} : vector<256x128xbf16>, vector<128x256xbf16>, vector<256x256xf32> -> vector<256x256xf32>
    %78 = arith.addf %74, %77 : vector<256x256xf32>
    %c0_74 = arith.constant 0 : index
    %c0_75 = arith.constant 0 : index
    %79 = vector.load %arg9[%c0_74, %c0_75] : memref<256x256xf32, #tpu.memory_space<vmem>>, vector<256x256xf32>
    tpu.vector_store %arg9[%c0_74, %c0_75], %78 {strides = array<i32>} : memref<256x256xf32, #tpu.memory_space<vmem>>, vector<256x256xf32>,
    %c2_i32_76 = arith.constant 2 : i32
    %80 = arith.addi %0, %c2_i32_76 : i32
    %c0_77 = arith.constant 0 : index
    %81 = arith.index_cast %80 : i32 to index
    %c1_78 = arith.constant 1 : index
    %c0_79 = arith.constant 0 : index
    %82 = vector.load %arg2[%c0_77, %81, %c1_78, %c0_79] : memref<1x18x18x128xbf16, #tpu.memory_space<vmem>>, vector<1x16x16x128xbf16>
    %83 = vector.shape_cast %82 : vector<1x16x16x128xbf16> to vector<16x16x128xbf16>
    %84 = vector.shape_cast %83 : vector<16x16x128xbf16> to vector<256x128xbf16>
    %c0_80 = arith.constant 0 : index
    %c0_81 = arith.constant 0 : index
    %85 = vector.load %arg9[%c0_80, %c0_81] : memref<256x256xf32, #tpu.memory_space<vmem>>, vector<256x256xf32>
    %c7 = arith.constant 7 : index
    %c0_82 = arith.constant 0 : index
    %c0_83 = arith.constant 0 : index
    %86 = vector.load %arg3[%c7, %c0_82, %c0_83] : memref<9x128x256xbf16, #tpu.memory_space<vmem>>, vector<1x128x256xbf16>
    %87 = vector.shape_cast %86 : vector<1x128x256xbf16> to vector<128x256xbf16>
    %cst_84 = arith.constant dense<0.000000e+00> : vector<256x256xf32>
    %88 = tpu.matmul %84, %87, %cst_84 {dimension_numbers = #tpu.dot_dimension_numbers<[1], [0], [0], [1], [0, 0, 1, 1], [], []>} : vector<256x128xbf16>, vector<128x256xbf16>, vector<256x256xf32> -> vector<256x256xf32>
    %89 = arith.addf %85, %88 : vector<256x256xf32>
    %c0_85 = arith.constant 0 : index
    %c0_86 = arith.constant 0 : index
    %90 = vector.load %arg9[%c0_85, %c0_86] : memref<256x256xf32, #tpu.memory_space<vmem>>, vector<256x256xf32>
    tpu.vector_store %arg9[%c0_85, %c0_86], %89 {strides = array<i32>} : memref<256x256xf32, #tpu.memory_space<vmem>>, vector<256x256xf32>,
    %c2_i32_87 = arith.constant 2 : i32
    %91 = arith.addi %0, %c2_i32_87 : i32
    %c0_88 = arith.constant 0 : index
    %92 = arith.index_cast %91 : i32 to index
    %c2_89 = arith.constant 2 : index
    %c0_90 = arith.constant 0 : index
    %93 = vector.load %arg2[%c0_88, %92, %c2_89, %c0_90] : memref<1x18x18x128xbf16, #tpu.memory_space<vmem>>, vector<1x16x16x128xbf16>
    %94 = vector.shape_cast %93 : vector<1x16x16x128xbf16> to vector<16x16x128xbf16>
    %95 = vector.shape_cast %94 : vector<16x16x128xbf16> to vector<256x128xbf16>
    %c0_91 = arith.constant 0 : index
    %c0_92 = arith.constant 0 : index
    %96 = vector.load %arg9[%c0_91, %c0_92] : memref<256x256xf32, #tpu.memory_space<vmem>>, vector<256x256xf32>
    %c8 = arith.constant 8 : index
    %c0_93 = arith.constant 0 : index
    %c0_94 = arith.constant 0 : index
    %97 = vector.load %arg3[%c8, %c0_93, %c0_94] : memref<9x128x256xbf16, #tpu.memory_space<vmem>>, vector<1x128x256xbf16>
    %98 = vector.shape_cast %97 : vector<1x128x256xbf16> to vector<128x256xbf16>
    %cst_95 = arith.constant dense<0.000000e+00> : vector<256x256xf32>
    %99 = tpu.matmul %95, %98, %cst_95 {dimension_numbers = #tpu.dot_dimension_numbers<[1], [0], [0], [1], [0, 0, 1, 1], [], []>} : vector<256x128xbf16>, vector<128x256xbf16>, vector<256x256xf32> -> vector<256x256xf32>
    %100 = arith.addf %96, %99 : vector<256x256xf32>
    %c0_96 = arith.constant 0 : index
    %c0_97 = arith.constant 0 : index
    %101 = vector.load %arg9[%c0_96, %c0_97] : memref<256x256xf32, #tpu.memory_space<vmem>>, vector<256x256xf32>
    tpu.vector_store %arg9[%c0_96, %c0_97], %100 {strides = array<i32>} : memref<256x256xf32, #tpu.memory_space<vmem>>, vector<256x256xf32>,
    %c0_98 = arith.constant 0 : index
    %c0_99 = arith.constant 0 : index
    %102 = vector.load %arg9[%c0_98, %c0_99] : memref<256x256xf32, #tpu.memory_space<vmem>>, vector<256x256xf32>
    %c0_100 = arith.constant 0 : index
    %c0_101 = arith.constant 0 : index
    %103 = vector.load %arg4[%c0_100, %c0_101] : memref<1x256xf32, #tpu.memory_space<vmem>>, vector<1x256xf32>
    %104 = vector.broadcast %103 : vector<1x256xf32> to vector<256x256xf32>
    %105 = arith.addf %102, %104 : vector<256x256xf32>
    %cst_102 = arith.constant 0.000000e+00 : f32
    %106 = vector.broadcast %cst_102 : f32 to vector<256x256xf32>
    %107 = arith.maximumf %105, %106 : vector<256x256xf32>
    %c0_103 = arith.constant 0 : index
    %c0_104 = arith.constant 0 : index
    %108 = vector.load %arg7[%c0_103, %c0_104] : memref<256x256xf32, #tpu.memory_space<vmem>>, vector<256x256xf32>
    tpu.vector_store %arg7[%c0_103, %c0_104], %107 {strides = array<i32>} : memref<256x256xf32, #tpu.memory_space<vmem>>, vector<256x256xf32>,
    %109 = arith.truncf %107 : vector<256x256xf32> to vector<256x256xbf16>
    %c0_105 = arith.constant 0 : index
    %c0_106 = arith.constant 0 : index
    %110 = vector.load %arg5[%c0_105, %c0_106] : memref<256x128xbf16, #tpu.memory_space<vmem>>, vector<256x128xbf16>
    %cst_107 = arith.constant dense<0.000000e+00> : vector<256x128xf32>
    %111 = tpu.matmul %109, %110, %cst_107 {dimension_numbers = #tpu.dot_dimension_numbers<[1], [0], [0], [1], [0, 0, 1, 1], [], []>} : vector<256x256xbf16>, vector<256x128xbf16>, vector<256x128xf32> -> vector<256x128xf32>
    %c0_108 = arith.constant 0 : index
    %c0_109 = arith.constant 0 : index
    %112 = vector.load %arg6[%c0_108, %c0_109] : memref<1x128xf32, #tpu.memory_space<vmem>>, vector<1x128xf32>
    %113 = vector.broadcast %112 : vector<1x128xf32> to vector<256x128xf32>
    %114 = arith.addf %111, %113 : vector<256x128xf32>
    %c0_110 = arith.constant 0 : index
    %c0_111 = arith.constant 0 : index
    %115 = vector.load %arg8[%c0_110, %c0_111] : memref<256x128xf32, #tpu.memory_space<vmem>>, vector<256x128xf32>
    tpu.vector_store %arg8[%c0_110, %c0_111], %114 {strides = array<i32>} : memref<256x128xf32, #tpu.memory_space<vmem>>, vector<256x128xf32>,
    return
  }
  func.func @transform_0(%arg0: i32, %arg1: i32) -> (i32, i32, i32, i32) {
    %c0_i32 = arith.constant 0 : i32
    %c0_i32_0 = arith.constant 0 : i32
    %c0_i32_1 = arith.constant 0 : i32
    %c0_i32_2 = arith.constant 0 : i32
    return %arg0, %c0_i32, %c0_i32_0, %c0_i32_1 : i32, i32, i32, i32
  }
  func.func @transform_1(%arg0: i32, %arg1: i32) -> (i32, i32, i32) {
    %c0_i32 = arith.constant 0 : i32
    %c0_i32_0 = arith.constant 0 : i32
    %c0_i32_1 = arith.constant 0 : i32
    %c0_i32_2 = arith.constant 0 : i32
    return %c0_i32, %c0_i32_0, %c0_i32_1 : i32, i32, i32
  }
  func.func @transform_2(%arg0: i32, %arg1: i32) -> (i32, i32) {
    %c0_i32 = arith.constant 0 : i32
    %c0_i32_0 = arith.constant 0 : i32
    %c0_i32_1 = arith.constant 0 : i32
    return %c0_i32, %c0_i32_0 : i32, i32
  }
  func.func @transform_3(%arg0: i32, %arg1: i32) -> (i32, i32) {
    %c0_i32 = arith.constant 0 : i32
    %c0_i32_0 = arith.constant 0 : i32
    %c0_i32_1 = arith.constant 0 : i32
    return %c0_i32, %c0_i32_0 : i32, i32
  }
  func.func @transform_4(%arg0: i32, %arg1: i32) -> (i32, i32) {
    %c0_i32 = arith.constant 0 : i32
    %c0_i32_0 = arith.constant 0 : i32
    %c0_i32_1 = arith.constant 0 : i32
    return %c0_i32, %c0_i32_0 : i32, i32
  }
  func.func @transform_5(%arg0: i32, %arg1: i32) -> (i32, i32) {
    %c1_i32 = arith.constant 1 : i32
    %0 = arith.muli %arg0, %c1_i32 : i32
    %1 = arith.addi %0, %arg1 : i32
    %c0_i32 = arith.constant 0 : i32
    %c0_i32_0 = arith.constant 0 : i32
    return %1, %c0_i32 : i32, i32
  }
  func.func @transform_6(%arg0: i32, %arg1: i32) -> (i32, i32) {
    %c1_i32 = arith.constant 1 : i32
    %0 = arith.muli %arg0, %c1_i32 : i32
    %1 = arith.addi %0, %arg1 : i32
    %c0_i32 = arith.constant 0 : i32
    %c0_i32_0 = arith.constant 0 : i32
    return %1, %c0_i32 : i32, i32
  }
}

</mosaic_0001>

<bundles_post_ra>
// kernel: decoder_forward.2
= control target key start
LH: loop header
LB: loop body
LE: loop exit
PB: predicated region body
PF: predicated region fallthrough
CT: control target
= control target key end

     0   :  { %s1071_s15 = smov 0   ;;  %s1188_s0 = inlined_call_operand.vmem [shape: bf16[512,4], index: 0, kind: input, shape index: {}]   ;;  %s1189_s1 = inlined_call_operand.vmem [shape: bf16[512,128], index: 1, kind: input, shape index: {}]   ;;  %s1190_s2 = inlined_call_operand.vmem [shape: bf16[4,128], index: 2, kind: input, shape index: {}]   ;;  %s1191_s3 = inlined_call_operand.vmem [shape: f32[1,128], index: 3, kind: input, shape index: {}]   ;;  %s1192_s4 = inlined_call_operand.vmem [shape: bf16[512,128], index: 4, kind: output, shape index: {}]  }
   0x1 LB: > { %s743_s16 = sadd.s32 4294967295, %s1044_s15   ;;  %p747_p0 = scmp.ge.s32.totalorder %s1044_s15, 1  ;;  %s1044_s15 = sphi %s1071_s15, %s14_s15  }
   0x2   : > { %p174_p1 = scmp.lt.s32.totalorder %s1044_s15, 3 }
   0x4   : > { %p175_p2 = pnand %p747_p0, %p174_p1 }
   0x5   : > { %s748_s19 = sshll.u32 (!%p175_p2), %s743_s16, 5 }
   0x6   : > { %178 = sbr.rel (%p175_p2) target bundleno = 215 (0xd7), region = 36  ;;  %p206_p3 = scmp.lt.s32.totalorder (!%p175_p2), %s748_s19, 63 }
   0xb   : > { %v256_v0 = vld [vmem:[%s1190_s2] sm:$0x3]  ;;  %vm390_vm0 = vcmask 1041408   ;;  %s1194_s19 = smov (!%p206_p3, %s748_s19), 63  ;;  %vm341_vm1 = vcmask 31744  }
   0xc   : > { %v392_v1 = vsel %vm390_vm0, %v256_v0, 0  ;;  %s1082_s20 = sshll.u32 %s1194_s19, 2  ;;  %v1107_v20 = vld [vmem:[%s1191_s3] ss:$0 sm:$0xff] }
   0xd   : > { %401 = vmatpush.bf16.msra.mxu0 %v392_v1  ;;  %1026 = vmatpush.bf16.msra.mxu1 %v392_v1  ;;  %s209_s23 = scalar_lea.vmem %s1188_s0, %s1082_s20  ;;  %s1113_s28 = scalar_lea.vmem %s1189_s1, %s1082_s20 }
   0xe   : > { %1027 = vmatpush.bf16.msra.mxu2 %v392_v1  ;;  %1028 = vmatpush.bf16.msra.mxu3 %v392_v1  ;;  %v836_v2 = vld [vmem:[%s209_s23] sm:$0xff]  ;;  %v837_v6 = vld [vmem:[%s209_s23 + $0x8] sm:$0xff]  ;;  %v838_v10 = vld [vmem:[%s209_s23 + $0x10] sm:$0xff]  ;;  %s1129_s5 = scalar_lea.vmem %s1192_s4, %s1082_s20 }
   0xf   : > { %v840_v3 = vld [vmem:[%s209_s23 + $0x20] sm:$0xff]  ;;  %v841_v7 = vld [vmem:[%s209_s23 + $0x28] sm:$0xff]  ;;  %v842_v11 = vld [vmem:[%s209_s23 + $0x30] sm:$0xff] }
  0x10   : > { %v844_v4 = vld [vmem:[%s209_s23 + $0x40] sm:$0xff]  ;;  %818 = vmatmul.msk.bf16.vlgmr.msra.gmra.mxu0 %vm341_vm1, %v836_v2  ;;  %822 = vmatmul.msk.bf16.vlgmr.msra.gmra.mxu1 %vm341_vm1, %v840_v3  ;;  %v845_v8 = vld [vmem:[%s209_s23 + $0x48] sm:$0xff]  ;;  %v846_v12 = vld [vmem:[%s209_s23 + $0x50] sm:$0xff] }
  0x11   : > { %v848_v5 = vld [vmem:[%s209_s23 + $0x60] sm:$0xff]  ;;  %826 = vmatmul.msk.bf16.vlgmr.msra.gmra.mxu2 %vm341_vm1, %v844_v4  ;;  %v849_v9 = vld [vmem:[%s209_s23 + $0x68] sm:$0xff]  ;;  %v850_v13 = vld [vmem:[%s209_s23 + $0x70] sm:$0xff] }
  0x12   : > { %830 = vmatmul.msk.bf16.vlgmr.msra.gmra.mxu3 %vm341_vm1, %v848_v5  ;;  %v839_v14 = vld [vmem:[%s209_s23 + $0x18] sm:$0xff]  ;;  %v853_v22 = vld [vmem:[%s1113_s28] sm:$0xff]   ;;  %v996_v4 = vld [vmem:[%s1113_s28 + $0x8] sm:$0xff]  }
  0x13   : > { %v843_v15 = vld [vmem:[%s209_s23 + $0x38] sm:$0xff]  ;;  %v999_v24 = vld [vmem:[%s1113_s28 + $0x20] sm:$0xff]   ;;  %v854_v27 = vunpack.c.l.bf16 %v853_v22  ;;  %v855_v30 = vunpack.c.h.bf16 %v853_v22  ;;  %v1004_v22 = vld [vmem:[%s1113_s28 + $0x48] sm:$0xff]  }
  0x14   : > { %v847_v16 = vld [vmem:[%s209_s23 + $0x58] sm:$0xff]  ;;  %v870_v28 = vunpack.c.l.bf16 %v999_v24  ;;  %v871_v32 = vunpack.c.h.bf16 %v999_v24  ;;  %v1003_v37 = vld [vmem:[%s1113_s28 + $0x40] sm:$0xff]  }
  0x15   : > { %v851_v17 = vld [vmem:[%s209_s23 + $0x78] sm:$0xff]  ;;  %v1007_v38 = vld [vmem:[%s1113_s28 + $0x60] sm:$0xff]   ;;  %v886_v47 = vunpack.c.l.bf16 %v1003_v37  ;;  %v887_v52 = vunpack.c.h.bf16 %v1003_v37  ;;  %v891_v37 = vunpack.c.h.bf16 %v1004_v22 }
  0x16   : > { %v902_v48 = vunpack.c.l.bf16 %v1007_v38  ;;  %v903_v54 = vunpack.c.h.bf16 %v1007_v38 }
  0x20   : > { %819 = vmatmul.msk.bf16.gmra.mxu0 %vm341_vm1, %v837_v6  ;;  %823 = vmatmul.msk.bf16.gmra.mxu1 %vm341_vm1, %v841_v7  ;;  %v1000_v6 = vld [vmem:[%s1113_s28 + $0x28] sm:$0xff]  }
  0x21   : > { %827 = vmatmul.msk.bf16.gmra.mxu2 %vm341_vm1, %v845_v8 }
  0x22   : > { %831 = vmatmul.msk.bf16.gmra.mxu3 %vm341_vm1, %v849_v9 }
  0x30   : > { %820 = vmatmul.msk.bf16.gmra.mxu0 %vm341_vm1, %v838_v10  ;;  %824 = vmatmul.msk.bf16.gmra.mxu1 %vm341_vm1, %v842_v11  ;;  %v858_v11 = vunpack.c.l.bf16 %v996_v4 }
  0x31   : > { %828 = vmatmul.msk.bf16.gmra.mxu2 %vm341_vm1, %v846_v12  ;;  %v874_v12 = vunpack.c.l.bf16 %v1000_v6 }
  0x32   : > { %832 = vmatmul.msk.bf16.gmra.mxu3 %vm341_vm1, %v850_v13 }
  0x40   : > { %821 = vmatmul.msk.bf16.gmra.mxu0 %vm341_vm1, %v839_v14  ;;  %825 = vmatmul.msk.bf16.gmra.mxu1 %vm341_vm1, %v843_v15  ;;  %v859_v14 = vunpack.c.h.bf16 %v996_v4 }
  0x41   : > { %829 = vmatmul.msk.bf16.gmra.mxu2 %vm341_vm1, %v847_v16  ;;  %v875_v16 = vunpack.c.h.bf16 %v1000_v6  ;;  %v1005_v6 = vld [vmem:[%s1113_s28 + $0x50] sm:$0xff]  }
  0x42   : > { %833 = vmatmul.msk.bf16.gmra.mxu3 %vm341_vm1, %v851_v17 }
  0x8d   : > { %v403_v18 = vpop.f32.mrf.mxu0  ;;  %v423_v19 = vpop.f32.mrf.mxu1 }
  0x8e   : > { %v404_v21 = vadd.f32 %v1107_v20, %v403_v18  ;;  %v424_v23 = vadd.f32 %v1107_v20, %v423_v19 }
  0x90   : > { %v483_v33 = vmax.f32 %v404_v21, 0.0  ;;  %v491_v34 = vmax.f32 %v424_v23, 0.0  ;;  %v1008_v23 = vld [vmem:[%s1113_s28 + $0x68] sm:$0xff]  }
  0x92   : > { %v579_v43 = vadd.f32 %v854_v27, %v483_v33  ;;  %v587_v44 = vadd.f32 %v870_v28, %v491_v34  ;;  %v906_v33 = vunpack.c.l.bf16 %v1008_v23 }
  0x94   : > { %v443_v25 = vpop.f32.mrf.mxu2 }
  0x95   : > { %v463_v26 = vpop.f32.mrf.mxu3  ;;  %v405_v29 = vpop.f32.mrf.mxu0  ;;  %v444_v41 = vadd.f32 %v1107_v20, %v443_v25 }
  0x96   : > { %v425_v31 = vpop.f32.mrf.mxu1  ;;  %v406_v35 = vadd.f32 %v1107_v20, %v405_v29  ;;  %v464_v42 = vadd.f32 %v1107_v20, %v463_v26 }
  0x97   : > { %v426_v36 = vadd.f32 %v1107_v20, %v425_v31  ;;  %v499_v55 = vmax.f32 %v444_v41, 0.0 }
  0x98   : > { %v484_v39 = vmax.f32 %v406_v35, 0.0  ;;  %v507_v56 = vmax.f32 %v464_v42, 0.0 }
  0x99   : > { %v492_v40 = vmax.f32 %v426_v36, 0.0  ;;  %v595_v63 = vadd.f32 %v886_v47, %v499_v55  ;;  %v1001_v55 = vld [vmem:[%s1113_s28 + $0x30] sm:$0xff]  }
  0x9a   : > { %v580_v45 = vadd.f32 %v855_v30, %v484_v39  ;;  %v603_v0 = vadd.f32 %v902_v48, %v507_v56  ;;  %v907_v39 = vunpack.c.h.bf16 %v1008_v23 }
  0x9b   : > { %v588_v46 = vadd.f32 %v871_v32, %v492_v40  ;;  %v890_v32 = vunpack.c.l.bf16 %v1004_v22  ;;  %v895_v22 = vunpack.c.h.bf16 %v1005_v6 }
  0x9c   : > { %v919_v49 = vpack.c.bf16 %v580_v45, %v579_v43  ;;  %v445_v51 = vpop.f32.mrf.mxu2 }
  0x9d   : > { %v939_v50 = vpack.c.bf16 %v588_v46, %v587_v44  ;;  %v465_v53 = vpop.f32.mrf.mxu3  ;;  %v446_v57 = vadd.f32 %v1107_v20, %v445_v51  ;;  %v408_v59 = vpop.f32.mrf.mxu0 }
  0x9e   : > { %v466_v58 = vadd.f32 %v1107_v20, %v465_v53  ;;  %v428_v60 = vpop.f32.mrf.mxu1  ;;  %920 = vst [vmem:[%s1129_s5] sm:$0xff] %v919_v49   ;;  %v409_v3 = vadd.f32 %v1107_v20, %v408_v59  ;;  %v997_v53 = vld [vmem:[%s1113_s28 + $0x10] sm:$0xff]  }
  0x9f   : > { %1014 = vst [vmem:[%s1129_s5 + $0x20] sm:$0xff] %v939_v50   ;;  %v500_v61 = vmax.f32 %v446_v57, 0.0  ;;  %v429_v5 = vadd.f32 %v1107_v20, %v428_v60  ;;  %v862_v60 = vunpack.c.l.bf16 %v997_v53 }
  0xa0   : > { %v508_v62 = vmax.f32 %v466_v58, 0.0  ;;  %v485_v17 = vmax.f32 %v409_v3, 0.0 }
  0xa1   : > { %v596_v1 = vadd.f32 %v887_v52, %v500_v61  ;;  %v493_v18 = vmax.f32 %v429_v5, 0.0  ;;  %v878_v61 = vunpack.c.l.bf16 %v1001_v55 }
  0xa2   : > { %v604_v2 = vadd.f32 %v903_v54, %v508_v62  ;;  %v581_v28 = vadd.f32 %v858_v11, %v485_v17 }
  0xa3   : > { %v959_v7 = vpack.c.bf16 %v596_v1, %v595_v63  ;;  %v589_v29 = vadd.f32 %v874_v12, %v493_v18  ;;  %v863_v63 = vunpack.c.h.bf16 %v997_v53  ;;  %v879_v1 = vunpack.c.h.bf16 %v1001_v55  ;;  %v1006_v55 = vld [vmem:[%s1113_s28 + $0x58] sm:$0xff]  }
  0xa4   : > { %v979_v8 = vpack.c.bf16 %v604_v2, %v603_v0  ;;  %v448_v9 = vpop.f32.mrf.mxu2 }
  0xa5   : > { %v468_v10 = vpop.f32.mrf.mxu3  ;;  %1018 = vst [vmem:[%s1129_s5 + $0x40] sm:$0xff] %v959_v7   ;;  %v410_v13 = vpop.f32.mrf.mxu0  ;;  %v449_v26 = vadd.f32 %v1107_v20, %v448_v9  ;;  %v1009_v7 = vld [vmem:[%s1113_s28 + $0x70] sm:$0xff]  }
  0xa6   : > { %v430_v15 = vpop.f32.mrf.mxu1  ;;  %1022 = vst [vmem:[%s1129_s5 + $0x60] sm:$0xff] %v979_v8   ;;  %v411_v19 = vadd.f32 %v1107_v20, %v410_v13  ;;  %v469_v27 = vadd.f32 %v1107_v20, %v468_v10  ;;  %v910_v17 = vunpack.c.l.bf16 %v1009_v7 }
  0xa7   : > { %v431_v21 = vadd.f32 %v1107_v20, %v430_v15  ;;  %v501_v40 = vmax.f32 %v449_v26, 0.0 }
  0xa8   : > { %v486_v24 = vmax.f32 %v411_v19, 0.0  ;;  %v509_v41 = vmax.f32 %v469_v27, 0.0 }
  0xa9   : > { %v494_v25 = vmax.f32 %v431_v21, 0.0  ;;  %v597_v48 = vadd.f32 %v890_v32, %v501_v40  ;;  %v1002_v40 = vld [vmem:[%s1113_s28 + $0x38] sm:$0xff]  }
  0xaa   : > { %v582_v30 = vadd.f32 %v859_v14, %v486_v24  ;;  %v605_v49 = vadd.f32 %v906_v33, %v509_v41  ;;  %v911_v24 = vunpack.c.h.bf16 %v1009_v7 }
  0xab   : > { %v590_v31 = vadd.f32 %v875_v16, %v494_v25  ;;  %v894_v16 = vunpack.c.l.bf16 %v1005_v6  ;;  %v899_v6 = vunpack.c.h.bf16 %v1006_v55 }
  0xac   : > { %v924_v34 = vpack.c.bf16 %v582_v30, %v581_v28  ;;  %v450_v36 = vpop.f32.mrf.mxu2 }
  0xad   : > { %v944_v35 = vpack.c.bf16 %v590_v31, %v589_v29  ;;  %v470_v38 = vpop.f32.mrf.mxu3  ;;  %v451_v42 = vadd.f32 %v1107_v20, %v450_v36  ;;  %v413_v44 = vpop.f32.mrf.mxu0 }
  0xae   : > { %v471_v43 = vadd.f32 %v1107_v20, %v470_v38  ;;  %v433_v45 = vpop.f32.mrf.mxu1  ;;  %1011 = vst [vmem:[%s1129_s5 + $0x8] sm:$0xff] %v924_v34   ;;  %v414_v52 = vadd.f32 %v1107_v20, %v413_v44  ;;  %v998_v38 = vld [vmem:[%s1113_s28 + $0x18] sm:$0xff]  }
  0xaf   : > { %1015 = vst [vmem:[%s1129_s5 + $0x28] sm:$0xff] %v944_v35   ;;  %v502_v46 = vmax.f32 %v451_v42, 0.0  ;;  %v434_v54 = vadd.f32 %v1107_v20, %v433_v45  ;;  %v866_v45 = vunpack.c.l.bf16 %v998_v38 }
  0xb0   : > { %v510_v47 = vmax.f32 %v471_v43, 0.0  ;;  %v487_v2 = vmax.f32 %v414_v52, 0.0 }
  0xb1   : > { %v598_v50 = vadd.f32 %v891_v37, %v502_v46  ;;  %v495_v3 = vmax.f32 %v434_v54, 0.0  ;;  %v882_v46 = vunpack.c.l.bf16 %v1002_v40 }
  0xb2   : > { %v606_v51 = vadd.f32 %v907_v39, %v510_v47  ;;  %v583_v12 = vadd.f32 %v862_v60, %v487_v2 }
  0xb3   : > { %v964_v56 = vpack.c.bf16 %v598_v50, %v597_v48  ;;  %v591_v13 = vadd.f32 %v878_v61, %v495_v3  ;;  %v867_v48 = vunpack.c.h.bf16 %v998_v38  ;;  %v883_v50 = vunpack.c.h.bf16 %v1002_v40 }
  0xb4   : > { %v984_v57 = vpack.c.bf16 %v606_v51, %v605_v49  ;;  %v453_v58 = vpop.f32.mrf.mxu2 }
  0xb5   : > { %v473_v59 = vpop.f32.mrf.mxu3  ;;  %1019 = vst [vmem:[%s1129_s5 + $0x48] sm:$0xff] %v964_v56   ;;  %v415_v62 = vpop.f32.mrf.mxu0  ;;  %v454_v10 = vadd.f32 %v1107_v20, %v453_v58  ;;  %v1010_v56 = vld [vmem:[%s1113_s28 + $0x78] sm:$0xff]  }
  0xb6   : > { %v435_v0 = vpop.f32.mrf.mxu1  ;;  %1023 = vst [vmem:[%s1129_s5 + $0x68] sm:$0xff] %v984_v57   ;;  %v416_v4 = vadd.f32 %v1107_v20, %v415_v62  ;;  %v474_v11 = vadd.f32 %v1107_v20, %v473_v59  ;;  %v914_v2 = vunpack.c.l.bf16 %v1010_v56 }
  0xb7   : > { %v436_v5 = vadd.f32 %v1107_v20, %v435_v0  ;;  %v503_v25 = vmax.f32 %v454_v10, 0.0 }
  0xb8   : > { %v488_v8 = vmax.f32 %v416_v4, 0.0  ;;  %v511_v26 = vmax.f32 %v474_v11, 0.0 }
  0xb9   : > { %v496_v9 = vmax.f32 %v436_v5, 0.0  ;;  %v599_v33 = vadd.f32 %v894_v16, %v503_v25 }
  0xba   : > { %v584_v14 = vadd.f32 %v863_v63, %v488_v8  ;;  %v607_v34 = vadd.f32 %v910_v17, %v511_v26  ;;  %v915_v8 = vunpack.c.h.bf16 %v1010_v56 }
  0xbb   : > { %v592_v15 = vadd.f32 %v879_v1, %v496_v9  ;;  %v898_v1 = vunpack.c.l.bf16 %v1006_v55 }
  0xbc   : > { %v929_v18 = vpack.c.bf16 %v584_v14, %v583_v12  ;;  %v455_v21 = vpop.f32.mrf.mxu2 }
  0xbd   : > { %v949_v19 = vpack.c.bf16 %v592_v15, %v591_v13  ;;  %v475_v23 = vpop.f32.mrf.mxu3  ;;  %v456_v27 = vadd.f32 %v1107_v20, %v455_v21  ;;  %v418_v29 = vpop.f32.mrf.mxu0 }
  0xbe   : > { %v476_v28 = vadd.f32 %v1107_v20, %v475_v23  ;;  %v438_v30 = vpop.f32.mrf.mxu1  ;;  %1012 = vst [vmem:[%s1129_s5 + $0x10] sm:$0xff] %v929_v18   ;;  %v419_v37 = vadd.f32 %v1107_v20, %v418_v29 }
  0xbf   : > { %1016 = vst [vmem:[%s1129_s5 + $0x30] sm:$0xff] %v949_v19   ;;  %v504_v31 = vmax.f32 %v456_v27, 0.0  ;;  %v439_v39 = vadd.f32 %v1107_v20, %v438_v30 }
  0xc0   : > { %v512_v32 = vmax.f32 %v476_v28, 0.0  ;;  %v489_v51 = vmax.f32 %v419_v37, 0.0 }
  0xc1   : > { %v600_v35 = vadd.f32 %v895_v22, %v504_v31  ;;  %v497_v52 = vmax.f32 %v439_v39, 0.0 }
  0xc2   : > { %v608_v36 = vadd.f32 %v911_v24, %v512_v32  ;;  %v585_v61 = vadd.f32 %v866_v45, %v489_v51 }
  0xc3   : > { %v969_v41 = vpack.c.bf16 %v600_v35, %v599_v33  ;;  %v593_v62 = vadd.f32 %v882_v46, %v497_v52 }
  0xc4   : > { %v989_v42 = vpack.c.bf16 %v608_v36, %v607_v34  ;;  %v458_v43 = vpop.f32.mrf.mxu2 }
  0xc5   : > { %v478_v44 = vpop.f32.mrf.mxu3  ;;  %1020 = vst [vmem:[%s1129_s5 + $0x50] sm:$0xff] %v969_v41   ;;  %v420_v47 = vpop.f32.mrf.mxu0  ;;  %v459_v59 = vadd.f32 %v1107_v20, %v458_v43 }
  0xc6   : > { %v440_v49 = vpop.f32.mrf.mxu1  ;;  %1024 = vst [vmem:[%s1129_s5 + $0x70] sm:$0xff] %v989_v42   ;;  %v421_v53 = vadd.f32 %v1107_v20, %v420_v47  ;;  %v479_v60 = vadd.f32 %v1107_v20, %v478_v44 }
  0xc7   : > { %v441_v54 = vadd.f32 %v1107_v20, %v440_v49  ;;  %v505_v9 = vmax.f32 %v459_v59, 0.0 }
  0xc8   : > { %v490_v57 = vmax.f32 %v421_v53, 0.0  ;;  %v513_v10 = vmax.f32 %v479_v60, 0.0 }
  0xc9   : > { %v498_v58 = vmax.f32 %v441_v54, 0.0  ;;  %v601_v15 = vadd.f32 %v898_v1, %v505_v9 }
  0xca   : > { %v586_v63 = vadd.f32 %v867_v48, %v490_v57  ;;  %v609_v16 = vadd.f32 %v914_v2, %v513_v10 }
  0xcb   : > { %v594_v0 = vadd.f32 %v883_v50, %v498_v58 }
  0xcc   : > { %v934_v3 = vpack.c.bf16 %v586_v63, %v585_v61  ;;  %v460_v5 = vpop.f32.mrf.mxu2 }
  0xcd   : > { %v954_v4 = vpack.c.bf16 %v594_v0, %v593_v62  ;;  %v480_v7 = vpop.f32.mrf.mxu3  ;;  %v461_v11 = vadd.f32 %v1107_v20, %v460_v5 }
  0xce   : > { %v481_v12 = vadd.f32 %v1107_v20, %v480_v7  ;;  %1013 = vst [vmem:[%s1129_s5 + $0x18] sm:$0xff] %v934_v3  }
  0xcf   : > { %1017 = vst [vmem:[%s1129_s5 + $0x38] sm:$0xff] %v954_v4   ;;  %v506_v13 = vmax.f32 %v461_v11, 0.0 }
  0xd0   : > { %v514_v14 = vmax.f32 %v481_v12, 0.0 }
  0xd1   : > { %v602_v17 = vadd.f32 %v899_v6, %v506_v13 }
  0xd2   : > { %v610_v18 = vadd.f32 %v915_v8, %v514_v14 }
  0xd3   : > { %v974_v19 = vpack.c.bf16 %v602_v17, %v601_v15 }
  0xd4   : > { %v994_v21 = vpack.c.bf16 %v610_v18, %v609_v16 }
  0xd5   : > { %1021 = vst [vmem:[%s1129_s5 + $0x58] sm:$0xff] %v974_v19  }
  0xd6   : > { %1025 = vst [vmem:[%s1129_s5 + $0x78] sm:$0xff] %v994_v21  }
  0xd7 PF: > { %s14_s15 = sadd.s32 1, %s1044_s15  }
  0xd8   : > { %p11_p4 = scmp.ge.s32.totalorder %s14_s15, 4  }
  0xda   :  { %13 = sbr.rel (!%p11_p4) target bundleno = 1 (0x1), region = 69 }

// kernel: decoder_forward.3
= control target key start
LH: loop header
LB: loop body
LE: loop exit
PB: predicated region body
PF: predicated region fallthrough
CT: control target
= control target key end

     0   :  { %12 = vsyncpa [#allocation4], 0  ;;  %s12526_s0 = inlined_call_operand.vmem [shape: bf16[2,18,18,128], index: 0, kind: input, shape index: {}]   ;;  %s12527_s1 = inlined_call_operand.vmem [shape: bf16[9,128,256], index: 1, kind: input, shape index: {}]   ;;  %s12528_s2 = inlined_call_operand.vmem [shape: f32[1,256], index: 2, kind: input, shape index: {}]   ;;  %s12529_s3 = inlined_call_operand.vmem [shape: bf16[256,128], index: 3, kind: input, shape index: {}]   ;;  %s12530_s4 = inlined_call_operand.vmem [shape: f32[1,128], index: 4, kind: input, shape index: {}]   ;;  %s12531_s5 = inlined_call_operand.hbm [shape: f32[512,256], index: 5, kind: output, shape index: {0}]   ;;  %s12532_s6 = inlined_call_operand.vmem [shape: f32[512,128], index: 6, kind: output, shape index: {1}]  }
   0x1   :  { %14 = vsyncpa [#allocation4 + $0x1], 0  ;;  %s9694_s21 = smov 0   ;;  %s9696_s22 = smov 0  }
   0x2   :  { %s9698_s23 = smov 0   ;;  %s9700_s24 = smov 0  }
   0x3   :  { %s9702_s25 = smov 0   ;;  %s9704_s26 = smov 0  }
   0x4 LB: > { %s8029_s27 = sadd.s32 4294967295, %s9655_s26   ;;  %s8030_s28 = sadd.s32 4294967294, %s9655_s26   ;;  %s9655_s26 = sphi %s9704_s26, %s20_s26   ;;  %s9651_s25 = sphi %s9702_s25, %s12783_s25   ;;  %s9647_s24 = sphi %s9700_s24, %s12782_s24   ;;  %s9643_s23 = sphi %s9698_s23, %s12781_s23   ;;  %s9639_s22 = sphi %s9696_s22, %s12780_s22   ;;  %s9635_s21 = sphi %s9694_s21, %s12779_s21  }
   0x5   : > { %s32_s29 = sadd.s32 1, %s9651_s25  ;;  %s151_s30 = sadd.s32 1, %s9643_s23 }
   0x6   : > { %p34_p0 = scmp.ge.s32.totalorder %s32_s29, 2  ;;  %p161_p1 = scmp.ne.s32.totalorder %s9643_s23, %s9639_s22 }
   0x7   : > { %p162_p2 = scmp.eq.s32.totalorder %s8029_s27, 1  ;;  %p167_p3 = scmp.ne.s32.totalorder %s9639_s22, %s9635_s21 }
   0x8   : > { %s12785_s29 = smov (%p34_p0, %s32_s29), 0  ;;  %p168_p5 = scmp.eq.s32.totalorder %s8030_s28, 1 }
   0x9   : > { %p9734_p4 = por %p162_p2, %p161_p1  ;;  %s148_s8 = ssub.s32 %s9651_s25, %s12785_s29 }
   0xa   : > { %p8033_p6 = scmp.ge.s32.totalorder %s9655_s26, 1  ;;  %p149_p7 = scmp.eq.s32.totalorder %s148_s8, 0 }
   0xb   : > { %p9741_p8 = por %p168_p5, %p167_p3  ;;  %p234_p9 = scmp.lt.s32.totalorder %s9655_s26, 3 }
   0xc   : > { %s9747_s10 = scalar_select %p149_p7, %s9643_s23, %s151_s30  }
   0xd   : > { %p235_p10 = pnand %p8033_p6, %p234_p9 }
   0xf   : > { %238 = sbr.rel (%p235_p10) target bundleno = 1605 (0x645), region = 40 }
  0x14   : > { %v8160_v0 = vld [vmem:[%s12527_s1 + $0x70] sm:$0xf]  ;;  %v9339_v1 = vld [vmem:[%s12527_s1 + $0x74] sm:$0xf0]  ;;  %v9338_v2 = vld [vmem:[%s12527_s1 + $0x74] sm:$0xf] }
  0x15   : > { %v8161_v3 = vor.u32 %v9339_v1, %v8160_v0  ;;  %v8162_v4 = vld [vmem:[%s12527_s1 + $0x78] sm:$0xf0]  ;;  %v8240_v5 = vld [vmem:[%s12527_s1 + $0xf0] sm:$0xf]  ;;  %v9355_v6 = vld [vmem:[%s12527_s1 + $0xf4] sm:$0xf0] }
  0x16   : > { %v8165_v7 = vor.u32 %v9338_v2, %v8162_v4  ;;  %v8241_v8 = vor.u32 %v9355_v6, %v8240_v5  ;;  %v9354_v9 = vld [vmem:[%s12527_s1 + $0xf4] sm:$0xf]  ;;  %v8242_v10 = vld [vmem:[%s12527_s1 + $0xf8] sm:$0xf0]  ;;  %v8152_v11 = vld [vmem:[%s12527_s1 + $0x60] sm:$0xf] }
  0x17   : > { %641 = vmatpush.bf16.msra.mxu0 %v8161_v3  ;;  %v8245_v12 = vor.u32 %v9354_v9, %v8242_v10  ;;  %v9337_v13 = vld [vmem:[%s12527_s1 + $0x64] sm:$0xf0]  ;;  %v9336_v14 = vld [vmem:[%s12527_s1 + $0x64] sm:$0xf]  ;;  %v8154_v15 = vld [vmem:[%s12527_s1 + $0x68] sm:$0xf0] }
  0x18   : > { %730 = vmatpush.bf16.msra.mxu1 %v8165_v7  ;;  %1607 = vmatpush.bf16.msra.mxu2 %v8241_v8  ;;  %v8153_v16 = vor.u32 %v9337_v13, %v8152_v11  ;;  %v8157_v17 = vor.u32 %v9336_v14, %v8154_v15  ;;  %v8232_v18 = vld [vmem:[%s12527_s1 + $0xe0] sm:$0xf]  ;;  %v9353_v19 = vld [vmem:[%s12527_s1 + $0xe4] sm:$0xf0]  ;;  %v9352_v20 = vld [vmem:[%s12527_s1 + $0xe4] sm:$0xf] }
  0x19   : > { %1696 = vmatpush.bf16.msra.mxu3 %v8245_v12  ;;  %v8233_v21 = vor.u32 %v9353_v19, %v8232_v18  ;;  %v8234_v22 = vld [vmem:[%s12527_s1 + $0xe8] sm:$0xf0]  ;;  %v8144_v23 = vld [vmem:[%s12527_s1 + $0x50] sm:$0xf]  ;;  %v9335_v24 = vld [vmem:[%s12527_s1 + $0x54] sm:$0xf0] }
  0x1a   : > { %v8237_v25 = vor.u32 %v9352_v20, %v8234_v22  ;;  %v9334_v26 = vld [vmem:[%s12527_s1 + $0x54] sm:$0xf]  ;;  %v8146_v27 = vld [vmem:[%s12527_s1 + $0x58] sm:$0xf0]  ;;  %v8224_v28 = vld [vmem:[%s12527_s1 + $0xd0] sm:$0xf]  ;;  %v8145_v29 = vor.u32 %v9335_v24, %v8144_v23 }
  0x1b   : > { %642 = vmatpush.bf16.msra.mxu0 %v8153_v16  ;;  %v9351_v30 = vld [vmem:[%s12527_s1 + $0xd4] sm:$0xf0]  ;;  %v9350_v31 = vld [vmem:[%s12527_s1 + $0xd4] sm:$0xf]  ;;  %v8226_v32 = vld [vmem:[%s12527_s1 + $0xd8] sm:$0xf0]  ;;  %v8149_v33 = vor.u32 %v9334_v26, %v8146_v27 }
  0x1c   : > { %731 = vmatpush.bf16.msra.mxu1 %v8157_v17  ;;  %1608 = vmatpush.bf16.msra.mxu2 %v8233_v21  ;;  %v8225_v34 = vor.u32 %v9351_v30, %v8224_v28  ;;  %v8136_v35 = vld [vmem:[%s12527_s1 + $0x40] sm:$0xf]  ;;  %v9333_v36 = vld [vmem:[%s12527_s1 + $0x44] sm:$0xf0]  ;;  %v9332_v37 = vld [vmem:[%s12527_s1 + $0x44] sm:$0xf]  ;;  %v8229_v38 = vor.u32 %v9350_v31, %v8226_v32 }
  0x1d   : > { %1697 = vmatpush.bf16.msra.mxu3 %v8237_v25  ;;  %v8138_v39 = vld [vmem:[%s12527_s1 + $0x48] sm:$0xf0]  ;;  %v8216_v40 = vld [vmem:[%s12527_s1 + $0xc0] sm:$0xf]  ;;  %v9349_v41 = vld [vmem:[%s12527_s1 + $0xc4] sm:$0xf0]  ;;  %v8137_v44 = vor.u32 %v9333_v36, %v8136_v35 }
  0x1e   : > { %v9348_v42 = vld [vmem:[%s12527_s1 + $0xc4] sm:$0xf]  ;;  %v8218_v43 = vld [vmem:[%s12527_s1 + $0xc8] sm:$0xf0]  ;;  %v8141_v45 = vor.u32 %v9332_v37, %v8138_v39  ;;  %v8217_v46 = vor.u32 %v9349_v41, %v8216_v40  ;;  %v8128_v47 = vld [vmem:[%s12527_s1 + $0x30] sm:$0xf] }
  0x1f   : > { %643 = vmatpush.bf16.msra.mxu0 %v8145_v29  ;;  %v9331_v48 = vld [vmem:[%s12527_s1 + $0x34] sm:$0xf0]  ;;  %v9330_v49 = vld [vmem:[%s12527_s1 + $0x34] sm:$0xf]  ;;  %v8221_v50 = vor.u32 %v9348_v42, %v8218_v43  ;;  %v8130_v51 = vld [vmem:[%s12527_s1 + $0x38] sm:$0xf0] }
  0x20   : > { %732 = vmatpush.bf16.msra.mxu1 %v8149_v33  ;;  %1609 = vmatpush.bf16.msra.mxu2 %v8225_v34  ;;  %v8208_v52 = vld [vmem:[%s12527_s1 + $0xb0] sm:$0xf]  ;;  %v9347_v53 = vld [vmem:[%s12527_s1 + $0xb4] sm:$0xf0]  ;;  %v9346_v54 = vld [vmem:[%s12527_s1 + $0xb4] sm:$0xf]  ;;  %v8129_v56 = vor.u32 %v9331_v48, %v8128_v47  ;;  %v8133_v57 = vor.u32 %v9330_v49, %v8130_v51 }
  0x21   : > { %1698 = vmatpush.bf16.msra.mxu3 %v8229_v38  ;;  %v8210_v55 = vld [vmem:[%s12527_s1 + $0xb8] sm:$0xf0]  ;;  %v8209_v58 = vor.u32 %v9347_v53, %v8208_v52  ;;  %v8120_v59 = vld [vmem:[%s12527_s1 + $0x20] sm:$0xf]  ;;  %v9329_v60 = vld [vmem:[%s12527_s1 + $0x24] sm:$0xf0] }
  0x22   : > { %v9328_v61 = vld [vmem:[%s12527_s1 + $0x24] sm:$0xf]  ;;  %v8213_v62 = vor.u32 %v9346_v54, %v8210_v55  ;;  %v8122_v63 = vld [vmem:[%s12527_s1 + $0x28] sm:$0xf0]  ;;  %v8200_v0 = vld [vmem:[%s12527_s1 + $0xa0] sm:$0xf]  ;;  %v8121_v4 = vor.u32 %v9329_v60, %v8120_v59 }
  0x23   : > { %644 = vmatpush.bf16.msra.mxu0 %v8137_v44  ;;  %v9345_v1 = vld [vmem:[%s12527_s1 + $0xa4] sm:$0xf0]  ;;  %v9344_v2 = vld [vmem:[%s12527_s1 + $0xa4] sm:$0xf]  ;;  %v8202_v3 = vld [vmem:[%s12527_s1 + $0xa8] sm:$0xf0]  ;;  %v8125_v8 = vor.u32 %v9328_v61, %v8122_v63 }
  0x24   : > { %733 = vmatpush.bf16.msra.mxu1 %v8141_v45  ;;  %1610 = vmatpush.bf16.msra.mxu2 %v8217_v46  ;;  %v8112_v5 = vld [vmem:[%s12527_s1 + $0x10] sm:$0xf]  ;;  %v9327_v6 = vld [vmem:[%s12527_s1 + $0x14] sm:$0xf0]  ;;  %v9326_v7 = vld [vmem:[%s12527_s1 + $0x14] sm:$0xf]  ;;  %v8201_v9 = vor.u32 %v9345_v1, %v8200_v0  ;;  %v8205_v13 = vor.u32 %v9344_v2, %v8202_v3 }
  0x25   : > { %1699 = vmatpush.bf16.msra.mxu3 %v8221_v50  ;;  %v8114_v10 = vld [vmem:[%s12527_s1 + $0x18] sm:$0xf0]  ;;  %v8192_v11 = vld [vmem:[%s12527_s1 + $0x90] sm:$0xf]  ;;  %v9343_v12 = vld [vmem:[%s12527_s1 + $0x94] sm:$0xf0]  ;;  %v8113_v20 = vor.u32 %v9327_v6, %v8112_v5 }
  0x26   : > { %v9342_v14 = vld [vmem:[%s12527_s1 + $0x94] sm:$0xf]  ;;  %v8194_v15 = vld [vmem:[%s12527_s1 + $0x98] sm:$0xf0]  ;;  %p270_p11 = scmp.lt.s32.totalorder %s9647_s24, 1  ;;  %v8117_v23 = vor.u32 %v9326_v7, %v8114_v10  ;;  %v8193_v24 = vor.u32 %v9343_v12, %v8192_v11  ;;  %vm2009_vm3 = vcmask 1042432  }
  0x27   : > { %645 = vmatpush.bf16.msra.mxu0 %v8129_v56  ;;  %v8104_v16 = vld [vmem:[%s12527_s1] sm:$0xf]  ;;  %v9325_v17 = vld [vmem:[%s12527_s1 + $0x4] sm:$0xf0]  ;;  %v9324_v18 = vld [vmem:[%s12527_s1 + $0x4] sm:$0xf]  ;;  %v8197_v27 = vor.u32 %v9342_v14, %v8194_v15 }
  0x28   : > { %734 = vmatpush.bf16.msra.mxu1 %v8133_v57  ;;  %1611 = vmatpush.bf16.msra.mxu2 %v8209_v58  ;;  %v8106_v19 = vld [vmem:[%s12527_s1 + $0x8] sm:$0xf0]  ;;  %v8184_v21 = vld [vmem:[%s12527_s1 + $0x80] sm:$0xf]  ;;  %v9341_v22 = vld [vmem:[%s12527_s1 + $0x84] sm:$0xf0]  ;;  %v8105_v30 = vor.u32 %v9325_v17, %v8104_v16 }
  0x29   : > { %1700 = vmatpush.bf16.msra.mxu3 %v8213_v62  ;;  %s271_s30 = scalar_select %p270_p11, %s9647_s24, 1  ;;  %v9340_v25 = vld [vmem:[%s12527_s1 + $0x84] sm:$0xf]  ;;  %v8186_v26 = vld [vmem:[%s12527_s1 + $0x88] sm:$0xf0]  ;;  %v8109_v31 = vor.u32 %v9324_v18, %v8106_v19  ;;  %v8185_v34 = vor.u32 %v9341_v22, %v8184_v21  ;;  %vm2010_vm4 = vcmask 1046532  }
  0x2a   : > { %v8336_v28 = vld [vmem:[%s12527_s1 + $0x170] sm:$0xf]  ;;  %v9371_v29 = vld [vmem:[%s12527_s1 + $0x174] sm:$0xf0]  ;;  %vm995_vm0 = vsmask.f32 3328  ;;  %v8189_v35 = vor.u32 %v9340_v25, %v8186_v26  ;;  %vm10351_vm5 = vmor %vm2009_vm3, %vm2010_vm4 }
  0x2b   : > { %646 = vmatpush.bf16.msra.mxu0 %v8121_v4  ;;  %s9518_s14 = smul.u32 216, %s271_s30  ;;  %v9370_v32 = vld [vmem:[%s12527_s1 + $0x174] sm:$0xf]  ;;  %v8338_v33 = vld [vmem:[%s12527_s1 + $0x178] sm:$0xf0]  ;;  %v8337_v38 = vor.u32 %v9371_v29, %v8336_v28  ;;  %s259_s18 = sand.u32 1, %s9639_s22  }
  0x2c   : > { %735 = vmatpush.bf16.msra.mxu1 %v8125_v8  ;;  %1612 = vmatpush.bf16.msra.mxu2 %v8201_v9  ;;  %vm996_vm1 = vsmask.f32 7440  ;;  %v8341_v46 = vor.u32 %v9370_v32, %v8338_v33  ;;  %v8328_v14 = vld [vmem:[%s12527_s1 + $0x160] sm:$0xf]  ;;  %v9369_v15 = vld [vmem:[%s12527_s1 + $0x164] sm:$0xf0] }
  0x2d   : > { %1701 = vmatpush.bf16.msra.mxu3 %v8205_v13  ;;  %s9952_s27 = scalar_lea.vmem %s12526_s0, %s9518_s14  ;;  %vm9968_vm2 = vmor %vm995_vm0, %vm996_vm1  ;;  %v8329_v18 = vor.u32 %v9369_v15, %v8328_v14  ;;  %v9368_v19 = vld [vmem:[%s12527_s1 + $0x164] sm:$0xf]  ;;  %s8034_s19 = sshll.u32 %s259_s18, 9 }
  0x2e   : > { %v947_v36 = vld [vmem:[%s9952_s27] sm:$0xf]  ;;  %v948_v37 = vld [vmem:[%s9952_s27 + $0x4] sm:$0xf]  ;;  %v949_v39 = vld [vmem:[%s9952_s27 + $0x8] sm:$0x1] }
  0x2f   : > { %647 = vmatpush.bf16.msra.mxu0 %v8113_v20  ;;  %v999_v40 = vshrl.u32 %v947_v36, 16  ;;  %v1002_v41 = vshll.u32 %v947_v36, 16  ;;  %v1008_v42 = vshll.u32 %v948_v37, 16  ;;  %v1012_v43 = vshrl.u32 %v948_v37, 16  ;;  %v9308_v44 = vld [vmem:[%s9952_s27] sm:$0xff]  ;;  %s12148_s20 = scalar_lea.vmem [#allocation3], %s8034_s19 }
  0x30   : > { %736 = vmatpush.bf16.msra.mxu1 %v8117_v23  ;;  %1613 = vmatpush.bf16.msra.mxu2 %v8193_v24  ;;  %v1018_v45 = vshll.u32 %v949_v39, 16  ;;  %v950_v47 = vld [vmem:[%s9952_s27 + $0xc] sm:$0xf]  ;;  %v951_v48 = vld [vmem:[%s9952_s27 + $0x10] sm:$0xf]  ;;  %s9517_s14 = sshll.u32 %s9647_s24, 9 }
  0x31   : > { %1702 = vmatpush.bf16.msra.mxu3 %v8197_v27  ;;  %v1001_v49 = vrot.slane %v999_v40, 4  ;;  %v1004_v50 = vrot.slane %v1002_v41, 5  ;;  %v1010_v51 = vrot.slane %v1008_v42, 5  ;;  %v1014_v52 = vrot.slane %v1012_v43, 4  ;;  %v952_v1 = vld [vmem:[%s9952_s27 + $0x14] sm:$0x1]  ;;  %s7913_s17 = scalar_lea.hbm %s12531_s5, %s9517_s14 }
  0x32   : > { %v1023_v53 = vshrl.u32 %v950_v47, 16  ;;  %v1026_v54 = vshll.u32 %v950_v47, 16  ;;  %v1032_v55 = vshll.u32 %v951_v48, 16  ;;  %v1020_v58 = vrot.slane %v1018_v45, 5  ;;  %v953_v12 = vld [vmem:[%s9952_s27 + $0x18] sm:$0xf] }
  0x33   : > { %648 = vmatpush.bf16.msra.mxu0 %v8105_v30  ;;  %v1005_v56 = vor.u32 %v1004_v50, %v1001_v49  ;;  %v1015_v57 = vor.u32 %v1014_v52, %v1010_v51  ;;  %v1036_v59 = vshrl.u32 %v951_v48, 16  ;;  %v1042_v8 = vshll.u32 %v952_v1, 16  ;;  %v8330_v20 = vld [vmem:[%s12527_s1 + $0x168] sm:$0xf0]  ;;  %v954_v21 = vld [vmem:[%s9952_s27 + $0x1c] sm:$0xf] }
  0x34   : > { %737 = vmatpush.bf16.msra.mxu1 %v8109_v31  ;;  %1614 = vmatpush.bf16.msra.mxu2 %v8185_v34  ;;  %v1025_v61 = vrot.slane %v1023_v53, 4  ;;  %v1028_v62 = vrot.slane %v1026_v54, 5  ;;  %v1034_v2 = vrot.slane %v1032_v55, 5  ;;  %v8333_v22 = vor.u32 %v9368_v19, %v8330_v20  ;;  %v9309_v23 = vld [vmem:[%s9952_s27 + $0xc] sm:$0xff]  ;;  %v955_v36 = vld [vmem:[%s9952_s27 + $0x20] sm:$0x1] }
  0x35   : > { %1703 = vmatpush.bf16.msra.mxu3 %v8189_v35  ;;  %v1006_v63 = vrot.slane %v1005_v56, 4  ;;  %v1016_v0 = vrot.slane %v1015_v57, 4  ;;  %v1038_v3 = vrot.slane %v1036_v59, 4  ;;  %v1044_v13 = vrot.slane %v1042_v8, 5  ;;  %v956_v41 = vld [vmem:[%s9952_s27 + $0x24] sm:$0xf] }
  0x36   : > { %649 = vmatmul.bf16.vlgmr.msra.gmra.mxu0 %v9308_v44  ;;  %v1029_v9 = vor.u32 %v1028_v62, %v1025_v61  ;;  %v1047_v24 = vshrl.u32 %v953_v12, 16  ;;  %v1050_v25 = vshll.u32 %v953_v12, 16  ;;  %v1056_v28 = vshll.u32 %v954_v21, 16  ;;  %v957_v42 = vld [vmem:[%s9952_s27 + $0x28] sm:$0xf]  ;;  %v9310_v50 = vld [vmem:[%s9952_s27 + $0x18] sm:$0xff] }
  0x37   : > { %2349 = vmatpush.bf16.msrb.mxu0 %v8337_v38  ;;  %738 = vmatmul.bf16.vlgmr.msra.gmra.mxu1 %v9308_v44  ;;  %v1011_v4 = vsel %vm9968_vm2, %v1006_v63, %v1010_v51  ;;  %v1021_v5 = vsel %vm9968_vm2, %v1016_v0, %v1020_v58  ;;  %v1039_v10 = vor.u32 %v1038_v3, %v1034_v2  ;;  %v1060_v29 = vshrl.u32 %v954_v21, 16  ;;  %v958_v59 = vld [vmem:[%s9952_s27 + $0x2c] sm:$0x1]  ;;  %v8322_v8 = vld [vmem:[%s12527_s1 + $0x158] sm:$0xf0]  ;;  %v9311_v12 = vld [vmem:[%s9952_s27 + $0x24] sm:$0xff] }
  0x38   : > { %2438 = vmatpush.bf16.msrb.mxu1 %v8341_v46  ;;  %v1463_v6 = vunpack.c.l.b16 %v1011_v4  ;;  %v1464_v7 = vunpack.c.l.b16 %v1021_v5  ;;  %v1030_v16 = vrot.slane %v1029_v9, 4  ;;  %v1049_v32 = vrot.slane %v1047_v24, 4  ;;  %v8320_v4 = vld [vmem:[%s12527_s1 + $0x150] sm:$0xf]  ;;  %v9367_v5 = vld [vmem:[%s12527_s1 + $0x154] sm:$0xf0] }
  0x39   : > { %v1040_v17 = vrot.slane %v1039_v10, 4  ;;  %v1052_v33 = vrot.slane %v1050_v25, 5  ;;  %v1058_v34 = vrot.slane %v1056_v28, 5  ;;  %v1062_v35 = vrot.slane %v1060_v29, 4  ;;  %v959_v9 = vld [vmem:[%s9952_s27 + $0x30] sm:$0xf] }
  0x3a   : > { %v1495_v11 = vpack.c.b16 %v1464_v7, %v1463_v6  ;;  %v1035_v26 = vsel %vm9968_vm2, %v1030_v16, %v1034_v2  ;;  %v1066_v40 = vshll.u32 %v955_v36, 16  ;;  %v1071_v46 = vshrl.u32 %v956_v41, 16  ;;  %v9366_v6 = vld [vmem:[%s12527_s1 + $0x154] sm:$0xf]  ;;  %v961_v25 = vld [vmem:[%s9952_s27 + $0x38] sm:$0x1] }
  0x3b   : > { %2350 = vmatpush.bf16.msrb.mxu0 %v8329_v18  ;;  %v1045_v27 = vsel %vm9968_vm2, %v1040_v17, %v1044_v13  ;;  %v1465_v30 = vunpack.c.l.b16 %v1035_v26  ;;  %v1053_v38 = vor.u32 %v1052_v33, %v1049_v32  ;;  %v1063_v39 = vor.u32 %v1062_v35, %v1058_v34  ;;  %v960_v10 = vld [vmem:[%s9952_s27 + $0x34] sm:$0xf]  ;;  %s7914_s19 = sshll.u32 %s12148_s20, 4  ;;  %s7894_s28 = scalar_lea.sflag [#allocation4], %s259_s18  ;;  %s7915_s19 = int_to_ptr.vmem [resolvable:$true] %s7914_s19 }
  0x3c   : > { %1615 = vmatmul.bf16.vlgmr.msra.gmra.mxu2 %v1495_v11  ;;  %1704 = vmatmul.bf16.vlgmr.msra.gmra.mxu3 %v1495_v11  ;;  %v1466_v31 = vunpack.c.l.b16 %v1045_v27  ;;  %v1068_v45 = vrot.slane %v1066_v40, 5  ;;  %v1074_v47 = vshll.u32 %v956_v41, 16  ;;  %v1080_v48 = vshll.u32 %v957_v42, 16 }
  0x3d   : > { %2439 = vmatpush.bf16.msrb.mxu1 %v8333_v22  ;;  %v1054_v43 = vrot.slane %v1053_v38, 4  ;;  %v1064_v44 = vrot.slane %v1063_v39, 4  ;;  %v1084_v49 = vshrl.u32 %v957_v42, 16  ;;  %v1073_v53 = vrot.slane %v1071_v46, 4  ;;  %v9312_v39 = vld [vmem:[%s9952_s27 + $0x30] sm:$0xff] }
  0x3e   : > { %v1496_v37 = vpack.c.b16 %v1466_v31, %v1465_v30  ;;  %v1076_v54 = vrot.slane %v1074_v47, 5  ;;  %v1082_v55 = vrot.slane %v1080_v48, 5  ;;  %v1090_v63 = vshll.u32 %v958_v59, 16  ;;  %v962_v30 = vld [vmem:[%s9952_s27 + $0x3c] sm:$0xf] }
  0x3f   : > { %v1059_v51 = vsel %vm9968_vm2, %v1054_v43, %v1058_v34  ;;  %v1069_v52 = vsel %vm9968_vm2, %v1064_v44, %v1068_v45  ;;  %v1086_v56 = vrot.slane %v1084_v49, 4  ;;  %v8321_v7 = vor.u32 %v9367_v5, %v8320_v4  ;;  %v963_v31 = vld [vmem:[%s9952_s27 + $0x40] sm:$0xf]  ;;  %v964_v48 = vld [vmem:[%s9952_s27 + $0x44] sm:$0x1] }
  0x40   : > { %v1467_v57 = vunpack.c.l.b16 %v1059_v51  ;;  %v1468_v58 = vunpack.c.l.b16 %v1069_v52  ;;  %v1077_v61 = vor.u32 %v1076_v54, %v1073_v53  ;;  %v1092_v3 = vrot.slane %v1090_v63, 5  ;;  %v966_v63 = vld [vmem:[%s9952_s27 + $0x4c] sm:$0xf] }
  0x41   : > { %v1087_v62 = vor.u32 %v1086_v56, %v1082_v55  ;;  %v8325_v11 = vor.u32 %v9366_v6, %v8322_v8  ;;  %2351 = vmatpush.bf16.msrb.mxu0 %v8321_v7  ;;  %v1095_v15 = vshrl.u32 %v959_v9, 16  ;;  %v1098_v16 = vshll.u32 %v959_v9, 16  ;;  %v8312_v56 = vld [vmem:[%s12527_s1 + $0x140] sm:$0xf] }
  0x42   : > { %v1497_v0 = vpack.c.b16 %v1468_v58, %v1467_v57  ;;  %v1078_v1 = vrot.slane %v1077_v61, 4  ;;  %v1104_v17 = vshll.u32 %v960_v10, 16  ;;  %v1108_v18 = vshrl.u32 %v960_v10, 16  ;;  %v9365_v57 = vld [vmem:[%s12527_s1 + $0x144] sm:$0xf0] }
  0x43   : > { %v1088_v2 = vrot.slane %v1087_v62, 4  ;;  %2440 = vmatpush.bf16.msrb.mxu1 %v8325_v11  ;;  %v1097_v21 = vrot.slane %v1095_v15, 4  ;;  %v1100_v22 = vrot.slane %v1098_v16, 5  ;;  %v1114_v29 = vshll.u32 %v961_v25, 16  ;;  %v9364_v58 = vld [vmem:[%s12527_s1 + $0x144] sm:$0xf] }
  0x44   : > { %v1083_v13 = vsel %vm9968_vm2, %v1078_v1, %v1082_v55  ;;  %v1110_v24 = vrot.slane %v1108_v18, 4  ;;  %v1119_v35 = vshrl.u32 %v962_v30, 16  ;;  %v1122_v36 = vshll.u32 %v962_v30, 16  ;;  %v8314_v61 = vld [vmem:[%s12527_s1 + $0x148] sm:$0xf0]  ;;  %v9313_v1 = vld [vmem:[%s9952_s27 + $0x3c] sm:$0xff] }
  0x45   : > { %v1093_v14 = vsel %vm9968_vm2, %v1088_v2, %v1092_v3  ;;  %v1469_v19 = vunpack.c.l.b16 %v1083_v13  ;;  %v1101_v27 = vor.u32 %v1100_v22, %v1097_v21  ;;  %v1116_v34 = vrot.slane %v1114_v29, 5  ;;  %v965_v62 = vld [vmem:[%s9952_s27 + $0x48] sm:$0xf] }
  0x46   : > { %654 = vmatmul.bf16.gmra.mxu0 %v9309_v23  ;;  %v1470_v20 = vunpack.c.l.b16 %v1093_v14  ;;  %v1132_v38 = vshrl.u32 %v963_v31, 16  ;;  %v1121_v42 = vrot.slane %v1119_v35, 4  ;;  %v1124_v43 = vrot.slane %v1122_v36, 5  ;;  %v967_v14 = vld [vmem:[%s9952_s27 + $0x50] sm:$0x1] }
  0x47   : > { %743 = vmatmul.bf16.gmra.mxu1 %v9309_v23  ;;  %v1106_v23 = vrot.slane %v1104_v17, 5  ;;  %v1102_v32 = vrot.slane %v1101_v27, 4  ;;  %v1138_v51 = vshll.u32 %v964_v48, 16  ;;  %v8313_v59 = vor.u32 %v9365_v57, %v8312_v56 }
  0x48   : > { %v1498_v26 = vpack.c.b16 %v1470_v20, %v1469_v19  ;;  %v1134_v45 = vrot.slane %v1132_v38, 4  ;;  %v1125_v49 = vor.u32 %v1124_v43, %v1121_v42  ;;  %v1143_v4 = vshrl.u32 %v965_v62, 16  ;;  %v968_v19 = vld [vmem:[%s9952_s27 + $0x54] sm:$0xf]  ;;  %v969_v20 = vld [vmem:[%s9952_s27 + $0x58] sm:$0xf] }
  0x49   : > { %v1111_v28 = vor.u32 %v1110_v24, %v1106_v23  ;;  %v1107_v40 = vsel %vm9968_vm2, %v1102_v32, %v1106_v23  ;;  %v1140_v55 = vrot.slane %v1138_v51, 5  ;;  %2352 = vmatpush.bf16.msrb.mxu0 %v8313_v59  ;;  %v1146_v5 = vshll.u32 %v965_v62, 16  ;;  %v972_v51 = vld [vmem:[%s9952_s27 + $0x64] sm:$0xf] }
  0x4a   : > { %v1471_v46 = vunpack.c.l.b16 %v1107_v40  ;;  %v1126_v53 = vrot.slane %v1125_v49, 4  ;;  %v1152_v6 = vshll.u32 %v966_v63, 16  ;;  %v1156_v7 = vshrl.u32 %v966_v63, 16  ;;  %v8306_v49 = vld [vmem:[%s12527_s1 + $0x138] sm:$0xf0] }
  0x4b   : > { %v1112_v33 = vrot.slane %v1111_v28, 4  ;;  %v1145_v10 = vrot.slane %v1143_v4, 4  ;;  %v1148_v11 = vrot.slane %v1146_v5, 5  ;;  %v1162_v18 = vshll.u32 %v967_v14, 16  ;;  %v9314_v28 = vld [vmem:[%s9952_s27 + $0x48] sm:$0xff] }
  0x4c   : > { %1620 = vmatmul.bf16.gmra.mxu2 %v1496_v37  ;;  %1709 = vmatmul.bf16.gmra.mxu3 %v1496_v37  ;;  %v1128_v37 = vshll.u32 %v963_v31, 16  ;;  %v1158_v13 = vrot.slane %v1156_v7, 4  ;;  %v1167_v24 = vshrl.u32 %v968_v19, 16  ;;  %v1170_v25 = vshll.u32 %v968_v19, 16  ;;  %v8512_v5 = vld [vmem:[%s12527_s1 + $0x1f0] sm:$0xf] }
  0x4d   : > { %v1117_v41 = vsel %vm9968_vm2, %v1112_v33, %v1116_v34  ;;  %v1149_v16 = vor.u32 %v1148_v11, %v1145_v10  ;;  %v1164_v23 = vrot.slane %v1162_v18, 5  ;;  %v1180_v27 = vshrl.u32 %v969_v20, 16  ;;  %v974_v11 = vld [vmem:[%s9952_s27 + $0x6c] sm:$0xf]  ;;  %v8514_v14 = vld [vmem:[%s12527_s1 + $0x1f8] sm:$0xf0] }
  0x4e   : > { %v1130_v44 = vrot.slane %v1128_v37, 5  ;;  %v1472_v47 = vunpack.c.l.b16 %v1117_v41  ;;  %v1169_v31 = vrot.slane %v1167_v24, 4  ;;  %v1172_v32 = vrot.slane %v1170_v25, 5  ;;  %v970_v37 = vld [vmem:[%s9952_s27 + $0x5c] sm:$0x1] }
  0x4f   : > { %v1150_v21 = vrot.slane %v1149_v16, 4  ;;  %v1182_v34 = vrot.slane %v1180_v27, 4  ;;  %v1186_v40 = vshll.u32 %v970_v37, 16  ;;  %v1204_v59 = vshrl.u32 %v972_v51, 16 }
  0x50   : > { %v1499_v52 = vpack.c.b16 %v1472_v47, %v1471_v46  ;;  %v1131_v2 = vsel %vm9968_vm2, %v1126_v53, %v1130_v44  ;;  %v1173_v38 = vor.u32 %v1172_v32, %v1169_v31  ;;  %v9363_v46 = vld [vmem:[%s12527_s1 + $0x134] sm:$0xf0]  ;;  %v9362_v47 = vld [vmem:[%s12527_s1 + $0x134] sm:$0xf]  ;;  %v1215_v19 = vshrl.u32 %v974_v11, 16 }
  0x51   : > { %v1473_v8 = vunpack.c.l.b16 %v1131_v2  ;;  %v9315_v53 = vld [vmem:[%s9952_s27 + $0x54] sm:$0xff]  ;;  %v1206_v2 = vrot.slane %v1204_v59, 4 }
  0x52   : > { %v1174_v42 = vrot.slane %v1173_v38, 4 }
  0x56   : > { %659 = vmatmul.bf16.gmra.mxu0 %v9310_v50 }
  0x57   : > { %748 = vmatmul.bf16.gmra.mxu1 %v9310_v50  ;;  %v1135_v50 = vor.u32 %v1134_v45, %v1130_v44  ;;  %v1188_v44 = vrot.slane %v1186_v40, 5  ;;  %v8304_v45 = vld [vmem:[%s12527_s1 + $0x130] sm:$0xf] }
  0x58   : > { %v8305_v48 = vor.u32 %v9363_v46, %v8304_v45  ;;  %v9361_v45 = vld [vmem:[%s12527_s1 + $0x124] sm:$0xf0]  ;;  %v9360_v46 = vld [vmem:[%s12527_s1 + $0x124] sm:$0xf] }
  0x59   : > { %v1136_v54 = vrot.slane %v1135_v50, 4  ;;  %v971_v50 = vld [vmem:[%s9952_s27 + $0x60] sm:$0xf] }
  0x5a   : > { %2353 = vmatpush.bf16.msrb.mxu0 %v8305_v48  ;;  %v1191_v56 = vshrl.u32 %v971_v50, 16  ;;  %v1194_v57 = vshll.u32 %v971_v50, 16  ;;  %v8298_v48 = vld [vmem:[%s12527_s1 + $0x128] sm:$0xf0]  ;;  %v978_v50 = vld [vmem:[%s9952_s27 + $0x7c] sm:$0xf] }
  0x5b   : > { %v1141_v3 = vsel %vm9968_vm2, %v1136_v54, %v1140_v55 }
  0x5c   : > { %1625 = vmatmul.bf16.gmra.mxu2 %v1497_v0  ;;  %1714 = vmatmul.bf16.gmra.mxu3 %v1497_v0  ;;  %v8317_v0 = vor.u32 %v9364_v58, %v8314_v61  ;;  %v1474_v9 = vunpack.c.l.b16 %v1141_v3  ;;  %v1200_v58 = vshll.u32 %v972_v51, 16  ;;  %v1193_v63 = vrot.slane %v1191_v56, 4  ;;  %v973_v3 = vld [vmem:[%s9952_s27 + $0x68] sm:$0x1]  ;;  %v9317_v56 = vld [vmem:[%s9952_s27 + $0x6c] sm:$0xff] }
  0x5d   : > { %v8301_v51 = vor.u32 %v9360_v46, %v8298_v48 }
  0x5e   : > { %2441 = vmatpush.bf16.msrb.mxu1 %v8317_v0  ;;  %v1500_v15 = vpack.c.b16 %v1474_v9, %v1473_v8  ;;  %v1196_v0 = vrot.slane %v1194_v57, 5  ;;  %v1210_v9 = vshll.u32 %v973_v3, 16 }
  0x60   : > { %v1197_v7 = vor.u32 %v1196_v0, %v1193_v63  ;;  %v1248_v63 = vshll.u32 %v978_v50, 16  ;;  %v1252_v0 = vshrl.u32 %v978_v50, 16 }
  0x66   : > { %664 = vmatmul.bf16.gmra.mxu0 %v9311_v12 }
  0x67   : > { %753 = vmatmul.bf16.gmra.mxu1 %v9311_v12  ;;  %v1154_v12 = vrot.slane %v1152_v6, 5  ;;  %v9403_v6 = vld [vmem:[%s12527_s1 + $0x1f4] sm:$0xf0] }
  0x68   : > { %v8513_v10 = vor.u32 %v9403_v6, %v8512_v5  ;;  %v1250_v6 = vrot.slane %v1248_v63, 5 }
  0x69   : > { %v1159_v17 = vor.u32 %v1158_v13, %v1154_v12  ;;  %v1155_v29 = vsel %vm9968_vm2, %v1150_v21, %v1154_v12  ;;  %v975_v12 = vld [vmem:[%s9952_s27 + $0x70] sm:$0xf]  ;;  %v9402_v13 = vld [vmem:[%s12527_s1 + $0x1f4] sm:$0xf] }
  0x6a   : > { %v1475_v35 = vunpack.c.l.b16 %v1155_v29  ;;  %2948 = vmatpush.bf16.msrb.mxu2 %v8513_v10  ;;  %v8517_v18 = vor.u32 %v9402_v13, %v8514_v14  ;;  %v1224_v21 = vshll.u32 %v975_v12, 16  ;;  %v8504_v14 = vld [vmem:[%s12527_s1 + $0x1e0] sm:$0xf] }
  0x6b   : > { %v1160_v22 = vrot.slane %v1159_v17, 4  ;;  %v1212_v17 = vrot.slane %v1210_v9, 5 }
  0x6c   : > { %1630 = vmatmul.bf16.gmra.mxu2 %v1498_v26  ;;  %1719 = vmatmul.bf16.gmra.mxu3 %v1498_v26  ;;  %v1176_v26 = vshll.u32 %v969_v20, 16  ;;  %v1218_v20 = vshll.u32 %v974_v11, 16 }
  0x6d   : > { %v1165_v30 = vsel %vm9968_vm2, %v1160_v22, %v1164_v23  ;;  %v1228_v22 = vshrl.u32 %v975_v12, 16  ;;  %3037 = vmatpush.bf16.msrb.mxu3 %v8517_v18  ;;  %v9316_v23 = vld [vmem:[%s9952_s27 + $0x60] sm:$0xff] }
  0x6e   : > { %v1178_v33 = vrot.slane %v1176_v26, 5  ;;  %v1476_v36 = vunpack.c.l.b16 %v1165_v30  ;;  %v1220_v29 = vrot.slane %v1218_v20, 5  ;;  %v1226_v30 = vrot.slane %v1224_v21, 5 }
  0x6f   : > { %v1230_v31 = vrot.slane %v1228_v22, 4  ;;  %v980_v22 = vld [vmem:[%s9952_s27 + $0x84] sm:$0xf] }
  0x70   : > { %v1501_v41 = vpack.c.b16 %v1476_v36, %v1475_v35  ;;  %v1179_v54 = vsel %vm9968_vm2, %v1174_v42, %v1178_v33 }
  0x71   : > { %v1477_v61 = vunpack.c.l.b16 %v1179_v54  ;;  %v1231_v36 = vor.u32 %v1230_v31, %v1226_v30 }
  0x73   : > { %v1232_v42 = vrot.slane %v1231_v36, 4 }
  0x76   : > { %669 = vmatmul.bf16.gmra.mxu0 %v9312_v39 }
  0x77   : > { %758 = vmatmul.bf16.gmra.mxu1 %v9312_v39  ;;  %v1183_v39 = vor.u32 %v1182_v34, %v1178_v33  ;;  %v976_v34 = vld [vmem:[%s9952_s27 + $0x74] sm:$0x1] }
  0x78   : > { %v1234_v37 = vshll.u32 %v976_v34, 16 }
  0x79   : > { %v1184_v43 = vrot.slane %v1183_v39, 4 }
  0x7b   : > { %v1189_v55 = vsel %vm9968_vm2, %v1184_v43, %v1188_v44  ;;  %v1236_v43 = vrot.slane %v1234_v37, 5  ;;  %v8296_v44 = vld [vmem:[%s12527_s1 + $0x120] sm:$0xf] }
  0x7c   : > { %1635 = vmatmul.bf16.gmra.mxu2 %v1499_v52  ;;  %1724 = vmatmul.bf16.gmra.mxu3 %v1499_v52  ;;  %v8309_v52 = vor.u32 %v9362_v47, %v8306_v49  ;;  %v1478_v62 = vunpack.c.l.b16 %v1189_v55  ;;  %v8297_v47 = vor.u32 %v9361_v45, %v8296_v44  ;;  %v977_v49 = vld [vmem:[%s9952_s27 + $0x78] sm:$0xf] }
  0x7e   : > { %2442 = vmatpush.bf16.msrb.mxu1 %v8309_v52  ;;  %v1502_v4 = vpack.c.b16 %v1478_v62, %v1477_v61  ;;  %2354 = vmatpush.bf16.msrb.mxu0 %v8297_v47  ;;  %v1239_v61 = vshrl.u32 %v977_v49, 16  ;;  %v1242_v62 = vshll.u32 %v977_v49, 16  ;;  %v982_v49 = vld [vmem:[%s9952_s27 + $0x8c] sm:$0x1] }
  0x80   : > { %v1244_v5 = vrot.slane %v1242_v62, 5 }
  0x82   : > { %2443 = vmatpush.bf16.msrb.mxu1 %v8301_v51 }
  0x86   : > { %674 = vmatmul.bf16.gmra.mxu0 %v9313_v1 }
  0x87   : > { %763 = vmatmul.bf16.gmra.mxu1 %v9313_v1  ;;  %v1202_v1 = vrot.slane %v1200_v58, 5  ;;  %v1237_v58 = vsel %vm9968_vm2, %v1232_v42, %v1236_v43 }
  0x88   : > { %v1482_v3 = vunpack.c.l.b16 %v1237_v58 }
  0x89   : > { %v1207_v8 = vor.u32 %v1206_v2, %v1202_v1 }
  0x8b   : > { %v1208_v16 = vrot.slane %v1207_v8, 4  ;;  %v979_v8 = vld [vmem:[%s9952_s27 + $0x80] sm:$0x1] }
  0x8c   : > { %1640 = vmatmul.bf16.gmra.mxu2 %v1500_v15  ;;  %1729 = vmatmul.bf16.gmra.mxu3 %v1500_v15  ;;  %v1198_v15 = vrot.slane %v1197_v7, 4  ;;  %v1254_v7 = vrot.slane %v1252_v0, 4 }
  0x8d   : > { %v1213_v26 = vsel %vm9968_vm2, %v1208_v16, %v1212_v17 }
  0x8e   : > { %v1203_v25 = vsel %vm9968_vm2, %v1198_v15, %v1202_v1  ;;  %v1480_v33 = vunpack.c.l.b16 %v1213_v26  ;;  %v9401_v15 = vld [vmem:[%s12527_s1 + $0x1e4] sm:$0xf0]  ;;  %v1255_v18 = vor.u32 %v1254_v7, %v1250_v6  ;;  %v983_v7 = vld [vmem:[%s9952_s27 + $0x90] sm:$0xf] }
  0x8f   : > { %v1479_v32 = vunpack.c.l.b16 %v1203_v25  ;;  %v8505_v20 = vor.u32 %v9401_v15, %v8504_v14  ;;  %v8506_v25 = vld [vmem:[%s12527_s1 + $0x1e8] sm:$0xf0] }
  0x91   : > { %v1503_v38 = vpack.c.b16 %v1480_v33, %v1479_v32  ;;  %2949 = vmatpush.bf16.msrb.mxu2 %v8505_v20  ;;  %v1263_v32 = vshrl.u32 %v980_v22, 16  ;;  %v1266_v33 = vshll.u32 %v980_v22, 16  ;;  %v1287_v20 = vshrl.u32 %v983_v7, 16 }
  0x93   : > { %v1265_v43 = vrot.slane %v1263_v32, 4  ;;  %v1268_v44 = vrot.slane %v1266_v33, 5 }
  0x96   : > { %679 = vmatmul.bf16.gmra.mxu0 %v9314_v28 }
  0x97   : > { %768 = vmatmul.bf16.gmra.mxu1 %v9314_v28  ;;  %v1217_v28 = vrot.slane %v1215_v19, 4  ;;  %v1258_v19 = vshll.u32 %v979_v8, 16  ;;  %v984_v8 = vld [vmem:[%s9952_s27 + $0x94] sm:$0xf] }
  0x98   : > { %v1296_v22 = vshll.u32 %v984_v8, 16 }
  0x99   : > { %v1221_v35 = vor.u32 %v1220_v29, %v1217_v28  ;;  %v1260_v28 = vrot.slane %v1258_v19, 5 }
  0x9c   : > { %1645 = vmatmul.bf16.gmra.mxu2 %v1501_v41  ;;  %1734 = vmatmul.bf16.gmra.mxu3 %v1501_v41  ;;  %v1222_v41 = vrot.slane %v1221_v35, 4 }
  0x9e   : > { %v1227_v57 = vsel %vm9968_vm2, %v1222_v41, %v1226_v30 }
  0x9f   : > { %v1481_v2 = vunpack.c.l.b16 %v1227_v57 }
  0xa1   : > { %v1504_v13 = vpack.c.b16 %v1482_v3, %v1481_v2  ;;  %v8288_v2 = vld [vmem:[%s12527_s1 + $0x110] sm:$0xf]  ;;  %v9359_v3 = vld [vmem:[%s12527_s1 + $0x114] sm:$0xf0] }
  0xa6   : > { %684 = vmatmul.bf16.gmra.mxu0 %v9315_v53 }
  0xa7   : > { %773 = vmatmul.bf16.gmra.mxu1 %v9315_v53 }
  0xac   : > { %1650 = vmatmul.bf16.gmra.mxu2 %v1502_v4  ;;  %1739 = vmatmul.bf16.gmra.mxu3 %v1502_v4  ;;  %v1241_v4 = vrot.slane %v1239_v61, 4 }
  0xae   : > { %v1245_v17 = vor.u32 %v1244_v5, %v1241_v4  ;;  %v9358_v4 = vld [vmem:[%s12527_s1 + $0x114] sm:$0xf]  ;;  %v8289_v5 = vor.u32 %v9359_v3, %v8288_v2 }
  0xb0   : > { %v1246_v26 = vrot.slane %v1245_v17, 4  ;;  %2355 = vmatpush.bf16.msrb.mxu0 %v8289_v5 }
  0xb3   : > { %v650_v24 = vpop.f32.mrf.mxu0 }
  0xb4   : > { %v739_v27 = vpop.f32.mrf.mxu1 }
  0xb6   : > { %689 = vmatmul.bf16.gmra.mxu0 %v9316_v23 }
  0xb7   : > { %778 = vmatmul.bf16.gmra.mxu1 %v9316_v23  ;;  %v981_v23 = vld [vmem:[%s9952_s27 + $0x88] sm:$0xf] }
  0xb8   : > { %v1272_v34 = vshll.u32 %v981_v23, 16  ;;  %v1276_v35 = vshrl.u32 %v981_v23, 16  ;;  %v1300_v23 = vshrl.u32 %v984_v8, 16 }
  0xba   : > { %v1274_v45 = vrot.slane %v1272_v34, 5  ;;  %v1278_v46 = vrot.slane %v1276_v35, 4 }
  0xbb   : > { %v652_v39 = vpop.f32.mrf.mxu0 }
  0xbc   : > { %v741_v40 = vpop.f32.mrf.mxu1  ;;  %1655 = vmatmul.bf16.gmra.mxu2 %v1503_v38  ;;  %1744 = vmatmul.bf16.gmra.mxu3 %v1503_v38  ;;  %v9318_v38 = vld [vmem:[%s9952_s27 + $0x78] sm:$0xff] }
  0xbf   : > { %v1616_v52 = vpop.f32.mrf.mxu2  ;;  %v1705_v53 = vpop.f32.mrf.mxu3 }
  0xc0   : > { %v10115_v54 = vadd.f32 %v1616_v52, %v650_v24  ;;  %v10117_v55 = vadd.f32 %v1705_v53, %v739_v27  ;;  %v9400_v24 = vld [vmem:[%s12527_s1 + $0x1e4] sm:$0xf]  ;;  %v1256_v27 = vrot.slane %v1255_v18, 4  ;;  %v1269_v52 = vor.u32 %v1268_v44, %v1265_v43 }
  0xc1   : > { %v8509_v29 = vor.u32 %v9400_v24, %v8506_v25  ;;  %v1279_v53 = vor.u32 %v1278_v46, %v1274_v45 }
  0xc2   : > { %v1261_v41 = vsel %vm9968_vm2, %v1256_v27, %v1260_v28  ;;  %v1270_v63 = vrot.slane %v1269_v52, 4  ;;  %v1289_v27 = vrot.slane %v1287_v20, 4 }
  0xc3   : > { %v655_v59 = vpop.f32.mrf.mxu0  ;;  %3038 = vmatpush.bf16.msrb.mxu3 %v8509_v29  ;;  %v1484_v48 = vunpack.c.l.b16 %v1261_v41  ;;  %v1280_v0 = vrot.slane %v1279_v53, 4  ;;  %v1298_v29 = vrot.slane %v1296_v22, 5 }
  0xc4   : > { %v744_v1 = vpop.f32.mrf.mxu1  ;;  %v1275_v17 = vsel %vm9968_vm2, %v1270_v63, %v1274_v45 }
  0xc5   : > { %v1485_v25 = vunpack.c.l.b16 %v1275_v17  ;;  %v988_v17 = vld [vmem:[%s9952_s27 + $0xa4] sm:$0x1] }
  0xc6   : > { %694 = vmatmul.bf16.gmra.mxu0 %v9317_v56  ;;  %v1330_v22 = vshll.u32 %v988_v17, 16 }
  0xc7   : > { %783 = vmatmul.bf16.gmra.mxu1 %v9317_v56  ;;  %v1618_v9 = vpop.f32.mrf.mxu2  ;;  %v1707_v10 = vpop.f32.mrf.mxu3  ;;  %v1282_v56 = vshll.u32 %v982_v49, 16  ;;  %v9398_v49 = vld [vmem:[%s12527_s1 + $0x1d4] sm:$0xf] }
  0xc8   : > { %v10125_v11 = vadd.f32 %v1618_v9, %v652_v39  ;;  %v10127_v12 = vadd.f32 %v1707_v10, %v741_v40  ;;  %v1251_v40 = vsel %vm9968_vm2, %v1246_v26, %v1250_v6  ;;  %v8290_v6 = vld [vmem:[%s12527_s1 + $0x118] sm:$0xf0] }
  0xc9   : > { %v1483_v47 = vunpack.c.l.b16 %v1251_v40  ;;  %v8293_v9 = vor.u32 %v9358_v4, %v8290_v6  ;;  %v9399_v40 = vld [vmem:[%s12527_s1 + $0x1d4] sm:$0xf0]  ;;  %v9320_v4 = vld [vmem:[%s9952_s27 + $0x90] sm:$0xff] }
  0xcb   : > { %v657_v16 = vpop.f32.mrf.mxu0  ;;  %2444 = vmatpush.bf16.msrb.mxu1 %v8293_v9 }
  0xcc   : > { %v746_v21 = vpop.f32.mrf.mxu1  ;;  %1660 = vmatmul.bf16.gmra.mxu2 %v1504_v13  ;;  %1749 = vmatmul.bf16.gmra.mxu3 %v1504_v13 }
  0xcf   : > { %v1621_v30 = vpop.f32.mrf.mxu2  ;;  %v1710_v31 = vpop.f32.mrf.mxu3 }
  0xd0   : > { %v10143_v36 = vadd.f32 %v1621_v30, %v655_v59  ;;  %v10145_v37 = vadd.f32 %v1710_v31, %v744_v1  ;;  %v1505_v59 = vpack.c.b16 %v1484_v48, %v1483_v47  ;;  %v1284_v1 = vrot.slane %v1282_v56, 5  ;;  %v985_v31 = vld [vmem:[%s9952_s27 + $0x98] sm:$0x1]  ;;  %v986_v47 = vld [vmem:[%s9952_s27 + $0x9c] sm:$0xf] }
  0xd1   : > { %v1302_v30 = vrot.slane %v1300_v23, 4  ;;  %v1306_v44 = vshll.u32 %v985_v31, 16  ;;  %v987_v48 = vld [vmem:[%s9952_s27 + $0xa0] sm:$0xf] }
  0xd2   : > { %v1285_v18 = vsel %vm9968_vm2, %v1280_v0, %v1284_v1  ;;  %v1324_v63 = vshrl.u32 %v987_v48, 16 }
  0xd3   : > { %v660_v39 = vpop.f32.mrf.mxu0  ;;  %v1486_v26 = vunpack.c.l.b16 %v1285_v18  ;;  %v1303_v43 = vor.u32 %v1302_v30, %v1298_v29  ;;  %v1308_v53 = vrot.slane %v1306_v44, 5 }
  0xd4   : > { %v749_v42 = vpop.f32.mrf.mxu1 }
  0xd5   : > { %v1304_v52 = vrot.slane %v1303_v43, 4  ;;  %v8282_v43 = vld [vmem:[%s12527_s1 + $0x108] sm:$0xf0] }
  0xd6   : > { %699 = vmatmul.bf16.gmra.mxu0 %v9318_v38 }
  0xd7   : > { %788 = vmatmul.bf16.gmra.mxu1 %v9318_v38  ;;  %v1623_v50 = vpop.f32.mrf.mxu2  ;;  %v1712_v51 = vpop.f32.mrf.mxu3  ;;  %v1506_v38 = vpack.c.b16 %v1486_v26, %v1485_v25 }
  0xd8   : > { %v10153_v57 = vadd.f32 %v1623_v50, %v657_v16  ;;  %v10155_v58 = vadd.f32 %v1712_v51, %v746_v21  ;;  %v9319_v16 = vld [vmem:[%s9952_s27 + $0x84] sm:$0xff]  ;;  %v1290_v21 = vshll.u32 %v983_v7, 16  ;;  %v8498_v50 = vld [vmem:[%s12527_s1 + $0x1d8] sm:$0xf0]  ;;  %v1309_v7 = vsel %vm9968_vm2, %v1304_v52, %v1308_v53 }
  0xd9   : > { %v8501_v56 = vor.u32 %v9398_v49, %v8498_v50 }
  0xda   : > { %v1292_v28 = vrot.slane %v1290_v21, 5 }
  0xdb   : > { %v662_v61 = vpop.f32.mrf.mxu0  ;;  %3039 = vmatpush.bf16.msrb.mxu3 %v8501_v56 }
  0xdc   : > { %v751_v62 = vpop.f32.mrf.mxu1  ;;  %1665 = vmatmul.bf16.gmra.mxu2 %v1505_v59  ;;  %1754 = vmatmul.bf16.gmra.mxu3 %v1505_v59  ;;  %v1311_v59 = vshrl.u32 %v986_v47, 16 }
  0xde   : > { %v1313_v9 = vrot.slane %v1311_v59, 4  ;;  %v9321_v59 = vld [vmem:[%s9952_s27 + $0x9c] sm:$0xff] }
  0xdf   : > { %v1626_v10 = vpop.f32.mrf.mxu2  ;;  %v1715_v13 = vpop.f32.mrf.mxu3 }
  0xe0   : > { %v10171_v14 = vadd.f32 %v1626_v10, %v660_v39  ;;  %v10173_v15 = vadd.f32 %v1715_v13, %v749_v42  ;;  %v8496_v39 = vld [vmem:[%s12527_s1 + $0x1d0] sm:$0xf]  ;;  %v1293_v42 = vor.u32 %v1292_v28, %v1289_v27 }
  0xe1   : > { %v8497_v45 = vor.u32 %v9399_v40, %v8496_v39  ;;  %v8280_v39 = vld [vmem:[%s12527_s1 + $0x100] sm:$0xf]  ;;  %v9357_v40 = vld [vmem:[%s12527_s1 + $0x104] sm:$0xf0] }
  0xe2   : > { %v1294_v51 = vrot.slane %v1293_v42, 4  ;;  %v8281_v42 = vor.u32 %v9357_v40, %v8280_v39  ;;  %v8482_v39 = vld [vmem:[%s12527_s1 + $0x1b8] sm:$0xf0] }
  0xe3   : > { %v665_v19 = vpop.f32.mrf.mxu0  ;;  %2950 = vmatpush.bf16.msrb.mxu2 %v8497_v45 }
  0xe4   : > { %v754_v24 = vpop.f32.mrf.mxu1  ;;  %v1299_v6 = vsel %vm9968_vm2, %v1294_v51, %v1298_v29  ;;  %2356 = vmatpush.bf16.msrb.mxu0 %v8281_v42  ;;  %v992_v42 = vld [vmem:[%s9952_s27 + $0xb4] sm:$0xf] }
  0xe5   : > { %v1487_v18 = vunpack.c.l.b16 %v1299_v6 }
  0xe6   : > { %704 = vmatmul.bf16.gmra.mxu0 %v9319_v16 }
  0xe7   : > { %793 = vmatmul.bf16.gmra.mxu1 %v9319_v16  ;;  %v1628_v32 = vpop.f32.mrf.mxu2  ;;  %v1717_v33 = vpop.f32.mrf.mxu3  ;;  %v1326_v16 = vrot.slane %v1324_v63, 4 }
  0xe8   : > { %v10181_v34 = vadd.f32 %v1628_v32, %v662_v61  ;;  %v10183_v35 = vadd.f32 %v1717_v33, %v751_v62  ;;  %v1314_v61 = vshll.u32 %v986_v47, 16  ;;  %v1320_v62 = vshll.u32 %v987_v48, 16  ;;  %v989_v33 = vld [vmem:[%s9952_s27 + $0xa8] sm:$0xf] }
  0xe9   : > { %v1332_v32 = vrot.slane %v1330_v22, 5  ;;  %v1335_v49 = vshrl.u32 %v989_v33, 16  ;;  %v1338_v50 = vshll.u32 %v989_v33, 16 }
  0xea   : > { %v1316_v10 = vrot.slane %v1314_v61, 5  ;;  %v1322_v13 = vrot.slane %v1320_v62, 5 }
  0xeb   : > { %v667_v41 = vpop.f32.mrf.mxu0 }
  0xec   : > { %v756_v46 = vpop.f32.mrf.mxu1  ;;  %1670 = vmatmul.bf16.gmra.mxu2 %v1506_v38  ;;  %1759 = vmatmul.bf16.gmra.mxu3 %v1506_v38  ;;  %v1317_v20 = vor.u32 %v1316_v10, %v1313_v9  ;;  %v1327_v21 = vor.u32 %v1326_v16, %v1322_v13  ;;  %v990_v38 = vld [vmem:[%s9952_s27 + $0xac] sm:$0xf]  ;;  %v991_v9 = vld [vmem:[%s9952_s27 + $0xb0] sm:$0x1]  ;;  %v9396_v10 = vld [vmem:[%s12527_s1 + $0x1c4] sm:$0xf] }
  0xed   : > { %v1344_v51 = vshll.u32 %v990_v38, 16  ;;  %v1348_v52 = vshrl.u32 %v990_v38, 16 }
  0xee   : > { %v1318_v30 = vrot.slane %v1317_v20, 4  ;;  %v1328_v31 = vrot.slane %v1327_v21, 4  ;;  %v8490_v21 = vld [vmem:[%s12527_s1 + $0x1c8] sm:$0xf0] }
  0xef   : > { %v1631_v0 = vpop.f32.mrf.mxu2  ;;  %v1720_v1 = vpop.f32.mrf.mxu3  ;;  %v10236_v6 = vrot.slane %v1344_v51, 5 }
  0xf0   : > { %v10199_v2 = vadd.f32 %v1631_v0, %v665_v19  ;;  %v10201_v3 = vadd.f32 %v1720_v1, %v754_v24  ;;  %v1488_v19 = vunpack.c.l.b16 %v1309_v7  ;;  %v1323_v44 = vsel %vm9968_vm2, %v1318_v30, %v1322_v13 }
  0xf1   : > { %v1333_v45 = vsel %vm9968_vm2, %v1328_v31, %v1332_v32  ;;  %v1489_v63 = vunpack.c.l.b16 %v1323_v44  ;;  %v1337_v1 = vrot.slane %v1335_v49, 4  ;;  %v1350_v7 = vrot.slane %v1348_v52, 4  ;;  %v8480_v32 = vld [vmem:[%s12527_s1 + $0x1b0] sm:$0xf]  ;;  %v993_v44 = vld [vmem:[%s9952_s27 + $0xb8] sm:$0xf] }
  0xf2   : > { %v1507_v27 = vpack.c.b16 %v1488_v19, %v1487_v18  ;;  %v1490_v0 = vunpack.c.l.b16 %v1333_v45  ;;  %v8472_v45 = vld [vmem:[%s12527_s1 + $0x1a0] sm:$0xf]  ;;  %v1359_v52 = vshrl.u32 %v992_v42, 16 }
  0xf3   : > { %v670_v5 = vpop.f32.mrf.mxu0  ;;  %v1351_v19 = vor.u32 %v1350_v7, %v10236_v6 }
  0xf4   : > { %v759_v8 = vpop.f32.mrf.mxu1  ;;  %v1508_v17 = vpack.c.b16 %v1490_v0, %v1489_v63  ;;  %v8474_v63 = vld [vmem:[%s12527_s1 + $0x1a8] sm:$0xf0] }
  0xf5   : > { %v1352_v40 = vrot.slane %v1351_v19, 4 }
  0xf6   : > { %709 = vmatmul.bf16.gmra.mxu0 %v9320_v4 }
  0xf7   : > { %798 = vmatmul.bf16.gmra.mxu1 %v9320_v4  ;;  %v1633_v23 = vpop.f32.mrf.mxu2  ;;  %v1722_v24 = vpop.f32.mrf.mxu3  ;;  %v1340_v4 = vrot.slane %v1338_v50, 5  ;;  %v9322_v50 = vld [vmem:[%s9952_s27 + $0xa8] sm:$0xff] }
  0xf8   : > { %v10209_v25 = vadd.f32 %v1633_v23, %v667_v41  ;;  %v10211_v26 = vadd.f32 %v1722_v24, %v756_v46  ;;  %v9356_v41 = vld [vmem:[%s12527_s1 + $0x104] sm:$0xf]  ;;  %v1354_v24 = vshll.u32 %v991_v9, 16  ;;  %v8464_v9 = vld [vmem:[%s12527_s1 + $0x190] sm:$0xf] }
  0xf9   : > { %v8285_v46 = vor.u32 %v9356_v41, %v8282_v43  ;;  %v1341_v18 = vor.u32 %v1340_v4, %v1337_v1 }
  0xfa   : > { %v1356_v41 = vrot.slane %v1354_v24, 5  ;;  %v1361_v24 = vrot.slane %v1359_v52, 4  ;;  %v9418_v52 = vld [vmem:[%s12527_s1 + $0x274] sm:$0xf] }
  0xfb   : > { %v672_v28 = vpop.f32.mrf.mxu0  ;;  %2445 = vmatpush.bf16.msrb.mxu1 %v8285_v46  ;;  %v1342_v33 = vrot.slane %v1341_v18, 4  ;;  %v9393_v46 = vld [vmem:[%s12527_s1 + $0x1a4] sm:$0xf0] }
  0xfc   : > { %v761_v29 = vpop.f32.mrf.mxu1  ;;  %1675 = vmatmul.bf16.gmra.mxu2 %v1507_v27  ;;  %1764 = vmatmul.bf16.gmra.mxu3 %v1507_v27  ;;  %v8493_v27 = vor.u32 %v9396_v10, %v8490_v21  ;;  %v1357_v4 = vsel %vm9968_vm2, %v1352_v40, %v1356_v41  ;;  %v1372_v10 = vshrl.u32 %v993_v44, 16  ;;  %v994_v21 = vld [vmem:[%s9952_s27 + $0xbc] sm:$0x1] }
  0xfd   : > { %v1347_v51 = vsel %vm9968_vm2, %v1342_v33, %v10236_v6  ;;  %v9391_v6 = vld [vmem:[%s12527_s1 + $0x194] sm:$0xf0]  ;;  %v9389_v33 = vld [vmem:[%s12527_s1 + $0x184] sm:$0xf0] }
  0xfe   : > { %3040 = vmatpush.bf16.msrb.mxu3 %v8493_v27  ;;  %v1491_v19 = vunpack.c.l.b16 %v1347_v51 }
  0xff   : > { %v1636_v47 = vpop.f32.mrf.mxu2  ;;  %v1725_v48 = vpop.f32.mrf.mxu3 }
 0x100   : > { %v10231_v53 = vadd.f32 %v1636_v47, %v670_v5  ;;  %v10233_v56 = vadd.f32 %v1725_v48, %v759_v8  ;;  %v8488_v5 = vld [vmem:[%s12527_s1 + $0x1c0] sm:$0xf]  ;;  %v9397_v8 = vld [vmem:[%s12527_s1 + $0x1c4] sm:$0xf0]  ;;  %v9392_v47 = vld [vmem:[%s12527_s1 + $0x1a4] sm:$0xf] }
 0x101   : > { %v8489_v20 = vor.u32 %v9397_v8, %v8488_v5  ;;  %v8477_v7 = vor.u32 %v9392_v47, %v8474_v63  ;;  %v1368_v8 = vshll.u32 %v993_v44, 16 }
 0x103   : > { %v675_v61 = vpop.f32.mrf.mxu0  ;;  %2951 = vmatpush.bf16.msrb.mxu2 %v8489_v20  ;;  %v1492_v20 = vunpack.c.l.b16 %v1357_v4 }
 0x104   : > { %v764_v62 = vpop.f32.mrf.mxu1 }
 0x106   : > { %714 = vmatmul.bf16.gmra.mxu0 %v9321_v59 }
 0x107   : > { %803 = vmatmul.bf16.gmra.mxu1 %v9321_v59  ;;  %v1638_v13 = vpop.f32.mrf.mxu2  ;;  %v1727_v16 = vpop.f32.mrf.mxu3  ;;  %v8473_v59 = vor.u32 %v9393_v46, %v8472_v45  ;;  %v1509_v45 = vpack.c.b16 %v1492_v20, %v1491_v19 }
 0x108   : > { %v10252_v22 = vadd.f32 %v1638_v13, %v672_v28  ;;  %v10254_v23 = vadd.f32 %v1727_v16, %v761_v29  ;;  %v9395_v28 = vld [vmem:[%s12527_s1 + $0x1b4] sm:$0xf0]  ;;  %v9394_v29 = vld [vmem:[%s12527_s1 + $0x1b4] sm:$0xf]  ;;  %v8465_v13 = vor.u32 %v9391_v6, %v8464_v9  ;;  %v8466_v16 = vld [vmem:[%s12527_s1 + $0x198] sm:$0xf0] }
 0x109   : > { %v8481_v38 = vor.u32 %v9395_v28, %v8480_v32  ;;  %v8485_v43 = vor.u32 %v9394_v29, %v8482_v39  ;;  %v1370_v32 = vrot.slane %v1368_v8, 5  ;;  %v1374_v28 = vrot.slane %v1372_v10, 4  ;;  %v8456_v29 = vld [vmem:[%s12527_s1 + $0x180] sm:$0xf]  ;;  %v8642_v9 = vld [vmem:[%s12527_s1 + $0x278] sm:$0xf0] }
 0x10a   : > { %v8457_v41 = vor.u32 %v9389_v33, %v8456_v29  ;;  %v1914_v6 = vld [vmem:[%s9952_s27 + $0x4] sm:$0xf] }
 0x10b   : > { %v10256_v30 = vpop.f32.mrf.mxu0  ;;  %2952 = vmatpush.bf16.msrb.mxu2 %v8481_v38  ;;  %3041 = vmatpush.bf16.msrb.mxu3 %v8485_v43  ;;  %v9388_v38 = vld [vmem:[%s12527_s1 + $0x184] sm:$0xf] }
 0x10c   : > { %v10258_v31 = vpop.f32.mrf.mxu1  ;;  %1680 = vmatmul.bf16.gmra.mxu2 %v1508_v17  ;;  %1769 = vmatmul.bf16.gmra.mxu3 %v1508_v17 }
 0x10f   : > { %v1641_v48 = vpop.f32.mrf.mxu2  ;;  %v1730_v49 = vpop.f32.mrf.mxu3  ;;  %2953 = vmatpush.bf16.msrb.mxu2 %v8473_v59  ;;  %3042 = vmatpush.bf16.msrb.mxu3 %v8477_v7 }
 0x110   : > { %v10290_v0 = vadd.f32 %v1641_v48, %v675_v61  ;;  %v10292_v1 = vadd.f32 %v1730_v49, %v764_v62  ;;  %v9390_v61 = vld [vmem:[%s12527_s1 + $0x194] sm:$0xf]  ;;  %v1362_v62 = vshll.u32 %v992_v42, 16  ;;  %v8458_v42 = vld [vmem:[%s12527_s1 + $0x188] sm:$0xf0]  ;;  %v1375_v49 = vor.u32 %v1374_v28, %v1370_v32 }
 0x111   : > { %v8469_v18 = vor.u32 %v9390_v61, %v8466_v16  ;;  %v8461_v46 = vor.u32 %v9388_v38, %v8458_v42  ;;  %v8645_v61 = vor.u32 %v9418_v52, %v8642_v9  ;;  %v9323_v16 = vld [vmem:[%s9952_s27 + $0xb4] sm:$0xff]  ;;  %v1915_v28 = vld [vmem:[%s9952_s27 + $0x8] sm:$0x1]  ;;  %v1917_v52 = vld [vmem:[%s9952_s27 + $0x10] sm:$0xf] }
 0x112   : > { %v1364_v27 = vrot.slane %v1362_v62, 5  ;;  %v1376_v63 = vrot.slane %v1375_v49, 4  ;;  %v2017_v38 = vrot.slane %v1915_v28, 5  ;;  %v2021_v9 = vrot.slane %v1917_v52, 5 }
 0x113   : > { %v680_v5 = vpop.f32.mrf.mxu0  ;;  %2954 = vmatpush.bf16.msrb.mxu2 %v8465_v13  ;;  %3043 = vmatpush.bf16.msrb.mxu3 %v8469_v18 }
 0x114   : > { %v769_v17 = vpop.f32.mrf.mxu1  ;;  %v1365_v48 = vor.u32 %v1364_v27, %v1361_v24  ;;  %4000 = vmatpush.bf16.msra.mxu1 %v8645_v61  ;;  %v1913_v27 = vld [vmem:[%s9952_s27] sm:$0xe]  ;;  %v1916_v61 = vld [vmem:[%s9952_s27 + $0xc] sm:$0xe] }
 0x116   : > { %719 = vmatmul.bf16.gmra.mxu0 %v9322_v50  ;;  %v1366_v59 = vrot.slane %v1365_v48, 4 }
 0x117   : > { %808 = vmatmul.bf16.gmra.mxu1 %v9322_v50  ;;  %v1643_v39 = vpop.f32.mrf.mxu2  ;;  %v1732_v40 = vpop.f32.mrf.mxu3  ;;  %v1378_v50 = vshll.u32 %v994_v21, 16  ;;  %2955 = vmatpush.bf16.msrb.mxu2 %v8457_v41  ;;  %v2014_v21 = vrot.slane %v1914_v6, 5 }
 0x118   : > { %v10322_v43 = vadd.f32 %v1643_v39, %v10256_v30  ;;  %v10325_v44 = vadd.f32 %v1732_v40, %v10258_v31  ;;  %3044 = vmatpush.bf16.msrb.mxu3 %v8461_v46  ;;  %v8640_v30 = vld [vmem:[%s12527_s1 + $0x270] sm:$0xf]  ;;  %v9419_v31 = vld [vmem:[%s12527_s1 + $0x274] sm:$0xf0]  ;;  %v1371_v19 = vsel %vm9968_vm2, %v1366_v59, %v1370_v32  ;;  %v12539_v39 = vmov 0 }
 0x119   : > { %v1380_v4 = vrot.slane %v1378_v50, 5  ;;  %v8641_v7 = vor.u32 %v9419_v31, %v8640_v30  ;;  %v2016_v33 = vrot.slane %v2014_v21, 4  ;;  %v12540_v39 = vsel %vm10351_vm5, 4294967295, %v12539_v39 }
 0x11a   : > { %12541 = vst [vmem:[#allocation6_spill] sm:$0xff] %v12540_v39 }
 0x11b   : > { %v682_v47 = vpop.f32.mrf.mxu0  ;;  %3911 = vmatpush.bf16.msra.mxu0 %v8641_v7  ;;  %v1381_v20 = vsel %vm9968_vm2, %v1376_v63, %v1380_v4  ;;  %v2018_v49 = vsel %vm10351_vm5, %v2016_v33, %v2017_v38 }
 0x11c   : > { %v771_v51 = vpop.f32.mrf.mxu1  ;;  %1685 = vmatmul.bf16.gmra.mxu2 %v1509_v45  ;;  %1774 = vmatmul.bf16.gmra.mxu3 %v1509_v45  ;;  %v1494_v29 = vunpack.c.l.b16 %v1381_v20  ;;  %v2206_v31 = vunpack.c.l.b16 %v2018_v49  ;;  %v1920_v49 = vld [vmem:[%s9952_s27 + $0x1c] sm:$0xf] }
 0x11f   : > { %v1646_v62 = vpop.f32.mrf.mxu2  ;;  %v1735_v8 = vpop.f32.mrf.mxu3 }
 0x120   : > { %v10340_v10 = vadd.f32 %v1646_v62, %v680_v5  ;;  %v10342_v13 = vadd.f32 %v1735_v8, %v769_v17  ;;  %v1493_v5 = vunpack.c.l.b16 %v1371_v19  ;;  %v8246_v17 = vrot.slane %v1913_v27, 9  ;;  %v1918_v62 = vld [vmem:[%s9952_s27 + $0x14] sm:$0x1] }
 0x121   : > { %v8247_v8 = vrot.slane %v1916_v61, 9  ;;  %v2024_v19 = vrot.slane %v1918_v62, 5  ;;  %v1919_v62 = vld [vmem:[%s9952_s27 + $0x18] sm:$0xe] }
 0x122   : > { %v1510_v45 = vpack.c.b16 %v1494_v29, %v1493_v5  ;;  %v2015_v48 = vsel %vm10351_vm5, %v8246_v17, %v2014_v21 }
 0x123   : > { %v685_v18 = vpop.f32.mrf.mxu0  ;;  %v2205_v30 = vunpack.c.l.b16 %v2015_v48  ;;  %v2022_v5 = vsel %vm10351_vm5, %v8247_v8, %v2021_v9  ;;  %v8634_v48 = vld [vmem:[%s12527_s1 + $0x268] sm:$0xf0]  ;;  %v1921_v8 = vld [vmem:[%s9952_s27 + $0x20] sm:$0x1] }
 0x124   : > { %v774_v24 = vpop.f32.mrf.mxu1  ;;  %v2207_v33 = vunpack.c.l.b16 %v2022_v5  ;;  %v9373_v5 = vld [vmem:[%s9952_s27 + $0x18] sm:$0xff] }
 0x125   : > { %v2237_v4 = vpack.c.b16 %v2206_v31, %v2205_v30 }
 0x126   : > { %724 = vmatmul.bf16.gmra.mxu0 %v9323_v16 }
 0x127   : > { %813 = vmatmul.bf16.gmra.mxu1 %v9323_v16  ;;  %v1648_v32 = vpop.f32.mrf.mxu2  ;;  %v1737_v40 = vpop.f32.mrf.mxu3  ;;  %v2023_v16 = vrot.slane %v2021_v9, 4  ;;  %v2028_v9 = vrot.slane %v1920_v49, 5 }
 0x128   : > { %v10355_v41 = vadd.f32 %v1648_v32, %v682_v47  ;;  %v10357_v42 = vadd.f32 %v1737_v40, %v771_v51  ;;  %v8632_v32 = vld [vmem:[%s12527_s1 + $0x260] sm:$0xf]  ;;  %v9417_v40 = vld [vmem:[%s12527_s1 + $0x264] sm:$0xf0] }
 0x129   : > { %v2025_v29 = vsel %vm10351_vm5, %v2023_v16, %v2024_v19  ;;  %v8248_v16 = vrot.slane %v1919_v62, 9  ;;  %v2030_v19 = vrot.slane %v2028_v9, 4  ;;  %v1924_v62 = vld [vmem:[%s9952_s27 + $0x2c] sm:$0x1] }
 0x12a   : > { %v2208_v38 = vunpack.c.l.b16 %v2025_v29 }
 0x12b   : > { %v687_v46 = vpop.f32.mrf.mxu0 }
 0x12c   : > { %v776_v50 = vpop.f32.mrf.mxu1  ;;  %1690 = vmatmul.bf16.gmra.mxu2 %v1510_v45  ;;  %1779 = vmatmul.bf16.gmra.mxu3 %v1510_v45  ;;  %v9416_v45 = vld [vmem:[%s12527_s1 + $0x264] sm:$0xf] }
 0x12f   : > { %v1651_v47 = vpop.f32.mrf.mxu2  ;;  %v1740_v59 = vpop.f32.mrf.mxu3 }
 0x130   : > { %v10364_v51 = vadd.f32 %v1651_v47, %v685_v18  ;;  %v10366_v63 = vadd.f32 %v1740_v59, %v774_v24  ;;  %v9372_v24 = vld [vmem:[%s9952_s27 + $0xc] sm:$0xff]  ;;  %v2238_v59 = vpack.c.b16 %v2208_v38, %v2207_v33  ;;  %v2029_v33 = vsel %vm10351_vm5, %v8248_v16, %v2028_v9  ;;  %v1922_v9 = vld [vmem:[%s9952_s27 + $0x24] sm:$0xe] }
 0x133   : > { %v690_v7 = vpop.f32.mrf.mxu0 }
 0x134   : > { %v779_v6 = vpop.f32.mrf.mxu1 }
 0x136   : > { %2357 = vmatmul.bf16.vlgmr.msrb.gmra.mxu0 %v2237_v4 }
 0x137   : > { %2446 = vmatmul.bf16.vlgmr.msrb.gmra.mxu1 %v2237_v4  ;;  %v1653_v20 = vpop.f32.mrf.mxu2  ;;  %v1742_v21 = vpop.f32.mrf.mxu3 }
 0x138   : > { %v10370_v27 = vadd.f32 %v1653_v20, %v687_v46  ;;  %v10372_v18 = vadd.f32 %v1742_v21, %v776_v50  ;;  %v8633_v46 = vor.u32 %v9417_v40, %v8632_v32  ;;  %v8637_v50 = vor.u32 %v9416_v45, %v8634_v48 }
 0x139   : > { %v2031_v20 = vrot.slane %v1921_v8, 5  ;;  %v2209_v40 = vunpack.c.l.b16 %v2029_v33  ;;  %v8249_v8 = vrot.slane %v1922_v9, 9 }
 0x13a   : > { %3912 = vmatpush.bf16.msra.mxu0 %v8633_v46  ;;  %4001 = vmatpush.bf16.msra.mxu1 %v8637_v50  ;;  %v1923_v46 = vld [vmem:[%s9952_s27 + $0x28] sm:$0xf] }
 0x13b   : > { %v692_v28 = vpop.f32.mrf.mxu0  ;;  %v2032_v38 = vsel %vm10351_vm5, %v2030_v19, %v2031_v20  ;;  %v2038_v19 = vrot.slane %v1924_v62, 5 }
 0x13c   : > { %v781_v17 = vpop.f32.mrf.mxu1  ;;  %2956 = vmatmul.bf16.vlgmr.msrb.gmra.mxu2 %v9372_v24  ;;  %3045 = vmatmul.bf16.vlgmr.msrb.gmra.mxu3 %v9372_v24  ;;  %v2210_v45 = vunpack.c.l.b16 %v2032_v38 }
 0x13e   : > { %v2239_v50 = vpack.c.b16 %v2210_v45, %v2209_v40 }
 0x13f   : > { %v1656_v30 = vpop.f32.mrf.mxu2  ;;  %v1745_v31 = vpop.f32.mrf.mxu3 }
 0x140   : > { %v10392_v52 = vadd.f32 %v1656_v30, %v690_v7  ;;  %v10394_v47 = vadd.f32 %v1745_v31, %v779_v6  ;;  %v2035_v31 = vrot.slane %v1923_v46, 5 }
 0x142   : > { %v2037_v16 = vrot.slane %v2035_v31, 4  ;;  %v2036_v33 = vsel %vm10351_vm5, %v8249_v8, %v2035_v31  ;;  %v1926_v31 = vld [vmem:[%s9952_s27 + $0x34] sm:$0xf] }
 0x143   : > { %v695_v4 = vpop.f32.mrf.mxu0  ;;  %v2211_v45 = vunpack.c.l.b16 %v2036_v33 }
 0x144   : > { %v784_v61 = vpop.f32.mrf.mxu1  ;;  %v2039_v38 = vsel %vm10351_vm5, %v2037_v16, %v2038_v19 }
 0x145   : > { %v2212_v46 = vunpack.c.l.b16 %v2039_v38  ;;  %v1925_v38 = vld [vmem:[%s9952_s27 + $0x30] sm:$0xe] }
 0x146   : > { %2362 = vmatmul.bf16.gmra.mxu0 %v2238_v59 }
 0x147   : > { %2451 = vmatmul.bf16.gmra.mxu1 %v2238_v59  ;;  %v1658_v21 = vpop.f32.mrf.mxu2  ;;  %v1747_v24 = vpop.f32.mrf.mxu3 }
 0x148   : > { %v10398_v7 = vadd.f32 %v1658_v21, %v692_v28  ;;  %v10400_v6 = vadd.f32 %v1747_v24, %v781_v17 }
 0x14b   : > { %v697_v29 = vpop.f32.mrf.mxu0 }
 0x14c   : > { %v786_v32 = vpop.f32.mrf.mxu1  ;;  %2961 = vmatmul.bf16.gmra.mxu2 %v9373_v5  ;;  %3050 = vmatmul.bf16.gmra.mxu3 %v9373_v5 }
 0x14f   : > { %v1661_v28 = vpop.f32.mrf.mxu2  ;;  %v1750_v48 = vpop.f32.mrf.mxu3 }
 0x150   : > { %v10408_v17 = vadd.f32 %v1661_v28, %v695_v4  ;;  %v10410_v49 = vadd.f32 %v1750_v48, %v784_v61  ;;  %v9374_v61 = vld [vmem:[%s9952_s27 + $0x24] sm:$0xff]  ;;  %v9414_v28 = vld [vmem:[%s12527_s1 + $0x254] sm:$0xf] }
 0x153   : > { %v700_v30 = vpop.f32.mrf.mxu0 }
 0x154   : > { %v789_v59 = vpop.f32.mrf.mxu1 }
 0x156   : > { %2367 = vmatmul.bf16.gmra.mxu0 %v2239_v50 }
 0x157   : > { %2456 = vmatmul.bf16.gmra.mxu1 %v2239_v50  ;;  %v1663_v20 = vpop.f32.mrf.mxu2  ;;  %v1752_v21 = vpop.f32.mrf.mxu3  ;;  %v8626_v50 = vld [vmem:[%s12527_s1 + $0x258] sm:$0xf0] }
 0x158   : > { %v10414_v24 = vadd.f32 %v1663_v20, %v697_v29  ;;  %v10416_v4 = vadd.f32 %v1752_v21, %v786_v32  ;;  %v8624_v29 = vld [vmem:[%s12527_s1 + $0x250] sm:$0xf]  ;;  %v9415_v32 = vld [vmem:[%s12527_s1 + $0x254] sm:$0xf0]  ;;  %v8629_v9 = vor.u32 %v9414_v28, %v8626_v50  ;;  %v2240_v20 = vpack.c.b16 %v2212_v46, %v2211_v45 }
 0x159   : > { %v8625_v48 = vor.u32 %v9415_v32, %v8624_v29  ;;  %v1927_v29 = vld [vmem:[%s9952_s27 + $0x38] sm:$0x1]  ;;  %v8250_v32 = vrot.slane %v1925_v38, 9  ;;  %v9375_v45 = vld [vmem:[%s9952_s27 + $0x30] sm:$0xff]  ;;  %v1929_v38 = vld [vmem:[%s9952_s27 + $0x40] sm:$0xf] }
 0x15a   : > { %12542 = vst [vmem:[#allocation7_spill] sm:$0xff] %v10414_v24  ;;  %4002 = vmatpush.bf16.msra.mxu1 %v8629_v9  ;;  %v2045_v50 = vrot.slane %v1927_v29, 5 }
 0x15b   : > { %12543 = vst [vmem:[#allocation8_spill] sm:$0xff] %v10416_v4  ;;  %v702_v5 = vpop.f32.mrf.mxu0  ;;  %3913 = vmatpush.bf16.msra.mxu0 %v8625_v48 }
 0x15c   : > { %v791_v40 = vpop.f32.mrf.mxu1  ;;  %2966 = vmatmul.bf16.gmra.mxu2 %v9374_v61  ;;  %3055 = vmatmul.bf16.gmra.mxu3 %v9374_v61  ;;  %v2042_v61 = vrot.slane %v1926_v31, 5 }
 0x15e   : > { %v2044_v28 = vrot.slane %v2042_v61, 4  ;;  %v2043_v31 = vsel %vm10351_vm5, %v8250_v32, %v2042_v61  ;;  %v2049_v32 = vrot.slane %v1929_v38, 5 }
 0x15f   : > { %v1666_v62 = vpop.f32.mrf.mxu2  ;;  %v1755_v8 = vpop.f32.mrf.mxu3 }
 0x160   : > { %v10436_v16 = vadd.f32 %v1666_v62, %v700_v30  ;;  %v10438_v19 = vadd.f32 %v1755_v8, %v789_v59  ;;  %v2046_v9 = vsel %vm10351_vm5, %v2044_v28, %v2045_v50  ;;  %v2213_v8 = vunpack.c.l.b16 %v2043_v31  ;;  %v1930_v28 = vld [vmem:[%s9952_s27 + $0x44] sm:$0x1] }
 0x161   : > { %v2052_v31 = vrot.slane %v1930_v28, 5  ;;  %v1932_v28 = vld [vmem:[%s9952_s27 + $0x4c] sm:$0xf] }
 0x162   : > { %12544 = vst [vmem:[#allocation9_spill] sm:$0xff] %v10436_v16 }
 0x163   : > { %12545 = vst [vmem:[#allocation10_spill] sm:$0xff] %v10438_v19  ;;  %v705_v21 = vpop.f32.mrf.mxu0 }
 0x164   : > { %v794_v33 = vpop.f32.mrf.mxu1 }
 0x166   : > { %2372 = vmatmul.bf16.gmra.mxu0 %v2240_v20 }
 0x167   : > { %2461 = vmatmul.bf16.gmra.mxu1 %v2240_v20  ;;  %v1668_v4 = vpop.f32.mrf.mxu2  ;;  %v1757_v48 = vpop.f32.mrf.mxu3  ;;  %v2214_v20 = vunpack.c.l.b16 %v2046_v9 }
 0x168   : > { %v10442_v30 = vadd.f32 %v1668_v4, %v702_v5  ;;  %v10444_v59 = vadd.f32 %v1757_v48, %v791_v40 }
 0x169   : > { %v2241_v48 = vpack.c.b16 %v2214_v20, %v2213_v8 }
 0x16a   : > { %12546 = vst [vmem:[#allocation11_spill] sm:$0xff] %v10442_v30  ;;  %v1928_v30 = vld [vmem:[%s9952_s27 + $0x3c] sm:$0xe] }
 0x16b   : > { %12547 = vst [vmem:[#allocation12_spill] sm:$0xff] %v10444_v59  ;;  %v707_v46 = vpop.f32.mrf.mxu0  ;;  %v8251_v50 = vrot.slane %v1928_v30, 9 }
 0x16c   : > { %v796_v62 = vpop.f32.mrf.mxu1  ;;  %2971 = vmatmul.bf16.gmra.mxu2 %v9375_v45  ;;  %3060 = vmatmul.bf16.gmra.mxu3 %v9375_v45  ;;  %v2051_v45 = vrot.slane %v2049_v32, 4 }
 0x16d   : > { %v2050_v8 = vsel %vm10351_vm5, %v8251_v50, %v2049_v32  ;;  %v8618_v32 = vld [vmem:[%s12527_s1 + $0x248] sm:$0xf0] }
 0x16e   : > { %v2053_v20 = vsel %vm10351_vm5, %v2051_v45, %v2052_v31  ;;  %v2215_v30 = vunpack.c.l.b16 %v2050_v8 }
 0x16f   : > { %v1671_v4 = vpop.f32.mrf.mxu2  ;;  %v1760_v5 = vpop.f32.mrf.mxu3 }
 0x170   : > { %v10452_v40 = vadd.f32 %v1671_v4, %v705_v21  ;;  %v10454_v29 = vadd.f32 %v1760_v5, %v794_v33  ;;  %v9376_v33 = vld [vmem:[%s9952_s27 + $0x3c] sm:$0xff]  ;;  %v2216_v5 = vunpack.c.l.b16 %v2053_v20 }
 0x172   : > { %12548 = vst [vmem:[#allocation13_spill] sm:$0xff] %v10452_v40  ;;  %v2242_v8 = vpack.c.b16 %v2216_v5, %v2215_v30  ;;  %v9377_v30 = vld [vmem:[%s9952_s27 + $0x48] sm:$0xff] }
 0x173   : > { %12549 = vst [vmem:[#allocation14_spill] sm:$0xff] %v10454_v29  ;;  %v710_v61 = vpop.f32.mrf.mxu0 }
 0x174   : > { %v799_v59 = vpop.f32.mrf.mxu1 }
 0x176   : > { %2377 = vmatmul.bf16.gmra.mxu0 %v2241_v48 }
 0x177   : > { %2466 = vmatmul.bf16.gmra.mxu1 %v2241_v48  ;;  %v1673_v9 = vpop.f32.mrf.mxu2  ;;  %v1762_v19 = vpop.f32.mrf.mxu3 }
 0x178   : > { %v10458_v16 = vadd.f32 %v1673_v9, %v707_v46  ;;  %v10460_v21 = vadd.f32 %v1762_v19, %v796_v62  ;;  %v8616_v46 = vld [vmem:[%s12527_s1 + $0x240] sm:$0xf]  ;;  %v9413_v19 = vld [vmem:[%s12527_s1 + $0x244] sm:$0xf0]  ;;  %v9412_v62 = vld [vmem:[%s12527_s1 + $0x244] sm:$0xf] }
 0x179   : > { %v8617_v48 = vor.u32 %v9413_v19, %v8616_v46  ;;  %v8621_v50 = vor.u32 %v9412_v62, %v8618_v32  ;;  %v1931_v46 = vld [vmem:[%s9952_s27 + $0x48] sm:$0xe]  ;;  %v1933_v19 = vld [vmem:[%s9952_s27 + $0x50] sm:$0x1] }
 0x17a   : > { %12550 = vst [vmem:[#allocation15_spill] sm:$0xff] %v10458_v16  ;;  %v8252_v29 = vrot.slane %v1931_v46, 9  ;;  %v2059_v32 = vrot.slane %v1933_v19, 5  ;;  %v1935_v46 = vld [vmem:[%s9952_s27 + $0x58] sm:$0xf] }
 0x17b   : > { %12551 = vst [vmem:[#allocation16_spill] sm:$0xff] %v10460_v21  ;;  %v712_v4 = vpop.f32.mrf.mxu0  ;;  %3914 = vmatpush.bf16.msra.mxu0 %v8617_v48  ;;  %4003 = vmatpush.bf16.msra.mxu1 %v8621_v50  ;;  %v2056_v21 = vrot.slane %v1932_v28, 5 }
 0x17c   : > { %v801_v38 = vpop.f32.mrf.mxu1  ;;  %2976 = vmatmul.bf16.gmra.mxu2 %v9376_v33  ;;  %3065 = vmatmul.bf16.gmra.mxu3 %v9376_v33 }
 0x17d   : > { %v2058_v62 = vrot.slane %v2056_v21, 4  ;;  %v2057_v28 = vsel %vm10351_vm5, %v8252_v29, %v2056_v21  ;;  %v2063_v21 = vrot.slane %v1935_v46, 5 }
 0x17f   : > { %v1676_v45 = vpop.f32.mrf.mxu2  ;;  %v1765_v31 = vpop.f32.mrf.mxu3  ;;  %v2060_v50 = vsel %vm10351_vm5, %v2058_v62, %v2059_v32  ;;  %v1936_v62 = vld [vmem:[%s9952_s27 + $0x5c] sm:$0x1] }
 0x180   : > { %v10480_v9 = vadd.f32 %v1676_v45, %v710_v61  ;;  %v10482_v33 = vadd.f32 %v1765_v31, %v799_v59  ;;  %v2217_v31 = vunpack.c.l.b16 %v2057_v28  ;;  %v2066_v28 = vrot.slane %v1936_v62, 5  ;;  %v1938_v62 = vld [vmem:[%s9952_s27 + $0x64] sm:$0xf] }
 0x182   : > { %12552 = vst [vmem:[#allocation17_spill] sm:$0xff] %v10480_v9 }
 0x183   : > { %12553 = vst [vmem:[#allocation18_spill] sm:$0xff] %v10482_v33  ;;  %v715_v20 = vpop.f32.mrf.mxu0 }
 0x184   : > { %v804_v16 = vpop.f32.mrf.mxu1 }
 0x186   : > { %2382 = vmatmul.bf16.gmra.mxu0 %v2242_v8 }
 0x187   : > { %2471 = vmatmul.bf16.gmra.mxu1 %v2242_v8  ;;  %v1678_v40 = vpop.f32.mrf.mxu2  ;;  %v1767_v48 = vpop.f32.mrf.mxu3  ;;  %v2218_v8 = vunpack.c.l.b16 %v2060_v50 }
 0x188   : > { %v10486_v61 = vadd.f32 %v1678_v40, %v712_v4  ;;  %v10488_v59 = vadd.f32 %v1767_v48, %v801_v38 }
 0x189   : > { %v2243_v48 = vpack.c.b16 %v2218_v8, %v2217_v31 }
 0x18a   : > { %12554 = vst [vmem:[#allocation19_spill] sm:$0xff] %v10486_v61  ;;  %v1934_v61 = vld [vmem:[%s9952_s27 + $0x54] sm:$0xe] }
 0x18b   : > { %12555 = vst [vmem:[#allocation20_spill] sm:$0xff] %v10488_v59  ;;  %v717_v5 = vpop.f32.mrf.mxu0  ;;  %v8253_v32 = vrot.slane %v1934_v61, 9 }
 0x18c   : > { %v806_v45 = vpop.f32.mrf.mxu1  ;;  %2981 = vmatmul.bf16.gmra.mxu2 %v9377_v30  ;;  %3070 = vmatmul.bf16.gmra.mxu3 %v9377_v30  ;;  %v2065_v30 = vrot.slane %v2063_v21, 4 }
 0x18d   : > { %v2064_v31 = vsel %vm10351_vm5, %v8253_v32, %v2063_v21  ;;  %v8610_v21 = vld [vmem:[%s12527_s1 + $0x238] sm:$0xf0] }
 0x18e   : > { %v2067_v8 = vsel %vm10351_vm5, %v2065_v30, %v2066_v28  ;;  %v2219_v61 = vunpack.c.l.b16 %v2064_v31 }
 0x18f   : > { %v1681_v40 = vpop.f32.mrf.mxu2  ;;  %v1770_v4 = vpop.f32.mrf.mxu3 }
 0x190   : > { %v10496_v38 = vadd.f32 %v1681_v40, %v715_v20  ;;  %v10498_v19 = vadd.f32 %v1770_v4, %v804_v16  ;;  %v9378_v16 = vld [vmem:[%s9952_s27 + $0x54] sm:$0xff]  ;;  %v2220_v4 = vunpack.c.l.b16 %v2067_v8 }
 0x192   : > { %12556 = vst [vmem:[#allocation21_spill] sm:$0xff] %v10496_v38  ;;  %v2244_v31 = vpack.c.b16 %v2220_v4, %v2219_v61  ;;  %v8784_v61 = vld [vmem:[%s12527_s1 + $0x2f0] sm:$0xf]  ;;  %v9435_v4 = vld [vmem:[%s12527_s1 + $0x2f4] sm:$0xf0] }
 0x193   : > { %12557 = vst [vmem:[#allocation22_spill] sm:$0xff] %v10498_v19  ;;  %v720_v29 = vpop.f32.mrf.mxu0 }
 0x194   : > { %v809_v59 = vpop.f32.mrf.mxu1 }
 0x196   : > { %2387 = vmatmul.bf16.gmra.mxu0 %v2243_v48 }
 0x197   : > { %2476 = vmatmul.bf16.gmra.mxu1 %v2243_v48  ;;  %v1683_v50 = vpop.f32.mrf.mxu2  ;;  %v1772_v33 = vpop.f32.mrf.mxu3 }
 0x198   : > { %v10502_v9 = vadd.f32 %v1683_v50, %v717_v5  ;;  %v10504_v20 = vadd.f32 %v1772_v33, %v806_v45  ;;  %v8608_v5 = vld [vmem:[%s12527_s1 + $0x230] sm:$0xf]  ;;  %v9411_v33 = vld [vmem:[%s12527_s1 + $0x234] sm:$0xf0]  ;;  %v9410_v45 = vld [vmem:[%s12527_s1 + $0x234] sm:$0xf] }
 0x199   : > { %v8609_v48 = vor.u32 %v9411_v33, %v8608_v5  ;;  %v8613_v32 = vor.u32 %v9410_v45, %v8610_v21  ;;  %v1937_v5 = vld [vmem:[%s9952_s27 + $0x60] sm:$0xe]  ;;  %v1939_v33 = vld [vmem:[%s9952_s27 + $0x68] sm:$0x1] }
 0x19a   : > { %12558 = vst [vmem:[#allocation23_spill] sm:$0xff] %v10502_v9  ;;  %v8254_v19 = vrot.slane %v1937_v5, 9  ;;  %v2073_v45 = vrot.slane %v1939_v33, 5  ;;  %v1941_v5 = vld [vmem:[%s9952_s27 + $0x70] sm:$0xf] }
 0x19b   : > { %12559 = vst [vmem:[#allocation24_spill] sm:$0xff] %v10504_v20  ;;  %v722_v40 = vpop.f32.mrf.mxu0  ;;  %3915 = vmatpush.bf16.msra.mxu0 %v8609_v48  ;;  %4004 = vmatpush.bf16.msra.mxu1 %v8613_v32  ;;  %v2070_v20 = vrot.slane %v1938_v62, 5 }
 0x19c   : > { %v811_v46 = vpop.f32.mrf.mxu1  ;;  %2986 = vmatmul.bf16.gmra.mxu2 %v9378_v16  ;;  %3075 = vmatmul.bf16.gmra.mxu3 %v9378_v16 }
 0x19d   : > { %v2072_v38 = vrot.slane %v2070_v20, 4  ;;  %v2071_v32 = vsel %vm10351_vm5, %v8254_v19, %v2070_v20  ;;  %v8786_v19 = vld [vmem:[%s12527_s1 + $0x2f8] sm:$0xf0] }
 0x19f   : > { %v1686_v30 = vpop.f32.mrf.mxu2  ;;  %v1775_v28 = vpop.f32.mrf.mxu3 }
 0x1a0   : > { %v10524_v50 = vadd.f32 %v1686_v30, %v720_v29  ;;  %v10526_v16 = vadd.f32 %v1775_v28, %v809_v59  ;;  %v9379_v59 = vld [vmem:[%s9952_s27 + $0x60] sm:$0xff]  ;;  %v8785_v30 = vor.u32 %v9435_v4, %v8784_v61  ;;  %v2077_v4 = vrot.slane %v1941_v5, 5 }
 0x1a2   : > { %4650 = vmatpush.bf16.msra.mxu2 %v8785_v30  ;;  %v1940_v30 = vld [vmem:[%s9952_s27 + $0x6c] sm:$0xe] }
 0x1a3   : > { %v725_v8 = vpop.f32.mrf.mxu0 }
 0x1a4   : > { %v814_v9 = vpop.f32.mrf.mxu1 }
 0x1a6   : > { %2392 = vmatmul.bf16.gmra.mxu0 %v2244_v31 }
 0x1a7   : > { %2481 = vmatmul.bf16.gmra.mxu1 %v2244_v31  ;;  %v1688_v21 = vpop.f32.mrf.mxu2  ;;  %v1777_v24 = vpop.f32.mrf.mxu3  ;;  %v9434_v31 = vld [vmem:[%s12527_s1 + $0x2f4] sm:$0xf] }
 0x1a8   : > { %v10530_v48 = vadd.f32 %v1688_v21, %v722_v40  ;;  %v10532_v29 = vadd.f32 %v1777_v24, %v811_v46  ;;  %v2074_v40 = vsel %vm10351_vm5, %v2072_v38, %v2073_v45  ;;  %v2221_v46 = vunpack.c.l.b16 %v2071_v32 }
 0x1a9   : > { %v2222_v28 = vunpack.c.l.b16 %v2074_v40  ;;  %v8789_v20 = vor.u32 %v9434_v31, %v8786_v19  ;;  %v8255_v31 = vrot.slane %v1940_v30, 9  ;;  %v2079_v19 = vrot.slane %v2077_v4, 4  ;;  %v1944_v30 = vld [vmem:[%s9952_s27 + $0x7c] sm:$0xf] }
 0x1aa   : > { %12560 = vst [vmem:[#allocation25_spill] sm:$0xff] %v10530_v48 }
 0x1ab   : > { %12561 = vst [vmem:[#allocation26_spill] sm:$0xff] %v10532_v29  ;;  %v727_v62 = vpop.f32.mrf.mxu0  ;;  %4739 = vmatpush.bf16.msra.mxu3 %v8789_v20  ;;  %v1942_v29 = vld [vmem:[%s9952_s27 + $0x74] sm:$0x1] }
 0x1ac   : > { %v816_v24 = vpop.f32.mrf.mxu1  ;;  %2991 = vmatmul.bf16.gmra.mxu2 %v9379_v59  ;;  %3080 = vmatmul.bf16.gmra.mxu3 %v9379_v59  ;;  %v2245_v59 = vpack.c.b16 %v2222_v28, %v2221_v46  ;;  %v2080_v20 = vrot.slane %v1942_v29, 5  ;;  %v9380_v28 = vld [vmem:[%s9952_s27 + $0x6c] sm:$0xff] }
 0x1af   : > { %v1691_v38 = vpop.f32.mrf.mxu2  ;;  %v1780_v33 = vpop.f32.mrf.mxu3 }
 0x1b0   : > { %v10552_v45 = vadd.f32 %v1691_v38, %v725_v8  ;;  %v10554_v21 = vadd.f32 %v1780_v33, %v814_v9 }
 0x1b3   : > { %v2358_v61 = vpop.f32.mrf.mxu0 }
 0x1b4   : > { %v2527_v32 = vadd.f32 %v2358_v61, %v10115_v54  ;;  %v2447_v40 = vpop.f32.mrf.mxu1  ;;  %v2078_v54 = vsel %vm10351_vm5, %v8255_v31, %v2077_v4  ;;  %v9409_v4 = vld [vmem:[%s12527_s1 + $0x224] sm:$0xf0] }
 0x1b5   : > { %v2528_v48 = vadd.f32 %v2447_v40, %v10117_v55  ;;  %v2081_v55 = vsel %vm10351_vm5, %v2079_v19, %v2080_v20  ;;  %v9408_v40 = vld [vmem:[%s12527_s1 + $0x224] sm:$0xf] }
 0x1b6   : > { %2397 = vmatmul.bf16.gmra.mxu0 %v2245_v59  ;;  %v2224_v61 = vunpack.c.l.b16 %v2081_v55 }
 0x1b7   : > { %2486 = vmatmul.bf16.gmra.mxu1 %v2245_v59  ;;  %v1693_v8 = vpop.f32.mrf.mxu2  ;;  %v1782_v38 = vpop.f32.mrf.mxu3 }
 0x1b8   : > { %v10560_v9 = vadd.f32 %v1693_v8, %v727_v62  ;;  %v10562_v46 = vadd.f32 %v1782_v38, %v816_v24  ;;  %v2223_v62 = vunpack.c.l.b16 %v2078_v54  ;;  %v8600_v24 = vld [vmem:[%s12527_s1 + $0x220] sm:$0xf]  ;;  %v2084_v54 = vrot.slane %v1944_v30, 5 }
 0x1ba   : > { %12562 = vst [vmem:[#allocation27_spill] sm:$0xff] %v10562_v46 }
 0x1bb   : > { %v2360_v5 = vpop.f32.mrf.mxu0 }
 0x1bc   : > { %v2529_v33 = vadd.f32 %v2360_v5, %v10125_v11  ;;  %v2449_v59 = vpop.f32.mrf.mxu1  ;;  %2996 = vmatmul.bf16.gmra.mxu2 %v9380_v28  ;;  %3085 = vmatmul.bf16.gmra.mxu3 %v9380_v28  ;;  %v8601_v11 = vor.u32 %v9409_v4, %v8600_v24  ;;  %v2246_v28 = vpack.c.b16 %v2224_v61, %v2223_v62  ;;  %v1943_v24 = vld [vmem:[%s9952_s27 + $0x78] sm:$0xe]  ;;  %v1945_v4 = vld [vmem:[%s9952_s27 + $0x80] sm:$0x1] }
 0x1bd   : > { %v2530_v29 = vadd.f32 %v2449_v59, %v10127_v12  ;;  %v8602_v12 = vld [vmem:[%s12527_s1 + $0x228] sm:$0xf0]  ;;  %v9381_v61 = vld [vmem:[%s9952_s27 + $0x78] sm:$0xff] }
 0x1be   : > { %v8605_v31 = vor.u32 %v9408_v40, %v8602_v12  ;;  %3916 = vmatpush.bf16.msra.mxu0 %v8601_v11  ;;  %v8256_v40 = vrot.slane %v1943_v24, 9  ;;  %v2086_v11 = vrot.slane %v2084_v54, 4 }
 0x1bf   : > { %v2957_v19 = vpop.f32.mrf.mxu2  ;;  %v3046_v20 = vpop.f32.mrf.mxu3 }
 0x1c0   : > { %v10584_v8 = vadd.f32 %v2957_v19, %v2527_v32  ;;  %v10586_v38 = vadd.f32 %v3046_v20, %v2528_v48  ;;  %4005 = vmatpush.bf16.msra.mxu1 %v8605_v31  ;;  %v2087_v32 = vrot.slane %v1945_v4, 5  ;;  %v2085_v31 = vsel %vm10351_vm5, %v8256_v40, %v2084_v54  ;;  %v9432_v54 = vld [vmem:[%s12527_s1 + $0x2e4] sm:$0xf]  ;;  %v8778_v4 = vld [vmem:[%s12527_s1 + $0x2e8] sm:$0xf0] }
 0x1c1   : > { %v8781_v40 = vor.u32 %v9432_v54, %v8778_v4 }
 0x1c3   : > { %v2363_v5 = vpop.f32.mrf.mxu0  ;;  %4740 = vmatpush.bf16.msra.mxu3 %v8781_v40 }
 0x1c4   : > { %v2531_v55 = vadd.f32 %v2363_v5, %v10143_v36  ;;  %v2452_v59 = vpop.f32.mrf.mxu1  ;;  %v8776_v36 = vld [vmem:[%s12527_s1 + $0x2e0] sm:$0xf] }
 0x1c5   : > { %v2532_v46 = vadd.f32 %v2452_v59, %v10145_v37  ;;  %v9433_v37 = vld [vmem:[%s12527_s1 + $0x2e4] sm:$0xf0]  ;;  %v2225_v59 = vunpack.c.l.b16 %v2085_v31  ;;  %v1946_v31 = vld [vmem:[%s9952_s27 + $0x84] sm:$0xe] }
 0x1c6   : > { %2402 = vmatmul.bf16.gmra.mxu0 %v2246_v28  ;;  %v8777_v20 = vor.u32 %v9433_v37, %v8776_v36 }
 0x1c7   : > { %2491 = vmatmul.bf16.gmra.mxu1 %v2246_v28  ;;  %v2959_v12 = vpop.f32.mrf.mxu2  ;;  %v3048_v48 = vpop.f32.mrf.mxu3 }
 0x1c8   : > { %v10592_v19 = vadd.f32 %v2959_v12, %v2529_v33  ;;  %v10594_v62 = vadd.f32 %v3048_v48, %v2530_v29  ;;  %v2088_v33 = vsel %vm10351_vm5, %v2086_v11, %v2087_v32  ;;  %4651 = vmatpush.bf16.msra.mxu2 %v8777_v20 }
 0x1c9   : > { %v2226_v24 = vunpack.c.l.b16 %v2088_v33  ;;  %v1948_v33 = vld [vmem:[%s9952_s27 + $0x8c] sm:$0x1] }
 0x1ca   : > { %v2094_v4 = vrot.slane %v1948_v33, 5 }
 0x1cb   : > { %v2365_v30 = vpop.f32.mrf.mxu0  ;;  %v2247_v48 = vpack.c.b16 %v2226_v24, %v2225_v59  ;;  %v9382_v24 = vld [vmem:[%s9952_s27 + $0x84] sm:$0xff] }
 0x1cc   : > { %v2533_v29 = vadd.f32 %v2365_v30, %v10153_v57  ;;  %v2454_v28 = vpop.f32.mrf.mxu1  ;;  %3001 = vmatmul.bf16.gmra.mxu2 %v9381_v61  ;;  %3090 = vmatmul.bf16.gmra.mxu3 %v9381_v61  ;;  %v1947_v57 = vld [vmem:[%s9952_s27 + $0x88] sm:$0xf] }
 0x1cd   : > { %v2534_v5 = vadd.f32 %v2454_v28, %v10155_v58  ;;  %v2091_v36 = vrot.slane %v1947_v57, 5  ;;  %v8257_v28 = vrot.slane %v1946_v31, 9  ;;  %v1950_v31 = vld [vmem:[%s9952_s27 + $0x94] sm:$0xf] }
 0x1cf   : > { %v2962_v11 = vpop.f32.mrf.mxu2  ;;  %v3051_v32 = vpop.f32.mrf.mxu3  ;;  %v2093_v54 = vrot.slane %v2091_v36, 4 }
 0x1d0   : > { %v10616_v58 = vadd.f32 %v2962_v11, %v2531_v55  ;;  %v10618_v12 = vadd.f32 %v3051_v32, %v2532_v46 }
 0x1d3   : > { %v2368_v61 = vpop.f32.mrf.mxu0 }
 0x1d4   : > { %v2535_v37 = vadd.f32 %v2368_v61, %v10171_v14  ;;  %v2457_v30 = vpop.f32.mrf.mxu1  ;;  %v2092_v14 = vsel %vm10351_vm5, %v8257_v28, %v2091_v36  ;;  %v9407_v36 = vld [vmem:[%s12527_s1 + $0x214] sm:$0xf0] }
 0x1d5   : > { %v2536_v20 = vadd.f32 %v2457_v30, %v10173_v15  ;;  %v2095_v15 = vsel %vm10351_vm5, %v2093_v54, %v2094_v4  ;;  %v9406_v30 = vld [vmem:[%s12527_s1 + $0x214] sm:$0xf] }
 0x1d6   : > { %2407 = vmatmul.bf16.gmra.mxu0 %v2247_v48  ;;  %v2228_v61 = vunpack.c.l.b16 %v2095_v15 }
 0x1d7   : > { %2496 = vmatmul.bf16.gmra.mxu1 %v2247_v48  ;;  %v2964_v55 = vpop.f32.mrf.mxu2  ;;  %v3053_v40 = vpop.f32.mrf.mxu3 }
 0x1d8   : > { %v10624_v46 = vadd.f32 %v2964_v55, %v2533_v29  ;;  %v10626_v59 = vadd.f32 %v3053_v40, %v2534_v5  ;;  %v2227_v29 = vunpack.c.l.b16 %v2092_v14  ;;  %v8592_v5 = vld [vmem:[%s12527_s1 + $0x210] sm:$0xf] }
 0x1da   : > { %v2248_v40 = vpack.c.b16 %v2228_v61, %v2227_v29  ;;  %v9383_v61 = vld [vmem:[%s9952_s27 + $0x90] sm:$0xff] }
 0x1db   : > { %v2370_v57 = vpop.f32.mrf.mxu0 }
 0x1dc   : > { %v2537_v11 = vadd.f32 %v2370_v57, %v10181_v34  ;;  %v2459_v32 = vpop.f32.mrf.mxu1  ;;  %3006 = vmatmul.bf16.gmra.mxu2 %v9382_v24  ;;  %3095 = vmatmul.bf16.gmra.mxu3 %v9382_v24  ;;  %v8593_v34 = vor.u32 %v9407_v36, %v8592_v5  ;;  %v2098_v57 = vrot.slane %v1950_v31, 5  ;;  %v1951_v5 = vld [vmem:[%s9952_s27 + $0x98] sm:$0x1] }
 0x1dd   : > { %v2538_v48 = vadd.f32 %v2459_v32, %v10183_v35  ;;  %v8594_v35 = vld [vmem:[%s12527_s1 + $0x218] sm:$0xf0]  ;;  %v1949_v32 = vld [vmem:[%s9952_s27 + $0x90] sm:$0xe] }
 0x1de   : > { %v8597_v33 = vor.u32 %v9406_v30, %v8594_v35  ;;  %3917 = vmatpush.bf16.msra.mxu0 %v8593_v34  ;;  %v8258_v30 = vrot.slane %v1949_v32, 9  ;;  %v2100_v34 = vrot.slane %v2098_v57, 4 }
 0x1df   : > { %v2967_v28 = vpop.f32.mrf.mxu2  ;;  %v3056_v54 = vpop.f32.mrf.mxu3 }
 0x1e0   : > { %v10648_v4 = vadd.f32 %v2967_v28, %v2535_v37  ;;  %v10650_v55 = vadd.f32 %v3056_v54, %v2536_v20  ;;  %4006 = vmatpush.bf16.msra.mxu1 %v8597_v33  ;;  %v2101_v37 = vrot.slane %v1951_v5, 5  ;;  %v2099_v33 = vsel %vm10351_vm5, %v8258_v30, %v2098_v57  ;;  %v9430_v57 = vld [vmem:[%s12527_s1 + $0x2d4] sm:$0xf]  ;;  %v8770_v5 = vld [vmem:[%s12527_s1 + $0x2d8] sm:$0xf0] }
 0x1e1   : > { %v8773_v30 = vor.u32 %v9430_v57, %v8770_v5 }
 0x1e3   : > { %v2373_v24 = vpop.f32.mrf.mxu0  ;;  %4741 = vmatpush.bf16.msra.mxu3 %v8773_v30 }
 0x1e4   : > { %v2539_v14 = vadd.f32 %v2373_v24, %v10199_v2  ;;  %v2462_v15 = vpop.f32.mrf.mxu1  ;;  %v8768_v2 = vld [vmem:[%s12527_s1 + $0x2d0] sm:$0xf] }
 0x1e5   : > { %v2540_v36 = vadd.f32 %v2462_v15, %v10201_v3  ;;  %v9431_v3 = vld [vmem:[%s12527_s1 + $0x2d4] sm:$0xf0]  ;;  %v2229_v15 = vunpack.c.l.b16 %v2099_v33  ;;  %v1952_v33 = vld [vmem:[%s9952_s27 + $0x9c] sm:$0xe] }
 0x1e6   : > { %2412 = vmatmul.bf16.gmra.mxu0 %v2248_v40  ;;  %v8769_v54 = vor.u32 %v9431_v3, %v8768_v2 }
 0x1e7   : > { %2501 = vmatmul.bf16.gmra.mxu1 %v2248_v40  ;;  %v2969_v35 = vpop.f32.mrf.mxu2  ;;  %v3058_v20 = vpop.f32.mrf.mxu3 }
 0x1e8   : > { %v10656_v28 = vadd.f32 %v2969_v35, %v2537_v11  ;;  %v10658_v29 = vadd.f32 %v3058_v20, %v2538_v48  ;;  %v2102_v11 = vsel %vm10351_vm5, %v2100_v34, %v2101_v37  ;;  %4652 = vmatpush.bf16.msra.mxu2 %v8769_v54 }
 0x1e9   : > { %v2230_v32 = vunpack.c.l.b16 %v2102_v11  ;;  %v1954_v11 = vld [vmem:[%s9952_s27 + $0xa4] sm:$0x1] }
 0x1ea   : > { %v2108_v5 = vrot.slane %v1954_v11, 5 }
 0x1eb   : > { %v2375_v31 = vpop.f32.mrf.mxu0  ;;  %v2249_v20 = vpack.c.b16 %v2230_v32, %v2229_v15  ;;  %v9384_v32 = vld [vmem:[%s9952_s27 + $0x9c] sm:$0xff] }
 0x1ec   : > { %v2541_v48 = vadd.f32 %v2375_v31, %v10209_v25  ;;  %v2464_v40 = vpop.f32.mrf.mxu1  ;;  %3011 = vmatmul.bf16.gmra.mxu2 %v9383_v61  ;;  %3100 = vmatmul.bf16.gmra.mxu3 %v9383_v61  ;;  %v1953_v25 = vld [vmem:[%s9952_s27 + $0xa0] sm:$0xf] }
 0x1ed   : > { %v2542_v24 = vadd.f32 %v2464_v40, %v10211_v26  ;;  %v2105_v2 = vrot.slane %v1953_v25, 5  ;;  %v8259_v40 = vrot.slane %v1952_v33, 9  ;;  %v1956_v33 = vld [vmem:[%s9952_s27 + $0xac] sm:$0xf] }
 0x1ef   : > { %v2972_v34 = vpop.f32.mrf.mxu2  ;;  %v3061_v37 = vpop.f32.mrf.mxu3  ;;  %v2107_v57 = vrot.slane %v2105_v2, 4 }
 0x1f0   : > { %v10680_v26 = vadd.f32 %v2972_v34, %v2539_v14  ;;  %v10682_v35 = vadd.f32 %v3061_v37, %v2540_v36 }
 0x1f3   : > { %v2378_v61 = vpop.f32.mrf.mxu0 }
 0x1f4   : > { %v2543_v3 = vadd.f32 %v2378_v61, %v10231_v53  ;;  %v2467_v31 = vpop.f32.mrf.mxu1  ;;  %v2106_v53 = vsel %vm10351_vm5, %v8259_v40, %v2105_v2  ;;  %v9405_v2 = vld [vmem:[%s12527_s1 + $0x204] sm:$0xf0] }
 0x1f5   : > { %v2544_v54 = vadd.f32 %v2467_v31, %v10233_v56  ;;  %v2109_v56 = vsel %vm10351_vm5, %v2107_v57, %v2108_v5  ;;  %v9404_v31 = vld [vmem:[%s12527_s1 + $0x204] sm:$0xf] }
 0x1f6   : > { %2417 = vmatmul.bf16.gmra.mxu0 %v2249_v20  ;;  %v2232_v61 = vunpack.c.l.b16 %v2109_v56 }
 0x1f7   : > { %2506 = vmatmul.bf16.gmra.mxu1 %v2249_v20  ;;  %v2974_v14 = vpop.f32.mrf.mxu2  ;;  %v3063_v30 = vpop.f32.mrf.mxu3 }
 0x1f8   : > { %v10688_v36 = vadd.f32 %v2974_v14, %v2541_v48  ;;  %v10690_v15 = vadd.f32 %v3063_v30, %v2542_v24  ;;  %v2231_v48 = vunpack.c.l.b16 %v2106_v53  ;;  %v8584_v24 = vld [vmem:[%s12527_s1 + $0x200] sm:$0xf] }
 0x1fa   : > { %v2250_v30 = vpack.c.b16 %v2232_v61, %v2231_v48  ;;  %v9429_v48 = vld [vmem:[%s12527_s1 + $0x2c4] sm:$0xf0] }
 0x1fb   : > { %v2380_v25 = vpop.f32.mrf.mxu0 }
 0x1fc   : > { %v2545_v34 = vadd.f32 %v2380_v25, %v10252_v22  ;;  %v2469_v37 = vpop.f32.mrf.mxu1  ;;  %3016 = vmatmul.bf16.gmra.mxu2 %v9384_v32  ;;  %3105 = vmatmul.bf16.gmra.mxu3 %v9384_v32  ;;  %v8585_v22 = vor.u32 %v9405_v2, %v8584_v24  ;;  %v2112_v25 = vrot.slane %v1956_v33, 5  ;;  %v1957_v24 = vld [vmem:[%s9952_s27 + $0xb0] sm:$0x1]  ;;  %v8762_v33 = vld [vmem:[%s12527_s1 + $0x2c8] sm:$0xf0] }
 0x1fd   : > { %v2546_v20 = vadd.f32 %v2469_v37, %v10254_v23  ;;  %v8586_v23 = vld [vmem:[%s12527_s1 + $0x208] sm:$0xf0]  ;;  %v1955_v37 = vld [vmem:[%s9952_s27 + $0xa8] sm:$0xe] }
 0x1fe   : > { %v8589_v11 = vor.u32 %v9404_v31, %v8586_v23  ;;  %3918 = vmatpush.bf16.msra.mxu0 %v8585_v22  ;;  %v8260_v31 = vrot.slane %v1955_v37, 9  ;;  %v2114_v22 = vrot.slane %v2112_v25, 4 }
 0x1ff   : > { %v2977_v40 = vpop.f32.mrf.mxu2  ;;  %v3066_v57 = vpop.f32.mrf.mxu3 }
 0x200   : > { %v10712_v5 = vadd.f32 %v2977_v40, %v2543_v3  ;;  %v10714_v14 = vadd.f32 %v3066_v57, %v2544_v54  ;;  %4007 = vmatpush.bf16.msra.mxu1 %v8589_v11  ;;  %v2115_v3 = vrot.slane %v1957_v24, 5  ;;  %v8760_v54 = vld [vmem:[%s12527_s1 + $0x2c0] sm:$0xf]  ;;  %v9385_v57 = vld [vmem:[%s9952_s27 + $0xa8] sm:$0xff] }
 0x202   : > { %12563 = vst [vmem:[#allocation28_spill] sm:$0xff] %v10714_v14  ;;  %v2116_v37 = vsel %vm10351_vm5, %v2114_v22, %v2115_v3 }
 0x203   : > { %v2383_v32 = vpop.f32.mrf.mxu0 }
 0x204   : > { %v2547_v53 = vadd.f32 %v2383_v32, %v10290_v0  ;;  %v2472_v56 = vpop.f32.mrf.mxu1  ;;  %v9428_v0 = vld [vmem:[%s12527_s1 + $0x2c4] sm:$0xf] }
 0x205   : > { %v2548_v2 = vadd.f32 %v2472_v56, %v10292_v1  ;;  %v8761_v1 = vor.u32 %v9429_v48, %v8760_v54  ;;  %v2113_v56 = vsel %vm10351_vm5, %v8260_v31, %v2112_v25  ;;  %v9426_v25 = vld [vmem:[%s12527_s1 + $0x2b4] sm:$0xf]  ;;  %v2234_v48 = vunpack.c.l.b16 %v2116_v37 }
 0x206   : > { %2422 = vmatmul.bf16.gmra.mxu0 %v2250_v30  ;;  %v2233_v3 = vunpack.c.l.b16 %v2113_v56 }
 0x207   : > { %2511 = vmatmul.bf16.gmra.mxu1 %v2250_v30  ;;  %v2979_v61 = vpop.f32.mrf.mxu2  ;;  %v3068_v23 = vpop.f32.mrf.mxu3  ;;  %v8765_v30 = vor.u32 %v9428_v0, %v8762_v33  ;;  %4653 = vmatpush.bf16.msra.mxu2 %v8761_v1  ;;  %v9424_v1 = vld [vmem:[%s12527_s1 + $0x2a4] sm:$0xf] }
 0x208   : > { %v10732_v11 = vadd.f32 %v2979_v61, %v2545_v34  ;;  %v10734_v40 = vadd.f32 %v3068_v23, %v2546_v20  ;;  %v8752_v34 = vld [vmem:[%s12527_s1 + $0x2b0] sm:$0xf]  ;;  %v9427_v20 = vld [vmem:[%s12527_s1 + $0x2b4] sm:$0xf0]  ;;  %v8744_v23 = vld [vmem:[%s12527_s1 + $0x2a0] sm:$0xf] }
 0x209   : > { %4742 = vmatpush.bf16.msra.mxu3 %v8765_v30  ;;  %v8753_v22 = vor.u32 %v9427_v20, %v8752_v34  ;;  %v1959_v61 = vld [vmem:[%s9952_s27 + $0xb8] sm:$0xf]  ;;  %v8736_v20 = vld [vmem:[%s12527_s1 + $0x290] sm:$0xf] }
 0x20a   : > { %12564 = vst [vmem:[#allocation29_spill] sm:$0xff] %v10732_v11 }
 0x20b   : > { %12565 = vst [vmem:[#allocation30_spill] sm:$0xff] %v10734_v40  ;;  %v2385_v32 = vpop.f32.mrf.mxu0  ;;  %4654 = vmatpush.bf16.msra.mxu2 %v8753_v22  ;;  %v9422_v22 = vld [vmem:[%s12527_s1 + $0x294] sm:$0xf] }
 0x20c   : > { %v2549_v24 = vadd.f32 %v2385_v32, %v10322_v43  ;;  %v2474_v54 = vpop.f32.mrf.mxu1  ;;  %v8754_v43 = vld [vmem:[%s12527_s1 + $0x2b8] sm:$0xf0]  ;;  %3021 = vmatmul.bf16.gmra.mxu2 %v9385_v57  ;;  %3110 = vmatmul.bf16.gmra.mxu3 %v9385_v57  ;;  %v8746_v32 = vld [vmem:[%s12527_s1 + $0x2a8] sm:$0xf0] }
 0x20d   : > { %v2550_v31 = vadd.f32 %v2474_v54, %v10325_v44  ;;  %v8757_v0 = vor.u32 %v9426_v25, %v8754_v43  ;;  %v9425_v44 = vld [vmem:[%s12527_s1 + $0x2a4] sm:$0xf0]  ;;  %v2251_v54 = vpack.c.b16 %v2234_v48, %v2233_v3  ;;  %v8749_v34 = vor.u32 %v9424_v1, %v8746_v32  ;;  %v9423_v25 = vld [vmem:[%s12527_s1 + $0x294] sm:$0xf0]  ;;  %v8738_v3 = vld [vmem:[%s12527_s1 + $0x298] sm:$0xf0] }
 0x20e   : > { %v8745_v30 = vor.u32 %v9425_v44, %v8744_v23  ;;  %v1960_v44 = vld [vmem:[%s9952_s27 + $0xbc] sm:$0x1]  ;;  %v8741_v1 = vor.u32 %v9422_v22, %v8738_v3  ;;  %v8518_v32 = vld [vmem:[%s9952_s27 + $0xc] sm:$0xf] }
 0x20f   : > { %4743 = vmatpush.bf16.msra.mxu3 %v8757_v0  ;;  %v2982_v33 = vpop.f32.mrf.mxu2  ;;  %v3071_v57 = vpop.f32.mrf.mxu3  ;;  %v2119_v0 = vrot.slane %v1959_v61, 5 }
 0x210   : > { %v10768_v56 = vadd.f32 %v2982_v33, %v2547_v53  ;;  %v10770_v37 = vadd.f32 %v3071_v57, %v2548_v2  ;;  %v1958_v53 = vld [vmem:[%s9952_s27 + $0xb4] sm:$0xe]  ;;  %4655 = vmatpush.bf16.msra.mxu2 %v8745_v30  ;;  %v8737_v2 = vor.u32 %v9423_v25, %v8736_v20  ;;  %v2122_v30 = vrot.slane %v1960_v44, 5  ;;  %v8519_v20 = vld [vmem:[%s9952_s27 + $0x10] sm:$0xf] }
 0x211   : > { %v8261_v57 = vrot.slane %v1958_v53, 9  ;;  %v2121_v61 = vrot.slane %v2119_v0, 4  ;;  %v3303_v53 = vshrl.u32 %v8518_v32, 16  ;;  %v3316_v40 = vshrl.u32 %v8519_v20, 16 }
 0x212   : > { %12566 = vst [vmem:[#allocation31_spill] sm:$0xff] %v10768_v56 }
 0x213   : > { %12567 = vst [vmem:[#allocation32_spill] sm:$0xff] %v10770_v37  ;;  %v2388_v43 = vpop.f32.mrf.mxu0  ;;  %4744 = vmatpush.bf16.msra.mxu3 %v8749_v34  ;;  %v9421_v34 = vld [vmem:[%s12527_s1 + $0x284] sm:$0xf0]  ;;  %v2120_v44 = vsel %vm10351_vm5, %v8261_v57, %v2119_v0  ;;  %v2123_v56 = vsel %vm10351_vm5, %v2121_v61, %v2122_v30  ;;  %v8960_v61 = vld [vmem:[%s12527_s1 + $0x370] sm:$0xf] }
 0x214   : > { %v2551_v48 = vadd.f32 %v2388_v43, %v10340_v10  ;;  %v2477_v23 = vpop.f32.mrf.mxu1  ;;  %4656 = vmatpush.bf16.msra.mxu2 %v8737_v2  ;;  %v8728_v10 = vld [vmem:[%s12527_s1 + $0x280] sm:$0xf]  ;;  %v8730_v43 = vld [vmem:[%s12527_s1 + $0x288] sm:$0xf0]  ;;  %v2235_v0 = vunpack.c.l.b16 %v2120_v44  ;;  %v2236_v57 = vunpack.c.l.b16 %v2123_v56  ;;  %v8962_v56 = vld [vmem:[%s12527_s1 + $0x378] sm:$0xf0] }
 0x215   : > { %v2552_v33 = vadd.f32 %v2477_v23, %v10342_v13  ;;  %v9420_v13 = vld [vmem:[%s12527_s1 + $0x284] sm:$0xf]  ;;  %v8729_v22 = vor.u32 %v9421_v34, %v8728_v10  ;;  %v9386_v23 = vld [vmem:[%s9952_s27 + $0xb4] sm:$0xff]  ;;  %v3306_v10 = vshll.u32 %v8518_v32, 16  ;;  %v3312_v34 = vshll.u32 %v8519_v20, 16 }
 0x216   : > { %2427 = vmatmul.bf16.gmra.mxu0 %v2251_v54  ;;  %v9467_v32 = vld [vmem:[%s12527_s1 + $0x374] sm:$0xf0]  ;;  %v8520_v20 = vld [vmem:[%s9952_s27 + $0x14] sm:$0x1] }
 0x217   : > { %2516 = vmatmul.bf16.gmra.mxu1 %v2251_v54  ;;  %4745 = vmatpush.bf16.msra.mxu3 %v8741_v1  ;;  %v2984_v25 = vpop.f32.mrf.mxu2  ;;  %v3073_v54 = vpop.f32.mrf.mxu3  ;;  %v8733_v1 = vor.u32 %v9420_v13, %v8730_v43  ;;  %v3314_v30 = vrot.slane %v3312_v34, 5 }
 0x218   : > { %v10802_v2 = vadd.f32 %v2984_v25, %v2549_v24  ;;  %v10804_v3 = vadd.f32 %v3073_v54, %v2550_v31  ;;  %4657 = vmatpush.bf16.msra.mxu2 %v8729_v22  ;;  %v3305_v31 = vrot.slane %v3303_v53, 4  ;;  %v2252_v53 = vpack.c.b16 %v2236_v57, %v2235_v0  ;;  %v8521_v0 = vld [vmem:[%s9952_s27 + $0x18] sm:$0xf]  ;;  %v8522_v57 = vld [vmem:[%s9952_s27 + $0x1c] sm:$0xf] }
 0x21b   : > { %v2390_v37 = vpop.f32.mrf.mxu0  ;;  %4746 = vmatpush.bf16.msra.mxu3 %v8733_v1  ;;  %v3322_v1 = vshll.u32 %v8520_v20, 16  ;;  %v8646_v20 = vld [vmem:[%s9952_s27 + $0xc] sm:$0xe] }
 0x21c   : > { %v2553_v11 = vadd.f32 %v2390_v37, %v10355_v41  ;;  %v2479_v14 = vpop.f32.mrf.mxu1  ;;  %3026 = vmatmul.bf16.gmra.mxu2 %v9386_v23  ;;  %3115 = vmatmul.bf16.gmra.mxu3 %v9386_v23  ;;  %v9466_v41 = vld [vmem:[%s12527_s1 + $0x374] sm:$0xf]  ;;  %v3308_v37 = vrot.slane %v3306_v10, 5 }
 0x21d   : > { %v2554_v24 = vadd.f32 %v2479_v14, %v10357_v42  ;;  %v3318_v42 = vrot.slane %v3316_v40, 4  ;;  %v8961_v14 = vor.u32 %v9467_v32, %v8960_v61  ;;  %v8965_v13 = vor.u32 %v9466_v41, %v8962_v56  ;;  %v9387_v56 = vld [vmem:[%s9952_s27 + $0xc0] sm:$0xff] }
 0x21e   : > { %v3309_v23 = vor.u32 %v3308_v37, %v3305_v31  ;;  %v3324_v41 = vrot.slane %v3322_v1, 5  ;;  %v8648_v1 = vld [vmem:[%s9952_s27 + $0x14] sm:$0x1] }
 0x21f   : > { %v2987_v25 = vpop.f32.mrf.mxu2  ;;  %v3076_v54 = vpop.f32.mrf.mxu3  ;;  %5249 = vmatpush.bf16.msrb.mxu0 %v8961_v14  ;;  %5338 = vmatpush.bf16.msrb.mxu1 %v8965_v13  ;;  %v3319_v44 = vor.u32 %v3318_v42, %v3314_v30  ;;  %v3327_v13 = vshrl.u32 %v8521_v0, 16 }
 0x220   : > { %v10826_v22 = vadd.f32 %v2987_v25, %v2551_v48  ;;  %v10828_v43 = vadd.f32 %v3076_v54, %v2552_v33  ;;  %v8647_v48 = vld [vmem:[%s9952_s27 + $0x10] sm:$0xf]  ;;  %v3310_v33 = vrot.slane %v3309_v23, 4  ;;  %v3340_v23 = vshrl.u32 %v8522_v57, 16 }
 0x221   : > { %v3320_v32 = vrot.slane %v3319_v44, 4  ;;  %v4315_v37 = vrot.slane %v8647_v48, 5 }
 0x222   : > { %12568 = vst [vmem:[#allocation33_spill] sm:$0xff] %v10828_v43  ;;  %v3315_v54 = vsel %vm9968_vm2, %v3310_v33, %v3314_v30  ;;  %v4318_v33 = vrot.slane %v8648_v1, 5  ;;  %v8524_v1 = vld [vmem:[%s9952_s27 + $0x24] sm:$0xf] }
 0x223   : > { %v2393_v40 = vpop.f32.mrf.mxu0  ;;  %v3767_v48 = vunpack.c.l.b16 %v3315_v54  ;;  %v4317_v30 = vrot.slane %v4315_v37, 4 }
 0x224   : > { %v2555_v10 = vadd.f32 %v2393_v40, %v10364_v51  ;;  %v2482_v34 = vpop.f32.mrf.mxu1  ;;  %v3336_v40 = vshll.u32 %v8522_v57, 16 }
 0x225   : > { %v2556_v61 = vadd.f32 %v2482_v34, %v10366_v63  ;;  %v3330_v63 = vshll.u32 %v8521_v0, 16  ;;  %v8694_v34 = vrot.slane %v8646_v20, 9 }
 0x226   : > { %2432 = vmatmul.bf16.gmra.mxu0 %v2252_v53 }
 0x227   : > { %2521 = vmatmul.bf16.gmra.mxu1 %v2252_v53  ;;  %v2989_v14 = vpop.f32.mrf.mxu2  ;;  %v3078_v31 = vpop.f32.mrf.mxu3  ;;  %v3325_v53 = vsel %vm9968_vm2, %v3320_v32, %v3324_v41  ;;  %v3342_v32 = vrot.slane %v3340_v23, 4  ;;  %v8523_v41 = vld [vmem:[%s9952_s27 + $0x20] sm:$0x1] }
 0x228   : > { %v10835_v42 = vadd.f32 %v2989_v14, %v2553_v11  ;;  %v10837_v51 = vadd.f32 %v3078_v31, %v2554_v24  ;;  %v3768_v0 = vunpack.c.l.b16 %v3325_v53  ;;  %v3329_v14 = vrot.slane %v3327_v13, 4 }
 0x229   : > { %v3332_v31 = vrot.slane %v3330_v63, 5  ;;  %v4316_v13 = vsel %vm10351_vm5, %v8694_v34, %v4315_v37  ;;  %v4319_v63 = vsel %vm10351_vm5, %v4317_v30, %v4318_v33  ;;  %v3346_v54 = vshll.u32 %v8523_v41, 16 }
 0x22a   : > { %12569 = vst [vmem:[#allocation34_spill] sm:$0xff] %v10835_v42  ;;  %v3351_v33 = vshrl.u32 %v8524_v1, 16 }
 0x22b   : > { %12570 = vst [vmem:[#allocation35_spill] sm:$0xff] %v10837_v51  ;;  %v2395_v25 = vpop.f32.mrf.mxu0  ;;  %v3338_v51 = vrot.slane %v3336_v40, 5  ;;  %v3333_v20 = vor.u32 %v3332_v31, %v3329_v14  ;;  %v4507_v40 = vunpack.c.l.b16 %v4319_v63  ;;  %v3348_v34 = vrot.slane %v3346_v54, 5  ;;  %v8649_v31 = vld [vmem:[%s9952_s27 + $0x18] sm:$0xe] }
 0x22c   : > { %v2557_v44 = vadd.f32 %v2395_v25, %v10370_v27  ;;  %v2484_v11 = vpop.f32.mrf.mxu1  ;;  %3031 = vmatmul.bf16.gmra.mxu2 %v9387_v56  ;;  %3120 = vmatmul.bf16.gmra.mxu3 %v9387_v56 }
 0x22d   : > { %v2558_v24 = vadd.f32 %v2484_v11, %v10372_v18  ;;  %v3799_v18 = vpack.c.b16 %v3768_v0, %v3767_v48  ;;  %v3343_v25 = vor.u32 %v3342_v32, %v3338_v51  ;;  %v3334_v23 = vrot.slane %v3333_v20, 4  ;;  %v8650_v11 = vld [vmem:[%s9952_s27 + $0x1c] sm:$0xf]  ;;  %v8525_v48 = vld [vmem:[%s9952_s27 + $0x28] sm:$0xf] }
 0x22e   : > { %v4322_v30 = vrot.slane %v8650_v11, 5  ;;  %v3364_v63 = vshrl.u32 %v8525_v48, 16  ;;  %v8952_v11 = vld [vmem:[%s12527_s1 + $0x360] sm:$0xf] }
 0x22f   : > { %v2992_v57 = vpop.f32.mrf.mxu2  ;;  %v3081_v42 = vpop.f32.mrf.mxu3  ;;  %v3344_v37 = vrot.slane %v3343_v25, 4  ;;  %v3339_v41 = vsel %vm9968_vm2, %v3334_v23, %v3338_v51 }
 0x230   : > { %v10849_v43 = vadd.f32 %v2992_v57, %v2555_v10  ;;  %v10851_v27 = vadd.f32 %v3081_v42, %v2556_v61  ;;  %v4506_v42 = vunpack.c.l.b16 %v4316_v13  ;;  %v8651_v57 = vld [vmem:[%s9952_s27 + $0x20] sm:$0x1]  ;;  %v3360_v13 = vshll.u32 %v8525_v48, 16 }
 0x231   : > { %v3769_v51 = vunpack.c.l.b16 %v3339_v41 }
 0x233   : > { %v2398_v56 = vpop.f32.mrf.mxu0 }
 0x234   : > { %v2559_v10 = vadd.f32 %v2398_v56, %v10392_v52  ;;  %v2487_v53 = vpop.f32.mrf.mxu1  ;;  %v3354_v56 = vshll.u32 %v8524_v1, 16 }
 0x235   : > { %v2560_v61 = vadd.f32 %v2487_v53, %v10394_v47  ;;  %v4538_v47 = vpack.c.b16 %v4507_v40, %v4506_v42  ;;  %v8695_v53 = vrot.slane %v8649_v31, 9  ;;  %v4325_v42 = vrot.slane %v8651_v57, 5 }
 0x236   : > { %3919 = vmatmul.bf16.vlgmr.msra.gmra.mxu0 %v3799_v18  ;;  %v3353_v40 = vrot.slane %v3351_v33, 4  ;;  %v3356_v1 = vrot.slane %v3354_v56, 5 }
 0x237   : > { %4008 = vmatmul.bf16.vlgmr.msra.gmra.mxu1 %v3799_v18  ;;  %v2994_v0 = vpop.f32.mrf.mxu2  ;;  %v3083_v14 = vpop.f32.mrf.mxu3  ;;  %v3349_v18 = vsel %vm9968_vm2, %v3344_v37, %v3348_v34  ;;  %v3362_v37 = vrot.slane %v3360_v13, 5  ;;  %v3366_v34 = vrot.slane %v3364_v63, 4  ;;  %v4323_v41 = vsel %vm10351_vm5, %v8695_v53, %v4322_v30 }
 0x238   : > { %v10863_v52 = vadd.f32 %v2994_v0, %v2557_v44  ;;  %v10865_v32 = vadd.f32 %v3083_v14, %v2558_v24  ;;  %v4324_v24 = vrot.slane %v4322_v30, 4  ;;  %v3770_v23 = vunpack.c.l.b16 %v3349_v18  ;;  %v8954_v0 = vld [vmem:[%s12527_s1 + $0x368] sm:$0xf0] }
 0x239   : > { %v8526_v14 = vld [vmem:[%s9952_s27 + $0x2c] sm:$0x1]  ;;  %v3357_v63 = vor.u32 %v3356_v1, %v3353_v40 }
 0x23a   : > { %v3800_v18 = vpack.c.b16 %v3770_v23, %v3769_v51  ;;  %v4326_v56 = vsel %vm10351_vm5, %v4324_v24, %v4325_v42  ;;  %v8653_v51 = vld [vmem:[%s9952_s27 + $0x28] sm:$0xf] }
 0x23b   : > { %v2400_v20 = vpop.f32.mrf.mxu0  ;;  %v3358_v23 = vrot.slane %v3357_v63, 4  ;;  %v12574_v63 = vld [vmem:[#allocation7_spill] sm:$0xff] }
 0x23c   : > { %v2561_v25 = vadd.f32 %v2400_v20, %v10398_v7  ;;  %v2489_v54 = vpop.f32.mrf.mxu1  ;;  %4658 = vmatmul.bf16.vlgmr.msra.gmra.mxu2 %v4538_v47  ;;  %4747 = vmatmul.bf16.vlgmr.msra.gmra.mxu3 %v4538_v47  ;;  %v9465_v7 = vld [vmem:[%s12527_s1 + $0x364] sm:$0xf0] }
 0x23d   : > { %v2562_v44 = vadd.f32 %v2489_v54, %v10400_v6  ;;  %v9464_v6 = vld [vmem:[%s12527_s1 + $0x364] sm:$0xf]  ;;  %v8953_v48 = vor.u32 %v9465_v7, %v8952_v11  ;;  %v3367_v54 = vor.u32 %v3366_v34, %v3362_v37  ;;  %v3370_v11 = vshll.u32 %v8526_v14, 16 }
 0x23e   : > { %v8957_v31 = vor.u32 %v9464_v6, %v8954_v0  ;;  %v8527_v6 = vld [vmem:[%s9952_s27 + $0x30] sm:$0xf]  ;;  %v4329_v34 = vrot.slane %v8653_v51, 5 }
 0x23f   : > { %v2997_v33 = vpop.f32.mrf.mxu2  ;;  %v3086_v47 = vpop.f32.mrf.mxu3  ;;  %5250 = vmatpush.bf16.msrb.mxu0 %v8953_v48  ;;  %v3368_v24 = vrot.slane %v3367_v54, 4  ;;  %v3372_v42 = vrot.slane %v3370_v11, 5  ;;  %v8528_v48 = vld [vmem:[%s9952_s27 + $0x34] sm:$0xf] }
 0x240   : > { %v10889_v57 = vadd.f32 %v2997_v33, %v2559_v10  ;;  %v10891_v20 = vadd.f32 %v3086_v47, %v2560_v61  ;;  %5339 = vmatpush.bf16.msrb.mxu1 %v8957_v31  ;;  %v4508_v10 = vunpack.c.l.b16 %v4323_v41  ;;  %v4509_v61 = vunpack.c.l.b16 %v4326_v56 }
 0x241   : > { %v3375_v31 = vshrl.u32 %v8527_v6, 16  ;;  %v3378_v33 = vshll.u32 %v8527_v6, 16  ;;  %v3363_v41 = vsel %vm9968_vm2, %v3358_v23, %v3362_v37  ;;  %v3384_v56 = vshll.u32 %v8528_v48, 16 }
 0x242   : > { %12571 = vst [vmem:[#allocation36_spill] sm:$0xff] %v10891_v20  ;;  %v4539_v1 = vpack.c.b16 %v4509_v61, %v4508_v10  ;;  %v3771_v61 = vunpack.c.l.b16 %v3363_v41  ;;  %v4331_v37 = vrot.slane %v4329_v34, 4 }
 0x243   : > { %v2403_v13 = vpop.f32.mrf.mxu0  ;;  %v3377_v6 = vrot.slane %v3375_v31, 4 }
 0x244   : > { %v2563_v7 = vadd.f32 %v2403_v13, %v10408_v17  ;;  %v2492_v30 = vpop.f32.mrf.mxu1  ;;  %v3388_v13 = vshrl.u32 %v8528_v48, 16 }
 0x245   : > { %v2564_v53 = vadd.f32 %v2492_v30, %v10410_v49  ;;  %v8652_v49 = vld [vmem:[%s9952_s27 + $0x24] sm:$0xe]  ;;  %v12575_v30 = vld [vmem:[#allocation8_spill] sm:$0xff] }
 0x246   : > { %3924 = vmatmul.bf16.gmra.mxu0 %v3800_v18  ;;  %v8696_v10 = vrot.slane %v8652_v49, 9 }
 0x247   : > { %4013 = vmatmul.bf16.gmra.mxu1 %v3800_v18  ;;  %v2999_v0 = vpop.f32.mrf.mxu2  ;;  %v3088_v40 = vpop.f32.mrf.mxu3  ;;  %v3373_v18 = vsel %vm9968_vm2, %v3368_v24, %v3372_v42  ;;  %v3390_v24 = vrot.slane %v3388_v13, 4  ;;  %v8529_v42 = vld [vmem:[%s9952_s27 + $0x38] sm:$0x1] }
 0x248   : > { %v10900_v17 = vadd.f32 %v2999_v0, %v2561_v25  ;;  %v10902_v14 = vadd.f32 %v3088_v40, %v2562_v44  ;;  %v8654_v25 = vld [vmem:[%s9952_s27 + $0x2c] sm:$0x1]  ;;  %v3772_v51 = vunpack.c.l.b16 %v3373_v18  ;;  %v3380_v0 = vrot.slane %v3378_v33, 5 }
 0x249   : > { %v4332_v23 = vrot.slane %v8654_v25, 5  ;;  %v3386_v40 = vrot.slane %v3384_v56, 5  ;;  %v4330_v31 = vsel %vm10351_vm5, %v8696_v10, %v4329_v34  ;;  %v3394_v18 = vshll.u32 %v8529_v42, 16  ;;  %v12578_v56 = vld [vmem:[#allocation9_spill] sm:$0xff] }
 0x24a   : > { %12572 = vst [vmem:[#allocation37_spill] sm:$0xff] %v10900_v17  ;;  %v3801_v49 = vpack.c.b16 %v3772_v51, %v3771_v61  ;;  %v8656_v61 = vld [vmem:[%s9952_s27 + $0x34] sm:$0xf]  ;;  %v8530_v51 = vld [vmem:[%s9952_s27 + $0x3c] sm:$0xf] }
 0x24b   : > { %12573 = vst [vmem:[#allocation38_spill] sm:$0xff] %v10902_v14  ;;  %v2405_v47 = vpop.f32.mrf.mxu0  ;;  %v4333_v33 = vsel %vm10351_vm5, %v4331_v37, %v4332_v23  ;;  %v3391_v41 = vor.u32 %v3390_v24, %v3386_v40  ;;  %v3396_v10 = vrot.slane %v3394_v18, 5  ;;  %v8655_v23 = vld [vmem:[%s9952_s27 + $0x30] sm:$0xe]  ;;  %v4336_v24 = vrot.slane %v8656_v61, 5 }
 0x24c   : > { %v2565_v54 = vadd.f32 %v2405_v47, %v12574_v63  ;;  %v2494_v11 = vpop.f32.mrf.mxu1  ;;  %4663 = vmatmul.bf16.gmra.mxu2 %v4539_v1  ;;  %4752 = vmatmul.bf16.gmra.mxu3 %v4539_v1  ;;  %v3381_v63 = vor.u32 %v3380_v0, %v3377_v6  ;;  %v4511_v25 = vunpack.c.l.b16 %v4333_v33  ;;  %v8531_v6 = vld [vmem:[%s9952_s27 + $0x40] sm:$0xf]  ;;  %v3399_v42 = vshrl.u32 %v8530_v51, 16 }
 0x24d   : > { %v2566_v44 = vadd.f32 %v2494_v11, %v12575_v30  ;;  %v12579_v11 = vld [vmem:[#allocation10_spill] sm:$0xff]  ;;  %v3392_v34 = vrot.slane %v3391_v41, 4  ;;  %v3402_v41 = vshll.u32 %v8530_v51, 16  ;;  %v3408_v18 = vshll.u32 %v8531_v6, 16  ;;  %v8944_v51 = vld [vmem:[%s12527_s1 + $0x350] sm:$0xf] }
 0x24e   : > { %v3382_v30 = vrot.slane %v3381_v63, 4 }
 0x24f   : > { %v3002_v48 = vpop.f32.mrf.mxu2  ;;  %v3091_v14 = vpop.f32.mrf.mxu3 }
 0x250   : > { %v10913_v17 = vadd.f32 %v3002_v48, %v2563_v7  ;;  %v10915_v47 = vadd.f32 %v3091_v14, %v2564_v53  ;;  %v4510_v14 = vunpack.c.l.b16 %v4330_v31  ;;  %v3387_v63 = vsel %vm9968_vm2, %v3382_v30, %v3386_v40  ;;  %v8657_v31 = vld [vmem:[%s9952_s27 + $0x38] sm:$0x1] }
 0x251   : > { %v3773_v40 = vunpack.c.l.b16 %v3387_v63  ;;  %v8532_v63 = vld [vmem:[%s9952_s27 + $0x44] sm:$0x1] }
 0x252   : > { %12576 = vst [vmem:[#allocation7_spill] sm:$0xff] %v10913_v17  ;;  %v8697_v17 = vrot.slane %v8655_v23, 9 }
 0x253   : > { %12577 = vst [vmem:[#allocation8_spill] sm:$0xff] %v10915_v47  ;;  %v2408_v1 = vpop.f32.mrf.mxu0 }
 0x254   : > { %v2567_v7 = vadd.f32 %v2408_v1, %v12578_v56  ;;  %v2497_v13 = vpop.f32.mrf.mxu1  ;;  %v4540_v56 = vpack.c.b16 %v4511_v25, %v4510_v14  ;;  %v4339_v14 = vrot.slane %v8657_v31, 5  ;;  %v3401_v25 = vrot.slane %v3399_v42, 4 }
 0x255   : > { %v2568_v53 = vadd.f32 %v2497_v13, %v12579_v11  ;;  %v3412_v13 = vshrl.u32 %v8531_v6, 16  ;;  %v12582_v11 = vld [vmem:[#allocation11_spill] sm:$0xff]  ;;  %v3404_v6 = vrot.slane %v3402_v41, 5 }
 0x256   : > { %3929 = vmatmul.bf16.gmra.mxu0 %v3801_v49 }
 0x257   : > { %4018 = vmatmul.bf16.gmra.mxu1 %v3801_v49  ;;  %v3004_v0 = vpop.f32.mrf.mxu2  ;;  %v3093_v37 = vpop.f32.mrf.mxu3  ;;  %v3397_v49 = vsel %vm9968_vm2, %v3392_v34, %v3396_v10  ;;  %v9463_v34 = vld [vmem:[%s12527_s1 + $0x354] sm:$0xf0]  ;;  %v9462_v10 = vld [vmem:[%s12527_s1 + $0x354] sm:$0xf]  ;;  %v3414_v23 = vrot.slane %v3412_v13, 4 }
 0x258   : > { %v10927_v48 = vadd.f32 %v3004_v0, %v2565_v54  ;;  %v10929_v1 = vadd.f32 %v3093_v37, %v2566_v44  ;;  %v12583_v54 = vld [vmem:[#allocation12_spill] sm:$0xff]  ;;  %v4338_v44 = vrot.slane %v4336_v24, 4  ;;  %v3774_v30 = vunpack.c.l.b16 %v3397_v49 }
 0x259   : > { %v3410_v37 = vrot.slane %v3408_v18, 5  ;;  %v8945_v42 = vor.u32 %v9463_v34, %v8944_v51  ;;  %v3405_v51 = vor.u32 %v3404_v6, %v3401_v25 }
 0x25a   : > { %12580 = vst [vmem:[#allocation9_spill] sm:$0xff] %v10927_v48  ;;  %v3802_v41 = vpack.c.b16 %v3774_v30, %v3773_v40  ;;  %v4340_v18 = vsel %vm10351_vm5, %v4338_v44, %v4339_v14  ;;  %v8659_v40 = vld [vmem:[%s9952_s27 + $0x40] sm:$0xf] }
 0x25b   : > { %12581 = vst [vmem:[#allocation10_spill] sm:$0xff] %v10929_v1  ;;  %v2410_v33 = vpop.f32.mrf.mxu0  ;;  %5251 = vmatpush.bf16.msrb.mxu0 %v8945_v42  ;;  %v3415_v34 = vor.u32 %v3414_v23, %v3410_v37  ;;  %v3406_v30 = vrot.slane %v3405_v51, 4  ;;  %v4343_v23 = vrot.slane %v8659_v40, 5  ;;  %v12591_v40 = vld [vmem:[#allocation16_spill] sm:$0xff] }
 0x25c   : > { %v2569_v47 = vadd.f32 %v2410_v33, %v12582_v11  ;;  %v2499_v61 = vpop.f32.mrf.mxu1  ;;  %4668 = vmatmul.bf16.gmra.mxu2 %v4540_v56  ;;  %4757 = vmatmul.bf16.gmra.mxu3 %v4540_v56  ;;  %v8946_v56 = vld [vmem:[%s12527_s1 + $0x358] sm:$0xf0]  ;;  %v4337_v11 = vsel %vm10351_vm5, %v8697_v17, %v4336_v24  ;;  %v12587_v24 = vld [vmem:[#allocation14_spill] sm:$0xff] }
 0x25d   : > { %v2570_v0 = vadd.f32 %v2499_v61, %v12583_v54  ;;  %v8949_v31 = vor.u32 %v9462_v10, %v8946_v56  ;;  %v3418_v10 = vshll.u32 %v8532_v63, 16  ;;  %v12586_v56 = vld [vmem:[#allocation13_spill] sm:$0xff]  ;;  %v3416_v44 = vrot.slane %v3415_v34, 4 }
 0x25f   : > { %v3007_v33 = vpop.f32.mrf.mxu2  ;;  %v3096_v49 = vpop.f32.mrf.mxu3  ;;  %5340 = vmatpush.bf16.msrb.mxu1 %v8949_v31  ;;  %v3420_v14 = vrot.slane %v3418_v10, 5  ;;  %v8533_v31 = vld [vmem:[%s9952_s27 + $0x48] sm:$0xf] }
 0x260   : > { %v10953_v61 = vadd.f32 %v3007_v33, %v2567_v7  ;;  %v10955_v54 = vadd.f32 %v3096_v49, %v2568_v53  ;;  %v4512_v7 = vunpack.c.l.b16 %v4337_v11  ;;  %v4513_v53 = vunpack.c.l.b16 %v4340_v18  ;;  %v8534_v33 = vld [vmem:[%s9952_s27 + $0x4c] sm:$0xf]  ;;  %v8658_v11 = vld [vmem:[%s9952_s27 + $0x3c] sm:$0xe] }
 0x261   : > { %v3426_v18 = vshll.u32 %v8533_v31, 16  ;;  %v3421_v51 = vsel %vm9968_vm2, %v3416_v44, %v3420_v14  ;;  %v3432_v34 = vshll.u32 %v8534_v33, 16  ;;  %v3436_v10 = vshrl.u32 %v8534_v33, 16  ;;  %v8535_v14 = vld [vmem:[%s9952_s27 + $0x50] sm:$0x1] }
 0x262   : > { %12584 = vst [vmem:[#allocation11_spill] sm:$0xff] %v10953_v61  ;;  %v4541_v6 = vpack.c.b16 %v4513_v53, %v4512_v7 }
 0x263   : > { %12585 = vst [vmem:[#allocation12_spill] sm:$0xff] %v10955_v54  ;;  %v2413_v13 = vpop.f32.mrf.mxu0  ;;  %v3434_v54 = vrot.slane %v3432_v34, 5  ;;  %v3438_v44 = vrot.slane %v3436_v10, 4  ;;  %v12594_v34 = vld [vmem:[#allocation17_spill] sm:$0xff] }
 0x264   : > { %v2571_v1 = vadd.f32 %v2413_v13, %v12586_v56  ;;  %v2502_v17 = vpop.f32.mrf.mxu1  ;;  %v3423_v56 = vshrl.u32 %v8533_v31, 16 }
 0x265   : > { %v2572_v42 = vadd.f32 %v2502_v17, %v12587_v24  ;;  %v12590_v24 = vld [vmem:[#allocation15_spill] sm:$0xff] }
 0x266   : > { %3934 = vmatmul.bf16.gmra.mxu0 %v3802_v41 }
 0x267   : > { %4023 = vmatmul.bf16.gmra.mxu1 %v3802_v41  ;;  %v3009_v49 = vpop.f32.mrf.mxu2  ;;  %v3098_v25 = vpop.f32.mrf.mxu3  ;;  %v3411_v41 = vsel %vm9968_vm2, %v3406_v30, %v3410_v37  ;;  %v4345_v37 = vrot.slane %v4343_v23, 4 }
 0x268   : > { %v10964_v63 = vadd.f32 %v3009_v49, %v2569_v47  ;;  %v10966_v13 = vadd.f32 %v3098_v25, %v2570_v0  ;;  %v8660_v47 = vld [vmem:[%s9952_s27 + $0x44] sm:$0x1]  ;;  %v8698_v49 = vrot.slane %v8658_v11, 9  ;;  %v3775_v31 = vunpack.c.l.b16 %v3411_v41 }
 0x269   : > { %v3776_v25 = vunpack.c.l.b16 %v3421_v51  ;;  %v4346_v30 = vrot.slane %v8660_v47, 5  ;;  %v3439_v41 = vor.u32 %v3438_v44, %v3434_v54  ;;  %v3442_v51 = vshll.u32 %v8535_v14, 16 }
 0x26a   : > { %12588 = vst [vmem:[#allocation13_spill] sm:$0xff] %v10964_v63  ;;  %v3428_v63 = vrot.slane %v3426_v18, 5 }
 0x26b   : > { %12589 = vst [vmem:[#allocation14_spill] sm:$0xff] %v10966_v13  ;;  %v2415_v17 = vpop.f32.mrf.mxu0  ;;  %v3425_v13 = vrot.slane %v3423_v56, 4  ;;  %v3803_v11 = vpack.c.b16 %v3776_v25, %v3775_v31  ;;  %v4344_v56 = vsel %vm10351_vm5, %v8698_v49, %v4343_v23  ;;  %v4347_v18 = vsel %vm10351_vm5, %v4345_v37, %v4346_v30  ;;  %v8537_v31 = vld [vmem:[%s9952_s27 + $0x58] sm:$0xf]  ;;  %v8661_v30 = vld [vmem:[%s9952_s27 + $0x48] sm:$0xe] }
 0x26c   : > { %v2573_v7 = vadd.f32 %v2415_v17, %v12590_v24  ;;  %v2504_v53 = vpop.f32.mrf.mxu1  ;;  %4673 = vmatmul.bf16.gmra.mxu2 %v4541_v6  ;;  %4762 = vmatmul.bf16.gmra.mxu3 %v4541_v6  ;;  %v4515_v47 = vunpack.c.l.b16 %v4347_v18  ;;  %v3440_v23 = vrot.slane %v3439_v41, 4  ;;  %v3444_v49 = vrot.slane %v3442_v51, 5 }
 0x26d   : > { %v2574_v0 = vadd.f32 %v2504_v53, %v12591_v40  ;;  %v3429_v24 = vor.u32 %v3428_v63, %v3425_v13  ;;  %v12595_v53 = vld [vmem:[#allocation18_spill] sm:$0xff]  ;;  %v8662_v13 = vld [vmem:[%s9952_s27 + $0x4c] sm:$0xf]  ;;  %v8536_v40 = vld [vmem:[%s9952_s27 + $0x54] sm:$0xf]  ;;  %v3456_v51 = vshll.u32 %v8537_v31, 16 }
 0x26e   : > { %v4350_v44 = vrot.slane %v8662_v13, 5  ;;  %v3447_v14 = vshrl.u32 %v8536_v40, 16  ;;  %v3450_v41 = vshll.u32 %v8536_v40, 16  ;;  %v8936_v40 = vld [vmem:[%s12527_s1 + $0x340] sm:$0xf] }
 0x26f   : > { %v3012_v33 = vpop.f32.mrf.mxu2  ;;  %v3101_v61 = vpop.f32.mrf.mxu3  ;;  %v3430_v63 = vrot.slane %v3429_v24, 4 }
 0x270   : > { %v10977_v48 = vadd.f32 %v3012_v33, %v2571_v1  ;;  %v10979_v17 = vadd.f32 %v3101_v61, %v2572_v42  ;;  %v4514_v42 = vunpack.c.l.b16 %v4344_v56  ;;  %v8663_v56 = vld [vmem:[%s9952_s27 + $0x50] sm:$0x1] }
 0x271   : > { %v3435_v24 = vsel %vm9968_vm2, %v3430_v63, %v3434_v54 }
 0x272   : > { %12592 = vst [vmem:[#allocation15_spill] sm:$0xff] %v10977_v48  ;;  %v8699_v48 = vrot.slane %v8661_v30, 9  ;;  %v3777_v54 = vunpack.c.l.b16 %v3435_v24  ;;  %v8538_v24 = vld [vmem:[%s9952_s27 + $0x5c] sm:$0x1] }
 0x273   : > { %12593 = vst [vmem:[#allocation16_spill] sm:$0xff] %v10979_v17  ;;  %v2418_v6 = vpop.f32.mrf.mxu0 }
 0x274   : > { %v2575_v1 = vadd.f32 %v2418_v6, %v12594_v34  ;;  %v2507_v10 = vpop.f32.mrf.mxu1  ;;  %v4542_v34 = vpack.c.b16 %v4515_v47, %v4514_v42  ;;  %v4353_v42 = vrot.slane %v8663_v56, 5  ;;  %v3449_v47 = vrot.slane %v3447_v14, 4 }
 0x275   : > { %v2576_v61 = vadd.f32 %v2507_v10, %v12595_v53  ;;  %v3460_v10 = vshrl.u32 %v8537_v31, 16  ;;  %v12598_v53 = vld [vmem:[#allocation19_spill] sm:$0xff]  ;;  %v3452_v31 = vrot.slane %v3450_v41, 5  ;;  %v4351_v41 = vsel %vm10351_vm5, %v8699_v48, %v4350_v44 }
 0x276   : > { %3939 = vmatmul.bf16.gmra.mxu0 %v3803_v11 }
 0x277   : > { %4028 = vmatmul.bf16.gmra.mxu1 %v3803_v11  ;;  %v3014_v25 = vpop.f32.mrf.mxu2  ;;  %v3103_v37 = vpop.f32.mrf.mxu3  ;;  %v3445_v11 = vsel %vm9968_vm2, %v3440_v23, %v3444_v49  ;;  %v9461_v23 = vld [vmem:[%s12527_s1 + $0x344] sm:$0xf0]  ;;  %v9460_v49 = vld [vmem:[%s12527_s1 + $0x344] sm:$0xf]  ;;  %v3462_v30 = vrot.slane %v3460_v10, 4 }
 0x278   : > { %v10991_v33 = vadd.f32 %v3014_v25, %v2573_v7  ;;  %v10993_v6 = vadd.f32 %v3103_v37, %v2574_v0  ;;  %v12599_v7 = vld [vmem:[#allocation20_spill] sm:$0xff]  ;;  %v4352_v0 = vrot.slane %v4350_v44, 4  ;;  %v3778_v63 = vunpack.c.l.b16 %v3445_v11 }
 0x279   : > { %v3458_v37 = vrot.slane %v3456_v51, 5  ;;  %v8937_v14 = vor.u32 %v9461_v23, %v8936_v40  ;;  %v3453_v40 = vor.u32 %v3452_v31, %v3449_v47 }
 0x27a   : > { %12596 = vst [vmem:[#allocation17_spill] sm:$0xff] %v10991_v33  ;;  %v4354_v10 = vsel %vm10351_vm5, %v4352_v0, %v4353_v42 }
 0x27b   : > { %12597 = vst [vmem:[#allocation18_spill] sm:$0xff] %v10993_v6  ;;  %v2420_v18 = vpop.f32.mrf.mxu0  ;;  %5252 = vmatpush.bf16.msrb.mxu0 %v8937_v14  ;;  %v3463_v23 = vor.u32 %v3462_v30, %v3458_v37  ;;  %v3454_v48 = vrot.slane %v3453_v40, 4  ;;  %v8666_v6 = vld [vmem:[%s9952_s27 + $0x5c] sm:$0x1] }
 0x27c   : > { %v2577_v17 = vadd.f32 %v2420_v18, %v12598_v53  ;;  %v2509_v13 = vpop.f32.mrf.mxu1  ;;  %4678 = vmatmul.bf16.gmra.mxu2 %v4542_v34  ;;  %4767 = vmatmul.bf16.gmra.mxu3 %v4542_v34  ;;  %v8938_v34 = vld [vmem:[%s12527_s1 + $0x348] sm:$0xf0] }
 0x27d   : > { %v2578_v25 = vadd.f32 %v2509_v13, %v12599_v7  ;;  %v8941_v56 = vor.u32 %v9460_v49, %v8938_v34  ;;  %v3804_v7 = vpack.c.b16 %v3778_v63, %v3777_v54  ;;  %v3466_v49 = vshll.u32 %v8538_v24, 16  ;;  %v12602_v34 = vld [vmem:[#allocation21_spill] sm:$0xff] }
 0x27e   : > { %v4516_v54 = vunpack.c.l.b16 %v4351_v41  ;;  %v4517_v63 = vunpack.c.l.b16 %v4354_v10  ;;  %v3464_v44 = vrot.slane %v3463_v23, 4 }
 0x27f   : > { %v3017_v18 = vpop.f32.mrf.mxu2  ;;  %v3106_v11 = vpop.f32.mrf.mxu3  ;;  %5341 = vmatpush.bf16.msrb.mxu1 %v8941_v56  ;;  %v3468_v56 = vrot.slane %v3466_v49, 5  ;;  %v12606_v49 = vld [vmem:[#allocation23_spill] sm:$0xff] }
 0x280   : > { %v11015_v53 = vadd.f32 %v3017_v18, %v2575_v1  ;;  %v11017_v13 = vadd.f32 %v3106_v11, %v2576_v61  ;;  %v12603_v18 = vld [vmem:[#allocation22_spill] sm:$0xff]  ;;  %v4543_v41 = vpack.c.b16 %v4517_v63, %v4516_v54 }
 0x281   : > { %v8539_v11 = vld [vmem:[%s9952_s27 + $0x60] sm:$0xf]  ;;  %v3469_v40 = vsel %vm9968_vm2, %v3464_v44, %v3468_v56 }
 0x282   : > { %12600 = vst [vmem:[#allocation19_spill] sm:$0xff] %v11015_v53  ;;  %v8665_v53 = vld [vmem:[%s9952_s27 + $0x58] sm:$0xf]  ;;  %v3471_v0 = vshrl.u32 %v8539_v11, 16  ;;  %v3474_v42 = vshll.u32 %v8539_v11, 16 }
 0x283   : > { %12601 = vst [vmem:[#allocation20_spill] sm:$0xff] %v11017_v13  ;;  %v2423_v51 = vpop.f32.mrf.mxu0  ;;  %v8540_v13 = vld [vmem:[%s9952_s27 + $0x64] sm:$0xf]  ;;  %v4357_v23 = vrot.slane %v8665_v53, 5  ;;  %v8664_v11 = vld [vmem:[%s9952_s27 + $0x54] sm:$0xe] }
 0x284   : > { %v2579_v14 = vadd.f32 %v2423_v51, %v12602_v34  ;;  %v2512_v1 = vpop.f32.mrf.mxu1  ;;  %v3480_v30 = vshll.u32 %v8540_v13, 16  ;;  %v3484_v24 = vshrl.u32 %v8540_v13, 16  ;;  %v3473_v13 = vrot.slane %v3471_v0, 4 }
 0x285   : > { %v2580_v61 = vadd.f32 %v2512_v1, %v12603_v18  ;;  %v4360_v53 = vrot.slane %v8666_v6, 5 }
 0x286   : > { %3944 = vmatmul.bf16.gmra.mxu0 %v3804_v7  ;;  %v3486_v54 = vrot.slane %v3484_v24, 4 }
 0x287   : > { %4033 = vmatmul.bf16.gmra.mxu1 %v3804_v7  ;;  %v3019_v47 = vpop.f32.mrf.mxu2  ;;  %v3108_v31 = vpop.f32.mrf.mxu3  ;;  %v3459_v7 = vsel %vm9968_vm2, %v3454_v48, %v3458_v37  ;;  %v3780_v37 = vunpack.c.l.b16 %v3469_v40  ;;  %v8541_v48 = vld [vmem:[%s9952_s27 + $0x68] sm:$0x1] }
 0x288   : > { %v11028_v51 = vadd.f32 %v3019_v47, %v2577_v17  ;;  %v11030_v34 = vadd.f32 %v3108_v31, %v2578_v25  ;;  %v3476_v17 = vrot.slane %v3474_v42, 5  ;;  %v12607_v47 = vld [vmem:[#allocation24_spill] sm:$0xff]  ;;  %v3482_v31 = vrot.slane %v3480_v30, 5 }
 0x289   : > { %v3779_v63 = vunpack.c.l.b16 %v3459_v7  ;;  %v3490_v0 = vshll.u32 %v8541_v48, 16 }
 0x28a   : > { %12604 = vst [vmem:[#allocation21_spill] sm:$0xff] %v11028_v51  ;;  %v4359_v51 = vrot.slane %v4357_v23, 4  ;;  %v3477_v44 = vor.u32 %v3476_v17, %v3473_v13  ;;  %v8668_v13 = vld [vmem:[%s9952_s27 + $0x64] sm:$0xf] }
 0x28b   : > { %12605 = vst [vmem:[#allocation22_spill] sm:$0xff] %v11030_v34  ;;  %v2425_v10 = vpop.f32.mrf.mxu0  ;;  %v8700_v34 = vrot.slane %v8664_v11, 9  ;;  %v3805_v30 = vpack.c.b16 %v3780_v37, %v3779_v63  ;;  %v3492_v17 = vrot.slane %v3490_v0, 5  ;;  %v8543_v37 = vld [vmem:[%s9952_s27 + $0x70] sm:$0xf] }
 0x28c   : > { %v2581_v1 = vadd.f32 %v2425_v10, %v12606_v49  ;;  %v2514_v18 = vpop.f32.mrf.mxu1  ;;  %4683 = vmatmul.bf16.gmra.mxu2 %v4543_v41  ;;  %4772 = vmatmul.bf16.gmra.mxu3 %v4543_v41  ;;  %v3487_v49 = vor.u32 %v3486_v54, %v3482_v31  ;;  %v4361_v7 = vsel %vm10351_vm5, %v4359_v51, %v4360_v53  ;;  %v3478_v11 = vrot.slane %v3477_v44, 4 }
 0x28d   : > { %v2582_v25 = vadd.f32 %v2514_v18, %v12607_v47  ;;  %v4358_v41 = vsel %vm10351_vm5, %v8700_v34, %v4357_v23  ;;  %v8542_v47 = vld [vmem:[%s9952_s27 + $0x6c] sm:$0xf]  ;;  %v4519_v63 = vunpack.c.l.b16 %v4361_v7  ;;  %v4364_v34 = vrot.slane %v8668_v13, 5  ;;  %v8667_v23 = vld [vmem:[%s9952_s27 + $0x60] sm:$0xe] }
 0x28e   : > { %v4518_v54 = vunpack.c.l.b16 %v4358_v41  ;;  %v3483_v51 = vsel %vm9968_vm2, %v3478_v11, %v3482_v31  ;;  %v3495_v48 = vshrl.u32 %v8542_v47, 16  ;;  %v8701_v7 = vrot.slane %v8667_v23, 9  ;;  %v12610_v11 = vld [vmem:[#allocation25_spill] sm:$0xff] }
 0x28f   : > { %v3022_v56 = vpop.f32.mrf.mxu2  ;;  %v3111_v10 = vpop.f32.mrf.mxu3  ;;  %v8930_v23 = vld [vmem:[%s12527_s1 + $0x338] sm:$0xf0] }
 0x290   : > { %v11041_v42 = vadd.f32 %v3022_v56, %v2579_v14  ;;  %v11043_v18 = vadd.f32 %v3111_v10, %v2580_v61  ;;  %v3488_v61 = vrot.slane %v3487_v49, 4  ;;  %v3498_v56 = vshll.u32 %v8542_v47, 16 }
 0x291   : > { %v3504_v10 = vshll.u32 %v8543_v37, 16  ;;  %v3508_v49 = vshrl.u32 %v8543_v37, 16  ;;  %v3497_v20 = vrot.slane %v3495_v48, 4 }
 0x292   : > { %12608 = vst [vmem:[#allocation23_spill] sm:$0xff] %v11041_v42  ;;  %v3781_v42 = vunpack.c.l.b16 %v3483_v51  ;;  %v3500_v47 = vrot.slane %v3498_v56, 5  ;;  %v8544_v51 = vld [vmem:[%s9952_s27 + $0x74] sm:$0x1] }
 0x293   : > { %12609 = vst [vmem:[#allocation24_spill] sm:$0xff] %v11043_v18  ;;  %v2428_v24 = vpop.f32.mrf.mxu0  ;;  %v11066_v37 = vrot.slane %v3504_v10, 5 }
 0x294   : > { %v2583_v6 = vadd.f32 %v2428_v24, %v10524_v50  ;;  %v2517_v40 = vpop.f32.mrf.mxu1  ;;  %v8669_v50 = vld [vmem:[%s9952_s27 + $0x68] sm:$0x1]  ;;  %v3501_v10 = vor.u32 %v3500_v47, %v3497_v20  ;;  %v8545_v47 = vld [vmem:[%s9952_s27 + $0x78] sm:$0xf] }
 0x295   : > { %v2584_v14 = vadd.f32 %v2517_v40, %v10526_v16  ;;  %v3493_v16 = vsel %vm9968_vm2, %v3488_v61, %v3492_v17  ;;  %v4366_v40 = vrot.slane %v4364_v34, 4  ;;  %v4367_v31 = vrot.slane %v8669_v50, 5  ;;  %v12611_v61 = vld [vmem:[#allocation26_spill] sm:$0xff] }
 0x296   : > { %3949 = vmatmul.bf16.gmra.mxu0 %v3805_v30  ;;  %v3782_v33 = vunpack.c.l.b16 %v3493_v16  ;;  %v4365_v16 = vsel %vm10351_vm5, %v8701_v7, %v4364_v34 }
 0x297   : > { %4038 = vmatmul.bf16.gmra.mxu1 %v3805_v30  ;;  %v3024_v53 = vpop.f32.mrf.mxu2  ;;  %v3113_v44 = vpop.f32.mrf.mxu3  ;;  %v4544_v30 = vpack.c.b16 %v4519_v63, %v4518_v54  ;;  %v9459_v54 = vld [vmem:[%s12527_s1 + $0x334] sm:$0xf0]  ;;  %v9458_v63 = vld [vmem:[%s12527_s1 + $0x334] sm:$0xf]  ;;  %v4368_v56 = vsel %vm10351_vm5, %v4366_v40, %v4367_v31  ;;  %v4520_v20 = vunpack.c.l.b16 %v4365_v16  ;;  %v3502_v31 = vrot.slane %v3501_v10, 4 }
 0x298   : > { %v11060_v0 = vadd.f32 %v3024_v53, %v2581_v1  ;;  %v11062_v24 = vadd.f32 %v3113_v44, %v2582_v25  ;;  %v3510_v1 = vrot.slane %v3508_v49, 4  ;;  %v8928_v25 = vld [vmem:[%s12527_s1 + $0x330] sm:$0xf]  ;;  %v8933_v50 = vor.u32 %v9458_v63, %v8930_v23 }
 0x299   : > { %v3806_v44 = vpack.c.b16 %v3782_v33, %v3781_v42  ;;  %v4521_v40 = vunpack.c.l.b16 %v4368_v56  ;;  %v3522_v10 = vshll.u32 %v8545_v47, 16 }
 0x29a   : > { %5342 = vmatpush.bf16.msrb.mxu1 %v8933_v50 }
 0x29b   : > { %v2430_v41 = vpop.f32.mrf.mxu0  ;;  %v4545_v63 = vpack.c.b16 %v4521_v40, %v4520_v20 }
 0x29c   : > { %v2585_v13 = vadd.f32 %v2430_v41, %v12610_v11  ;;  %v2519_v18 = vpop.f32.mrf.mxu1  ;;  %4688 = vmatmul.bf16.gmra.mxu2 %v4544_v30  ;;  %4777 = vmatmul.bf16.gmra.mxu3 %v4544_v30  ;;  %v3511_v41 = vor.u32 %v3510_v1, %v11066_v37  ;;  %v3514_v11 = vshll.u32 %v8544_v51, 16  ;;  %v8546_v1 = vld [vmem:[%s9952_s27 + $0x7c] sm:$0xf]  ;;  %v8670_v51 = vld [vmem:[%s9952_s27 + $0x6c] sm:$0xe] }
 0x29d   : > { %v2586_v17 = vadd.f32 %v2519_v18, %v12611_v61  ;;  %v8929_v18 = vor.u32 %v9459_v54, %v8928_v25  ;;  %v8671_v61 = vld [vmem:[%s9952_s27 + $0x70] sm:$0xf]  ;;  %v8702_v20 = vrot.slane %v8670_v51, 9 }
 0x29f   : > { %v3027_v48 = vpop.f32.mrf.mxu2  ;;  %v3116_v53 = vpop.f32.mrf.mxu3  ;;  %5253 = vmatpush.bf16.msrb.mxu0 %v8929_v18 }
 0x2a0   : > { %v11085_v49 = vadd.f32 %v3027_v48, %v2583_v6  ;;  %v11087_v30 = vadd.f32 %v3116_v53, %v2584_v14  ;;  %v3512_v6 = vrot.slane %v3511_v41, 4  ;;  %v3516_v14 = vrot.slane %v3514_v11, 5  ;;  %v9088_v48 = vld [vmem:[%s12527_s1 + $0x3f0] sm:$0xf]  ;;  %v9483_v53 = vld [vmem:[%s12527_s1 + $0x3f4] sm:$0xf0] }
 0x2a1   : > { %v9089_v56 = vor.u32 %v9483_v53, %v9088_v48  ;;  %v3532_v41 = vshrl.u32 %v8546_v1, 16  ;;  %v8547_v48 = vld [vmem:[%s9952_s27 + $0x80] sm:$0x1] }
 0x2a2   : > { %v3517_v50 = vsel %vm9968_vm2, %v3512_v6, %v3516_v14 }
 0x2a3   : > { %v2433_v33 = vpop.f32.mrf.mxu0  ;;  %6212 = vmatpush.bf16.msrb.mxu2 %v9089_v56  ;;  %v3784_v6 = vunpack.c.l.b16 %v3517_v50 }
 0x2a4   : > { %v2587_v42 = vadd.f32 %v2433_v33, %v10552_v45  ;;  %v2522_v34 = vpop.f32.mrf.mxu1  ;;  %v3507_v45 = vsel %vm9968_vm2, %v3502_v31, %v11066_v37  ;;  %v8672_v37 = vld [vmem:[%s9952_s27 + $0x74] sm:$0x1]  ;;  %v12612_v33 = vld [vmem:[#allocation27_spill] sm:$0xff] }
 0x2a5   : > { %v2588_v7 = vadd.f32 %v2522_v34, %v10554_v21  ;;  %v4371_v21 = vrot.slane %v8671_v61, 5  ;;  %v3783_v31 = vunpack.c.l.b16 %v3507_v45  ;;  %v4374_v14 = vrot.slane %v8672_v37, 5 }
 0x2a6   : > { %3954 = vmatmul.bf16.gmra.mxu0 %v3806_v44 }
 0x2a7   : > { %4043 = vmatmul.bf16.gmra.mxu1 %v3806_v44  ;;  %v3029_v25 = vpop.f32.mrf.mxu2  ;;  %v3118_v54 = vpop.f32.mrf.mxu3  ;;  %v3519_v44 = vshrl.u32 %v8545_v47, 16  ;;  %v4373_v40 = vrot.slane %v4371_v21, 4  ;;  %v9482_v47 = vld [vmem:[%s12527_s1 + $0x3f4] sm:$0xf] }
 0x2a8   : > { %v11099_v18 = vadd.f32 %v3029_v25, %v2585_v13  ;;  %v11101_v23 = vadd.f32 %v3118_v54, %v2586_v17  ;;  %v3528_v13 = vshll.u32 %v8546_v1, 16  ;;  %v3524_v1 = vrot.slane %v3522_v10, 5 }
 0x2a9   : > { %v3521_v61 = vrot.slane %v3519_v44, 4  ;;  %v3534_v54 = vrot.slane %v3532_v41, 4  ;;  %v3807_v44 = vpack.c.b16 %v3784_v6, %v3783_v31  ;;  %v4375_v56 = vsel %vm10351_vm5, %v4373_v40, %v4374_v14 }
 0x2aa   : > { %v3530_v25 = vrot.slane %v3528_v13, 5  ;;  %v3538_v41 = vshll.u32 %v8547_v48, 16  ;;  %v4523_v6 = vunpack.c.l.b16 %v4375_v56 }
 0x2ab   : > { %v2435_v16 = vpop.f32.mrf.mxu0  ;;  %v3525_v10 = vor.u32 %v3524_v1, %v3521_v61  ;;  %v8549_v61 = vld [vmem:[%s9952_s27 + $0x88] sm:$0xf] }
 0x2ac   : > { %v2589_v17 = vadd.f32 %v2435_v16, %v10560_v9  ;;  %v2524_v11 = vpop.f32.mrf.mxu1  ;;  %4693 = vmatmul.bf16.gmra.mxu2 %v4545_v63  ;;  %4782 = vmatmul.bf16.gmra.mxu3 %v4545_v63  ;;  %v9090_v9 = vld [vmem:[%s12527_s1 + $0x3f8] sm:$0xf0]  ;;  %v4372_v16 = vsel %vm10351_vm5, %v8702_v20, %v4371_v21  ;;  %v3535_v13 = vor.u32 %v3534_v54, %v3530_v25  ;;  %v8548_v21 = vld [vmem:[%s9952_s27 + $0x84] sm:$0xf]  ;;  %v3540_v40 = vrot.slane %v3538_v41, 5 }
 0x2ad   : > { %v2590_v34 = vadd.f32 %v2524_v11, %v12612_v33  ;;  %v9093_v51 = vor.u32 %v9482_v47, %v9090_v9  ;;  %v4522_v31 = vunpack.c.l.b16 %v4372_v16  ;;  %v3526_v20 = vrot.slane %v3525_v10, 4  ;;  %v8673_v54 = vld [vmem:[%s9952_s27 + $0x78] sm:$0xe] }
 0x2ae   : > { %v3536_v47 = vrot.slane %v3535_v13, 4  ;;  %v3552_v56 = vshll.u32 %v8549_v61, 16  ;;  %v3556_v10 = vshrl.u32 %v8549_v61, 16 }
 0x2af   : > { %v3032_v53 = vpop.f32.mrf.mxu2  ;;  %v3121_v63 = vpop.f32.mrf.mxu3  ;;  %6301 = vmatpush.bf16.msrb.mxu3 %v9093_v51  ;;  %v3546_v51 = vshll.u32 %v8548_v21, 16 }
 0x2b0   : > { %v11121_v45 = vadd.f32 %v3032_v53, %v2587_v42  ;;  %v11123_v50 = vadd.f32 %v3121_v63, %v2588_v7  ;;  %v8674_v7 = vld [vmem:[%s9952_s27 + $0x7c] sm:$0xf]  ;;  %v4546_v53 = vpack.c.b16 %v4523_v6, %v4522_v31  ;;  %v8675_v63 = vld [vmem:[%s9952_s27 + $0x80] sm:$0x1] }
 0x2b1   : > { %v4378_v14 = vrot.slane %v8674_v7, 5  ;;  %v3548_v6 = vrot.slane %v3546_v51, 5 }
 0x2b3   : > { %v3920_v37 = vpop.f32.mrf.mxu0  ;;  %v4380_v7 = vrot.slane %v4378_v14, 4 }
 0x2b4   : > { %v4089_v11 = vadd.f32 %v3920_v37, %v10584_v8  ;;  %v4009_v42 = vpop.f32.mrf.mxu1  ;;  %v3543_v8 = vshrl.u32 %v8548_v21, 16  ;;  %v3541_v37 = vsel %vm9968_vm2, %v3536_v47, %v3540_v40  ;;  %v9456_v47 = vld [vmem:[%s12527_s1 + $0x324] sm:$0xf]  ;;  %v3558_v40 = vrot.slane %v3556_v10, 4 }
 0x2b5   : > { %v4090_v33 = vadd.f32 %v4009_v42, %v10586_v38  ;;  %v8703_v42 = vrot.slane %v8673_v54, 9 }
 0x2b6   : > { %3959 = vmatmul.bf16.gmra.mxu0 %v3807_v44  ;;  %v3545_v31 = vrot.slane %v3543_v8, 4 }
 0x2b7   : > { %4048 = vmatmul.bf16.gmra.mxu1 %v3807_v44  ;;  %v3034_v9 = vpop.f32.mrf.mxu2  ;;  %v3123_v1 = vpop.f32.mrf.mxu3  ;;  %v3531_v44 = vsel %vm9968_vm2, %v3526_v20, %v3530_v25  ;;  %v3786_v25 = vunpack.c.l.b16 %v3541_v37  ;;  %v8920_v20 = vld [vmem:[%s12527_s1 + $0x320] sm:$0xf] }
 0x2b8   : > { %v11135_v48 = vadd.f32 %v3034_v9, %v2589_v17  ;;  %v11137_v38 = vadd.f32 %v3123_v1, %v2590_v34  ;;  %v4381_v34 = vrot.slane %v8675_v63, 5  ;;  %v3785_v21 = vunpack.c.l.b16 %v3531_v44  ;;  %v8922_v9 = vld [vmem:[%s12527_s1 + $0x328] sm:$0xf0] }
 0x2b9   : > { %v8550_v1 = vld [vmem:[%s9952_s27 + $0x8c] sm:$0x1]  ;;  %v8925_v54 = vor.u32 %v9456_v47, %v8922_v9  ;;  %v3549_v63 = vor.u32 %v3548_v6, %v3545_v31  ;;  %v8677_v6 = vld [vmem:[%s9952_s27 + $0x88] sm:$0xf]  ;;  %v8676_v9 = vld [vmem:[%s9952_s27 + $0x84] sm:$0xe] }
 0x2ba   : > { %v3808_v37 = vpack.c.b16 %v3786_v25, %v3785_v21  ;;  %v8552_v25 = vld [vmem:[%s9952_s27 + $0x94] sm:$0xf] }
 0x2bb   : > { %v3922_v16 = vpop.f32.mrf.mxu0  ;;  %5343 = vmatpush.bf16.msrb.mxu1 %v8925_v54 }
 0x2bc   : > { %v4091_v13 = vadd.f32 %v3922_v16, %v10592_v19  ;;  %v4011_v41 = vpop.f32.mrf.mxu1  ;;  %4698 = vmatmul.bf16.gmra.mxu2 %v4546_v53  ;;  %4787 = vmatmul.bf16.gmra.mxu3 %v4546_v53  ;;  %v9457_v19 = vld [vmem:[%s12527_s1 + $0x324] sm:$0xf0]  ;;  %v4379_v53 = vsel %vm10351_vm5, %v8703_v42, %v4378_v14 }
 0x2bd   : > { %v4092_v17 = vadd.f32 %v4011_v41, %v10594_v62  ;;  %v3554_v62 = vrot.slane %v3552_v56, 5  ;;  %v8921_v61 = vor.u32 %v9457_v19, %v8920_v20  ;;  %v4382_v56 = vsel %vm10351_vm5, %v4380_v7, %v4381_v34  ;;  %v8551_v34 = vld [vmem:[%s9952_s27 + $0x90] sm:$0xf] }
 0x2be   : > { %v3562_v20 = vshll.u32 %v8550_v1, 16  ;;  %v4525_v31 = vunpack.c.l.b16 %v4382_v56  ;;  %v4385_v1 = vrot.slane %v8677_v6, 5 }
 0x2bf   : > { %v4659_v8 = vpop.f32.mrf.mxu2  ;;  %v4748_v51 = vpop.f32.mrf.mxu3  ;;  %5254 = vmatpush.bf16.msrb.mxu0 %v8921_v61  ;;  %v3559_v41 = vor.u32 %v3558_v40, %v3554_v62 }
 0x2c0   : > { %v11161_v16 = vadd.f32 %v4659_v8, %v4089_v11  ;;  %v11163_v44 = vadd.f32 %v4748_v51, %v4090_v33  ;;  %v4524_v11 = vunpack.c.l.b16 %v4379_v53  ;;  %v3550_v33 = vrot.slane %v3549_v63, 4  ;;  %v9080_v8 = vld [vmem:[%s12527_s1 + $0x3e0] sm:$0xf]  ;;  %v9481_v51 = vld [vmem:[%s12527_s1 + $0x3e4] sm:$0xf0] }
 0x2c1   : > { %v3560_v21 = vrot.slane %v3559_v41, 4  ;;  %v3564_v7 = vrot.slane %v3562_v20, 5  ;;  %v3567_v53 = vshrl.u32 %v8551_v34, 16  ;;  %v3570_v63 = vshll.u32 %v8551_v34, 16  ;;  %v8678_v20 = vld [vmem:[%s9952_s27 + $0x8c] sm:$0x1] }
 0x2c2   : > { %v4547_v40 = vpack.c.b16 %v4525_v31, %v4524_v11  ;;  %v9081_v56 = vor.u32 %v9481_v51, %v9080_v8  ;;  %v8704_v11 = vrot.slane %v8676_v9, 9  ;;  %v4387_v31 = vrot.slane %v4385_v1, 4  ;;  %v8553_v9 = vld [vmem:[%s9952_s27 + $0x98] sm:$0x1] }
 0x2c3   : > { %v3925_v10 = vpop.f32.mrf.mxu0  ;;  %v3569_v34 = vrot.slane %v3567_v53, 4 }
 0x2c4   : > { %v4093_v19 = vadd.f32 %v3925_v10, %v10616_v58  ;;  %v4014_v14 = vpop.f32.mrf.mxu1  ;;  %v3555_v58 = vsel %vm9968_vm2, %v3550_v33, %v3554_v62  ;;  %v3565_v62 = vsel %vm9968_vm2, %v3560_v21, %v3564_v7  ;;  %v3576_v10 = vshll.u32 %v8552_v25, 16  ;;  %6213 = vmatpush.bf16.msrb.mxu2 %v9081_v56  ;;  %v9480_v21 = vld [vmem:[%s12527_s1 + $0x3e4] sm:$0xf] }
 0x2c5   : > { %v4094_v42 = vadd.f32 %v4014_v14, %v10618_v12  ;;  %v3787_v33 = vunpack.c.l.b16 %v3555_v58  ;;  %v3788_v6 = vunpack.c.l.b16 %v3565_v62  ;;  %v4388_v7 = vrot.slane %v8678_v20, 5 }
 0x2c6   : > { %3964 = vmatmul.bf16.gmra.mxu0 %v3808_v37  ;;  %v4386_v62 = vsel %vm10351_vm5, %v8704_v11, %v4385_v1 }
 0x2c7   : > { %4053 = vmatmul.bf16.gmra.mxu1 %v3808_v37  ;;  %v4661_v47 = vpop.f32.mrf.mxu2  ;;  %v4750_v61 = vpop.f32.mrf.mxu3  ;;  %v3809_v53 = vpack.c.b16 %v3788_v6, %v3787_v33  ;;  %v4389_v56 = vsel %vm10351_vm5, %v4387_v31, %v4388_v7  ;;  %v4526_v20 = vunpack.c.l.b16 %v4386_v62  ;;  %v8679_v7 = vld [vmem:[%s9952_s27 + $0x90] sm:$0xe] }
 0x2c8   : > { %v11175_v12 = vadd.f32 %v4661_v47, %v4091_v13  ;;  %v11177_v54 = vadd.f32 %v4750_v61, %v4092_v17  ;;  %v3580_v13 = vshrl.u32 %v8552_v25, 16  ;;  %v3572_v47 = vrot.slane %v3570_v63, 5 }
 0x2c9   : > { %v4527_v33 = vunpack.c.l.b16 %v4389_v56 }
 0x2ca   : > { %v3582_v25 = vrot.slane %v3580_v13, 4  ;;  %v3573_v63 = vor.u32 %v3572_v47, %v3569_v34  ;;  %v3586_v13 = vshll.u32 %v8553_v9, 16  ;;  %v8680_v34 = vld [vmem:[%s9952_s27 + $0x94] sm:$0xf]  ;;  %v8554_v47 = vld [vmem:[%s9952_s27 + $0x9c] sm:$0xf] }
 0x2cb   : > { %v3927_v37 = vpop.f32.mrf.mxu0 }
 0x2cc   : > { %v4095_v17 = vadd.f32 %v3927_v37, %v10624_v46  ;;  %v4016_v41 = vpop.f32.mrf.mxu1  ;;  %4703 = vmatmul.bf16.gmra.mxu2 %v4547_v40  ;;  %4792 = vmatmul.bf16.gmra.mxu3 %v4547_v40  ;;  %v9082_v46 = vld [vmem:[%s12527_s1 + $0x3e8] sm:$0xf0]  ;;  %v3574_v6 = vrot.slane %v3573_v63, 4  ;;  %v3588_v11 = vrot.slane %v3586_v13, 5 }
 0x2cd   : > { %v4096_v14 = vadd.f32 %v4016_v41, %v10626_v59  ;;  %v3578_v59 = vrot.slane %v3576_v10, 5  ;;  %v9085_v61 = vor.u32 %v9480_v21, %v9082_v46  ;;  %v8555_v21 = vld [vmem:[%s9952_s27 + $0xa0] sm:$0xf] }
 0x2ce   : > { %v3600_v62 = vshll.u32 %v8555_v21, 16  ;;  %v3604_v56 = vshrl.u32 %v8555_v21, 16 }
 0x2cf   : > { %v4664_v8 = vpop.f32.mrf.mxu2  ;;  %v4753_v51 = vpop.f32.mrf.mxu3  ;;  %6302 = vmatpush.bf16.msrb.mxu3 %v9085_v61  ;;  %v3583_v10 = vor.u32 %v3582_v25, %v3578_v59  ;;  %v4392_v25 = vrot.slane %v8680_v34, 5  ;;  %v3591_v61 = vshrl.u32 %v8554_v47, 16  ;;  %v8912_v34 = vld [vmem:[%s12527_s1 + $0x310] sm:$0xf] }
 0x2d0   : > { %v11197_v40 = vadd.f32 %v4664_v8, %v4093_v19  ;;  %v11199_v58 = vadd.f32 %v4753_v51, %v4094_v42  ;;  %v3579_v8 = vsel %vm9968_vm2, %v3574_v6, %v3578_v59  ;;  %v8681_v51 = vld [vmem:[%s9952_s27 + $0x98] sm:$0x1] }
 0x2d1   : > { %v3584_v1 = vrot.slane %v3583_v10, 4  ;;  %v3789_v59 = vunpack.c.l.b16 %v3579_v8 }
 0x2d3   : > { %v3930_v37 = vpop.f32.mrf.mxu0 }
 0x2d4   : > { %v4097_v19 = vadd.f32 %v3930_v37, %v10648_v4  ;;  %v4019_v41 = vpop.f32.mrf.mxu1  ;;  %v3594_v37 = vshll.u32 %v8554_v47, 16 }
 0x2d5   : > { %v4098_v42 = vadd.f32 %v4019_v41, %v10650_v55  ;;  %v4548_v55 = vpack.c.b16 %v4527_v33, %v4526_v20  ;;  %v8705_v41 = vrot.slane %v8679_v7, 9  ;;  %v4395_v20 = vrot.slane %v8681_v51, 5 }
 0x2d6   : > { %3969 = vmatmul.bf16.gmra.mxu0 %v3809_v53  ;;  %v3593_v33 = vrot.slane %v3591_v61, 4  ;;  %v3596_v47 = vrot.slane %v3594_v37, 5 }
 0x2d7   : > { %4058 = vmatmul.bf16.gmra.mxu1 %v3809_v53  ;;  %v4666_v31 = vpop.f32.mrf.mxu2  ;;  %v4755_v46 = vpop.f32.mrf.mxu3  ;;  %v3589_v53 = vsel %vm9968_vm2, %v3584_v1, %v3588_v11  ;;  %v3602_v1 = vrot.slane %v3600_v62, 5  ;;  %v3606_v11 = vrot.slane %v3604_v56, 4 }
 0x2d8   : > { %v11211_v4 = vadd.f32 %v4666_v31, %v4095_v17  ;;  %v11213_v9 = vadd.f32 %v4755_v46, %v4096_v14  ;;  %v4394_v14 = vrot.slane %v4392_v25, 4  ;;  %v3790_v6 = vunpack.c.l.b16 %v3589_v53  ;;  %v8914_v31 = vld [vmem:[%s12527_s1 + $0x318] sm:$0xf0]  ;;  %v8556_v46 = vld [vmem:[%s9952_s27 + $0xa4] sm:$0x1] }
 0x2d9   : > { %v4393_v53 = vsel %vm10351_vm5, %v8705_v41, %v4392_v25  ;;  %v3597_v56 = vor.u32 %v3596_v47, %v3593_v33 }
 0x2da   : > { %v4396_v62 = vsel %vm10351_vm5, %v4394_v14, %v4395_v20 }
 0x2db   : > { %v3932_v63 = vpop.f32.mrf.mxu0  ;;  %v3598_v25 = vrot.slane %v3597_v56, 4 }
 0x2dc   : > { %v4099_v10 = vadd.f32 %v3932_v63, %v10656_v28  ;;  %v4021_v13 = vpop.f32.mrf.mxu1  ;;  %4708 = vmatmul.bf16.gmra.mxu2 %v4548_v55  ;;  %4797 = vmatmul.bf16.gmra.mxu3 %v4548_v55  ;;  %v9455_v28 = vld [vmem:[%s12527_s1 + $0x314] sm:$0xf0]  ;;  %v3810_v63 = vpack.c.b16 %v3790_v6, %v3789_v59  ;;  %v4528_v59 = vunpack.c.l.b16 %v4393_v53  ;;  %v4529_v6 = vunpack.c.l.b16 %v4396_v62 }
 0x2dd   : > { %v4100_v17 = vadd.f32 %v4021_v13, %v10658_v29  ;;  %v9454_v29 = vld [vmem:[%s12527_s1 + $0x314] sm:$0xf]  ;;  %v8913_v21 = vor.u32 %v9455_v28, %v8912_v34  ;;  %v3607_v13 = vor.u32 %v3606_v11, %v3602_v1  ;;  %v3610_v34 = vshll.u32 %v8556_v46, 16 }
 0x2de   : > { %v8917_v7 = vor.u32 %v9454_v29, %v8914_v31  ;;  %v8557_v29 = vld [vmem:[%s9952_s27 + $0xa8] sm:$0xf] }
 0x2df   : > { %v4669_v61 = vpop.f32.mrf.mxu2  ;;  %v4758_v55 = vpop.f32.mrf.mxu3  ;;  %5255 = vmatpush.bf16.msrb.mxu0 %v8913_v21  ;;  %v8558_v21 = vld [vmem:[%s9952_s27 + $0xac] sm:$0xf]  ;;  %v3608_v41 = vrot.slane %v3607_v13, 4  ;;  %v3612_v31 = vrot.slane %v3610_v34, 5  ;;  %v3615_v14 = vshrl.u32 %v8557_v29, 16  ;;  %v3618_v20 = vshll.u32 %v8557_v29, 16 }
 0x2e0   : > { %v11235_v8 = vadd.f32 %v4669_v61, %v4097_v19  ;;  %v11237_v51 = vadd.f32 %v4758_v55, %v4098_v42  ;;  %5344 = vmatpush.bf16.msrb.mxu1 %v8917_v7  ;;  %v8683_v7 = vld [vmem:[%s9952_s27 + $0xa0] sm:$0xf]  ;;  %v3628_v11 = vshrl.u32 %v8558_v21, 16  ;;  %v4549_v61 = vpack.c.b16 %v4529_v6, %v4528_v59  ;;  %v9072_v55 = vld [vmem:[%s12527_s1 + $0x3d0] sm:$0xf] }
 0x2e1   : > { %v3613_v62 = vsel %vm9968_vm2, %v3608_v41, %v3612_v31  ;;  %v8682_v34 = vld [vmem:[%s9952_s27 + $0x9c] sm:$0xe]  ;;  %v3617_v29 = vrot.slane %v3615_v14, 4  ;;  %v3620_v59 = vrot.slane %v3618_v20, 5  ;;  %v8559_v41 = vld [vmem:[%s9952_s27 + $0xb0] sm:$0x1] }
 0x2e2   : > { %v9478_v31 = vld [vmem:[%s12527_s1 + $0x3d4] sm:$0xf] }
 0x2e3   : > { %v3935_v37 = vpop.f32.mrf.mxu0 }
 0x2e4   : > { %v4101_v28 = vadd.f32 %v3935_v37, %v10680_v26  ;;  %v4024_v19 = vpop.f32.mrf.mxu1  ;;  %v3624_v26 = vshll.u32 %v8558_v21, 16  ;;  %v3603_v37 = vsel %vm9968_vm2, %v3598_v25, %v3602_v1  ;;  %v3792_v25 = vunpack.c.l.b16 %v3613_v62 }
 0x2e5   : > { %v4102_v42 = vadd.f32 %v4024_v19, %v10682_v35  ;;  %v8684_v19 = vld [vmem:[%s9952_s27 + $0xa4] sm:$0x1]  ;;  %v3791_v1 = vunpack.c.l.b16 %v3603_v37 }
 0x2e6   : > { %3974 = vmatmul.bf16.gmra.mxu0 %v3810_v63  ;;  %v3626_v21 = vrot.slane %v3624_v26, 5  ;;  %v4402_v20 = vrot.slane %v8684_v19, 5 }
 0x2e7   : > { %4063 = vmatmul.bf16.gmra.mxu1 %v3810_v63  ;;  %v4671_v33 = vpop.f32.mrf.mxu2  ;;  %v4760_v47 = vpop.f32.mrf.mxu3  ;;  %v9479_v63 = vld [vmem:[%s12527_s1 + $0x3d4] sm:$0xf0]  ;;  %v3811_v37 = vpack.c.b16 %v3792_v25, %v3791_v1 }
 0x2e8   : > { %v11248_v46 = vadd.f32 %v4671_v33, %v4099_v10  ;;  %v11250_v35 = vadd.f32 %v4760_v47, %v4100_v17  ;;  %v4399_v10 = vrot.slane %v8683_v7, 5  ;;  %v9073_v17 = vor.u32 %v9479_v63, %v9072_v55 }
 0x2e9   : > { %v3630_v33 = vrot.slane %v3628_v11, 4  ;;  %v8706_v7 = vrot.slane %v8682_v34, 9  ;;  %v3621_v47 = vor.u32 %v3620_v59, %v3617_v29  ;;  %v3634_v55 = vshll.u32 %v8559_v41, 16  ;;  %v8686_v59 = vld [vmem:[%s9952_s27 + $0xac] sm:$0xf] }
 0x2ea   : > { %12613 = vst [vmem:[#allocation25_spill] sm:$0xff] %v11248_v46  ;;  %6214 = vmatpush.bf16.msrb.mxu2 %v9073_v17  ;;  %v4401_v14 = vrot.slane %v4399_v10, 4 }
 0x2eb   : > { %12614 = vst [vmem:[#allocation26_spill] sm:$0xff] %v11250_v35  ;;  %v3937_v53 = vpop.f32.mrf.mxu0  ;;  %v4400_v17 = vsel %vm10351_vm5, %v8706_v7, %v4399_v10  ;;  %v3622_v29 = vrot.slane %v3621_v47, 4  ;;  %v3636_v41 = vrot.slane %v3634_v55, 5  ;;  %v4406_v10 = vrot.slane %v8686_v59, 5 }
 0x2ec   : > { %v4103_v56 = vadd.f32 %v3937_v53, %v10688_v36  ;;  %v4026_v13 = vpop.f32.mrf.mxu1  ;;  %4713 = vmatmul.bf16.gmra.mxu2 %v4549_v61  ;;  %4802 = vmatmul.bf16.gmra.mxu3 %v4549_v61  ;;  %v9074_v36 = vld [vmem:[%s12527_s1 + $0x3d8] sm:$0xf0]  ;;  %v3631_v61 = vor.u32 %v3630_v33, %v3626_v21  ;;  %v4530_v1 = vunpack.c.l.b16 %v4400_v17 }
 0x2ed   : > { %v4104_v6 = vadd.f32 %v4026_v13, %v10690_v15  ;;  %v9077_v15 = vor.u32 %v9478_v31, %v9074_v36  ;;  %v4403_v13 = vsel %vm10351_vm5, %v4401_v14, %v4402_v20  ;;  %v8560_v31 = vld [vmem:[%s9952_s27 + $0xb4] sm:$0xf]  ;;  %v8561_v36 = vld [vmem:[%s9952_s27 + $0xb8] sm:$0xf]  ;;  %v3627_v7 = vsel %vm9968_vm2, %v3622_v29, %v3626_v21  ;;  %v8685_v14 = vld [vmem:[%s9952_s27 + $0xa8] sm:$0xe] }
 0x2ee   : > { %v4531_v25 = vunpack.c.l.b16 %v4403_v13  ;;  %v3639_v20 = vshrl.u32 %v8560_v31, 16  ;;  %v3652_v55 = vshrl.u32 %v8561_v36, 16  ;;  %v4408_v59 = vrot.slane %v4406_v10, 4  ;;  %v12618_v29 = vld [vmem:[#allocation29_spill] sm:$0xff] }
 0x2ef   : > { %v4674_v26 = vpop.f32.mrf.mxu2  ;;  %v4763_v11 = vpop.f32.mrf.mxu3  ;;  %6303 = vmatpush.bf16.msrb.mxu3 %v9077_v15 }
 0x2f0   : > { %v11273_v63 = vadd.f32 %v4674_v26, %v4101_v28  ;;  %v11275_v53 = vadd.f32 %v4763_v11, %v4102_v42  ;;  %v12617_v28 = vld [vmem:[#allocation28_spill] sm:$0xff]  ;;  %v3632_v42 = vrot.slane %v3631_v61, 4  ;;  %v3642_v11 = vshll.u32 %v8560_v31, 16 }
 0x2f1   : > { %v3648_v61 = vshll.u32 %v8561_v36, 16  ;;  %v3641_v46 = vrot.slane %v3639_v20, 4 }
 0x2f2   : > { %12615 = vst [vmem:[#allocation27_spill] sm:$0xff] %v11273_v63  ;;  %v3637_v26 = vsel %vm9968_vm2, %v3632_v42, %v3636_v41  ;;  %v3793_v63 = vunpack.c.l.b16 %v3627_v7  ;;  %v12619_v42 = vld [vmem:[#allocation30_spill] sm:$0xff]  ;;  %v3644_v31 = vrot.slane %v3642_v11, 5  ;;  %v8562_v7 = vld [vmem:[%s9952_s27 + $0xbc] sm:$0x1] }
 0x2f3   : > { %12616 = vst [vmem:[#allocation39_spill] sm:$0xff] %v11275_v53  ;;  %v3940_v62 = vpop.f32.mrf.mxu0  ;;  %v3794_v35 = vunpack.c.l.b16 %v3637_v26  ;;  %v11298_v36 = vrot.slane %v3648_v61, 5 }
 0x2f4   : > { %v4105_v34 = vadd.f32 %v3940_v62, %v10712_v5  ;;  %v4029_v19 = vpop.f32.mrf.mxu1  ;;  %v8687_v5 = vld [vmem:[%s9952_s27 + $0xb0] sm:$0x1]  ;;  %v3645_v61 = vor.u32 %v3644_v31, %v3641_v46 }
 0x2f5   : > { %v4106_v33 = vadd.f32 %v4029_v19, %v12617_v28  ;;  %v8707_v19 = vrot.slane %v8685_v14, 9  ;;  %v4409_v21 = vrot.slane %v8687_v5, 5  ;;  %v8906_v14 = vld [vmem:[%s12527_s1 + $0x308] sm:$0xf0] }
 0x2f6   : > { %3979 = vmatmul.bf16.gmra.mxu0 %v3811_v37 }
 0x2f7   : > { %4068 = vmatmul.bf16.gmra.mxu1 %v3811_v37  ;;  %v4676_v15 = vpop.f32.mrf.mxu2  ;;  %v4765_v47 = vpop.f32.mrf.mxu3  ;;  %v4550_v37 = vpack.c.b16 %v4531_v25, %v4530_v1  ;;  %v9453_v1 = vld [vmem:[%s12527_s1 + $0x304] sm:$0xf0]  ;;  %v9452_v25 = vld [vmem:[%s12527_s1 + $0x304] sm:$0xf]  ;;  %v4407_v26 = vsel %vm10351_vm5, %v8707_v19, %v4406_v10  ;;  %v4410_v11 = vsel %vm10351_vm5, %v4408_v59, %v4409_v21  ;;  %v12621_v21 = vld [vmem:[#allocation32_spill] sm:$0xff] }
 0x2f8   : > { %v11292_v62 = vadd.f32 %v4676_v15, %v4103_v56  ;;  %v11294_v17 = vadd.f32 %v4765_v47, %v4104_v6  ;;  %v3654_v56 = vrot.slane %v3652_v55, 4  ;;  %v8904_v6 = vld [vmem:[%s12527_s1 + $0x300] sm:$0xf]  ;;  %v8909_v5 = vor.u32 %v9452_v25, %v8906_v14  ;;  %v8564_v25 = vld [vmem:[%s9952_s27 + $0xc4] sm:$0xf] }
 0x2f9   : > { %v3812_v47 = vpack.c.b16 %v3794_v35, %v3793_v63  ;;  %v12620_v63 = vld [vmem:[#allocation31_spill] sm:$0xff]  ;;  %v4532_v59 = vunpack.c.l.b16 %v4407_v26  ;;  %v4533_v46 = vunpack.c.l.b16 %v4410_v11 }
 0x2fa   : > { %5345 = vmatpush.bf16.msrb.mxu1 %v8909_v5  ;;  %v9477_v14 = vld [vmem:[%s12527_s1 + $0x3c4] sm:$0xf0]  ;;  %v9476_v5 = vld [vmem:[%s12527_s1 + $0x3c4] sm:$0xf] }
 0x2fb   : > { %v3942_v13 = vpop.f32.mrf.mxu0 }
 0x2fc   : > { %v4107_v28 = vadd.f32 %v3942_v13, %v12618_v29  ;;  %v4031_v53 = vpop.f32.mrf.mxu1  ;;  %4718 = vmatmul.bf16.gmra.mxu2 %v4550_v37  ;;  %4807 = vmatmul.bf16.gmra.mxu3 %v4550_v37  ;;  %v3655_v13 = vor.u32 %v3654_v56, %v11298_v36  ;;  %v3658_v29 = vshll.u32 %v8562_v7, 16  ;;  %v8689_v56 = vld [vmem:[%s9952_s27 + $0xb8] sm:$0xf]  ;;  %v4551_v7 = vpack.c.b16 %v4533_v46, %v4532_v59 }
 0x2fd   : > { %v4108_v41 = vadd.f32 %v4031_v53, %v12619_v42  ;;  %v8905_v53 = vor.u32 %v9453_v1, %v8904_v6  ;;  %v8688_v6 = vld [vmem:[%s9952_s27 + $0xb4] sm:$0xe]  ;;  %v8563_v1 = vld [vmem:[%s9952_s27 + $0xc0] sm:$0xf]  ;;  %v4413_v11 = vrot.slane %v8689_v56, 5 }
 0x2fe   : > { %v3660_v31 = vrot.slane %v3658_v29, 5  ;;  %v8708_v26 = vrot.slane %v8688_v6, 9  ;;  %v3676_v6 = vshrl.u32 %v8564_v25, 16 }
 0x2ff   : > { %v4679_v20 = vpop.f32.mrf.mxu2  ;;  %v4768_v15 = vpop.f32.mrf.mxu3  ;;  %5256 = vmatpush.bf16.msrb.mxu0 %v8905_v53  ;;  %v9064_v53 = vld [vmem:[%s12527_s1 + $0x3c0] sm:$0xf] }
 0x300   : > { %v11317_v55 = vadd.f32 %v4679_v20, %v4105_v34  ;;  %v11319_v37 = vadd.f32 %v4768_v15, %v4106_v33  ;;  %v3646_v34 = vrot.slane %v3645_v61, 4  ;;  %v3656_v33 = vrot.slane %v3655_v13, 4  ;;  %v9066_v13 = vld [vmem:[%s12527_s1 + $0x3c8] sm:$0xf0] }
 0x301   : > { %v9065_v61 = vor.u32 %v9477_v14, %v9064_v53  ;;  %v9069_v59 = vor.u32 %v9476_v5, %v9066_v13  ;;  %v9058_v14 = vld [vmem:[%s12527_s1 + $0x3b8] sm:$0xf0] }
 0x303   : > { %v3945_v35 = vpop.f32.mrf.mxu0  ;;  %6215 = vmatpush.bf16.msrb.mxu2 %v9065_v61  ;;  %6304 = vmatpush.bf16.msrb.mxu3 %v9069_v59  ;;  %v8565_v61 = vld [vmem:[%s9952_s27 + $0xc8] sm:$0x1] }
 0x304   : > { %v11323_v10 = vadd.f32 %v3945_v35, %v12620_v63  ;;  %v4034_v19 = vpop.f32.mrf.mxu1  ;;  %v3661_v63 = vsel %vm9968_vm2, %v3656_v33, %v3660_v31  ;;  %v9474_v33 = vld [vmem:[%s12527_s1 + $0x3b4] sm:$0xf] }
 0x305   : > { %v11326_v42 = vadd.f32 %v4034_v19, %v12621_v21  ;;  %v8690_v19 = vld [vmem:[%s9952_s27 + $0xbc] sm:$0x1]  ;;  %v3663_v21 = vshrl.u32 %v8563_v1, 16 }
 0x306   : > { %3984 = vmatmul.bf16.gmra.mxu0 %v3812_v47 }
 0x307   : > { %4073 = vmatmul.bf16.gmra.mxu1 %v3812_v47  ;;  %v4681_v20 = vpop.f32.mrf.mxu2  ;;  %v4770_v15 = vpop.f32.mrf.mxu3  ;;  %v3651_v47 = vsel %vm9968_vm2, %v3646_v34, %v11298_v36  ;;  %v3666_v36 = vshll.u32 %v8563_v1, 16  ;;  %v3672_v34 = vshll.u32 %v8564_v25, 16  ;;  %v4416_v1 = vrot.slane %v8690_v19, 5  ;;  %v9473_v19 = vld [vmem:[%s12527_s1 + $0x3a4] sm:$0xf0] }
 0x308   : > { %v11347_v29 = vadd.f32 %v4681_v20, %v4107_v28  ;;  %v11349_v35 = vadd.f32 %v4770_v15, %v4108_v41  ;;  %v9056_v28 = vld [vmem:[%s12527_s1 + $0x3b0] sm:$0xf]  ;;  %v9475_v41 = vld [vmem:[%s12527_s1 + $0x3b4] sm:$0xf0]  ;;  %v3795_v5 = vunpack.c.l.b16 %v3651_v47  ;;  %v3796_v20 = vunpack.c.l.b16 %v3661_v63 }
 0x309   : > { %v9057_v25 = vor.u32 %v9475_v41, %v9056_v28  ;;  %v9061_v15 = vor.u32 %v9474_v33, %v9058_v14  ;;  %v3665_v13 = vrot.slane %v3663_v21, 4  ;;  %v3668_v59 = vrot.slane %v3666_v36, 5 }
 0x30a   : > { %12622 = vst [vmem:[#allocation28_spill] sm:$0xff] %v11349_v35  ;;  %v3678_v35 = vrot.slane %v3676_v6, 4  ;;  %v4414_v21 = vsel %vm10351_vm5, %v8708_v26, %v4413_v11  ;;  %v9050_v6 = vld [vmem:[%s12527_s1 + $0x3a8] sm:$0xf0]  ;;  %v3813_v41 = vpack.c.b16 %v3796_v20, %v3795_v5  ;;  %v9040_v26 = vld [vmem:[%s12527_s1 + $0x390] sm:$0xf] }
 0x30b   : > { %v3947_v46 = vpop.f32.mrf.mxu0  ;;  %6216 = vmatpush.bf16.msrb.mxu2 %v9057_v25  ;;  %6305 = vmatpush.bf16.msrb.mxu3 %v9061_v15  ;;  %v3682_v25 = vshll.u32 %v8565_v61, 16  ;;  %v9042_v5 = vld [vmem:[%s12527_s1 + $0x398] sm:$0xf0] }
 0x30c   : > { %v11355_v56 = vadd.f32 %v3947_v46, %v10802_v2  ;;  %v4036_v53 = vpop.f32.mrf.mxu1  ;;  %v4415_v2 = vrot.slane %v4413_v11, 4  ;;  %4723 = vmatmul.bf16.gmra.mxu2 %v4551_v7  ;;  %4812 = vmatmul.bf16.gmra.mxu3 %v4551_v7  ;;  %v11373_v46 = vrot.slane %v3672_v34, 5  ;;  %v9472_v7 = vld [vmem:[%s12527_s1 + $0x3a4] sm:$0xf]  ;;  %v9471_v11 = vld [vmem:[%s12527_s1 + $0x394] sm:$0xf0] }
 0x30d   : > { %v11367_v31 = vadd.f32 %v4036_v53, %v10804_v3  ;;  %v9048_v3 = vld [vmem:[%s12527_s1 + $0x3a0] sm:$0xf]  ;;  %v9053_v33 = vor.u32 %v9472_v7, %v9050_v6  ;;  %v9041_v14 = vor.u32 %v9471_v11, %v9040_v26  ;;  %v9034_v26 = vld [vmem:[%s12527_s1 + $0x388] sm:$0xf0] }
 0x30e   : > { %v4417_v36 = vsel %vm10351_vm5, %v4415_v2, %v4416_v1  ;;  %v9049_v34 = vor.u32 %v9473_v19, %v9048_v3  ;;  %v9470_v2 = vld [vmem:[%s12527_s1 + $0x394] sm:$0xf]  ;;  %v3669_v1 = vor.u32 %v3668_v59, %v3665_v13  ;;  %v12623_v19 = vld [vmem:[#allocation33_spill] sm:$0xff]  ;;  %v8692_v13 = vld [vmem:[%s9952_s27 + $0xc4] sm:$0xf]  ;;  %v3684_v59 = vrot.slane %v3682_v25, 5 }
 0x30f   : > { %v4684_v47 = vpop.f32.mrf.mxu2  ;;  %v4773_v63 = vpop.f32.mrf.mxu3  ;;  %6306 = vmatpush.bf16.msrb.mxu3 %v9053_v33  ;;  %v9045_v3 = vor.u32 %v9470_v2, %v9042_v5 }
 0x310   : > { %v11392_v53 = vadd.f32 %v4684_v47, %v11323_v10  ;;  %v11395_v28 = vadd.f32 %v4773_v63, %v11326_v42  ;;  %v3679_v42 = vor.u32 %v3678_v35, %v11373_v46  ;;  %6217 = vmatpush.bf16.msrb.mxu2 %v9049_v34  ;;  %v4534_v47 = vunpack.c.l.b16 %v4414_v21  ;;  %v9469_v34 = vld [vmem:[%s12527_s1 + $0x384] sm:$0xf0]  ;;  %v9468_v21 = vld [vmem:[%s12527_s1 + $0x384] sm:$0xf] }
 0x311   : > { %v4535_v63 = vunpack.c.l.b16 %v4417_v36  ;;  %v3670_v35 = vrot.slane %v3669_v1, 4  ;;  %v8691_v1 = vld [vmem:[%s9952_s27 + $0xc0] sm:$0xe]  ;;  %v9037_v25 = vor.u32 %v9468_v21, %v9034_v26 }
 0x312   : > { %v3680_v61 = vrot.slane %v3679_v42, 4  ;;  %v8693_v42 = vld [vmem:[%s9952_s27 + $0xc8] sm:$0x1] }
 0x313   : > { %v3950_v10 = vpop.f32.mrf.mxu0  ;;  %6307 = vmatpush.bf16.msrb.mxu3 %v9045_v3  ;;  %v3675_v5 = vsel %vm9968_vm2, %v3670_v35, %v11373_v46  ;;  %v12624_v3 = vld [vmem:[#allocation34_spill] sm:$0xff]  ;;  %v9232_v46 = vld [vmem:[%s12527_s1 + $0x470] sm:$0xf]  ;;  %v9499_v35 = vld [vmem:[%s12527_s1 + $0x474] sm:$0xf0] }
 0x314   : > { %v4113_v20 = vadd.f32 %v3950_v10, %v10826_v22  ;;  %v4039_v15 = vpop.f32.mrf.mxu1  ;;  %6218 = vmatpush.bf16.msrb.mxu2 %v9041_v14  ;;  %v9032_v22 = vld [vmem:[%s12527_s1 + $0x380] sm:$0xf]  ;;  %v4552_v10 = vpack.c.b16 %v4535_v63, %v4534_v47  ;;  %v8709_v63 = vrot.slane %v8691_v1, 9 }
 0x315   : > { %v4114_v7 = vadd.f32 %v4039_v15, %v12623_v19  ;;  %v9033_v33 = vor.u32 %v9469_v34, %v9032_v22  ;;  %v3685_v15 = vsel %vm9968_vm2, %v3680_v61, %v3684_v59  ;;  %v4423_v22 = vrot.slane %v8693_v42, 5  ;;  %v9498_v61 = vld [vmem:[%s12527_s1 + $0x474] sm:$0xf] }
 0x316   : > { %3989 = vmatmul.bf16.gmra.mxu0 %v3813_v41  ;;  %v3797_v34 = vunpack.c.l.b16 %v3675_v5  ;;  %v3798_v21 = vunpack.c.l.b16 %v3685_v15  ;;  %v9233_v59 = vor.u32 %v9499_v35, %v9232_v46 }
 0x317   : > { %4078 = vmatmul.bf16.gmra.mxu1 %v3813_v41  ;;  %v4686_v36 = vpop.f32.mrf.mxu2  ;;  %v4775_v6 = vpop.f32.mrf.mxu3  ;;  %v4420_v41 = vrot.slane %v8692_v13, 5  ;;  %6308 = vmatpush.bf16.msrb.mxu3 %v9037_v25 }
 0x318   : > { %v11426_v11 = vadd.f32 %v4686_v36, %v11355_v56  ;;  %v11429_v2 = vadd.f32 %v4775_v6, %v11367_v31  ;;  %6219 = vmatpush.bf16.msrb.mxu2 %v9033_v33  ;;  %v12625_v31 = vld [vmem:[#allocation35_spill] sm:$0xff]  ;;  %v9234_v36 = vld [vmem:[%s12527_s1 + $0x478] sm:$0xf0]  ;;  %v8966_v6 = vld [vmem:[%s9952_s27 + $0x18] sm:$0xf]  ;;  %6951 = vmatpush.bf16.msra.mxu0 %v9233_v59  ;;  %v3814_v5 = vpack.c.b16 %v3798_v21, %v3797_v34 }
 0x319   : > { %v4422_v13 = vrot.slane %v4420_v41, 4  ;;  %v8967_v33 = vld [vmem:[%s9952_s27 + $0x1c] sm:$0xf]  ;;  %v9237_v26 = vor.u32 %v9498_v61, %v9234_v36  ;;  %v4421_v42 = vsel %vm10351_vm5, %v8709_v63, %v4420_v41  ;;  %v8968_v21 = vld [vmem:[%s9952_s27 + $0x20] sm:$0x1] }
 0x31a   : > { %v5613_v46 = vshll.u32 %v8967_v33, 16  ;;  %v5617_v35 = vshrl.u32 %v8967_v33, 16 }
 0x31b   : > { %v3952_v14 = vpop.f32.mrf.mxu0  ;;  %v4424_v15 = vsel %vm10351_vm5, %v4422_v13, %v4423_v22  ;;  %7040 = vmatpush.bf16.msra.mxu1 %v9237_v26 }
 0x31c   : > { %v4115_v19 = vadd.f32 %v3952_v14, %v12624_v3  ;;  %v4041_v56 = vpop.f32.mrf.mxu1  ;;  %4728 = vmatmul.bf16.gmra.mxu2 %v4552_v10  ;;  %4817 = vmatmul.bf16.gmra.mxu3 %v4552_v10  ;;  %v5615_v13 = vrot.slane %v5613_v46, 5  ;;  %v5619_v22 = vrot.slane %v5617_v35, 4 }
 0x31d   : > { %v4116_v47 = vadd.f32 %v4041_v56, %v12625_v31  ;;  %v5604_v56 = vshrl.u32 %v8966_v6, 16  ;;  %v5607_v31 = vshll.u32 %v8966_v6, 16 }
 0x31f   : > { %v4689_v10 = vpop.f32.mrf.mxu2  ;;  %v4778_v1 = vpop.f32.mrf.mxu3  ;;  %v5606_v63 = vrot.slane %v5604_v56, 4  ;;  %v5609_v34 = vrot.slane %v5607_v31, 5  ;;  %v8969_v56 = vld [vmem:[%s9952_s27 + $0x24] sm:$0xf]  ;;  %v8970_v31 = vld [vmem:[%s9952_s27 + $0x28] sm:$0xf] }
 0x320   : > { %v11456_v25 = vadd.f32 %v4689_v10, %v4113_v20  ;;  %v11458_v14 = vadd.f32 %v4778_v1, %v4114_v7  ;;  %v4536_v20 = vunpack.c.l.b16 %v4421_v42  ;;  %v4537_v7 = vunpack.c.l.b16 %v4424_v15 }
 0x321   : > { %v5620_v1 = vor.u32 %v5619_v22, %v5615_v13  ;;  %v5623_v42 = vshll.u32 %v8968_v21, 16 }
 0x323   : > { %v3955_v3 = vpop.f32.mrf.mxu0  ;;  %v5625_v35 = vrot.slane %v5623_v42, 5 }
 0x324   : > { %v4117_v61 = vadd.f32 %v3955_v3, %v10849_v43  ;;  %v4044_v36 = vpop.f32.mrf.mxu1  ;;  %v4553_v43 = vpack.c.b16 %v4537_v7, %v4536_v20  ;;  %v5631_v7 = vshll.u32 %v8969_v56, 16 }
 0x325   : > { %v4118_v41 = vadd.f32 %v4044_v36, %v10851_v27  ;;  %v5610_v27 = vor.u32 %v5609_v34, %v5606_v63  ;;  %v5637_v63 = vshll.u32 %v8970_v31, 16  ;;  %v5641_v34 = vshrl.u32 %v8970_v31, 16 }
 0x326   : > { %3994 = vmatmul.bf16.gmra.mxu0 %v3814_v5 }
 0x327   : > { %4083 = vmatmul.bf16.gmra.mxu1 %v3814_v5  ;;  %v4691_v59 = vpop.f32.mrf.mxu2  ;;  %v4780_v6 = vpop.f32.mrf.mxu3  ;;  %v5611_v46 = vrot.slane %v5610_v27, 4 }
 0x328   : > { %v11465_v26 = vadd.f32 %v4691_v59, %v4115_v19  ;;  %v11467_v33 = vadd.f32 %v4780_v6, %v4116_v47  ;;  %v5621_v19 = vrot.slane %v5620_v1, 4  ;;  %v5628_v47 = vshrl.u32 %v8969_v56, 16  ;;  %v12627_v1 = vld [vmem:[#allocation36_spill] sm:$0xff] }
 0x329   : > { %v5616_v59 = vsel %vm9968_vm2, %v5611_v46, %v5615_v13  ;;  %v5643_v56 = vrot.slane %v5641_v34, 4 }
 0x32a   : > { %v5626_v6 = vsel %vm9968_vm2, %v5621_v19, %v5625_v35  ;;  %v5630_v27 = vrot.slane %v5628_v47, 4 }
 0x32b   : > { %v3957_v10 = vpop.f32.mrf.mxu0  ;;  %v6069_v31 = vunpack.c.l.b16 %v5626_v6 }
 0x32c   : > { %v4119_v5 = vadd.f32 %v3957_v10, %v10863_v52  ;;  %v4046_v15 = vpop.f32.mrf.mxu1  ;;  %4733 = vmatmul.bf16.gmra.mxu2 %v4553_v43  ;;  %4822 = vmatmul.bf16.gmra.mxu3 %v4553_v43 }
 0x32d   : > { %v4120_v3 = vadd.f32 %v4046_v15, %v10865_v32  ;;  %v9436_v32 = vld [vmem:[%s9952_s27 + $0x18] sm:$0xff]  ;;  %v5633_v15 = vrot.slane %v5631_v7, 5 }
 0x32e   : > { %v12630_v7 = vld [vmem:[#allocation37_spill] sm:$0xff] }
 0x32f   : > { %v4694_v36 = vpop.f32.mrf.mxu2  ;;  %v4783_v20 = vpop.f32.mrf.mxu3  ;;  %v5634_v13 = vor.u32 %v5633_v15, %v5630_v27  ;;  %v8973_v15 = vld [vmem:[%s9952_s27 + $0x34] sm:$0xf] }
 0x330   : > { %v11473_v22 = vadd.f32 %v4694_v36, %v4117_v61  ;;  %v11475_v52 = vadd.f32 %v4783_v20, %v4118_v41  ;;  %v5639_v61 = vrot.slane %v5637_v63, 5  ;;  %v6068_v41 = vunpack.c.l.b16 %v5616_v59  ;;  %v8971_v36 = vld [vmem:[%s9952_s27 + $0x2c] sm:$0x1] }
 0x331   : > { %v5635_v6 = vrot.slane %v5634_v13, 4  ;;  %v9437_v13 = vld [vmem:[%s9952_s27 + $0x24] sm:$0xff] }
 0x332   : > { %12626 = vst [vmem:[#allocation29_spill] sm:$0xff] %v11475_v52  ;;  %v5644_v46 = vor.u32 %v5643_v56, %v5639_v61  ;;  %v5647_v52 = vshll.u32 %v8971_v36, 16  ;;  %v6100_v35 = vpack.c.b16 %v6069_v31, %v6068_v41 }
 0x333   : > { %v3960_v21 = vpop.f32.mrf.mxu0 }
 0x334   : > { %v4121_v43 = vadd.f32 %v3960_v21, %v10889_v57  ;;  %v4049_v10 = vpop.f32.mrf.mxu1  ;;  %v12631_v21 = vld [vmem:[#allocation38_spill] sm:$0xff] }
 0x335   : > { %v4122_v42 = vadd.f32 %v4049_v10, %v12627_v1  ;;  %v5649_v10 = vrot.slane %v5647_v52, 5  ;;  %v9226_v52 = vld [vmem:[%s12527_s1 + $0x468] sm:$0xf0]  ;;  %v8972_v1 = vld [vmem:[%s9952_s27 + $0x30] sm:$0xf] }
 0x336   : > { %5257 = vmatmul.bf16.vlgmr.msrb.gmra.mxu0 %v9436_v32 }
 0x337   : > { %5346 = vmatmul.bf16.vlgmr.msrb.gmra.mxu1 %v9436_v32  ;;  %v4696_v20 = vpop.f32.mrf.mxu2  ;;  %v4785_v39 = vpop.f32.mrf.mxu3  ;;  %v5645_v32 = vrot.slane %v5644_v46, 4  ;;  %v5640_v46 = vsel %vm9968_vm2, %v5635_v6, %v5639_v61 }
 0x338   : > { %v11485_v19 = vadd.f32 %v4696_v20, %v4119_v5  ;;  %v11487_v57 = vadd.f32 %v4785_v39, %v4120_v3  ;;  %v9224_v39 = vld [vmem:[%s12527_s1 + $0x460] sm:$0xf]  ;;  %v9497_v5 = vld [vmem:[%s12527_s1 + $0x464] sm:$0xf0]  ;;  %v9496_v3 = vld [vmem:[%s12527_s1 + $0x464] sm:$0xf] }
 0x339   : > { %v9225_v27 = vor.u32 %v9497_v5, %v9224_v39  ;;  %v9229_v56 = vor.u32 %v9496_v3, %v9226_v52  ;;  %v5665_v39 = vshrl.u32 %v8973_v15, 16  ;;  %v12634_v5 = vld [vmem:[#allocation7_spill] sm:$0xff]  ;;  %v6070_v52 = vunpack.c.l.b16 %v5640_v46 }
 0x33a   : > { %12628 = vst [vmem:[#allocation30_spill] sm:$0xff] %v11485_v19 }
 0x33b   : > { %12629 = vst [vmem:[#allocation31_spill] sm:$0xff] %v11487_v57  ;;  %v3962_v47 = vpop.f32.mrf.mxu0  ;;  %6952 = vmatpush.bf16.msra.mxu0 %v9225_v27  ;;  %7041 = vmatpush.bf16.msra.mxu1 %v9229_v56  ;;  %v12635_v27 = vld [vmem:[#allocation8_spill] sm:$0xff]  ;;  %v8974_v56 = vld [vmem:[%s9952_s27 + $0x38] sm:$0x1] }
 0x33c   : > { %v4123_v63 = vadd.f32 %v3962_v47, %v12630_v7  ;;  %v4051_v34 = vpop.f32.mrf.mxu1  ;;  %6220 = vmatmul.bf16.vlgmr.msrb.gmra.mxu2 %v6100_v35  ;;  %6309 = vmatmul.bf16.vlgmr.msrb.gmra.mxu3 %v6100_v35  ;;  %v5650_v35 = vsel %vm9968_vm2, %v5645_v32, %v5649_v10  ;;  %v5652_v7 = vshrl.u32 %v8972_v1, 16  ;;  %v5667_v10 = vrot.slane %v5665_v39, 4  ;;  %v8976_v39 = vld [vmem:[%s9952_s27 + $0x40] sm:$0xf] }
 0x33d   : > { %v4124_v59 = vadd.f32 %v4051_v34, %v12631_v21  ;;  %v5655_v34 = vshll.u32 %v8972_v1, 16  ;;  %v5661_v21 = vshll.u32 %v8973_v15, 16  ;;  %v5671_v46 = vshll.u32 %v8974_v56, 16 }
 0x33e   : > { %v5654_v61 = vrot.slane %v5652_v7, 4 }
 0x33f   : > { %v4699_v41 = vpop.f32.mrf.mxu2  ;;  %v4788_v31 = vpop.f32.mrf.mxu3  ;;  %v5657_v6 = vrot.slane %v5655_v34, 5  ;;  %v5663_v32 = vrot.slane %v5661_v21, 5  ;;  %v12639_v34 = vld [vmem:[#allocation10_spill] sm:$0xff]  ;;  %v8975_v21 = vld [vmem:[%s9952_s27 + $0x3c] sm:$0xf] }
 0x340   : > { %v11505_v36 = vadd.f32 %v4699_v41, %v4121_v43  ;;  %v11507_v20 = vadd.f32 %v4788_v31, %v4122_v42  ;;  %v6071_v41 = vunpack.c.l.b16 %v5650_v35  ;;  %v12638_v35 = vld [vmem:[#allocation9_spill] sm:$0xff] }
 0x342   : > { %12632 = vst [vmem:[#allocation32_spill] sm:$0xff] %v11505_v36 }
 0x343   : > { %12633 = vst [vmem:[#allocation33_spill] sm:$0xff] %v11507_v20  ;;  %v3965_v47 = vpop.f32.mrf.mxu0 }
 0x344   : > { %v4125_v3 = vadd.f32 %v3965_v47, %v12634_v5  ;;  %v4054_v43 = vpop.f32.mrf.mxu1  ;;  %v6101_v47 = vpack.c.b16 %v6071_v41, %v6070_v52  ;;  %v5679_v41 = vshll.u32 %v8975_v21, 16 }
 0x345   : > { %v4126_v42 = vadd.f32 %v4054_v43, %v12635_v27  ;;  %v5658_v43 = vor.u32 %v5657_v6, %v5654_v61  ;;  %v5668_v27 = vor.u32 %v5667_v10, %v5663_v32  ;;  %v5685_v61 = vshll.u32 %v8976_v39, 16 }
 0x346   : > { %5262 = vmatmul.bf16.gmra.mxu0 %v9437_v13  ;;  %v5689_v6 = vshrl.u32 %v8976_v39, 16  ;;  %v5681_v39 = vrot.slane %v5679_v41, 5 }
 0x347   : > { %5351 = vmatmul.bf16.gmra.mxu1 %v9437_v13  ;;  %v4701_v31 = vpop.f32.mrf.mxu2  ;;  %v4790_v1 = vpop.f32.mrf.mxu3  ;;  %v5659_v57 = vrot.slane %v5658_v43, 4 }
 0x348   : > { %v11517_v20 = vadd.f32 %v4701_v31, %v4123_v63  ;;  %v11519_v15 = vadd.f32 %v4790_v1, %v4124_v59  ;;  %v5669_v63 = vrot.slane %v5668_v27, 4  ;;  %v5673_v31 = vrot.slane %v5671_v46, 5  ;;  %v12642_v27 = vld [vmem:[#allocation11_spill] sm:$0xff] }
 0x349   : > { %v5676_v59 = vshrl.u32 %v8975_v21, 16  ;;  %v12643_v21 = vld [vmem:[#allocation12_spill] sm:$0xff] }
 0x34a   : > { %12636 = vst [vmem:[#allocation34_spill] sm:$0xff] %v11517_v20  ;;  %v5674_v43 = vsel %vm9968_vm2, %v5669_v63, %v5673_v31 }
 0x34b   : > { %12637 = vst [vmem:[#allocation35_spill] sm:$0xff] %v11519_v15  ;;  %v3967_v5 = vpop.f32.mrf.mxu0 }
 0x34c   : > { %v4127_v13 = vadd.f32 %v3967_v5, %v12638_v35  ;;  %v4056_v7 = vpop.f32.mrf.mxu1  ;;  %6225 = vmatmul.bf16.gmra.mxu2 %v6101_v47  ;;  %6314 = vmatmul.bf16.gmra.mxu3 %v6101_v47  ;;  %v9438_v5 = vld [vmem:[%s9952_s27 + $0x30] sm:$0xff]  ;;  %v5664_v47 = vsel %vm9968_vm2, %v5659_v57, %v5663_v32 }
 0x34d   : > { %v4128_v36 = vadd.f32 %v4056_v7, %v12639_v34  ;;  %v5678_v34 = vrot.slane %v5676_v59, 4 }
 0x34f   : > { %v4704_v1 = vpop.f32.mrf.mxu2  ;;  %v4793_v52 = vpop.f32.mrf.mxu3  ;;  %v5682_v57 = vor.u32 %v5681_v39, %v5678_v34  ;;  %v8979_v34 = vld [vmem:[%s9952_s27 + $0x4c] sm:$0xf] }
 0x350   : > { %v11525_v10 = vadd.f32 %v4704_v1, %v4125_v3  ;;  %v11527_v56 = vadd.f32 %v4793_v52, %v4126_v42  ;;  %v5687_v3 = vrot.slane %v5685_v61, 5  ;;  %v5691_v1 = vrot.slane %v5689_v6, 4  ;;  %v12646_v61 = vld [vmem:[#allocation13_spill] sm:$0xff] }
 0x351   : > { %v6072_v42 = vunpack.c.l.b16 %v5664_v47  ;;  %v6073_v52 = vunpack.c.l.b16 %v5674_v43  ;;  %v12647_v47 = vld [vmem:[#allocation14_spill] sm:$0xff] }
 0x352   : > { %12640 = vst [vmem:[#allocation36_spill] sm:$0xff] %v11525_v10  ;;  %v5692_v32 = vor.u32 %v5691_v1, %v5687_v3 }
 0x353   : > { %12641 = vst [vmem:[#allocation37_spill] sm:$0xff] %v11527_v56  ;;  %v3970_v35 = vpop.f32.mrf.mxu0  ;;  %v8977_v56 = vld [vmem:[%s9952_s27 + $0x44] sm:$0x1]  ;;  %v6102_v59 = vpack.c.b16 %v6073_v52, %v6072_v42 }
 0x354   : > { %v4129_v46 = vadd.f32 %v3970_v35, %v12642_v27  ;;  %v4059_v7 = vpop.f32.mrf.mxu1  ;;  %v5695_v19 = vshll.u32 %v8977_v56, 16  ;;  %v5683_v27 = vrot.slane %v5682_v57, 4  ;;  %v8978_v56 = vld [vmem:[%s9952_s27 + $0x48] sm:$0xf]  ;;  %v9439_v57 = vld [vmem:[%s9952_s27 + $0x3c] sm:$0xff] }
 0x355   : > { %v4130_v15 = vadd.f32 %v4059_v7, %v12643_v21 }
 0x356   : > { %5267 = vmatmul.bf16.gmra.mxu0 %v9438_v5  ;;  %v5697_v7 = vrot.slane %v5695_v19, 5  ;;  %v9218_v19 = vld [vmem:[%s12527_s1 + $0x458] sm:$0xf0] }
 0x357   : > { %5356 = vmatmul.bf16.gmra.mxu1 %v9438_v5  ;;  %v4706_v10 = vpop.f32.mrf.mxu2  ;;  %v4795_v20 = vpop.f32.mrf.mxu3  ;;  %v5693_v5 = vrot.slane %v5692_v32, 4  ;;  %v5688_v32 = vsel %vm9968_vm2, %v5683_v27, %v5687_v3 }
 0x358   : > { %v11537_v63 = vadd.f32 %v4706_v10, %v4127_v13  ;;  %v11539_v31 = vadd.f32 %v4795_v20, %v4128_v36  ;;  %v9216_v36 = vld [vmem:[%s12527_s1 + $0x450] sm:$0xf]  ;;  %v9495_v20 = vld [vmem:[%s12527_s1 + $0x454] sm:$0xf0]  ;;  %v9494_v13 = vld [vmem:[%s12527_s1 + $0x454] sm:$0xf] }
 0x359   : > { %v9217_v10 = vor.u32 %v9495_v20, %v9216_v36  ;;  %v9221_v21 = vor.u32 %v9494_v13, %v9218_v19  ;;  %v5713_v36 = vshrl.u32 %v8979_v34, 16  ;;  %v12650_v20 = vld [vmem:[#allocation15_spill] sm:$0xff]  ;;  %v6074_v19 = vunpack.c.l.b16 %v5688_v32 }
 0x35a   : > { %12644 = vst [vmem:[#allocation38_spill] sm:$0xff] %v11537_v63 }
 0x35b   : > { %12645 = vst [vmem:[#allocation7_spill] sm:$0xff] %v11539_v31  ;;  %v3972_v41 = vpop.f32.mrf.mxu0  ;;  %6953 = vmatpush.bf16.msra.mxu0 %v9217_v10  ;;  %7042 = vmatpush.bf16.msra.mxu1 %v9221_v21  ;;  %v12651_v10 = vld [vmem:[#allocation16_spill] sm:$0xff] }
 0x35c   : > { %v4131_v6 = vadd.f32 %v3972_v41, %v12646_v61  ;;  %v4061_v35 = vpop.f32.mrf.mxu1  ;;  %6230 = vmatmul.bf16.gmra.mxu2 %v6102_v59  ;;  %6319 = vmatmul.bf16.gmra.mxu3 %v6102_v59  ;;  %v5698_v59 = vsel %vm9968_vm2, %v5693_v5, %v5697_v7  ;;  %v5700_v61 = vshrl.u32 %v8978_v56, 16  ;;  %v5715_v7 = vrot.slane %v5713_v36, 4  ;;  %v8980_v21 = vld [vmem:[%s9952_s27 + $0x50] sm:$0x1]  ;;  %v8982_v36 = vld [vmem:[%s9952_s27 + $0x58] sm:$0xf] }
 0x35d   : > { %v4132_v43 = vadd.f32 %v4061_v35, %v12647_v47  ;;  %v5703_v35 = vshll.u32 %v8978_v56, 16  ;;  %v5709_v47 = vshll.u32 %v8979_v34, 16  ;;  %v5719_v32 = vshll.u32 %v8980_v21, 16 }
 0x35e   : > { %v5702_v3 = vrot.slane %v5700_v61, 4 }
 0x35f   : > { %v4709_v39 = vpop.f32.mrf.mxu2  ;;  %v4798_v1 = vpop.f32.mrf.mxu3  ;;  %v5705_v27 = vrot.slane %v5703_v35, 5  ;;  %v5711_v5 = vrot.slane %v5709_v47, 5  ;;  %v12655_v35 = vld [vmem:[#allocation18_spill] sm:$0xff]  ;;  %v8981_v47 = vld [vmem:[%s9952_s27 + $0x54] sm:$0xf] }
 0x360   : > { %v11557_v42 = vadd.f32 %v4709_v39, %v4129_v46  ;;  %v11559_v52 = vadd.f32 %v4798_v1, %v4130_v15  ;;  %v6075_v39 = vunpack.c.l.b16 %v5698_v59  ;;  %v12654_v59 = vld [vmem:[#allocation17_spill] sm:$0xff] }
 0x362   : > { %12648 = vst [vmem:[#allocation8_spill] sm:$0xff] %v11557_v42 }
 0x363   : > { %12649 = vst [vmem:[#allocation9_spill] sm:$0xff] %v11559_v52  ;;  %v3975_v41 = vpop.f32.mrf.mxu0 }
 0x364   : > { %v4133_v13 = vadd.f32 %v3975_v41, %v12650_v20  ;;  %v4064_v46 = vpop.f32.mrf.mxu1  ;;  %v6103_v41 = vpack.c.b16 %v6075_v39, %v6074_v19  ;;  %v5727_v39 = vshll.u32 %v8981_v47, 16 }
 0x365   : > { %v4134_v15 = vadd.f32 %v4064_v46, %v12651_v10  ;;  %v5706_v46 = vor.u32 %v5705_v27, %v5702_v3  ;;  %v5716_v10 = vor.u32 %v5715_v7, %v5711_v5  ;;  %v5733_v3 = vshll.u32 %v8982_v36, 16 }
 0x366   : > { %5272 = vmatmul.bf16.gmra.mxu0 %v9439_v57  ;;  %v5737_v27 = vshrl.u32 %v8982_v36, 16  ;;  %v5729_v36 = vrot.slane %v5727_v39, 5 }
 0x367   : > { %5361 = vmatmul.bf16.gmra.mxu1 %v9439_v57  ;;  %v4711_v1 = vpop.f32.mrf.mxu2  ;;  %v4800_v56 = vpop.f32.mrf.mxu3  ;;  %v5707_v31 = vrot.slane %v5706_v46, 4 }
 0x368   : > { %v11569_v52 = vadd.f32 %v4711_v1, %v4131_v6  ;;  %v11571_v34 = vadd.f32 %v4800_v56, %v4132_v43  ;;  %v5717_v6 = vrot.slane %v5716_v10, 4  ;;  %v5721_v1 = vrot.slane %v5719_v32, 5  ;;  %v12658_v10 = vld [vmem:[#allocation19_spill] sm:$0xff] }
 0x369   : > { %v5724_v43 = vshrl.u32 %v8981_v47, 16  ;;  %v12659_v47 = vld [vmem:[#allocation20_spill] sm:$0xff] }
 0x36a   : > { %12652 = vst [vmem:[#allocation10_spill] sm:$0xff] %v11569_v52  ;;  %v5722_v46 = vsel %vm9968_vm2, %v5717_v6, %v5721_v1 }
 0x36b   : > { %12653 = vst [vmem:[#allocation11_spill] sm:$0xff] %v11571_v34  ;;  %v3977_v20 = vpop.f32.mrf.mxu0 }
 0x36c   : > { %v4135_v57 = vadd.f32 %v3977_v20, %v12654_v59  ;;  %v4066_v61 = vpop.f32.mrf.mxu1  ;;  %6235 = vmatmul.bf16.gmra.mxu2 %v6103_v41  ;;  %6324 = vmatmul.bf16.gmra.mxu3 %v6103_v41  ;;  %v9440_v20 = vld [vmem:[%s9952_s27 + $0x48] sm:$0xff]  ;;  %v5712_v41 = vsel %vm9968_vm2, %v5707_v31, %v5711_v5 }
 0x36d   : > { %v4136_v42 = vadd.f32 %v4066_v61, %v12655_v35  ;;  %v5726_v35 = vrot.slane %v5724_v43, 4 }
 0x36f   : > { %v4714_v56 = vpop.f32.mrf.mxu2  ;;  %v4803_v19 = vpop.f32.mrf.mxu3  ;;  %v5730_v31 = vor.u32 %v5729_v36, %v5726_v35  ;;  %v8985_v35 = vld [vmem:[%s9952_s27 + $0x64] sm:$0xf] }
 0x370   : > { %v11577_v7 = vadd.f32 %v4714_v56, %v4133_v13  ;;  %v11579_v21 = vadd.f32 %v4803_v19, %v4134_v15  ;;  %v5735_v13 = vrot.slane %v5733_v3, 5  ;;  %v5739_v56 = vrot.slane %v5737_v27, 4  ;;  %v12660_v3 = vld [vmem:[#allocation21_spill] sm:$0xff] }
 0x371   : > { %v6076_v15 = vunpack.c.l.b16 %v5712_v41  ;;  %v6077_v19 = vunpack.c.l.b16 %v5722_v46  ;;  %v12661_v41 = vld [vmem:[#allocation22_spill] sm:$0xff] }
 0x372   : > { %12656 = vst [vmem:[#allocation12_spill] sm:$0xff] %v11577_v7  ;;  %v5740_v5 = vor.u32 %v5739_v56, %v5735_v13 }
 0x373   : > { %12657 = vst [vmem:[#allocation13_spill] sm:$0xff] %v11579_v21  ;;  %v3980_v59 = vpop.f32.mrf.mxu0  ;;  %v8983_v21 = vld [vmem:[%s9952_s27 + $0x5c] sm:$0x1]  ;;  %v6104_v43 = vpack.c.b16 %v6077_v19, %v6076_v15 }
 0x374   : > { %v4137_v32 = vadd.f32 %v3980_v59, %v12658_v10  ;;  %v4069_v61 = vpop.f32.mrf.mxu1  ;;  %v5743_v63 = vshll.u32 %v8983_v21, 16  ;;  %v5731_v10 = vrot.slane %v5730_v31, 4  ;;  %v8984_v21 = vld [vmem:[%s9952_s27 + $0x60] sm:$0xf]  ;;  %v9441_v31 = vld [vmem:[%s9952_s27 + $0x54] sm:$0xff] }
 0x375   : > { %v4138_v34 = vadd.f32 %v4069_v61, %v12659_v47 }
 0x376   : > { %5277 = vmatmul.bf16.gmra.mxu0 %v9440_v20  ;;  %v5745_v61 = vrot.slane %v5743_v63, 5  ;;  %v9210_v63 = vld [vmem:[%s12527_s1 + $0x448] sm:$0xf0] }
 0x377   : > { %5366 = vmatmul.bf16.gmra.mxu1 %v9440_v20  ;;  %v4716_v7 = vpop.f32.mrf.mxu2  ;;  %v4805_v52 = vpop.f32.mrf.mxu3  ;;  %v5741_v20 = vrot.slane %v5740_v5, 4  ;;  %v5736_v5 = vsel %vm9968_vm2, %v5731_v10, %v5735_v13 }
 0x378   : > { %v11589_v6 = vadd.f32 %v4716_v7, %v4135_v57  ;;  %v11591_v1 = vadd.f32 %v4805_v52, %v4136_v42  ;;  %v9208_v42 = vld [vmem:[%s12527_s1 + $0x440] sm:$0xf]  ;;  %v9493_v52 = vld [vmem:[%s12527_s1 + $0x444] sm:$0xf0]  ;;  %v9492_v57 = vld [vmem:[%s12527_s1 + $0x444] sm:$0xf] }
 0x379   : > { %v9209_v7 = vor.u32 %v9493_v52, %v9208_v42  ;;  %v9213_v47 = vor.u32 %v9492_v57, %v9210_v63  ;;  %v5761_v42 = vshrl.u32 %v8985_v35, 16  ;;  %v12663_v52 = vld [vmem:[#allocation23_spill] sm:$0xff]  ;;  %v6078_v63 = vunpack.c.l.b16 %v5736_v5 }
 0x37b   : > { %v3982_v39 = vpop.f32.mrf.mxu0  ;;  %6954 = vmatpush.bf16.msra.mxu0 %v9209_v7  ;;  %7043 = vmatpush.bf16.msra.mxu1 %v9213_v47  ;;  %v12664_v7 = vld [vmem:[#allocation24_spill] sm:$0xff]  ;;  %v8986_v47 = vld [vmem:[%s9952_s27 + $0x68] sm:$0x1] }
 0x37c   : > { %v4139_v27 = vadd.f32 %v3982_v39, %v12660_v3  ;;  %v4071_v59 = vpop.f32.mrf.mxu1  ;;  %6240 = vmatmul.bf16.gmra.mxu2 %v6104_v43  ;;  %6329 = vmatmul.bf16.gmra.mxu3 %v6104_v43  ;;  %v5746_v43 = vsel %vm9968_vm2, %v5741_v20, %v5745_v61  ;;  %v5748_v3 = vshrl.u32 %v8984_v21, 16  ;;  %v5763_v61 = vrot.slane %v5761_v42, 4 }
 0x37d   : > { %v4140_v46 = vadd.f32 %v4071_v59, %v12661_v41  ;;  %v5751_v59 = vshll.u32 %v8984_v21, 16  ;;  %v5757_v41 = vshll.u32 %v8985_v35, 16  ;;  %v5767_v5 = vshll.u32 %v8986_v47, 16 }
 0x37e   : > { %v5750_v13 = vrot.slane %v5748_v3, 4 }
 0x37f   : > { %v4719_v36 = vpop.f32.mrf.mxu2  ;;  %v4808_v56 = vpop.f32.mrf.mxu3  ;;  %v5753_v10 = vrot.slane %v5751_v59, 5  ;;  %v5759_v20 = vrot.slane %v5757_v41, 5  ;;  %v8987_v59 = vld [vmem:[%s9952_s27 + $0x6c] sm:$0xf]  ;;  %v8988_v41 = vld [vmem:[%s9952_s27 + $0x70] sm:$0xf] }
 0x380   : > { %v11609_v15 = vadd.f32 %v4719_v36, %v4137_v32  ;;  %v11611_v19 = vadd.f32 %v4808_v56, %v4138_v34  ;;  %v6079_v36 = vunpack.c.l.b16 %v5746_v43 }
 0x382   : > { %12662 = vst [vmem:[#allocation14_spill] sm:$0xff] %v11611_v19 }
 0x383   : > { %v3985_v39 = vpop.f32.mrf.mxu0 }
 0x384   : > { %v4141_v57 = vadd.f32 %v3985_v39, %v12663_v52  ;;  %v4074_v32 = vpop.f32.mrf.mxu1  ;;  %v6105_v39 = vpack.c.b16 %v6079_v36, %v6078_v63  ;;  %v5775_v36 = vshll.u32 %v8987_v59, 16 }
 0x385   : > { %v4142_v34 = vadd.f32 %v4074_v32, %v12664_v7  ;;  %v5754_v32 = vor.u32 %v5753_v10, %v5750_v13  ;;  %v5764_v7 = vor.u32 %v5763_v61, %v5759_v20  ;;  %v5781_v13 = vshll.u32 %v8988_v41, 16 }
 0x386   : > { %5282 = vmatmul.bf16.gmra.mxu0 %v9441_v31  ;;  %v5785_v10 = vshrl.u32 %v8988_v41, 16 }
 0x387   : > { %5371 = vmatmul.bf16.gmra.mxu1 %v9441_v31  ;;  %v4721_v56 = vpop.f32.mrf.mxu2  ;;  %v4810_v21 = vpop.f32.mrf.mxu3  ;;  %v5755_v42 = vrot.slane %v5754_v32, 4 }
 0x388   : > { %v11621_v19 = vadd.f32 %v4721_v56, %v4139_v27  ;;  %v11623_v35 = vadd.f32 %v4810_v21, %v4140_v46  ;;  %v5765_v27 = vrot.slane %v5764_v7, 4  ;;  %v5769_v56 = vrot.slane %v5767_v5, 5 }
 0x389   : > { %v5772_v46 = vshrl.u32 %v8987_v59, 16  ;;  %v5777_v59 = vrot.slane %v5775_v36, 5  ;;  %v5787_v41 = vrot.slane %v5785_v10, 4 }
 0x38a   : > { %12665 = vst [vmem:[#allocation15_spill] sm:$0xff] %v11623_v35 }
 0x38b   : > { %v3987_v52 = vpop.f32.mrf.mxu0  ;;  %v5774_v5 = vrot.slane %v5772_v46, 4 }
 0x38c   : > { %v4143_v31 = vadd.f32 %v3987_v52, %v11060_v0  ;;  %v4076_v43 = vpop.f32.mrf.mxu1  ;;  %6245 = vmatmul.bf16.gmra.mxu2 %v6105_v39  ;;  %6334 = vmatmul.bf16.gmra.mxu3 %v6105_v39  ;;  %v5760_v39 = vsel %vm9968_vm2, %v5755_v42, %v5759_v20  ;;  %v5770_v52 = vsel %vm9968_vm2, %v5765_v27, %v5769_v56 }
 0x38d   : > { %v4144_v3 = vadd.f32 %v4076_v43, %v11062_v24  ;;  %v9442_v24 = vld [vmem:[%s9952_s27 + $0x60] sm:$0xff]  ;;  %v5778_v20 = vor.u32 %v5777_v59, %v5774_v5 }
 0x38f   : > { %v4724_v21 = vpop.f32.mrf.mxu2  ;;  %v4813_v63 = vpop.f32.mrf.mxu3  ;;  %v5779_v10 = vrot.slane %v5778_v20, 4 }
 0x390   : > { %v11629_v61 = vadd.f32 %v4724_v21, %v4141_v57  ;;  %v11631_v0 = vadd.f32 %v4813_v63, %v4142_v34  ;;  %v5783_v57 = vrot.slane %v5781_v13, 5  ;;  %v6080_v34 = vunpack.c.l.b16 %v5760_v39  ;;  %v8989_v63 = vld [vmem:[%s9952_s27 + $0x74] sm:$0x1] }
 0x391   : > { %v6081_v21 = vunpack.c.l.b16 %v5770_v52  ;;  %v5791_v35 = vshll.u32 %v8989_v63, 16 }
 0x392   : > { %12666 = vst [vmem:[#allocation16_spill] sm:$0xff] %v11629_v61  ;;  %v5788_v42 = vor.u32 %v5787_v41, %v5783_v57  ;;  %v9443_v41 = vld [vmem:[%s9952_s27 + $0x6c] sm:$0xff] }
 0x393   : > { %12667 = vst [vmem:[#allocation17_spill] sm:$0xff] %v11631_v0  ;;  %v3990_v47 = vpop.f32.mrf.mxu0  ;;  %v6106_v56 = vpack.c.b16 %v6081_v21, %v6080_v34  ;;  %v5784_v34 = vsel %vm9968_vm2, %v5779_v10, %v5783_v57 }
 0x394   : > { %v4145_v32 = vadd.f32 %v3990_v47, %v11085_v49  ;;  %v4079_v7 = vpop.f32.mrf.mxu1  ;;  %v5793_v47 = vrot.slane %v5791_v35, 5  ;;  %v8990_v35 = vld [vmem:[%s9952_s27 + $0x78] sm:$0xf] }
 0x395   : > { %v4146_v43 = vadd.f32 %v4079_v7, %v11087_v30  ;;  %v5796_v20 = vshrl.u32 %v8990_v35, 16 }
 0x396   : > { %5287 = vmatmul.bf16.gmra.mxu0 %v9442_v24 }
 0x397   : > { %5376 = vmatmul.bf16.gmra.mxu1 %v9442_v24  ;;  %v4726_v0 = vpop.f32.mrf.mxu2  ;;  %v4815_v61 = vpop.f32.mrf.mxu3  ;;  %v5789_v24 = vrot.slane %v5788_v42, 4  ;;  %v5799_v42 = vshll.u32 %v8990_v35, 16  ;;  %v5798_v57 = vrot.slane %v5796_v20, 4  ;;  %v8993_v20 = vld [vmem:[%s9952_s27 + $0x84] sm:$0xf] }
 0x398   : > { %v11641_v27 = vadd.f32 %v4726_v0, %v4143_v31  ;;  %v11643_v49 = vadd.f32 %v4815_v61, %v4144_v3  ;;  %v9200_v31 = vld [vmem:[%s12527_s1 + $0x430] sm:$0xf]  ;;  %v9491_v3 = vld [vmem:[%s12527_s1 + $0x434] sm:$0xf0]  ;;  %v8991_v0 = vld [vmem:[%s9952_s27 + $0x7c] sm:$0xf] }
 0x399   : > { %v9201_v61 = vor.u32 %v9491_v3, %v9200_v31  ;;  %v5794_v21 = vsel %vm9968_vm2, %v5789_v24, %v5793_v47  ;;  %v6082_v31 = vunpack.c.l.b16 %v5784_v34  ;;  %v5801_v10 = vrot.slane %v5799_v42, 5  ;;  %v8992_v47 = vld [vmem:[%s9952_s27 + $0x80] sm:$0x1] }
 0x39a   : > { %v6083_v3 = vunpack.c.l.b16 %v5794_v21 }
 0x39b   : > { %v3992_v30 = vpop.f32.mrf.mxu0  ;;  %6955 = vmatpush.bf16.msra.mxu0 %v9201_v61 }
 0x39c   : > { %v4147_v46 = vadd.f32 %v3992_v30, %v11099_v18  ;;  %v4081_v36 = vpop.f32.mrf.mxu1  ;;  %6250 = vmatmul.bf16.gmra.mxu2 %v6106_v56  ;;  %6339 = vmatmul.bf16.gmra.mxu3 %v6106_v56  ;;  %v9490_v18 = vld [vmem:[%s12527_s1 + $0x434] sm:$0xf]  ;;  %v5805_v56 = vshll.u32 %v8991_v0, 16  ;;  %v5809_v30 = vshrl.u32 %v8991_v0, 16 }
 0x39d   : > { %v4148_v13 = vadd.f32 %v4081_v36, %v11101_v23  ;;  %v9202_v23 = vld [vmem:[%s12527_s1 + $0x438] sm:$0xf0] }
 0x39e   : > { %v9205_v39 = vor.u32 %v9490_v18, %v9202_v23  ;;  %v5807_v18 = vrot.slane %v5805_v56, 5  ;;  %v5811_v24 = vrot.slane %v5809_v30, 4 }
 0x39f   : > { %v4729_v52 = vpop.f32.mrf.mxu2  ;;  %v4818_v7 = vpop.f32.mrf.mxu3 }
 0x3a0   : > { %v11661_v5 = vadd.f32 %v4729_v52, %v4145_v32  ;;  %v11663_v59 = vadd.f32 %v4818_v7, %v4146_v43  ;;  %7044 = vmatpush.bf16.msra.mxu1 %v9205_v39  ;;  %v5802_v52 = vor.u32 %v5801_v10, %v5798_v57  ;;  %v5812_v7 = vor.u32 %v5811_v24, %v5807_v18 }
 0x3a2   : > { %v5803_v42 = vrot.slane %v5802_v52, 4  ;;  %v5813_v56 = vrot.slane %v5812_v7, 4 }
 0x3a3   : > { %v3995_v63 = vpop.f32.mrf.mxu0 }
 0x3a4   : > { %v4149_v36 = vadd.f32 %v3995_v63, %v11121_v45  ;;  %v4084_v32 = vpop.f32.mrf.mxu1  ;;  %v6107_v45 = vpack.c.b16 %v6083_v3, %v6082_v31  ;;  %v5823_v3 = vshll.u32 %v8993_v20, 16 }
 0x3a5   : > { %v4150_v43 = vadd.f32 %v4084_v32, %v11123_v50  ;;  %v9507_v50 = vld [vmem:[%s12529_s3 + $0x38] sm:$0xff]  ;;  %v5820_v32 = vshrl.u32 %v8993_v20, 16 }
 0x3a6   : > { %5292 = vmatmul.bf16.gmra.mxu0 %v9443_v41  ;;  %7683 = vmatpush.bf16.msra.mxu2 %v9507_v50 }
 0x3a7   : > { %5381 = vmatmul.bf16.gmra.mxu1 %v9443_v41  ;;  %v4731_v61 = vpop.f32.mrf.mxu2  ;;  %v4820_v23 = vpop.f32.mrf.mxu3  ;;  %v5815_v41 = vshll.u32 %v8992_v47, 16  ;;  %v9444_v47 = vld [vmem:[%s9952_s27 + $0x78] sm:$0xff]  ;;  %v5822_v52 = vrot.slane %v5820_v32, 4 }
 0x3a8   : > { %v11673_v35 = vadd.f32 %v4731_v61, %v4147_v46  ;;  %v11675_v0 = vadd.f32 %v4820_v23, %v4148_v13  ;;  %v8994_v46 = vld [vmem:[%s9952_s27 + $0x88] sm:$0xf]  ;;  %v9515_v13 = vld [vmem:[%s12529_s3 + $0x78] sm:$0xff]  ;;  %v5808_v23 = vsel %vm9968_vm2, %v5803_v42, %v5807_v18 }
 0x3a9   : > { %v5817_v30 = vrot.slane %v5815_v41, 5  ;;  %7772 = vmatpush.bf16.msra.mxu3 %v9515_v13  ;;  %v5829_v57 = vshll.u32 %v8994_v46, 16  ;;  %v5833_v10 = vshrl.u32 %v8994_v46, 16  ;;  %v5825_v41 = vrot.slane %v5823_v3, 5  ;;  %v8995_v46 = vld [vmem:[%s9952_s27 + $0x8c] sm:$0x1] }
 0x3ab   : > { %v3997_v39 = vpop.f32.mrf.mxu0  ;;  %v5826_v18 = vor.u32 %v5825_v41, %v5822_v52 }
 0x3ac   : > { %v4151_v34 = vadd.f32 %v3997_v39, %v11135_v48  ;;  %v4086_v21 = vpop.f32.mrf.mxu1  ;;  %6255 = vmatmul.bf16.gmra.mxu2 %v6107_v45  ;;  %6344 = vmatmul.bf16.gmra.mxu3 %v6107_v45  ;;  %v5818_v45 = vsel %vm9968_vm2, %v5813_v56, %v5817_v30 }
 0x3ad   : > { %v4152_v63 = vadd.f32 %v4086_v21, %v11137_v38  ;;  %v5835_v21 = vrot.slane %v5833_v10, 4  ;;  %v6085_v20 = vunpack.c.l.b16 %v5818_v45  ;;  %v5827_v10 = vrot.slane %v5826_v18, 4  ;;  %v8996_v45 = vld [vmem:[%s9952_s27 + $0x90] sm:$0xf] }
 0x3af   : > { %v4734_v31 = vpop.f32.mrf.mxu2  ;;  %v4823_v48 = vpop.f32.mrf.mxu3 }
 0x3b0   : > { %v11687_v38 = vadd.f32 %v4734_v31, %v4149_v36  ;;  %v11689_v24 = vadd.f32 %v4823_v48, %v4150_v43  ;;  %v5831_v36 = vrot.slane %v5829_v57, 5  ;;  %v6084_v43 = vunpack.c.l.b16 %v5808_v23 }
 0x3b1   : > { %v5839_v48 = vshll.u32 %v8995_v46, 16  ;;  %v9445_v46 = vld [vmem:[%s9952_s27 + $0x84] sm:$0xff] }
 0x3b2   : > { %v5836_v42 = vor.u32 %v5835_v21, %v5831_v36  ;;  %v6108_v30 = vpack.c.b16 %v6085_v20, %v6084_v43 }
 0x3b3   : > { %v5258_v61 = vpop.f32.mrf.mxu0 }
 0x3b4   : > { %v5427_v50 = vadd.f32 %v5258_v61, %v11161_v16  ;;  %v5347_v39 = vpop.f32.mrf.mxu1  ;;  %v5841_v61 = vrot.slane %v5839_v48, 5  ;;  %v5847_v48 = vshll.u32 %v8996_v45, 16 }
 0x3b5   : > { %v5428_v7 = vadd.f32 %v5347_v39, %v11163_v44  ;;  %v8997_v39 = vld [vmem:[%s9952_s27 + $0x94] sm:$0xf] }
 0x3b6   : > { %5297 = vmatmul.bf16.gmra.mxu0 %v9444_v47 }
 0x3b7   : > { %5386 = vmatmul.bf16.gmra.mxu1 %v9444_v47  ;;  %v4736_v13 = vpop.f32.mrf.mxu2  ;;  %v4825_v31 = vpop.f32.mrf.mxu3  ;;  %v5837_v47 = vrot.slane %v5836_v42, 4  ;;  %v5844_v42 = vshrl.u32 %v8996_v45, 16 }
 0x3b8   : > { %v11699_v56 = vadd.f32 %v4736_v13, %v4151_v34  ;;  %v11701_v16 = vadd.f32 %v4825_v31, %v4152_v63  ;;  %v9192_v34 = vld [vmem:[%s12527_s1 + $0x420] sm:$0xf]  ;;  %v9489_v63 = vld [vmem:[%s12527_s1 + $0x424] sm:$0xf0]  ;;  %v5832_v13 = vsel %vm9968_vm2, %v5827_v10, %v5831_v36  ;;  %v5849_v10 = vrot.slane %v5847_v48, 5 }
 0x3b9   : > { %v9193_v23 = vor.u32 %v9489_v63, %v9192_v34  ;;  %v5842_v31 = vsel %vm9968_vm2, %v5837_v47, %v5841_v61  ;;  %v6086_v34 = vunpack.c.l.b16 %v5832_v13  ;;  %v5846_v36 = vrot.slane %v5844_v42, 4  ;;  %v8998_v61 = vld [vmem:[%s9952_s27 + $0x98] sm:$0x1]  ;;  %v8999_v42 = vld [vmem:[%s9952_s27 + $0x9c] sm:$0xf] }
 0x3ba   : > { %v6087_v63 = vunpack.c.l.b16 %v5842_v31 }
 0x3bb   : > { %v5260_v44 = vpop.f32.mrf.mxu0  ;;  %6956 = vmatpush.bf16.msra.mxu0 %v9193_v23 }
 0x3bc   : > { %v5429_v32 = vadd.f32 %v5260_v44, %v11175_v12  ;;  %v5349_v3 = vpop.f32.mrf.mxu1  ;;  %6260 = vmatmul.bf16.gmra.mxu2 %v6108_v30  ;;  %6349 = vmatmul.bf16.gmra.mxu3 %v6108_v30  ;;  %v9488_v12 = vld [vmem:[%s12527_s1 + $0x424] sm:$0xf]  ;;  %v5853_v30 = vshll.u32 %v8997_v39, 16  ;;  %v5857_v44 = vshrl.u32 %v8997_v39, 16 }
 0x3bd   : > { %v5430_v57 = vadd.f32 %v5349_v3, %v11177_v54  ;;  %v9194_v54 = vld [vmem:[%s12527_s1 + $0x428] sm:$0xf0] }
 0x3be   : > { %v9197_v52 = vor.u32 %v9488_v12, %v9194_v54  ;;  %v5855_v12 = vrot.slane %v5853_v30, 5  ;;  %v5859_v47 = vrot.slane %v5857_v44, 4 }
 0x3bf   : > { %v6221_v41 = vpop.f32.mrf.mxu2  ;;  %v6310_v21 = vpop.f32.mrf.mxu3 }
 0x3c0   : > { %v11719_v43 = vadd.f32 %v6221_v41, %v5427_v50  ;;  %v11721_v20 = vadd.f32 %v6310_v21, %v5428_v7  ;;  %7045 = vmatpush.bf16.msra.mxu1 %v9197_v52  ;;  %v5850_v41 = vor.u32 %v5849_v10, %v5846_v36  ;;  %v5860_v21 = vor.u32 %v5859_v47, %v5855_v12 }
 0x3c2   : > { %v5851_v48 = vrot.slane %v5850_v41, 4  ;;  %v5861_v30 = vrot.slane %v5860_v21, 4 }
 0x3c3   : > { %v5263_v18 = vpop.f32.mrf.mxu0 }
 0x3c4   : > { %v5431_v3 = vadd.f32 %v5263_v18, %v11197_v40  ;;  %v5352_v50 = vpop.f32.mrf.mxu1  ;;  %v6109_v40 = vpack.c.b16 %v6087_v63, %v6086_v34  ;;  %v5871_v63 = vshll.u32 %v8999_v42, 16 }
 0x3c5   : > { %v5432_v7 = vadd.f32 %v5352_v50, %v11199_v58  ;;  %v9506_v58 = vld [vmem:[%s12529_s3 + $0x30] sm:$0xff]  ;;  %v5868_v50 = vshrl.u32 %v8999_v42, 16 }
 0x3c6   : > { %5302 = vmatmul.bf16.gmra.mxu0 %v9445_v46  ;;  %7684 = vmatpush.bf16.msra.mxu2 %v9506_v58 }
 0x3c7   : > { %5391 = vmatmul.bf16.gmra.mxu1 %v9445_v46  ;;  %v6223_v23 = vpop.f32.mrf.mxu2  ;;  %v6312_v54 = vpop.f32.mrf.mxu3  ;;  %v5863_v46 = vshll.u32 %v8998_v61, 16  ;;  %v9446_v61 = vld [vmem:[%s9952_s27 + $0x90] sm:$0xff]  ;;  %v5870_v41 = vrot.slane %v5868_v50, 4  ;;  %v12668_v50 = vld [vmem:[#allocation25_spill] sm:$0xff] }
 0x3c8   : > { %v11731_v45 = vadd.f32 %v6223_v23, %v5429_v32  ;;  %v11733_v39 = vadd.f32 %v6312_v54, %v5430_v57  ;;  %v9000_v32 = vld [vmem:[%s9952_s27 + $0xa0] sm:$0xf]  ;;  %v9514_v57 = vld [vmem:[%s12529_s3 + $0x70] sm:$0xff]  ;;  %v5856_v54 = vsel %vm9968_vm2, %v5851_v48, %v5855_v12 }
 0x3c9   : > { %v5865_v44 = vrot.slane %v5863_v46, 5  ;;  %7773 = vmatpush.bf16.msra.mxu3 %v9514_v57  ;;  %v5877_v36 = vshll.u32 %v9000_v32, 16  ;;  %v5881_v10 = vshrl.u32 %v9000_v32, 16  ;;  %v5873_v46 = vrot.slane %v5871_v63, 5  ;;  %v9001_v32 = vld [vmem:[%s9952_s27 + $0xa4] sm:$0x1] }
 0x3cb   : > { %v5265_v52 = vpop.f32.mrf.mxu0  ;;  %v5874_v12 = vor.u32 %v5873_v46, %v5870_v41  ;;  %v9186_v46 = vld [vmem:[%s12527_s1 + $0x418] sm:$0xf0] }
 0x3cc   : > { %v5433_v13 = vadd.f32 %v5265_v52, %v11211_v4  ;;  %v5354_v31 = vpop.f32.mrf.mxu1  ;;  %6265 = vmatmul.bf16.gmra.mxu2 %v6109_v40  ;;  %6354 = vmatmul.bf16.gmra.mxu3 %v6109_v40  ;;  %v5866_v40 = vsel %vm9968_vm2, %v5861_v30, %v5865_v44 }
 0x3cd   : > { %v5434_v18 = vadd.f32 %v5354_v31, %v11213_v9  ;;  %v5883_v31 = vrot.slane %v5881_v10, 4  ;;  %v6089_v42 = vunpack.c.l.b16 %v5866_v40  ;;  %v12669_v10 = vld [vmem:[#allocation26_spill] sm:$0xff] }
 0x3cf   : > { %v6226_v34 = vpop.f32.mrf.mxu2  ;;  %v6315_v4 = vpop.f32.mrf.mxu3 }
 0x3d0   : > { %v11745_v9 = vadd.f32 %v6226_v34, %v5431_v3  ;;  %v11747_v47 = vadd.f32 %v6315_v4, %v5432_v7  ;;  %v5879_v3 = vrot.slane %v5877_v36, 5  ;;  %v6088_v7 = vunpack.c.l.b16 %v5856_v54 }
 0x3d1   : > { %v5887_v4 = vshll.u32 %v9001_v32, 16  ;;  %v5875_v54 = vrot.slane %v5874_v12, 4 }
 0x3d2   : > { %v5884_v48 = vor.u32 %v5883_v31, %v5879_v3  ;;  %v6110_v44 = vpack.c.b16 %v6089_v42, %v6088_v7  ;;  %v9002_v31 = vld [vmem:[%s9952_s27 + $0xa8] sm:$0xf]  ;;  %v9003_v7 = vld [vmem:[%s9952_s27 + $0xac] sm:$0xf] }
 0x3d3   : > { %v5268_v23 = vpop.f32.mrf.mxu0  ;;  %v5889_v40 = vrot.slane %v5887_v4, 5  ;;  %v5880_v4 = vsel %vm9968_vm2, %v5875_v54, %v5879_v3 }
 0x3d4   : > { %v5435_v58 = vadd.f32 %v5268_v23, %v11235_v8  ;;  %v5357_v52 = vpop.f32.mrf.mxu1 }
 0x3d5   : > { %v5436_v21 = vadd.f32 %v5357_v52, %v11237_v51  ;;  %v9486_v52 = vld [vmem:[%s12527_s1 + $0x414] sm:$0xf] }
 0x3d6   : > { %5307 = vmatmul.bf16.gmra.mxu0 %v9446_v61  ;;  %v9189_v42 = vor.u32 %v9486_v52, %v9186_v46  ;;  %v6090_v46 = vunpack.c.l.b16 %v5880_v4  ;;  %v9505_v4 = vld [vmem:[%s12529_s3 + $0x28] sm:$0xff] }
 0x3d7   : > { %5396 = vmatmul.bf16.gmra.mxu1 %v9446_v61  ;;  %v6228_v57 = vpop.f32.mrf.mxu2  ;;  %v6317_v34 = vpop.f32.mrf.mxu3  ;;  %v5885_v61 = vrot.slane %v5884_v48, 4  ;;  %v9447_v48 = vld [vmem:[%s9952_s27 + $0x9c] sm:$0xff]  ;;  %7685 = vmatpush.bf16.msra.mxu2 %v9505_v4 }
 0x3d8   : > { %v11757_v30 = vadd.f32 %v6228_v57, %v5433_v13  ;;  %v11759_v8 = vadd.f32 %v6317_v34, %v5434_v18  ;;  %v9184_v13 = vld [vmem:[%s12527_s1 + $0x410] sm:$0xf]  ;;  %v9487_v18 = vld [vmem:[%s12527_s1 + $0x414] sm:$0xf0]  ;;  %7046 = vmatpush.bf16.msra.mxu1 %v9189_v42 }
 0x3d9   : > { %v9185_v41 = vor.u32 %v9487_v18, %v9184_v13  ;;  %v5905_v13 = vshrl.u32 %v9003_v7, 16  ;;  %v12671_v18 = vld [vmem:[#allocation27_spill] sm:$0xff] }
 0x3db   : > { %v5270_v51 = vpop.f32.mrf.mxu0  ;;  %6957 = vmatpush.bf16.msra.mxu0 %v9185_v41  ;;  %v12672_v41 = vld [vmem:[#allocation39_spill] sm:$0xff] }
 0x3dc   : > { %v5437_v63 = vadd.f32 %v5270_v51, %v12668_v50  ;;  %v5359_v36 = vpop.f32.mrf.mxu1  ;;  %6270 = vmatmul.bf16.gmra.mxu2 %v6110_v44  ;;  %6359 = vmatmul.bf16.gmra.mxu3 %v6110_v44  ;;  %v5890_v44 = vsel %vm9968_vm2, %v5885_v61, %v5889_v40  ;;  %v5892_v50 = vshrl.u32 %v9002_v31, 16  ;;  %v5907_v61 = vrot.slane %v5905_v13, 4  ;;  %v9004_v40 = vld [vmem:[%s9952_s27 + $0xb0] sm:$0x1] }
 0x3dd   : > { %v5438_v23 = vadd.f32 %v5359_v36, %v12669_v10  ;;  %v5895_v36 = vshll.u32 %v9002_v31, 16  ;;  %v5901_v10 = vshll.u32 %v9003_v7, 16 }
 0x3de   : > { %v5894_v3 = vrot.slane %v5892_v50, 4 }
 0x3df   : > { %v6231_v32 = vpop.f32.mrf.mxu2  ;;  %v6320_v57 = vpop.f32.mrf.mxu3  ;;  %v5897_v54 = vrot.slane %v5895_v36, 5  ;;  %v5911_v36 = vshll.u32 %v9004_v40, 16 }
 0x3e0   : > { %v11777_v34 = vadd.f32 %v6231_v32, %v5435_v58  ;;  %v11779_v12 = vadd.f32 %v6320_v57, %v5436_v21  ;;  %v6091_v32 = vunpack.c.l.b16 %v5890_v44  ;;  %v5903_v57 = vrot.slane %v5901_v10, 5 }
 0x3e2   : > { %12670 = vst [vmem:[#allocation18_spill] sm:$0xff] %v11779_v12  ;;  %v5908_v50 = vor.u32 %v5907_v61, %v5903_v57 }
 0x3e3   : > { %v5273_v51 = vpop.f32.mrf.mxu0 }
 0x3e4   : > { %v5439_v52 = vadd.f32 %v5273_v51, %v12671_v18  ;;  %v5362_v58 = vpop.f32.mrf.mxu1  ;;  %v6111_v51 = vpack.c.b16 %v6091_v32, %v6090_v46  ;;  %v5913_v46 = vrot.slane %v5911_v36, 5 }
 0x3e5   : > { %v5440_v21 = vadd.f32 %v5362_v58, %v12672_v41  ;;  %v9005_v58 = vld [vmem:[%s9952_s27 + $0xb4] sm:$0xf]  ;;  %v5909_v41 = vrot.slane %v5908_v50, 4 }
 0x3e6   : > { %5312 = vmatmul.bf16.gmra.mxu0 %v9447_v48  ;;  %v5916_v32 = vshrl.u32 %v9005_v58, 16 }
 0x3e7   : > { %5401 = vmatmul.bf16.gmra.mxu1 %v9447_v48  ;;  %v6233_v42 = vpop.f32.mrf.mxu2  ;;  %v6322_v12 = vpop.f32.mrf.mxu3  ;;  %v5898_v48 = vor.u32 %v5897_v54, %v5894_v3  ;;  %v5919_v54 = vshll.u32 %v9005_v58, 16 }
 0x3e8   : > { %v11789_v31 = vadd.f32 %v6233_v42, %v5437_v63  ;;  %v11791_v7 = vadd.f32 %v6322_v12, %v5438_v23  ;;  %v9006_v63 = vld [vmem:[%s9952_s27 + $0xb8] sm:$0xf]  ;;  %v9513_v23 = vld [vmem:[%s12529_s3 + $0x68] sm:$0xff] }
 0x3e9   : > { %v5899_v12 = vrot.slane %v5898_v48, 4  ;;  %7774 = vmatpush.bf16.msra.mxu3 %v9513_v23  ;;  %v5925_v61 = vshll.u32 %v9006_v63, 16  ;;  %v5929_v40 = vshrl.u32 %v9006_v63, 16  ;;  %v5914_v48 = vsel %vm9968_vm2, %v5909_v41, %v5913_v46 }
 0x3ea   : > { %v5921_v63 = vrot.slane %v5919_v54, 5 }
 0x3eb   : > { %v5275_v44 = vpop.f32.mrf.mxu0  ;;  %v5931_v23 = vrot.slane %v5929_v40, 4  ;;  %v12675_v40 = vld [vmem:[#allocation28_spill] sm:$0xff] }
 0x3ec   : > { %v5441_v10 = vadd.f32 %v5275_v44, %v11292_v62  ;;  %v5364_v13 = vpop.f32.mrf.mxu1  ;;  %6275 = vmatmul.bf16.gmra.mxu2 %v6111_v51  ;;  %6364 = vmatmul.bf16.gmra.mxu3 %v6111_v51  ;;  %v9448_v51 = vld [vmem:[%s9952_s27 + $0xa8] sm:$0xff]  ;;  %v5904_v44 = vsel %vm9968_vm2, %v5899_v12, %v5903_v57 }
 0x3ed   : > { %v5442_v18 = vadd.f32 %v5364_v13, %v11294_v17  ;;  %v5918_v13 = vrot.slane %v5916_v32, 4 }
 0x3ef   : > { %v6236_v3 = vpop.f32.mrf.mxu2  ;;  %v6325_v62 = vpop.f32.mrf.mxu3  ;;  %v5922_v12 = vor.u32 %v5921_v63, %v5918_v13 }
 0x3f0   : > { %v11803_v17 = vadd.f32 %v6236_v3, %v5439_v52  ;;  %v11805_v42 = vadd.f32 %v6325_v62, %v5440_v21  ;;  %v5927_v52 = vrot.slane %v5925_v61, 5  ;;  %v6092_v21 = vunpack.c.l.b16 %v5904_v44  ;;  %v9007_v62 = vld [vmem:[%s9952_s27 + $0xbc] sm:$0x1] }
 0x3f1   : > { %v6093_v3 = vunpack.c.l.b16 %v5914_v48  ;;  %v5935_v41 = vshll.u32 %v9007_v62, 16 }
 0x3f2   : > { %12673 = vst [vmem:[#allocation19_spill] sm:$0xff] %v11803_v17  ;;  %v5932_v17 = vor.u32 %v5931_v23, %v5927_v52 }
 0x3f3   : > { %12674 = vst [vmem:[#allocation20_spill] sm:$0xff] %v11805_v42  ;;  %v5278_v4 = vpop.f32.mrf.mxu0  ;;  %v5937_v48 = vrot.slane %v5935_v41, 5 }
 0x3f4   : > { %v5443_v50 = vadd.f32 %v5278_v4, %v11317_v55  ;;  %v5367_v36 = vpop.f32.mrf.mxu1  ;;  %v5933_v44 = vrot.slane %v5932_v17, 4  ;;  %v9178_v17 = vld [vmem:[%s12527_s1 + $0x408] sm:$0xf0] }
 0x3f5   : > { %v5444_v58 = vadd.f32 %v5367_v36, %v11319_v37  ;;  %v6112_v37 = vpack.c.b16 %v6093_v3, %v6092_v21  ;;  %v9008_v36 = vld [vmem:[%s9952_s27 + $0xc0] sm:$0xf] }
 0x3f6   : > { %5317 = vmatmul.bf16.gmra.mxu0 %v9448_v51  ;;  %v5938_v62 = vsel %vm9968_vm2, %v5933_v44, %v5937_v48 }
 0x3f7   : > { %5406 = vmatmul.bf16.gmra.mxu1 %v9448_v51  ;;  %v6238_v42 = vpop.f32.mrf.mxu2  ;;  %v6327_v57 = vpop.f32.mrf.mxu3  ;;  %v5923_v51 = vrot.slane %v5922_v12, 4  ;;  %v5943_v12 = vshll.u32 %v9008_v36, 16  ;;  %v6095_v44 = vunpack.c.l.b16 %v5938_v62 }
 0x3f8   : > { %v11815_v46 = vadd.f32 %v6238_v42, %v5441_v10  ;;  %v11817_v55 = vadd.f32 %v6327_v57, %v5442_v18  ;;  %v9176_v10 = vld [vmem:[%s12527_s1 + $0x400] sm:$0xf]  ;;  %v9484_v18 = vld [vmem:[%s12527_s1 + $0x404] sm:$0xf]  ;;  %v5940_v57 = vshrl.u32 %v9008_v36, 16 }
 0x3f9   : > { %v9009_v42 = vld [vmem:[%s9952_s27 + $0xc4] sm:$0xf]  ;;  %v9181_v63 = vor.u32 %v9484_v18, %v9178_v17  ;;  %v5928_v3 = vsel %vm9968_vm2, %v5923_v51, %v5927_v52  ;;  %v5945_v36 = vrot.slane %v5943_v12, 5 }
 0x3fa   : > { %v6094_v51 = vunpack.c.l.b16 %v5928_v3  ;;  %v5942_v48 = vrot.slane %v5940_v57, 4 }
 0x3fb   : > { %v5280_v32 = vpop.f32.mrf.mxu0  ;;  %7047 = vmatpush.bf16.msra.mxu1 %v9181_v63 }
 0x3fc   : > { %v11820_v54 = vadd.f32 %v5280_v32, %v11347_v29  ;;  %v5369_v61 = vpop.f32.mrf.mxu1  ;;  %6280 = vmatmul.bf16.gmra.mxu2 %v6112_v37  ;;  %6369 = vmatmul.bf16.gmra.mxu3 %v6112_v37  ;;  %v9485_v29 = vld [vmem:[%s12527_s1 + $0x404] sm:$0xf0]  ;;  %v9449_v32 = vld [vmem:[%s9952_s27 + $0xb4] sm:$0xff]  ;;  %v5946_v63 = vor.u32 %v5945_v36, %v5942_v48 }
 0x3fd   : > { %v11823_v4 = vadd.f32 %v5369_v61, %v12675_v40  ;;  %v9177_v13 = vor.u32 %v9485_v29, %v9176_v10  ;;  %v5949_v61 = vshll.u32 %v9009_v42, 16  ;;  %v5953_v40 = vshrl.u32 %v9009_v42, 16 }
 0x3fe   : > { %v6113_v42 = vpack.c.b16 %v6095_v44, %v6094_v51  ;;  %v9012_v51 = vld [vmem:[%s9952_s27 + $0xd0] sm:$0xf] }
 0x3ff   : > { %v6241_v23 = vpop.f32.mrf.mxu2  ;;  %v6330_v21 = vpop.f32.mrf.mxu3  ;;  %6958 = vmatpush.bf16.msra.mxu0 %v9177_v13  ;;  %v5955_v13 = vrot.slane %v5953_v40, 4 }
 0x400   : > { %v11843_v41 = vadd.f32 %v6241_v23, %v5443_v50  ;;  %v11845_v37 = vadd.f32 %v6330_v21, %v5444_v58  ;;  %v5951_v50 = vrot.slane %v5949_v61, 5  ;;  %v9010_v58 = vld [vmem:[%s9952_s27 + $0xc8] sm:$0x1] }
 0x401   : > { %v5959_v21 = vshll.u32 %v9010_v58, 16 }
 0x403   : > { %v5283_v10 = vpop.f32.mrf.mxu0  ;;  %v5961_v40 = vrot.slane %v5959_v21, 5  ;;  %v5973_v21 = vshll.u32 %v9012_v51, 16 }
 0x404   : > { %v5447_v29 = vadd.f32 %v5283_v10, %v11392_v53  ;;  %v5372_v18 = vpop.f32.mrf.mxu1  ;;  %v5956_v53 = vor.u32 %v5955_v13, %v5951_v50  ;;  %v9512_v10 = vld [vmem:[%s12529_s3 + $0x60] sm:$0xff] }
 0x405   : > { %v5448_v52 = vadd.f32 %v5372_v18, %v11395_v28  ;;  %v9504_v28 = vld [vmem:[%s12529_s3 + $0x20] sm:$0xff]  ;;  %v9011_v18 = vld [vmem:[%s9952_s27 + $0xcc] sm:$0xf]  ;;  %7775 = vmatpush.bf16.msra.mxu3 %v9512_v10 }
 0x406   : > { %5322 = vmatmul.bf16.gmra.mxu0 %v9449_v32  ;;  %7686 = vmatpush.bf16.msra.mxu2 %v9504_v28  ;;  %v5957_v61 = vrot.slane %v5956_v53, 4  ;;  %v5967_v53 = vshll.u32 %v9011_v18, 16  ;;  %v5977_v28 = vshrl.u32 %v9012_v51, 16 }
 0x407   : > { %5411 = vmatmul.bf16.gmra.mxu1 %v9449_v32  ;;  %v11851_v17 = vpop.f32.mrf.mxu2  ;;  %v11853_v23 = vpop.f32.mrf.mxu3  ;;  %v5947_v32 = vrot.slane %v5946_v63, 4  ;;  %v5964_v63 = vshrl.u32 %v9011_v18, 16 }
 0x408   : > { %v5962_v58 = vsel %vm9968_vm2, %v5957_v61, %v5961_v40  ;;  %v9013_v61 = vld [vmem:[%s9952_s27 + $0xd4] sm:$0x1] }
 0x409   : > { %v5952_v13 = vsel %vm9968_vm2, %v5947_v32, %v5951_v50  ;;  %v6097_v10 = vunpack.c.l.b16 %v5962_v58  ;;  %v5969_v50 = vrot.slane %v5967_v53, 5  ;;  %v5975_v32 = vrot.slane %v5973_v21, 5 }
 0x40b   : > { %v5285_v3 = vpop.f32.mrf.mxu0 }
 0x40c   : > { %v11859_v62 = vadd.f32 %v5285_v3, %v11426_v11  ;;  %v5374_v57 = vpop.f32.mrf.mxu1  ;;  %6285 = vmatmul.bf16.gmra.mxu2 %v6113_v42  ;;  %6374 = vmatmul.bf16.gmra.mxu3 %v6113_v42 }
 0x40d   : > { %v11862_v12 = vadd.f32 %v5374_v57, %v11429_v2  ;;  %v9450_v2 = vld [vmem:[%s9952_s27 + $0xc0] sm:$0xff] }
 0x40f   : > { %12676 = vst [vmem:[#allocation21_spill] sm:$0xff] %v11862_v12  ;;  %v6246_v11 = vpop.f32.mrf.mxu2  ;;  %v6335_v44 = vpop.f32.mrf.mxu3 }
 0x410   : > { %v11869_v48 = vadd.f32 %v6246_v11, %v5447_v29  ;;  %v11871_v36 = vadd.f32 %v6335_v44, %v5448_v52  ;;  %v6096_v52 = vunpack.c.l.b16 %v5952_v13  ;;  %v5966_v11 = vrot.slane %v5964_v63, 4 }
 0x411   : > { %v5979_v44 = vrot.slane %v5977_v28, 4  ;;  %v9095_v28 = vld [vmem:[%s9952_s27 + $0x1c] sm:$0xf] }
 0x412   : > { %v6114_v51 = vpack.c.b16 %v6097_v10, %v6096_v52 }
 0x413   : > { %v5288_v42 = vpop.f32.mrf.mxu0 }
 0x414   : > { %v5451_v3 = vadd.f32 %v5288_v42, %v11456_v25  ;;  %v5377_v57 = vpop.f32.mrf.mxu1  ;;  %v5970_v25 = vor.u32 %v5969_v50, %v5966_v11  ;;  %v5980_v42 = vor.u32 %v5979_v44, %v5975_v32  ;;  %v6616_v44 = vrot.slane %v9095_v28, 5 }
 0x415   : > { %v5452_v29 = vadd.f32 %v5377_v57, %v11458_v14  ;;  %v5983_v14 = vshll.u32 %v9013_v61, 16 }
 0x416   : > { %5327 = vmatmul.bf16.gmra.mxu0 %v9450_v2  ;;  %v5971_v63 = vrot.slane %v5970_v25, 4  ;;  %v5981_v53 = vrot.slane %v5980_v42, 4  ;;  %v9094_v25 = vld [vmem:[%s9952_s27 + $0x18] sm:$0xe]  ;;  %v9096_v42 = vld [vmem:[%s9952_s27 + $0x20] sm:$0x1] }
 0x417   : > { %5416 = vmatmul.bf16.gmra.mxu1 %v9450_v2  ;;  %v11881_v40 = vpop.f32.mrf.mxu2  ;;  %v11883_v18 = vpop.f32.mrf.mxu3  ;;  %v5985_v21 = vrot.slane %v5983_v14, 5  ;;  %v12679_v14 = vld [vmem:[#allocation29_spill] sm:$0xff] }
 0x419   : > { %v5986_v50 = vsel %vm9968_vm2, %v5981_v53, %v5985_v21 }
 0x41b   : > { %v5290_v12 = vpop.f32.mrf.mxu0 }
 0x41c   : > { %v11886_v13 = vadd.f32 %v5290_v12, %v11465_v26  ;;  %v5379_v2 = vpop.f32.mrf.mxu1  ;;  %6290 = vmatmul.bf16.gmra.mxu2 %v6114_v51  ;;  %6379 = vmatmul.bf16.gmra.mxu3 %v6114_v51  ;;  %v9451_v26 = vld [vmem:[%s9952_s27 + $0xcc] sm:$0xff] }
 0x41d   : > { %v11889_v58 = vadd.f32 %v5379_v2, %v11467_v33  ;;  %v5976_v33 = vsel %vm9968_vm2, %v5971_v63, %v5975_v32  ;;  %v9511_v63 = vld [vmem:[%s12529_s3 + $0x58] sm:$0xff] }
 0x41e   : > { %12677 = vst [vmem:[#allocation22_spill] sm:$0xff] %v11886_v13  ;;  %7776 = vmatpush.bf16.msra.mxu3 %v9511_v63  ;;  %v12689_v63 = vld [vmem:[#allocation32_spill] sm:$0xff] }
 0x41f   : > { %12678 = vst [vmem:[#allocation23_spill] sm:$0xff] %v11889_v58  ;;  %v6251_v57 = vpop.f32.mrf.mxu2  ;;  %v6340_v52 = vpop.f32.mrf.mxu3  ;;  %v6619_v58 = vrot.slane %v9096_v42, 5 }
 0x420   : > { %v11892_v10 = vadd.f32 %v6251_v57, %v5451_v3  ;;  %v11894_v11 = vadd.f32 %v6340_v52, %v5452_v29  ;;  %v6098_v3 = vunpack.c.l.b16 %v5976_v33  ;;  %v6099_v29 = vunpack.c.l.b16 %v5986_v50 }
 0x421   : > { %v9142_v57 = vrot.slane %v9094_v25, 9  ;;  %v6618_v52 = vrot.slane %v6616_v44, 4 }
 0x422   : > { %v6115_v60 = vpack.c.b16 %v6099_v29, %v6098_v3  ;;  %v9098_v3 = vld [vmem:[%s9952_s27 + $0x28] sm:$0xf] }
 0x423   : > { %v5293_v12 = vpop.f32.mrf.mxu0  ;;  %v6617_v28 = vsel %vm10351_vm5, %v9142_v57, %v6616_v44 }
 0x424   : > { %v5455_v61 = vadd.f32 %v5293_v12, %v11473_v22  ;;  %v5382_v51 = vpop.f32.mrf.mxu1  ;;  %v9503_v22 = vld [vmem:[%s12529_s3 + $0x18] sm:$0xff]  ;;  %v12683_v12 = vld [vmem:[#allocation30_spill] sm:$0xff]  ;;  %v6807_v42 = vunpack.c.l.b16 %v6617_v28 }
 0x425   : > { %v5456_v2 = vadd.f32 %v5382_v51, %v12679_v14  ;;  %7687 = vmatpush.bf16.msra.mxu2 %v9503_v22  ;;  %v12685_v51 = vld [vmem:[#allocation31_spill] sm:$0xff]  ;;  %v6623_v22 = vrot.slane %v9098_v3, 5 }
 0x426   : > { %5332 = vmatmul.bf16.gmra.mxu0 %v9451_v26 }
 0x427   : > { %5421 = vmatmul.bf16.gmra.mxu1 %v9451_v26  ;;  %v11905_v13 = vpop.f32.mrf.mxu2  ;;  %v11907_v32 = vpop.f32.mrf.mxu3  ;;  %v6620_v26 = vsel %vm10351_vm5, %v6618_v52, %v6619_v58  ;;  %v6625_v28 = vrot.slane %v6623_v22, 4 }
 0x428   : > { %12680 = vst [vmem:[#allocation24_spill] sm:$0xff] %v11905_v13  ;;  %v6808_v14 = vunpack.c.l.b16 %v6620_v26  ;;  %v12700_v13 = vld [vmem:[#allocation37_spill] sm:$0xff] }
 0x429   : > { %12681 = vst [vmem:[#allocation25_spill] sm:$0xff] %v11907_v32 }
 0x42a   : > { %v6839_v52 = vpack.c.b16 %v6808_v14, %v6807_v42 }
 0x42b   : > { %v5295_v53 = vpop.f32.mrf.mxu0 }
 0x42c   : > { %v11920_v33 = vadd.f32 %v5295_v53, %v12683_v12  ;;  %v5384_v50 = vpop.f32.mrf.mxu1  ;;  %6295 = vmatmul.bf16.gmra.mxu2 %v6115_v60  ;;  %6384 = vmatmul.bf16.gmra.mxu3 %v6115_v60 }
 0x42d   : > { %v11923_v25 = vadd.f32 %v5384_v50, %v12685_v51  ;;  %v9097_v50 = vld [vmem:[%s9952_s27 + $0x24] sm:$0xe]  ;;  %v9099_v51 = vld [vmem:[%s9952_s27 + $0x2c] sm:$0x1] }
 0x42e   : > { %12684 = vst [vmem:[#allocation26_spill] sm:$0xff] %v11920_v33  ;;  %v9143_v60 = vrot.slane %v9097_v50, 9  ;;  %v6626_v26 = vrot.slane %v9099_v51, 5  ;;  %v9101_v50 = vld [vmem:[%s9952_s27 + $0x34] sm:$0xf] }
 0x42f   : > { %12686 = vst [vmem:[#allocation27_spill] sm:$0xff] %v11923_v25  ;;  %v6256_v44 = vpop.f32.mrf.mxu2  ;;  %v6345_v29 = vpop.f32.mrf.mxu3  ;;  %v12690_v25 = vld [vmem:[#allocation33_spill] sm:$0xff] }
 0x430   : > { %v11926_v57 = vadd.f32 %v6256_v44, %v5455_v61  ;;  %v11928_v58 = vadd.f32 %v6345_v29, %v5456_v2  ;;  %v6624_v14 = vsel %vm10351_vm5, %v9143_v60, %v6623_v22  ;;  %v6627_v3 = vsel %vm10351_vm5, %v6625_v28, %v6626_v26  ;;  %v12693_v44 = vld [vmem:[#allocation34_spill] sm:$0xff]  ;;  %v12695_v29 = vld [vmem:[#allocation35_spill] sm:$0xff] }
 0x431   : > { %v6630_v26 = vrot.slane %v9101_v50, 5 }
 0x432   : > { %12687 = vst [vmem:[#allocation39_spill] sm:$0xff] %v11926_v57  ;;  %v9102_v57 = vld [vmem:[%s9952_s27 + $0x38] sm:$0x1] }
 0x433   : > { %12688 = vst [vmem:[#allocation28_spill] sm:$0xff] %v11928_v58  ;;  %v5298_v53 = vpop.f32.mrf.mxu0  ;;  %v12699_v58 = vld [vmem:[#allocation36_spill] sm:$0xff] }
 0x434   : > { %v5459_v12 = vadd.f32 %v5298_v53, %v12689_v63  ;;  %v5387_v33 = vpop.f32.mrf.mxu1  ;;  %v6809_v53 = vunpack.c.l.b16 %v6624_v14  ;;  %v6810_v63 = vunpack.c.l.b16 %v6627_v3  ;;  %v6632_v3 = vrot.slane %v6630_v26, 4 }
 0x435   : > { %v5460_v32 = vadd.f32 %v5387_v33, %v12690_v25 }
 0x436   : > { %6959 = vmatmul.bf16.vlgmr.msra.gmra.mxu0 %v6839_v52  ;;  %v6840_v60 = vpack.c.b16 %v6810_v63, %v6809_v53 }
 0x437   : > { %7048 = vmatmul.bf16.vlgmr.msra.gmra.mxu1 %v6839_v52  ;;  %v11934_v61 = vpop.f32.mrf.mxu2  ;;  %v11936_v2 = vpop.f32.mrf.mxu3 }
 0x438   : > { %12691 = vst [vmem:[#allocation29_spill] sm:$0xff] %v11934_v61 }
 0x439   : > { %12692 = vst [vmem:[#allocation6_spill] sm:$0xff] %v11936_v2 }
 0x43b   : > { %v5300_v42 = vpop.f32.mrf.mxu0 }
 0x43c   : > { %v11943_v33 = vadd.f32 %v5300_v42, %v12693_v44  ;;  %v5389_v25 = vpop.f32.mrf.mxu1 }
 0x43d   : > { %v11946_v52 = vadd.f32 %v5389_v25, %v12695_v29  ;;  %v6633_v29 = vrot.slane %v9102_v57, 5  ;;  %v12703_v57 = vld [vmem:[#allocation38_spill] sm:$0xff] }
 0x43e   : > { %12694 = vst [vmem:[#allocation30_spill] sm:$0xff] %v11943_v33  ;;  %v9100_v33 = vld [vmem:[%s9952_s27 + $0x30] sm:$0xe] }
 0x43f   : > { %12696 = vst [vmem:[#allocation31_spill] sm:$0xff] %v11946_v52  ;;  %v6261_v51 = vpop.f32.mrf.mxu2  ;;  %v6350_v2 = vpop.f32.mrf.mxu3  ;;  %v9144_v14 = vrot.slane %v9100_v33, 9  ;;  %v6634_v33 = vsel %vm10351_vm5, %v6632_v3, %v6633_v29 }
 0x440   : > { %v11949_v61 = vadd.f32 %v6261_v51, %v5459_v12  ;;  %v11951_v22 = vadd.f32 %v6350_v2, %v5460_v32  ;;  %v9502_v2 = vld [vmem:[%s12529_s3 + $0x10] sm:$0xff]  ;;  %v12705_v51 = vld [vmem:[#allocation7_spill] sm:$0xff] }
 0x441   : > { %7688 = vmatpush.bf16.msra.mxu2 %v9502_v2 }
 0x442   : > { %12697 = vst [vmem:[#allocation32_spill] sm:$0xff] %v11949_v61  ;;  %v12710_v61 = vld [vmem:[#allocation9_spill] sm:$0xff] }
 0x443   : > { %12698 = vst [vmem:[#allocation33_spill] sm:$0xff] %v11951_v22  ;;  %v5303_v28 = vpop.f32.mrf.mxu0  ;;  %v9103_v22 = vld [vmem:[%s9952_s27 + $0x3c] sm:$0xe] }
 0x444   : > { %v5463_v42 = vadd.f32 %v5303_v28, %v12699_v58  ;;  %v5392_v44 = vpop.f32.mrf.mxu1  ;;  %v9510_v58 = vld [vmem:[%s12529_s3 + $0x50] sm:$0xff] }
 0x445   : > { %v5464_v25 = vadd.f32 %v5392_v44, %v12700_v13  ;;  %v6631_v13 = vsel %vm10351_vm5, %v9144_v14, %v6630_v26  ;;  %7777 = vmatpush.bf16.msra.mxu3 %v9510_v58  ;;  %v6812_v44 = vunpack.c.l.b16 %v6634_v33  ;;  %v9105_v58 = vld [vmem:[%s9952_s27 + $0x44] sm:$0x1] }
 0x446   : > { %6964 = vmatmul.bf16.gmra.mxu0 %v6840_v60  ;;  %v6811_v28 = vunpack.c.l.b16 %v6631_v13  ;;  %v9145_v13 = vrot.slane %v9103_v22, 9  ;;  %v12715_v22 = vld [vmem:[#allocation11_spill] sm:$0xff] }
 0x447   : > { %7053 = vmatmul.bf16.gmra.mxu1 %v6840_v60  ;;  %v11957_v12 = vpop.f32.mrf.mxu2  ;;  %v11959_v32 = vpop.f32.mrf.mxu3 }
 0x448   : > { %12701 = vst [vmem:[#allocation34_spill] sm:$0xff] %v11957_v12  ;;  %v6841_v3 = vpack.c.b16 %v6812_v44, %v6811_v28  ;;  %v12713_v28 = vld [vmem:[#allocation10_spill] sm:$0xff] }
 0x449   : > { %12702 = vst [vmem:[#allocation35_spill] sm:$0xff] %v11959_v32  ;;  %v9104_v32 = vld [vmem:[%s9952_s27 + $0x40] sm:$0xf] }
 0x44b   : > { %v5305_v53 = vpop.f32.mrf.mxu0 }
 0x44c   : > { %v11972_v63 = vadd.f32 %v5305_v53, %v12703_v57  ;;  %v5394_v50 = vpop.f32.mrf.mxu1  ;;  %v6637_v53 = vrot.slane %v9104_v32, 5  ;;  %v12709_v57 = vld [vmem:[#allocation8_spill] sm:$0xff] }
 0x44d   : > { %v11975_v60 = vadd.f32 %v5394_v50, %v12705_v51  ;;  %v6640_v51 = vrot.slane %v9105_v58, 5 }
 0x44e   : > { %12704 = vst [vmem:[#allocation36_spill] sm:$0xff] %v11972_v63  ;;  %v6639_v33 = vrot.slane %v6637_v53, 4 }
 0x44f   : > { %12706 = vst [vmem:[#allocation37_spill] sm:$0xff] %v11975_v60  ;;  %v6266_v52 = vpop.f32.mrf.mxu2  ;;  %v6355_v12 = vpop.f32.mrf.mxu3 }
 0x450   : > { %v11978_v26 = vadd.f32 %v6266_v52, %v5463_v42  ;;  %v11980_v14 = vadd.f32 %v6355_v12, %v5464_v25  ;;  %v6638_v12 = vsel %vm10351_vm5, %v9145_v13, %v6637_v53  ;;  %v6641_v32 = vsel %vm10351_vm5, %v6639_v33, %v6640_v51 }
 0x452   : > { %12707 = vst [vmem:[#allocation38_spill] sm:$0xff] %v11978_v26  ;;  %v12718_v26 = vld [vmem:[#allocation13_spill] sm:$0xff] }
 0x453   : > { %12708 = vst [vmem:[#allocation7_spill] sm:$0xff] %v11980_v14  ;;  %v5308_v29 = vpop.f32.mrf.mxu0  ;;  %v9108_v14 = vld [vmem:[%s9952_s27 + $0x50] sm:$0x1] }
 0x454   : > { %v5467_v63 = vadd.f32 %v5308_v29, %v12709_v57  ;;  %v5397_v2 = vpop.f32.mrf.mxu1  ;;  %v6813_v29 = vunpack.c.l.b16 %v6638_v12  ;;  %v6814_v57 = vunpack.c.l.b16 %v6641_v32 }
 0x455   : > { %v5468_v50 = vadd.f32 %v5397_v2, %v12710_v61  ;;  %v9107_v2 = vld [vmem:[%s9952_s27 + $0x4c] sm:$0xf] }
 0x456   : > { %6969 = vmatmul.bf16.gmra.mxu0 %v6841_v3  ;;  %v6842_v13 = vpack.c.b16 %v6814_v57, %v6813_v29  ;;  %v6644_v51 = vrot.slane %v9107_v2, 5 }
 0x457   : > { %7058 = vmatmul.bf16.gmra.mxu1 %v6841_v3  ;;  %v11986_v52 = vpop.f32.mrf.mxu2  ;;  %v11988_v42 = vpop.f32.mrf.mxu3 }
 0x458   : > { %12711 = vst [vmem:[#allocation8_spill] sm:$0xff] %v11986_v52  ;;  %v12717_v52 = vld [vmem:[#allocation12_spill] sm:$0xff]  ;;  %v6646_v32 = vrot.slane %v6644_v51, 4 }
 0x459   : > { %12712 = vst [vmem:[#allocation9_spill] sm:$0xff] %v11988_v42 }
 0x45b   : > { %v5310_v25 = vpop.f32.mrf.mxu0 }
 0x45c   : > { %v11995_v61 = vadd.f32 %v5310_v25, %v12713_v28  ;;  %v5399_v44 = vpop.f32.mrf.mxu1 }
 0x45d   : > { %v11998_v3 = vadd.f32 %v5399_v44, %v12715_v22  ;;  %v6647_v22 = vrot.slane %v9108_v14, 5 }
 0x45e   : > { %12714 = vst [vmem:[#allocation10_spill] sm:$0xff] %v11995_v61  ;;  %v9106_v61 = vld [vmem:[%s9952_s27 + $0x48] sm:$0xe] }
 0x45f   : > { %12716 = vst [vmem:[#allocation11_spill] sm:$0xff] %v11998_v3  ;;  %v6271_v58 = vpop.f32.mrf.mxu2  ;;  %v6360_v42 = vpop.f32.mrf.mxu3  ;;  %v9146_v12 = vrot.slane %v9106_v61, 9  ;;  %v6648_v61 = vsel %vm10351_vm5, %v6646_v32, %v6647_v22  ;;  %v12723_v3 = vld [vmem:[#allocation14_spill] sm:$0xff] }
 0x460   : > { %v12001_v60 = vadd.f32 %v6271_v58, %v5467_v63  ;;  %v12003_v53 = vadd.f32 %v6360_v42, %v5468_v50  ;;  %v9501_v42 = vld [vmem:[%s12529_s3 + $0x8] sm:$0xff] }
 0x461   : > { %7689 = vmatpush.bf16.msra.mxu2 %v9501_v42 }
 0x463   : > { %v5313_v33 = vpop.f32.mrf.mxu0 }
 0x464   : > { %v5471_v25 = vadd.f32 %v5313_v33, %v12717_v52  ;;  %v5402_v28 = vpop.f32.mrf.mxu1  ;;  %v9509_v52 = vld [vmem:[%s12529_s3 + $0x48] sm:$0xff]  ;;  %v9110_v33 = vld [vmem:[%s9952_s27 + $0x58] sm:$0xf] }
 0x465   : > { %v5472_v44 = vadd.f32 %v5402_v28, %v12718_v26  ;;  %v6645_v26 = vsel %vm10351_vm5, %v9146_v12, %v6644_v51  ;;  %7778 = vmatpush.bf16.msra.mxu3 %v9509_v52  ;;  %v6651_v22 = vrot.slane %v9110_v33, 5  ;;  %v9111_v52 = vld [vmem:[%s9952_s27 + $0x5c] sm:$0x1] }
 0x466   : > { %6974 = vmatmul.bf16.gmra.mxu0 %v6842_v13  ;;  %v6815_v58 = vunpack.c.l.b16 %v6645_v26 }
 0x467   : > { %7063 = vmatmul.bf16.gmra.mxu1 %v6842_v13  ;;  %v12009_v63 = vpop.f32.mrf.mxu2  ;;  %v12011_v50 = vpop.f32.mrf.mxu3  ;;  %v6816_v13 = vunpack.c.l.b16 %v6648_v61  ;;  %v6653_v61 = vrot.slane %v6651_v22, 4 }
 0x468   : > { %12719 = vst [vmem:[#allocation12_spill] sm:$0xff] %v12011_v50 }
 0x469   : > { %v6843_v32 = vpack.c.b16 %v6816_v13, %v6815_v58 }
 0x46b   : > { %v5315_v29 = vpop.f32.mrf.mxu0 }
 0x46c   : > { %v12024_v14 = vadd.f32 %v5315_v29, %v11589_v6  ;;  %v5404_v57 = vpop.f32.mrf.mxu1 }
 0x46d   : > { %v12027_v2 = vadd.f32 %v5404_v57, %v11591_v1  ;;  %v6654_v57 = vrot.slane %v9111_v52, 5 }
 0x46e   : > { %12720 = vst [vmem:[#allocation13_spill] sm:$0xff] %v12024_v14  ;;  %v9109_v14 = vld [vmem:[%s9952_s27 + $0x54] sm:$0xe] }
 0x46f   : > { %12721 = vst [vmem:[#allocation40_spill] sm:$0xff] %v12027_v2  ;;  %v6276_v28 = vpop.f32.mrf.mxu2  ;;  %v6365_v50 = vpop.f32.mrf.mxu3  ;;  %v9147_v26 = vrot.slane %v9109_v14, 9  ;;  %v12727_v14 = vld [vmem:[#allocation15_spill] sm:$0xff]  ;;  %v12728_v2 = vld [vmem:[#allocation16_spill] sm:$0xff] }
 0x470   : > { %v12030_v51 = vadd.f32 %v6276_v28, %v5471_v25  ;;  %v12032_v12 = vadd.f32 %v6365_v50, %v5472_v44 }
 0x471   : > { %v6652_v58 = vsel %vm10351_vm5, %v9147_v26, %v6651_v22 }
 0x472   : > { %12722 = vst [vmem:[#allocation41_spill] sm:$0xff] %v12032_v12  ;;  %v6817_v28 = vunpack.c.l.b16 %v6652_v58  ;;  %v12729_v12 = vld [vmem:[#allocation17_spill] sm:$0xff] }
 0x473   : > { %v5318_v6 = vpop.f32.mrf.mxu0 }
 0x474   : > { %v5475_v29 = vadd.f32 %v5318_v6, %v11609_v15  ;;  %v5407_v42 = vpop.f32.mrf.mxu1  ;;  %v6655_v15 = vsel %vm10351_vm5, %v6653_v61, %v6654_v57  ;;  %v9113_v6 = vld [vmem:[%s9952_s27 + $0x64] sm:$0xf] }
 0x475   : > { %v5476_v1 = vadd.f32 %v5407_v42, %v12723_v3  ;;  %v6658_v57 = vrot.slane %v9113_v6, 5 }
 0x476   : > { %6979 = vmatmul.bf16.gmra.mxu0 %v6843_v32 }
 0x477   : > { %7068 = vmatmul.bf16.gmra.mxu1 %v6843_v32  ;;  %v12038_v25 = vpop.f32.mrf.mxu2  ;;  %v12040_v44 = vpop.f32.mrf.mxu3  ;;  %v6818_v32 = vunpack.c.l.b16 %v6655_v15  ;;  %v6660_v15 = vrot.slane %v6658_v57, 4 }
 0x478   : > { %12724 = vst [vmem:[#allocation14_spill] sm:$0xff] %v12038_v25  ;;  %v9114_v25 = vld [vmem:[%s9952_s27 + $0x68] sm:$0x1] }
 0x479   : > { %12725 = vst [vmem:[#allocation42_spill] sm:$0xff] %v12040_v44  ;;  %v6844_v26 = vpack.c.b16 %v6818_v32, %v6817_v28  ;;  %v9500_v28 = vld [vmem:[%s12529_s3] sm:$0xff] }
 0x47a   : > { %7690 = vmatpush.bf16.msra.mxu2 %v9500_v28 }
 0x47b   : > { %v5320_v50 = vpop.f32.mrf.mxu0 }
 0x47c   : > { %v12047_v3 = vadd.f32 %v5320_v50, %v11621_v19  ;;  %v5409_v13 = vpop.f32.mrf.mxu1 }
 0x47d   : > { %v12050_v33 = vadd.f32 %v5409_v13, %v12727_v14  ;;  %v6661_v14 = vrot.slane %v9114_v25, 5 }
 0x47e   : > { %12726 = vst [vmem:[#allocation43_spill] sm:$0xff] %v12047_v3  ;;  %v9112_v3 = vld [vmem:[%s9952_s27 + $0x60] sm:$0xe] }
 0x47f   : > { %v6281_v42 = vpop.f32.mrf.mxu2  ;;  %v6370_v52 = vpop.f32.mrf.mxu3  ;;  %v9148_v58 = vrot.slane %v9112_v3, 9  ;;  %v6662_v3 = vsel %vm10351_vm5, %v6660_v15, %v6661_v14 }
 0x480   : > { %v12053_v44 = vadd.f32 %v6281_v42, %v5475_v29  ;;  %v12055_v22 = vadd.f32 %v6370_v52, %v5476_v1 }
 0x483   : > { %v5323_v61 = vpop.f32.mrf.mxu0 }
 0x484   : > { %v5479_v19 = vadd.f32 %v5323_v61, %v12728_v2  ;;  %v5412_v50 = vpop.f32.mrf.mxu1  ;;  %v9508_v2 = vld [vmem:[%s12529_s3 + $0x40] sm:$0xff]  ;;  %v9116_v61 = vld [vmem:[%s9952_s27 + $0x70] sm:$0xf] }
 0x485   : > { %v5480_v13 = vadd.f32 %v5412_v50, %v12729_v12  ;;  %v6659_v12 = vsel %vm10351_vm5, %v9148_v58, %v6658_v57  ;;  %7779 = vmatpush.bf16.msra.mxu3 %v9508_v2  ;;  %v6665_v14 = vrot.slane %v9116_v61, 5  ;;  %v9117_v2 = vld [vmem:[%s9952_s27 + $0x74] sm:$0x1] }
 0x486   : > { %6984 = vmatmul.bf16.gmra.mxu0 %v6844_v26  ;;  %v6819_v52 = vunpack.c.l.b16 %v6659_v12 }
 0x487   : > { %7073 = vmatmul.bf16.gmra.mxu1 %v6844_v26  ;;  %v12061_v29 = vpop.f32.mrf.mxu2  ;;  %v12063_v1 = vpop.f32.mrf.mxu3  ;;  %v6820_v26 = vunpack.c.l.b16 %v6662_v3  ;;  %v6667_v3 = vrot.slane %v6665_v14, 4 }
 0x488   : > { %12730 = vst [vmem:[#allocation15_spill] sm:$0xff] %v12063_v1 }
 0x489   : > { %v6845_v15 = vpack.c.b16 %v6820_v26, %v6819_v52 }
 0x48b   : > { %v5325_v32 = vpop.f32.mrf.mxu0 }
 0x48c   : > { %v12076_v25 = vadd.f32 %v5325_v32, %v11641_v27  ;;  %v5414_v6 = vpop.f32.mrf.mxu1 }
 0x48d   : > { %v12079_v42 = vadd.f32 %v5414_v6, %v11643_v49  ;;  %v6668_v6 = vrot.slane %v9117_v2, 5 }
 0x48e   : > { %12731 = vst [vmem:[#allocation16_spill] sm:$0xff] %v12076_v25  ;;  %v9115_v25 = vld [vmem:[%s9952_s27 + $0x6c] sm:$0xe] }
 0x48f   : > { %v6286_v50 = vpop.f32.mrf.mxu2  ;;  %v6375_v1 = vpop.f32.mrf.mxu3  ;;  %v9149_v12 = vrot.slane %v9115_v25, 9 }
 0x490   : > { %v12082_v57 = vadd.f32 %v6286_v50, %v5479_v19  ;;  %v12084_v58 = vadd.f32 %v6375_v1, %v5480_v13 }
 0x491   : > { %v6666_v52 = vsel %vm10351_vm5, %v9149_v12, %v6665_v14 }
 0x492   : > { %v6821_v61 = vunpack.c.l.b16 %v6666_v52 }
 0x493   : > { %v5328_v27 = vpop.f32.mrf.mxu0 }
 0x494   : > { %v5483_v32 = vadd.f32 %v5328_v27, %v11661_v5  ;;  %v5417_v28 = vpop.f32.mrf.mxu1  ;;  %v6669_v5 = vsel %vm10351_vm5, %v6667_v3, %v6668_v6 }
 0x495   : > { %v5484_v49 = vadd.f32 %v5417_v28, %v11663_v59  ;;  %v6822_v50 = vunpack.c.l.b16 %v6669_v5 }
 0x496   : > { %6989 = vmatmul.bf16.gmra.mxu0 %v6845_v15 }
 0x497   : > { %7078 = vmatmul.bf16.gmra.mxu1 %v6845_v15  ;;  %v12090_v19 = vpop.f32.mrf.mxu2  ;;  %v12092_v13 = vpop.f32.mrf.mxu3  ;;  %v9119_v15 = vld [vmem:[%s9952_s27 + $0x7c] sm:$0xf]  ;;  %v6846_v12 = vpack.c.b16 %v6822_v50, %v6821_v61 }
 0x498   : > { %12732 = vst [vmem:[#allocation17_spill] sm:$0xff] %v12092_v13  ;;  %v6672_v6 = vrot.slane %v9119_v15, 5  ;;  %v9120_v13 = vld [vmem:[%s9952_s27 + $0x80] sm:$0x1] }
 0x49a   : > { %v6674_v5 = vrot.slane %v6672_v6, 4 }
 0x49b   : > { %v5330_v1 = vpop.f32.mrf.mxu0 }
 0x49c   : > { %v12099_v59 = vadd.f32 %v5330_v1, %v11673_v35  ;;  %v5419_v26 = vpop.f32.mrf.mxu1 }
 0x49d   : > { %v12102_v25 = vadd.f32 %v5419_v26, %v11675_v0 }
 0x49e   : > { %12733 = vst [vmem:[#allocation44_spill] sm:$0xff] %v12099_v59  ;;  %v9118_v59 = vld [vmem:[%s9952_s27 + $0x78] sm:$0xe] }
 0x49f   : > { %v6291_v27 = vpop.f32.mrf.mxu2  ;;  %v6380_v28 = vpop.f32.mrf.mxu3  ;;  %v9150_v52 = vrot.slane %v9118_v59, 9 }
 0x4a0   : > { %v12105_v2 = vadd.f32 %v6291_v27, %v5483_v32  ;;  %v12107_v14 = vadd.f32 %v6380_v28, %v5484_v49  ;;  %v6675_v32 = vrot.slane %v9120_v13, 5  ;;  %v7321_v28 = vld [vmem:[%s12528_s2] sm:$0x3] }
 0x4a2   : > { %v6676_v50 = vsel %vm10351_vm5, %v6674_v5, %v6675_v32  ;;  %v12138_v32 = vperm.slane %v7321_v28, 1 }
 0x4a3   : > { %v5333_v3 = vpop.f32.mrf.mxu0  ;;  %v6824_v27 = vunpack.c.l.b16 %v6676_v50 }
 0x4a4   : > { %v5487_v35 = vadd.f32 %v5333_v3, %v11687_v38  ;;  %v5422_v1 = vpop.f32.mrf.mxu1  ;;  %v6673_v38 = vsel %vm10351_vm5, %v9150_v52, %v6672_v6  ;;  %v12136_v52 = vperm.slane %v7321_v28, 0 }
 0x4a5   : > { %v5488_v0 = vadd.f32 %v5422_v1, %v11689_v24  ;;  %v6823_v13 = vunpack.c.l.b16 %v6673_v38 }
 0x4a6   : > { %6994 = vmatmul.bf16.gmra.mxu0 %v6846_v12 }
 0x4a7   : > { %7083 = vmatmul.bf16.gmra.mxu1 %v6846_v12  ;;  %v12113_v26 = vpop.f32.mrf.mxu2  ;;  %v12115_v49 = vpop.f32.mrf.mxu3  ;;  %v9122_v12 = vld [vmem:[%s9952_s27 + $0x88] sm:$0xf] }
 0x4ab   : > { %v5335_v61 = vpop.f32.mrf.mxu0 }
 0x4ac   : > { %v12122_v24 = vadd.f32 %v5335_v61, %v11699_v56  ;;  %v5424_v15 = vpop.f32.mrf.mxu1  ;;  %v6679_v61 = vrot.slane %v9122_v12, 5 }
 0x4ad   : > { %v12125_v59 = vadd.f32 %v5424_v15, %v11701_v16  ;;  %v6847_v16 = vpack.c.b16 %v6824_v27, %v6823_v13  ;;  %v9121_v15 = vld [vmem:[%s9952_s27 + $0x84] sm:$0xe] }
 0x4ae   : > { %12734 = vst [vmem:[#allocation45_spill] sm:$0xff] %v12122_v24  ;;  %v9151_v13 = vrot.slane %v9121_v15, 9  ;;  %v6681_v27 = vrot.slane %v6679_v61, 4 }
 0x4af   : > { %12735 = vst [vmem:[#allocation46_spill] sm:$0xff] %v12125_v59  ;;  %v6296_v3 = vpop.f32.mrf.mxu2  ;;  %v6385_v6 = vpop.f32.mrf.mxu3  ;;  %v9123_v59 = vld [vmem:[%s9952_s27 + $0x8c] sm:$0x1] }
 0x4b0   : > { %v12132_v1 = vadd.f32 %v6296_v3, %v5487_v35  ;;  %v12134_v56 = vadd.f32 %v6385_v6, %v5488_v0  ;;  %v6682_v28 = vrot.slane %v9123_v59, 5 }
 0x4b2   : > { %12736 = vst [vmem:[#allocation47_spill] sm:$0xff] %v12134_v56 }
 0x4b3   : > { %v6960_v5 = vpop.f32.mrf.mxu0 }
 0x4b4   : > { %v7129_v38 = vadd.f32 %v6960_v5, %v11719_v43  ;;  %v7049_v50 = vpop.f32.mrf.mxu1 }
 0x4b5   : > { %v7130_v24 = vadd.f32 %v7049_v50, %v11721_v20  ;;  %v6680_v20 = vsel %vm10351_vm5, %v9151_v13, %v6679_v61 }
 0x4b6   : > { %v7327_v35 = vadd.f32 %v12136_v52, %v7129_v38  ;;  %6999 = vmatmul.bf16.gmra.mxu0 %v6847_v16  ;;  %v6825_v38 = vunpack.c.l.b16 %v6680_v20  ;;  %v9124_v20 = vld [vmem:[%s9952_s27 + $0x90] sm:$0xe] }
 0x4b7   : > { %v7328_v0 = vadd.f32 %v12138_v32, %v7130_v24  ;;  %7088 = vmatmul.bf16.gmra.mxu1 %v6847_v16  ;;  %v6683_v24 = vsel %vm10351_vm5, %v6681_v27, %v6682_v28 }
 0x4b8   : > { %v7391_v3 = vmax.f32 %v7327_v35, 0.0  ;;  %v6826_v50 = vunpack.c.l.b16 %v6683_v24  ;;  %v9126_v24 = vld [vmem:[%s9952_s27 + $0x98] sm:$0x1] }
 0x4b9   : > { %v7392_v12 = vmax.f32 %v7328_v0, 0.0  ;;  %v9125_v0 = vld [vmem:[%s9952_s27 + $0x94] sm:$0xf] }
 0x4ba   : > { %7455 = vst [vmem:[%s12148_s20] sm:$0xff] %v7391_v3  ;;  %v6848_v13 = vpack.c.b16 %v6826_v50, %v6825_v38  ;;  %v6686_v28 = vrot.slane %v9125_v0, 5 }
 0x4bb   : > { %7456 = vst [vmem:[%s12148_s20 + $0x8] sm:$0xff] %v7392_v12  ;;  %v6962_v43 = vpop.f32.mrf.mxu0 }
 0x4bc   : > { %v7131_v59 = vadd.f32 %v6962_v43, %v11731_v45  ;;  %v7051_v6 = vpop.f32.mrf.mxu1 }
 0x4bd   : > { %v7132_v16 = vadd.f32 %v7051_v6, %v11733_v39 }
 0x4be   : > { %v7329_v5 = vadd.f32 %v12136_v52, %v7131_v59 }
 0x4bf   : > { %v7330_v15 = vadd.f32 %v12138_v32, %v7132_v16  ;;  %v6689_v16 = vrot.slane %v9126_v24, 5 }
 0x4c0   : > { %v7393_v35 = vmax.f32 %v7329_v5, 0.0 }
 0x4c1   : > { %v7394_v56 = vmax.f32 %v7330_v15, 0.0 }
 0x4c2   : > { %7457 = vst [vmem:[%s12148_s20 + $0x10] sm:$0xff] %v7393_v35  ;;  %v7519_v61 = vpack.c.bf16 %v7393_v35, %v7391_v3 }
 0x4c3   : > { %7458 = vst [vmem:[%s12148_s20 + $0x18] sm:$0xff] %v7394_v56  ;;  %v7520_v27 = vpack.c.bf16 %v7394_v56, %v7392_v12  ;;  %v6965_v45 = vpop.f32.mrf.mxu0  ;;  %v9152_v56 = vrot.slane %v9124_v20, 9  ;;  %v6688_v12 = vrot.slane %v6686_v28, 4 }
 0x4c4   : > { %v7133_v39 = vadd.f32 %v6965_v45, %v11745_v9  ;;  %v7054_v43 = vpop.f32.mrf.mxu1  ;;  %7691 = vmatmul.bf16.vlgmr.msra.gmra.mxu2 %v7519_v61 }
 0x4c5   : > { %v7134_v59 = vadd.f32 %v7054_v43, %v11747_v47  ;;  %7780 = vmatmul.bf16.vlgmr.msra.gmra.mxu3 %v7520_v27  ;;  %v6687_v47 = vsel %vm10351_vm5, %v9152_v56, %v6686_v28  ;;  %v6690_v50 = vsel %vm10351_vm5, %v6688_v12, %v6689_v16  ;;  %v9128_v43 = vld [vmem:[%s9952_s27 + $0xa0] sm:$0xf]  ;;  %v9127_v56 = vld [vmem:[%s9952_s27 + $0x9c] sm:$0xe]  ;;  %v9129_v12 = vld [vmem:[%s9952_s27 + $0xa4] sm:$0x1] }
 0x4c6   : > { %v7331_v6 = vadd.f32 %v12136_v52, %v7133_v39  ;;  %7004 = vmatmul.bf16.gmra.mxu0 %v6848_v13  ;;  %v6828_v27 = vunpack.c.l.b16 %v6690_v50  ;;  %v12737_v16 = vld [vmem:[#allocation18_spill] sm:$0xff]  ;;  %v9153_v50 = vrot.slane %v9127_v56, 9 }
 0x4c7   : > { %v7332_v3 = vadd.f32 %v12138_v32, %v7134_v59  ;;  %7093 = vmatmul.bf16.gmra.mxu1 %v6848_v13  ;;  %v6827_v13 = vunpack.c.l.b16 %v6687_v47 }
 0x4c8   : > { %v7395_v9 = vmax.f32 %v7331_v6, 0.0  ;;  %v6693_v6 = vrot.slane %v9128_v43, 5 }
 0x4c9   : > { %v7396_v5 = vmax.f32 %v7332_v3, 0.0  ;;  %v6849_v24 = vpack.c.b16 %v6828_v27, %v6827_v13 }
 0x4ca   : > { %7459 = vst [vmem:[%s12148_s20 + $0x20] sm:$0xff] %v7395_v9 }
 0x4cb   : > { %7460 = vst [vmem:[%s12148_s20 + $0x28] sm:$0xff] %v7396_v5  ;;  %v6967_v38 = vpop.f32.mrf.mxu0 }
 0x4cc   : > { %v7135_v15 = vadd.f32 %v6967_v38, %v11757_v30  ;;  %v7056_v35 = vpop.f32.mrf.mxu1 }
 0x4cd   : > { %v7136_v0 = vadd.f32 %v7056_v35, %v11759_v8 }
 0x4ce   : > { %v7333_v61 = vadd.f32 %v12136_v52, %v7135_v15  ;;  %v6696_v15 = vrot.slane %v9129_v12, 5 }
 0x4cf   : > { %v7334_v45 = vadd.f32 %v12138_v32, %v7136_v0 }
 0x4d0   : > { %v7397_v39 = vmax.f32 %v7333_v61, 0.0  ;;  %v6694_v61 = vsel %vm10351_vm5, %v9153_v50, %v6693_v6  ;;  %v12739_v50 = vld [vmem:[#allocation20_spill] sm:$0xff] }
 0x4d1   : > { %v7398_v20 = vmax.f32 %v7334_v45, 0.0 }
 0x4d2   : > { %7461 = vst [vmem:[%s12148_s20 + $0x30] sm:$0xff] %v7397_v39  ;;  %v7521_v28 = vpack.c.bf16 %v7397_v39, %v7395_v9 }
 0x4d3   : > { %7462 = vst [vmem:[%s12148_s20 + $0x38] sm:$0xff] %v7398_v20  ;;  %v6970_v59 = vpop.f32.mrf.mxu0  ;;  %v7522_v30 = vpack.c.bf16 %v7398_v20, %v7396_v5  ;;  %v6695_v5 = vrot.slane %v6693_v6, 4  ;;  %v6829_v20 = vunpack.c.l.b16 %v6694_v61 }
 0x4d4   : > { %v7137_v8 = vadd.f32 %v6970_v59, %v11777_v34  ;;  %v7059_v3 = vpop.f32.mrf.mxu1  ;;  %7696 = vmatmul.bf16.gmra.mxu2 %v7521_v28 }
 0x4d5   : > { %v7138_v38 = vadd.f32 %v7059_v3, %v12737_v16  ;;  %7785 = vmatmul.bf16.gmra.mxu3 %v7522_v30  ;;  %v6697_v13 = vsel %vm10351_vm5, %v6695_v5, %v6696_v15  ;;  %v9131_v30 = vld [vmem:[%s9952_s27 + $0xac] sm:$0xf] }
 0x4d6   : > { %v7335_v47 = vadd.f32 %v12136_v52, %v7137_v8  ;;  %7009 = vmatmul.bf16.gmra.mxu0 %v6849_v24  ;;  %v6830_v28 = vunpack.c.l.b16 %v6697_v13  ;;  %v6700_v12 = vrot.slane %v9131_v30, 5  ;;  %v12738_v16 = vld [vmem:[#allocation19_spill] sm:$0xff] }
 0x4d7   : > { %v7336_v9 = vadd.f32 %v12138_v32, %v7138_v38  ;;  %7098 = vmatmul.bf16.gmra.mxu1 %v6849_v24 }
 0x4d8   : > { %v7399_v34 = vmax.f32 %v7335_v47, 0.0  ;;  %v6850_v3 = vpack.c.b16 %v6830_v28, %v6829_v20  ;;  %v9130_v47 = vld [vmem:[%s9952_s27 + $0xa8] sm:$0xe] }
 0x4d9   : > { %v7400_v35 = vmax.f32 %v7336_v9, 0.0  ;;  %v9132_v9 = vld [vmem:[%s9952_s27 + $0xb0] sm:$0x1] }
 0x4da   : > { %7463 = vst [vmem:[%s12148_s20 + $0x40] sm:$0xff] %v7399_v34  ;;  %v6703_v61 = vrot.slane %v9132_v9, 5  ;;  %v9133_v9 = vld [vmem:[%s9952_s27 + $0xb4] sm:$0xe] }
 0x4db   : > { %7464 = vst [vmem:[%s12148_s20 + $0x48] sm:$0xff] %v7400_v35  ;;  %v6972_v0 = vpop.f32.mrf.mxu0 }
 0x4dc   : > { %v7139_v27 = vadd.f32 %v6972_v0, %v11789_v31  ;;  %v7061_v45 = vpop.f32.mrf.mxu1  ;;  %v9154_v0 = vrot.slane %v9130_v47, 9 }
 0x4dd   : > { %v7140_v39 = vadd.f32 %v7061_v45, %v11791_v7 }
 0x4de   : > { %v7337_v43 = vadd.f32 %v12136_v52, %v7139_v27 }
 0x4df   : > { %v7338_v24 = vadd.f32 %v12138_v32, %v7140_v39  ;;  %v6701_v39 = vsel %vm10351_vm5, %v9154_v0, %v6700_v12  ;;  %v9155_v0 = vrot.slane %v9133_v9, 9 }
 0x4e0   : > { %v7401_v59 = vmax.f32 %v7337_v43, 0.0  ;;  %v6831_v30 = vunpack.c.l.b16 %v6701_v39 }
 0x4e1   : > { %v7402_v8 = vmax.f32 %v7338_v24, 0.0 }
 0x4e2   : > { %7465 = vst [vmem:[%s12148_s20 + $0x50] sm:$0xff] %v7401_v59  ;;  %v7523_v6 = vpack.c.bf16 %v7401_v59, %v7399_v34 }
 0x4e3   : > { %7466 = vst [vmem:[%s12148_s20 + $0x58] sm:$0xff] %v7402_v8  ;;  %v6975_v56 = vpop.f32.mrf.mxu0  ;;  %v7524_v31 = vpack.c.bf16 %v7402_v8, %v7400_v35  ;;  %v6702_v35 = vrot.slane %v6700_v12, 4 }
 0x4e4   : > { %v7141_v7 = vadd.f32 %v6975_v56, %v12738_v16  ;;  %v7064_v38 = vpop.f32.mrf.mxu1  ;;  %7701 = vmatmul.bf16.gmra.mxu2 %v7523_v6  ;;  %v9134_v56 = vld [vmem:[%s9952_s27 + $0xb8] sm:$0xf] }
 0x4e5   : > { %v7142_v5 = vadd.f32 %v7064_v38, %v12739_v50  ;;  %7790 = vmatmul.bf16.gmra.mxu3 %v7524_v31  ;;  %v6704_v43 = vsel %vm10351_vm5, %v6702_v35, %v6703_v61  ;;  %v6707_v38 = vrot.slane %v9134_v56, 5  ;;  %v9135_v50 = vld [vmem:[%s9952_s27 + $0xbc] sm:$0x1] }
 0x4e6   : > { %v7339_v15 = vadd.f32 %v12136_v52, %v7141_v7  ;;  %7014 = vmatmul.bf16.gmra.mxu0 %v6850_v3  ;;  %v6832_v8 = vunpack.c.l.b16 %v6704_v43  ;;  %v6710_v61 = vrot.slane %v9135_v50, 5 }
 0x4e7   : > { %v7340_v34 = vadd.f32 %v12138_v32, %v7142_v5  ;;  %7103 = vmatmul.bf16.gmra.mxu1 %v6850_v3  ;;  %v6709_v35 = vrot.slane %v6707_v38, 4  ;;  %v6708_v39 = vsel %vm10351_vm5, %v9155_v0, %v6707_v38  ;;  %v9138_v38 = vld [vmem:[%s9952_s27 + $0xc8] sm:$0x1]  ;;  %v6412_v0 = vadd.f32 %v11881_v40, %v11859_v62 }
 0x4e8   : > { %v7403_v13 = vmax.f32 %v7339_v15, 0.0  ;;  %v6851_v16 = vpack.c.b16 %v6832_v8, %v6831_v30  ;;  %v9137_v30 = vld [vmem:[%s9952_s27 + $0xc4] sm:$0xf] }
 0x4e9   : > { %v7404_v27 = vmax.f32 %v7340_v34, 0.0  ;;  %v6711_v43 = vsel %vm10351_vm5, %v6709_v35, %v6710_v61  ;;  %v12740_v35 = vld [vmem:[#allocation21_spill] sm:$0xff] }
 0x4ea   : > { %7467 = vst [vmem:[%s12148_s20 + $0x60] sm:$0xff] %v7403_v13 }
 0x4eb   : > { %7468 = vst [vmem:[%s12148_s20 + $0x68] sm:$0xff] %v7404_v27  ;;  %v6977_v45 = vpop.f32.mrf.mxu0 }
 0x4ec   : > { %v7143_v20 = vadd.f32 %v6977_v45, %v11815_v46  ;;  %v7066_v28 = vpop.f32.mrf.mxu1 }
 0x4ed   : > { %v7144_v24 = vadd.f32 %v7066_v28, %v11817_v55 }
 0x4ee   : > { %v7341_v59 = vadd.f32 %v12136_v52, %v7143_v20 }
 0x4ef   : > { %v7342_v6 = vadd.f32 %v12138_v32, %v7144_v24 }
 0x4f0   : > { %v7405_v3 = vmax.f32 %v7341_v59, 0.0 }
 0x4f1   : > { %v7406_v31 = vmax.f32 %v7342_v6, 0.0 }
 0x4f2   : > { %7469 = vst [vmem:[%s12148_s20 + $0x70] sm:$0xff] %v7405_v3  ;;  %v7525_v12 = vpack.c.bf16 %v7405_v3, %v7403_v13 }
 0x4f3   : > { %7470 = vst [vmem:[%s12148_s20 + $0x78] sm:$0xff] %v7406_v31  ;;  %v6980_v7 = vpop.f32.mrf.mxu0  ;;  %v7526_v46 = vpack.c.bf16 %v7406_v31, %v7404_v27  ;;  %v6408_v27 = vadd.f32 %v11851_v17, %v11820_v54  ;;  %v6833_v54 = vunpack.c.l.b16 %v6708_v39  ;;  %v6834_v17 = vunpack.c.l.b16 %v6711_v43 }
 0x4f4   : > { %v7145_v55 = vadd.f32 %v6980_v7, %v11843_v41  ;;  %v7069_v47 = vpop.f32.mrf.mxu1  ;;  %7706 = vmatmul.bf16.gmra.mxu2 %v7525_v12  ;;  %v6714_v12 = vrot.slane %v9137_v30, 5 }
 0x4f5   : > { %v7146_v5 = vadd.f32 %v7069_v47, %v11845_v37  ;;  %7795 = vmatmul.bf16.gmra.mxu3 %v7526_v46  ;;  %v6409_v37 = vadd.f32 %v11853_v23, %v11823_v4  ;;  %v6852_v3 = vpack.c.b16 %v6834_v17, %v6833_v54  ;;  %v9136_v46 = vld [vmem:[%s9952_s27 + $0xc0] sm:$0xe] }
 0x4f6   : > { %v7343_v15 = vadd.f32 %v12136_v52, %v7145_v55  ;;  %7019 = vmatmul.bf16.gmra.mxu0 %v6851_v16  ;;  %v9156_v50 = vrot.slane %v9136_v46, 9 }
 0x4f7   : > { %v7344_v34 = vadd.f32 %v12138_v32, %v7146_v5  ;;  %7108 = vmatmul.bf16.gmra.mxu1 %v6851_v16  ;;  %v6716_v5 = vrot.slane %v6714_v12, 4 }
 0x4f8   : > { %v7407_v13 = vmax.f32 %v7343_v15, 0.0  ;;  %v6717_v15 = vrot.slane %v9138_v38, 5  ;;  %v12741_v38 = vld [vmem:[#allocation22_spill] sm:$0xff] }
 0x4f9   : > { %v7408_v41 = vmax.f32 %v7344_v34, 0.0 }
 0x4fa   : > { %7471 = vst [vmem:[%s12148_s20 + $0x80] sm:$0xff] %v7407_v13 }
 0x4fb   : > { %7472 = vst [vmem:[%s12148_s20 + $0x88] sm:$0xff] %v7408_v41  ;;  %v6982_v45 = vpop.f32.mrf.mxu0 }
 0x4fc   : > { %v7147_v20 = vadd.f32 %v6982_v45, %v6408_v27  ;;  %v7071_v28 = vpop.f32.mrf.mxu1 }
 0x4fd   : > { %v7148_v24 = vadd.f32 %v7071_v28, %v6409_v37 }
 0x4fe   : > { %v7345_v59 = vadd.f32 %v12136_v52, %v7147_v20  ;;  %v9140_v20 = vld [vmem:[%s9952_s27 + $0xd0] sm:$0xf] }
 0x4ff   : > { %v7346_v4 = vadd.f32 %v12138_v32, %v7148_v24 }
 0x500   : > { %v7409_v23 = vmax.f32 %v7345_v59, 0.0 }
 0x501   : > { %v7410_v8 = vmax.f32 %v7346_v4, 0.0  ;;  %v6721_v4 = vrot.slane %v9140_v20, 5  ;;  %v12746_v20 = vld [vmem:[#allocation28_spill] sm:$0xff] }
 0x502   : > { %7473 = vst [vmem:[%s12148_s20 + $0x90] sm:$0xff] %v7409_v23  ;;  %v7527_v6 = vpack.c.bf16 %v7409_v23, %v7407_v13  ;;  %v6715_v13 = vsel %vm10351_vm5, %v9156_v50, %v6714_v12  ;;  %v12744_v50 = vld [vmem:[#allocation25_spill] sm:$0xff] }
 0x503   : > { %7474 = vst [vmem:[%s12148_s20 + $0x98] sm:$0xff] %v7410_v8  ;;  %v6985_v56 = vpop.f32.mrf.mxu0  ;;  %v7528_v31 = vpack.c.bf16 %v7410_v8, %v7408_v41  ;;  %v6718_v41 = vsel %vm10351_vm5, %v6716_v5, %v6717_v15  ;;  %v6835_v62 = vunpack.c.l.b16 %v6715_v13  ;;  %v9139_v8 = vld [vmem:[%s9952_s27 + $0xcc] sm:$0xe] }
 0x504   : > { %v7149_v16 = vadd.f32 %v6985_v56, %v11869_v48  ;;  %v7074_v7 = vpop.f32.mrf.mxu1  ;;  %7711 = vmatmul.bf16.gmra.mxu2 %v7527_v6  ;;  %v6836_v40 = vunpack.c.l.b16 %v6718_v41  ;;  %v9141_v6 = vld [vmem:[%s9952_s27 + $0xd4] sm:$0x1]  ;;  %v9157_v12 = vrot.slane %v9139_v8, 9  ;;  %v12749_v8 = vld [vmem:[#allocation27_spill] sm:$0xff]  ;;  %s8036_s27 = sshll.u32 %s9647_s24, 5 }
 0x505   : > { %v7150_v55 = vadd.f32 %v7074_v7, %v11871_v36  ;;  %7800 = vmatmul.bf16.gmra.mxu3 %v7528_v31  ;;  %v6413_v36 = vadd.f32 %v11883_v18, %v12740_v35  ;;  %v6724_v7 = vrot.slane %v9141_v6, 5  ;;  %v12750_v6 = vld [vmem:[#allocation6_spill] sm:$0xff]  ;;  %p279_p12 = scmp.lt.s32.totalorder %s8036_s27, 63 }
 0x506   : > { %v7347_v47 = vadd.f32 %v12136_v52, %v7149_v16  ;;  %7024 = vmatmul.bf16.gmra.mxu0 %v6852_v3  ;;  %v6853_v59 = vpack.c.b16 %v6836_v40, %v6835_v62  ;;  %v6723_v16 = vrot.slane %v6721_v4, 4  ;;  %v6722_v15 = vsel %vm10351_vm5, %v9157_v12, %v6721_v4  ;;  %v12745_v40 = vld [vmem:[#allocation39_spill] sm:$0xff]  ;;  %v12747_v4 = vld [vmem:[#allocation26_spill] sm:$0xff] }
 0x507   : > { %v7348_v9 = vadd.f32 %v12138_v32, %v7150_v55  ;;  %7113 = vmatmul.bf16.gmra.mxu1 %v6852_v3  ;;  %v12742_v55 = vld [vmem:[#allocation24_spill] sm:$0xff]  ;;  %s12787_s27 = smov (!%p279_p12, %s8036_s27), 63 }
 0x508   : > { %v7411_v34 = vmax.f32 %v7347_v47, 0.0  ;;  %v6416_v47 = vadd.f32 %v12742_v55, %v12741_v38  ;;  %s8037_s8 = sshll.u32 %s12787_s27, 3  ;;  %s7916_s27 = sshll.u32 %s7913_s17, 4  ;;  %s7917_s27 = int_to_ptr.hbm [resolvable:$true] %s7916_s27 }
 0x509   : > { %v7412_v48 = vmax.f32 %v7348_v9, 0.0  ;;  %v12743_v9 = vld [vmem:[#allocation23_spill] sm:$0xff]  ;;  %s12328_s13 = scalar_lea.vmem %s12532_s6, %s8037_s8  ;;  %s9591_s30 = sshra.s32 %s7917_s27, 4  ;;  %s9592_s30 = int_to_ptr.hbm [resolvable:$true] %s9591_s30 }
 0x50a   : > { %7475 = vst [vmem:[%s12148_s20 + $0xa0] sm:$0xff] %v7411_v34  ;;  %s9593_s8 = scalar_lea.hbm %s9592_s30, 512  ;;  %p9598_p2 = scmp.lt.s32.totalorder %s9592_s30, %s12531_s5 }
 0x50b   : > { %7476 = vst [vmem:[%s12148_s20 + $0xa8] sm:$0xff] %v7412_v48  ;;  %v6987_v61 = vpop.f32.mrf.mxu0  ;;  %p9594_p13 = scmp.ne.s32.totalorder %s9592_s30, %s9593_s8 }
 0x50c   : > { %v7151_v27 = vadd.f32 %v6987_v61, %v6412_v0  ;;  %v7076_v37 = vpop.f32.mrf.mxu1  ;;  %v6837_v61 = vunpack.c.l.b16 %v6722_v15  ;;  %v12752_v15 = vld [vmem:[#allocation33_spill] sm:$0xff] }
 0x50d   : > { %v7152_v45 = vadd.f32 %v7076_v37, %v6413_v36  ;;  %p9595_p0 = pnand %p9594_p13, %p9734_p4 }
 0x50e   : > { %v7349_v39 = vadd.f32 %v12136_v52, %v7151_v27 }
 0x50f   : > { %v7350_v18 = vadd.f32 %v12138_v32, %v7152_v45  ;;  %p9596_p1 = pneg %p9595_p0 }
 0x510   : > { %v7413_v43 = vmax.f32 %v7349_v39, 0.0 }
 0x511   : > { %v7414_v28 = vmax.f32 %v7350_v18, 0.0 }
 0x512   : > { %7477 = vst [vmem:[%s12148_s20 + $0xb0] sm:$0xff] %v7413_v43  ;;  %v7529_v24 = vpack.c.bf16 %v7413_v43, %v7411_v34  ;;  %v6725_v34 = vsel %vm10351_vm5, %v6723_v16, %v6724_v7 }
 0x513   : > { %7478 = vst [vmem:[%s12148_s20 + $0xb8] sm:$0xff] %v7414_v28  ;;  %v6990_v54 = vpop.f32.mrf.mxu0  ;;  %v7530_v17 = vpack.c.bf16 %v7414_v28, %v7412_v48  ;;  %v6838_v13 = vunpack.c.l.b16 %v6725_v34 }
 0x514   : > { %v7153_v23 = vadd.f32 %v6990_v54, %v11892_v10  ;;  %v7079_v30 = vpop.f32.mrf.mxu1  ;;  %7716 = vmatmul.bf16.gmra.mxu2 %v7529_v24 }
 0x515   : > { %v7154_v3 = vadd.f32 %v7079_v30, %v11894_v11  ;;  %7805 = vmatmul.bf16.gmra.mxu3 %v7530_v17  ;;  %v6417_v11 = vadd.f32 %v12744_v50, %v12743_v9  ;;  %v6854_v39 = vpack.c.b16 %v6838_v13, %v6837_v61  ;;  %v12751_v50 = vld [vmem:[#allocation32_spill] sm:$0xff]  ;;  %v12753_v61 = vld [vmem:[#allocation30_spill] sm:$0xff] }
 0x516   : > { %v7351_v56 = vadd.f32 %v12136_v52, %v7153_v23  ;;  %7029 = vmatmul.bf16.gmra.mxu0 %v6853_v59  ;;  %v12748_v23 = vld [vmem:[#allocation29_spill] sm:$0xff]  ;;  %v12754_v13 = vld [vmem:[#allocation34_spill] sm:$0xff] }
 0x517   : > { %v7352_v31 = vadd.f32 %v12138_v32, %v7154_v3  ;;  %7118 = vmatmul.bf16.gmra.mxu1 %v6853_v59  ;;  %v6420_v30 = vadd.f32 %v12748_v23, %v12747_v4  ;;  %v6421_v3 = vadd.f32 %v12750_v6, %v12749_v8  ;;  %v12757_v23 = vld [vmem:[#allocation38_spill] sm:$0xff] }
 0x518   : > { %v7415_v46 = vmax.f32 %v7351_v56, 0.0  ;;  %v12319_v6 = vld [vmem:[%s12530_s4] ss:$0 sm:$0xff] }
 0x519   : > { %v7416_v10 = vmax.f32 %v7352_v31, 0.0 }
 0x51a   : > { %7479 = vst [vmem:[%s12148_s20 + $0xc0] sm:$0xff] %v7415_v46 }
 0x51b   : > { %7480 = vst [vmem:[%s12148_s20 + $0xc8] sm:$0xff] %v7416_v10  ;;  %v6992_v5 = vpop.f32.mrf.mxu0 }
 0x51c   : > { %v7155_v48 = vadd.f32 %v6992_v5, %v6416_v47  ;;  %v7081_v0 = vpop.f32.mrf.mxu1 }
 0x51d   : > { %v7156_v35 = vadd.f32 %v7081_v0, %v6417_v11 }
 0x51e   : > { %v7353_v36 = vadd.f32 %v12136_v52, %v7155_v48 }
 0x51f   : > { %v7354_v41 = vadd.f32 %v12138_v32, %v7156_v35 }
 0x520   : > { %v7417_v27 = vmax.f32 %v7353_v36, 0.0 }
 0x521   : > { %v7418_v37 = vmax.f32 %v7354_v41, 0.0  ;;  %v6424_v41 = vadd.f32 %v12754_v13, %v12753_v61 }
 0x522   : > { %7481 = vst [vmem:[%s12148_s20 + $0xd0] sm:$0xff] %v7417_v27  ;;  %v7531_v45 = vpack.c.bf16 %v7417_v27, %v7415_v46  ;;  %v12755_v27 = vld [vmem:[#allocation31_spill] sm:$0xff] }
 0x523   : > { %7482 = vst [vmem:[%s12148_s20 + $0xd8] sm:$0xff] %v7418_v37  ;;  %v6995_v62 = vpop.f32.mrf.mxu0  ;;  %v7532_v21 = vpack.c.bf16 %v7418_v37, %v7416_v10  ;;  %v12756_v37 = vld [vmem:[#allocation35_spill] sm:$0xff] }
 0x524   : > { %v7157_v18 = vadd.f32 %v6995_v62, %v12745_v40  ;;  %v7084_v43 = vpop.f32.mrf.mxu1  ;;  %7721 = vmatmul.bf16.gmra.mxu2 %v7531_v45  ;;  %v6425_v45 = vadd.f32 %v12756_v37, %v12755_v27 }
 0x525   : > { %v7158_v28 = vadd.f32 %v7084_v43, %v12746_v20  ;;  %7810 = vmatmul.bf16.gmra.mxu3 %v7532_v21  ;;  %v12308_v43 = vpop.f32.mrf.mxu2 }
 0x526   : > { %v7355_v24 = vadd.f32 %v12136_v52, %v7157_v18  ;;  %7034 = vmatmul.bf16.gmra.mxu0 %v6854_v39 }
 0x527   : > { %v7356_v59 = vadd.f32 %v12138_v32, %v7158_v28  ;;  %7123 = vmatmul.bf16.gmra.mxu1 %v6854_v39  ;;  %v12311_v28 = vpop.f32.mrf.mxu3 }
 0x528   : > { %v7419_v54 = vmax.f32 %v7355_v24, 0.0 }
 0x529   : > { %v7420_v17 = vmax.f32 %v7356_v59, 0.0 }
 0x52a   : > { %7483 = vst [vmem:[%s12148_s20 + $0xe0] sm:$0xff] %v7419_v54 }
 0x52b   : > { %7484 = vst [vmem:[%s12148_s20 + $0xe8] sm:$0xff] %v7420_v17  ;;  %v6997_v56 = vpop.f32.mrf.mxu0 }
 0x52c   : > { %v7159_v31 = vadd.f32 %v6997_v56, %v6420_v30  ;;  %v7086_v12 = vpop.f32.mrf.mxu1 }
 0x52d   : > { %v7160_v16 = vadd.f32 %v7086_v12, %v6421_v3  ;;  %v12758_v3 = vld [vmem:[#allocation7_spill] sm:$0xff] }
 0x52e   : > { %v7357_v7 = vadd.f32 %v12136_v52, %v7159_v31 }
 0x52f   : > { %v7358_v46 = vadd.f32 %v12138_v32, %v7160_v16 }
 0x530   : > { %v7421_v10 = vmax.f32 %v7357_v7, 0.0 }
 0x531   : > { %v7422_v38 = vmax.f32 %v7358_v46, 0.0 }
 0x532   : > { %7485 = vst [vmem:[%s12148_s20 + $0xf0] sm:$0xff] %v7421_v10  ;;  %v7533_v55 = vpack.c.bf16 %v7421_v10, %v7419_v54 }
 0x533   : > { %7486 = vst [vmem:[%s12148_s20 + $0xf8] sm:$0xff] %v7422_v38  ;;  %v7000_v47 = vpop.f32.mrf.mxu0  ;;  %v7534_v9 = vpack.c.bf16 %v7422_v38, %v7420_v17 }
 0x534   : > { %v7161_v11 = vadd.f32 %v7000_v47, %v12751_v50  ;;  %v7089_v5 = vpop.f32.mrf.mxu1  ;;  %7726 = vmatmul.bf16.gmra.mxu2 %v7533_v55  ;;  %v12759_v55 = vld [vmem:[#allocation36_spill] sm:$0xff] }
 0x535   : > { %v7162_v34 = vadd.f32 %v7089_v5, %v12752_v15  ;;  %7815 = vmatmul.bf16.gmra.mxu3 %v7534_v9  ;;  %v12760_v47 = vld [vmem:[#allocation8_spill] sm:$0xff]  ;;  %v12762_v5 = vld [vmem:[#allocation9_spill] sm:$0xff] }
 0x536   : > { %v7359_v48 = vadd.f32 %v12136_v52, %v7161_v11  ;;  %v6428_v9 = vadd.f32 %v12760_v47, %v12759_v55  ;;  %v12761_v11 = vld [vmem:[#allocation37_spill] sm:$0xff] }
 0x537   : > { %v7360_v0 = vadd.f32 %v12138_v32, %v7162_v34  ;;  %v6429_v15 = vadd.f32 %v12762_v5, %v12761_v11 }
 0x538   : > { %v7423_v35 = vmax.f32 %v7359_v48, 0.0 }
 0x539   : > { %v7424_v36 = vmax.f32 %v7360_v0, 0.0 }
 0x53a   : > { %7487 = vst [vmem:[%s12148_s20 + $0x100] sm:$0xff] %v7423_v35 }
 0x53b   : > { %7488 = vst [vmem:[%s12148_s20 + $0x108] sm:$0xff] %v7424_v36  ;;  %v7002_v39 = vpop.f32.mrf.mxu0 }
 0x53c   : > { %v7163_v62 = vadd.f32 %v7002_v39, %v6424_v41  ;;  %v7091_v21 = vpop.f32.mrf.mxu1 }
 0x53d   : > { %v7164_v40 = vadd.f32 %v7091_v21, %v6425_v45 }
 0x53e   : > { %v7361_v18 = vadd.f32 %v12136_v52, %v7163_v62 }
 0x53f   : > { %v7362_v20 = vadd.f32 %v12138_v32, %v7164_v40 }
 0x540   : > { %v7425_v24 = vmax.f32 %v7361_v18, 0.0 }
 0x541   : > { %v7426_v59 = vmax.f32 %v7362_v20, 0.0 }
 0x542   : > { %7489 = vst [vmem:[%s12148_s20 + $0x110] sm:$0xff] %v7425_v24  ;;  %v7535_v54 = vpack.c.bf16 %v7425_v24, %v7423_v35 }
 0x543   : > { %7490 = vst [vmem:[%s12148_s20 + $0x118] sm:$0xff] %v7426_v59  ;;  %v7005_v17 = vpop.f32.mrf.mxu0  ;;  %v7536_v4 = vpack.c.bf16 %v7426_v59, %v7424_v36 }
 0x544   : > { %v7165_v30 = vadd.f32 %v7005_v17, %v12757_v23  ;;  %v7094_v8 = vpop.f32.mrf.mxu1  ;;  %7731 = vmatmul.bf16.gmra.mxu2 %v7535_v54 }
 0x545   : > { %v7166_v56 = vadd.f32 %v7094_v8, %v12758_v3  ;;  %7820 = vmatmul.bf16.gmra.mxu3 %v7536_v4  ;;  %v12763_v3 = vld [vmem:[#allocation10_spill] sm:$0xff] }
 0x546   : > { %v7363_v31 = vadd.f32 %v12136_v52, %v7165_v30 }
 0x547   : > { %v7364_v12 = vadd.f32 %v12138_v32, %v7166_v56  ;;  %v7692_v16 = vpop.f32.mrf.mxu2 }
 0x548   : > { %v7427_v7 = vmax.f32 %v7363_v31, 0.0  ;;  %v7693_v46 = vadd.f32 %v12319_v6, %v7692_v16  ;;  %v7781_v10 = vpop.f32.mrf.mxu3  ;;  %v12764_v31 = vld [vmem:[#allocation11_spill] sm:$0xff] }
 0x549   : > { %v7428_v38 = vmax.f32 %v7364_v12, 0.0  ;;  %v12765_v12 = vld [vmem:[#allocation12_spill] sm:$0xff] }
 0x54a   : > { %7491 = vst [vmem:[%s12148_s20 + $0x120] sm:$0xff] %v7427_v7  ;;  %v7782_v50 = vadd.f32 %v7781_v10, %v7693_v46 }
 0x54b   : > { %7492 = vst [vmem:[%s12148_s20 + $0x128] sm:$0xff] %v7428_v38  ;;  %v7007_v34 = vpop.f32.mrf.mxu0 }
 0x54c   : > { %7861 = vst [vmem:[%s12328_s13] sm:$0xff] %v7782_v50  ;;  %v7167_v48 = vadd.f32 %v7007_v34, %v6428_v9  ;;  %v7096_v0 = vpop.f32.mrf.mxu1 }
 0x54d   : > { %v7168_v35 = vadd.f32 %v7096_v0, %v6429_v15 }
 0x54e   : > { %v7365_v36 = vadd.f32 %v12136_v52, %v7167_v48 }
 0x54f   : > { %v7366_v61 = vadd.f32 %v12138_v32, %v7168_v35  ;;  %v7694_v13 = vpop.f32.mrf.mxu2 }
 0x550   : > { %v7429_v41 = vmax.f32 %v7365_v36, 0.0  ;;  %v7695_v27 = vadd.f32 %v12319_v6, %v7694_v13  ;;  %v7783_v37 = vpop.f32.mrf.mxu3  ;;  %v12766_v36 = vld [vmem:[#allocation41_spill] sm:$0xff] }
 0x551   : > { %v7430_v45 = vmax.f32 %v7366_v61, 0.0 }
 0x552   : > { %7493 = vst [vmem:[%s12148_s20 + $0x130] sm:$0xff] %v7429_v41  ;;  %v7784_v39 = vadd.f32 %v7783_v37, %v7695_v27  ;;  %v7537_v62 = vpack.c.bf16 %v7429_v41, %v7427_v7 }
 0x553   : > { %7494 = vst [vmem:[%s12148_s20 + $0x138] sm:$0xff] %v7430_v45  ;;  %v7010_v21 = vpop.f32.mrf.mxu0  ;;  %v7538_v40 = vpack.c.bf16 %v7430_v45, %v7428_v38 }
 0x554   : > { %7862 = vst [vmem:[%s12328_s13 + $0x8] sm:$0xff] %v7784_v39  ;;  %v7169_v18 = vadd.f32 %v7010_v21, %v12001_v60  ;;  %v7099_v20 = vpop.f32.mrf.mxu1  ;;  %7736 = vmatmul.bf16.gmra.mxu2 %v7537_v62  ;;  %v6432_v60 = vadd.f32 %v12009_v63, %v12763_v3  ;;  %v12767_v21 = vld [vmem:[#allocation13_spill] sm:$0xff] }
 0x555   : > { %v7170_v24 = vadd.f32 %v7099_v20, %v12003_v53  ;;  %7825 = vmatmul.bf16.gmra.mxu3 %v7538_v40  ;;  %v6433_v53 = vadd.f32 %v12765_v12, %v12764_v31  ;;  %v12768_v40 = vld [vmem:[#allocation14_spill] sm:$0xff]  ;;  %v12769_v20 = vld [vmem:[#allocation40_spill] sm:$0xff] }
 0x556   : > { %v7367_v59 = vadd.f32 %v12136_v52, %v7169_v18 }
 0x557   : > { %v7368_v54 = vadd.f32 %v12138_v32, %v7170_v24  ;;  %v7697_v17 = vpop.f32.mrf.mxu2  ;;  %v12770_v24 = vld [vmem:[#allocation42_spill] sm:$0xff] }
 0x558   : > { %v7431_v4 = vmax.f32 %v7367_v59, 0.0  ;;  %v7698_v23 = vadd.f32 %v12319_v6, %v7697_v17  ;;  %v7786_v30 = vpop.f32.mrf.mxu3  ;;  %v6437_v59 = vadd.f32 %v12770_v24, %v12769_v20 }
 0x559   : > { %v7432_v8 = vmax.f32 %v7368_v54, 0.0 }
 0x55a   : > { %7495 = vst [vmem:[%s12148_s20 + $0x140] sm:$0xff] %v7431_v4  ;;  %v7787_v56 = vadd.f32 %v7786_v30, %v7698_v23 }
 0x55b   : > { %7496 = vst [vmem:[%s12148_s20 + $0x148] sm:$0xff] %v7432_v8  ;;  %v7012_v16 = vpop.f32.mrf.mxu0 }
 0x55c   : > { %7863 = vst [vmem:[%s12328_s13 + $0x10] sm:$0xff] %v7787_v56  ;;  %v7171_v7 = vadd.f32 %v7012_v16, %v6432_v60  ;;  %v7101_v46 = vpop.f32.mrf.mxu1 }
 0x55d   : > { %v7172_v10 = vadd.f32 %v7101_v46, %v6433_v53 }
 0x55e   : > { %v7369_v38 = vadd.f32 %v12136_v52, %v7171_v7 }
 0x55f   : > { %v7370_v55 = vadd.f32 %v12138_v32, %v7172_v10  ;;  %v7699_v47 = vpop.f32.mrf.mxu2 }
 0x560   : > { %v7433_v63 = vmax.f32 %v7369_v38, 0.0  ;;  %v7700_v9 = vadd.f32 %v12319_v6, %v7699_v47  ;;  %v7788_v50 = vpop.f32.mrf.mxu3 }
 0x561   : > { %v7434_v11 = vmax.f32 %v7370_v55, 0.0 }
 0x562   : > { %7497 = vst [vmem:[%s12148_s20 + $0x150] sm:$0xff] %v7433_v63  ;;  %v7789_v5 = vadd.f32 %v7788_v50, %v7700_v9  ;;  %v7539_v15 = vpack.c.bf16 %v7433_v63, %v7431_v4 }
 0x563   : > { %7498 = vst [vmem:[%s12148_s20 + $0x158] sm:$0xff] %v7434_v11  ;;  %v7015_v34 = vpop.f32.mrf.mxu0  ;;  %v7540_v48 = vpack.c.bf16 %v7434_v11, %v7432_v8 }
 0x564   : > { %7864 = vst [vmem:[%s12328_s13 + $0x18] sm:$0xff] %v7789_v5  ;;  %v7173_v0 = vadd.f32 %v7015_v34, %v12030_v51  ;;  %v7104_v35 = vpop.f32.mrf.mxu1  ;;  %7741 = vmatmul.bf16.gmra.mxu2 %v7539_v15  ;;  %v6436_v51 = vadd.f32 %v12768_v40, %v12767_v21  ;;  %v12771_v34 = vld [vmem:[#allocation43_spill] sm:$0xff] }
 0x565   : > { %v7174_v61 = vadd.f32 %v7104_v35, %v12766_v36  ;;  %7830 = vmatmul.bf16.gmra.mxu3 %v7540_v48 }
 0x566   : > { %v7371_v13 = vadd.f32 %v12136_v52, %v7173_v0  ;;  %v12772_v0 = vld [vmem:[#allocation15_spill] sm:$0xff] }
 0x567   : > { %v7372_v41 = vadd.f32 %v12138_v32, %v7174_v61  ;;  %v7702_v27 = vpop.f32.mrf.mxu2 }
 0x568   : > { %v7435_v37 = vmax.f32 %v7371_v13, 0.0  ;;  %v7703_v45 = vadd.f32 %v12319_v6, %v7702_v27  ;;  %v7791_v39 = vpop.f32.mrf.mxu3 }
 0x569   : > { %v7436_v62 = vmax.f32 %v7372_v41, 0.0 }
 0x56a   : > { %7499 = vst [vmem:[%s12148_s20 + $0x160] sm:$0xff] %v7435_v37  ;;  %v7792_v18 = vadd.f32 %v7791_v39, %v7703_v45 }
 0x56b   : > { %7500 = vst [vmem:[%s12148_s20 + $0x168] sm:$0xff] %v7436_v62  ;;  %v7017_v54 = vpop.f32.mrf.mxu0 }
 0x56c   : > { %7865 = vst [vmem:[%s12328_s13 + $0x20] sm:$0xff] %v7792_v18  ;;  %v7175_v17 = vadd.f32 %v7017_v54, %v6436_v51  ;;  %v7106_v4 = vpop.f32.mrf.mxu1 }
 0x56d   : > { %v7176_v23 = vadd.f32 %v7106_v4, %v6437_v59 }
 0x56e   : > { %v7373_v30 = vadd.f32 %v12136_v52, %v7175_v17 }
 0x56f   : > { %v7374_v8 = vadd.f32 %v12138_v32, %v7176_v23  ;;  %v7704_v3 = vpop.f32.mrf.mxu2 }
 0x570   : > { %v7437_v60 = vmax.f32 %v7373_v30, 0.0  ;;  %v7705_v56 = vadd.f32 %v12319_v6, %v7704_v3  ;;  %v7793_v31 = vpop.f32.mrf.mxu3  ;;  %v12773_v3 = vld [vmem:[#allocation16_spill] sm:$0xff] }
 0x571   : > { %v7438_v12 = vmax.f32 %v7374_v8, 0.0 }
 0x572   : > { %7501 = vst [vmem:[%s12148_s20 + $0x170] sm:$0xff] %v7437_v60  ;;  %v7794_v53 = vadd.f32 %v7793_v31, %v7705_v56  ;;  %v7541_v16 = vpack.c.bf16 %v7437_v60, %v7435_v37  ;;  %v12774_v56 = vld [vmem:[#allocation17_spill] sm:$0xff] }
 0x573   : > { %7502 = vst [vmem:[%s12148_s20 + $0x178] sm:$0xff] %v7438_v12  ;;  %v7020_v7 = vpop.f32.mrf.mxu0  ;;  %v7542_v46 = vpack.c.bf16 %v7438_v12, %v7436_v62 }
 0x574   : > { %7866 = vst [vmem:[%s12328_s13 + $0x28] sm:$0xff] %v7794_v53  ;;  %v7177_v10 = vadd.f32 %v7020_v7, %v12053_v44  ;;  %v7109_v38 = vpop.f32.mrf.mxu1  ;;  %7746 = vmatmul.bf16.gmra.mxu2 %v7541_v16  ;;  %v6440_v44 = vadd.f32 %v12061_v29, %v12771_v34 }
 0x575   : > { %v7178_v55 = vadd.f32 %v7109_v38, %v12055_v22  ;;  %7835 = vmatmul.bf16.gmra.mxu3 %v7542_v46  ;;  %v6441_v22 = vadd.f32 %v12772_v0, %v12050_v33 }
 0x576   : > { %v7375_v47 = vadd.f32 %v12136_v52, %v7177_v10 }
 0x577   : > { %v7376_v63 = vadd.f32 %v12138_v32, %v7178_v55  ;;  %v7707_v9 = vpop.f32.mrf.mxu2 }
 0x578   : > { %v7439_v50 = vmax.f32 %v7375_v47, 0.0  ;;  %v7708_v11 = vadd.f32 %v12319_v6, %v7707_v9  ;;  %v7796_v5 = vpop.f32.mrf.mxu3 }
 0x579   : > { %v7440_v15 = vmax.f32 %v7376_v63, 0.0 }
 0x57a   : > { %7503 = vst [vmem:[%s12148_s20 + $0x180] sm:$0xff] %v7439_v50  ;;  %v7797_v48 = vadd.f32 %v7796_v5, %v7708_v11 }
 0x57b   : > { %7504 = vst [vmem:[%s12148_s20 + $0x188] sm:$0xff] %v7440_v15  ;;  %v7022_v35 = vpop.f32.mrf.mxu0 }
 0x57c   : > { %7867 = vst [vmem:[%s12328_s13 + $0x30] sm:$0xff] %v7797_v48  ;;  %v7179_v36 = vadd.f32 %v7022_v35, %v6440_v44  ;;  %v7111_v61 = vpop.f32.mrf.mxu1 }
 0x57d   : > { %v7180_v13 = vadd.f32 %v7111_v61, %v6441_v22  ;;  %v12775_v61 = vld [vmem:[#allocation44_spill] sm:$0xff] }
 0x57e   : > { %v7377_v41 = vadd.f32 %v12136_v52, %v7179_v36 }
 0x57f   : > { %v7378_v27 = vadd.f32 %v12138_v32, %v7180_v13  ;;  %v7709_v37 = vpop.f32.mrf.mxu2 }
 0x580   : > { %v7441_v29 = vmax.f32 %v7377_v41, 0.0  ;;  %v7710_v45 = vadd.f32 %v12319_v6, %v7709_v37  ;;  %v7798_v39 = vpop.f32.mrf.mxu3 }
 0x581   : > { %v7442_v62 = vmax.f32 %v7378_v27, 0.0 }
 0x582   : > { %7505 = vst [vmem:[%s12148_s20 + $0x190] sm:$0xff] %v7441_v29  ;;  %v7799_v33 = vadd.f32 %v7798_v39, %v7710_v45  ;;  %v7543_v21 = vpack.c.bf16 %v7441_v29, %v7439_v50 }
 0x583   : > { %7506 = vst [vmem:[%s12148_s20 + $0x198] sm:$0xff] %v7442_v62  ;;  %v7025_v40 = vpop.f32.mrf.mxu0  ;;  %v7544_v51 = vpack.c.bf16 %v7442_v62, %v7440_v15 }
 0x584   : > { %7868 = vst [vmem:[%s12328_s13 + $0x38] sm:$0xff] %v7799_v33  ;;  %v7181_v18 = vadd.f32 %v7025_v40, %v12082_v57  ;;  %v7114_v20 = vpop.f32.mrf.mxu1  ;;  %7751 = vmatmul.bf16.gmra.mxu2 %v7543_v21  ;;  %v6444_v57 = vadd.f32 %v12090_v19, %v12773_v3 }
 0x585   : > { %v7182_v24 = vadd.f32 %v7114_v20, %v12084_v58  ;;  %7840 = vmatmul.bf16.gmra.mxu3 %v7544_v51  ;;  %v6445_v58 = vadd.f32 %v12774_v56, %v12079_v42 }
 0x586   : > { %v7379_v59 = vadd.f32 %v12136_v52, %v7181_v18 }
 0x587   : > { %v7380_v54 = vadd.f32 %v12138_v32, %v7182_v24  ;;  %v7712_v17 = vpop.f32.mrf.mxu2 }
 0x588   : > { %v7443_v4 = vmax.f32 %v7379_v59, 0.0  ;;  %v7713_v23 = vadd.f32 %v12319_v6, %v7712_v17  ;;  %v7801_v30 = vpop.f32.mrf.mxu3  ;;  %v12776_v59 = vld [vmem:[#allocation47_spill] sm:$0xff] }
 0x589   : > { %v7444_v8 = vmax.f32 %v7380_v54, 0.0 }
 0x58a   : > { %7507 = vst [vmem:[%s12148_s20 + $0x1a0] sm:$0xff] %v7443_v4  ;;  %v7802_v60 = vadd.f32 %v7801_v30, %v7713_v23 }
 0x58b   : > { %7508 = vst [vmem:[%s12148_s20 + $0x1a8] sm:$0xff] %v7444_v8  ;;  %v7027_v31 = vpop.f32.mrf.mxu0 }
 0x58c   : > { %7869 = vst [vmem:[%s12328_s13 + $0x40] sm:$0xff] %v7802_v60  ;;  %v7183_v12 = vadd.f32 %v7027_v31, %v6444_v57  ;;  %v7116_v53 = vpop.f32.mrf.mxu1  ;;  %v12777_v60 = vld [vmem:[#allocation45_spill] sm:$0xff] }
 0x58d   : > { %v7184_v16 = vadd.f32 %v7116_v53, %v6445_v58  ;;  %v12778_v58 = vld [vmem:[#allocation46_spill] sm:$0xff] }
 0x58e   : > { %v7381_v7 = vadd.f32 %v12136_v52, %v7183_v12  ;;  %v6453_v31 = vadd.f32 %v12311_v28, %v12778_v58 }
 0x58f   : > { %v7382_v46 = vadd.f32 %v12138_v32, %v7184_v16  ;;  %v7714_v10 = vpop.f32.mrf.mxu2 }
 0x590   : > { %v7445_v19 = vmax.f32 %v7381_v7, 0.0  ;;  %v7715_v38 = vadd.f32 %v12319_v6, %v7714_v10  ;;  %v7803_v55 = vpop.f32.mrf.mxu3 }
 0x591   : > { %v7446_v47 = vmax.f32 %v7382_v46, 0.0 }
 0x592   : > { %7509 = vst [vmem:[%s12148_s20 + $0x1b0] sm:$0xff] %v7445_v19  ;;  %v7804_v42 = vadd.f32 %v7803_v55, %v7715_v38  ;;  %v7545_v63 = vpack.c.bf16 %v7445_v19, %v7443_v4 }
 0x593   : > { %7510 = vst [vmem:[%s12148_s20 + $0x1b8] sm:$0xff] %v7446_v47  ;;  %v7030_v9 = vpop.f32.mrf.mxu0  ;;  %v7546_v50 = vpack.c.bf16 %v7446_v47, %v7444_v8 }
 0x594   : > { %7870 = vst [vmem:[%s12328_s13 + $0x48] sm:$0xff] %v7804_v42  ;;  %v7185_v11 = vadd.f32 %v7030_v9, %v12105_v2  ;;  %v7119_v5 = vpop.f32.mrf.mxu1  ;;  %7756 = vmatmul.bf16.gmra.mxu2 %v7545_v63  ;;  %v6448_v2 = vadd.f32 %v12113_v26, %v12775_v61 }
 0x595   : > { %v7186_v15 = vadd.f32 %v7119_v5, %v12107_v14  ;;  %7845 = vmatmul.bf16.gmra.mxu3 %v7546_v50  ;;  %v6449_v14 = vadd.f32 %v12115_v49, %v12102_v25 }
 0x596   : > { %v7383_v34 = vadd.f32 %v12136_v52, %v7185_v11 }
 0x597   : > { %v7384_v44 = vadd.f32 %v12138_v32, %v7186_v15  ;;  %v7717_v48 = vpop.f32.mrf.mxu2 }
 0x598   : > { %v7447_v0 = vmax.f32 %v7383_v34, 0.0  ;;  %v7718_v22 = vadd.f32 %v12319_v6, %v7717_v48  ;;  %v7806_v35 = vpop.f32.mrf.mxu3 }
 0x599   : > { %v7448_v36 = vmax.f32 %v7384_v44, 0.0 }
 0x59a   : > { %7511 = vst [vmem:[%s12148_s20 + $0x1c0] sm:$0xff] %v7447_v0  ;;  %v7807_v13 = vadd.f32 %v7806_v35, %v7718_v22 }
 0x59b   : > { %7512 = vst [vmem:[%s12148_s20 + $0x1c8] sm:$0xff] %v7448_v36  ;;  %v7032_v41 = vpop.f32.mrf.mxu0 }
 0x59c   : > { %7871 = vst [vmem:[%s12328_s13 + $0x50] sm:$0xff] %v7807_v13  ;;  %v7187_v27 = vadd.f32 %v7032_v41, %v6448_v2  ;;  %v7121_v37 = vpop.f32.mrf.mxu1 }
 0x59d   : > { %v7188_v29 = vadd.f32 %v7121_v37, %v6449_v14 }
 0x59e   : > { %v7385_v45 = vadd.f32 %v12136_v52, %v7187_v27 }
 0x59f   : > { %v7386_v39 = vadd.f32 %v12138_v32, %v7188_v29  ;;  %v7719_v62 = vpop.f32.mrf.mxu2 }
 0x5a0   : > { %v7449_v26 = vmax.f32 %v7385_v45, 0.0  ;;  %v7720_v33 = vadd.f32 %v12319_v6, %v7719_v62  ;;  %v7808_v21 = vpop.f32.mrf.mxu3 }
 0x5a1   : > { %v7450_v40 = vmax.f32 %v7386_v39, 0.0 }
 0x5a2   : > { %7513 = vst [vmem:[%s12148_s20 + $0x1d0] sm:$0xff] %v7449_v26  ;;  %v7809_v25 = vadd.f32 %v7808_v21, %v7720_v33  ;;  %v7547_v49 = vpack.c.bf16 %v7449_v26, %v7447_v0 }
 0x5a3   : > { %7514 = vst [vmem:[%s12148_s20 + $0x1d8] sm:$0xff] %v7450_v40  ;;  %v7035_v51 = vpop.f32.mrf.mxu0  ;;  %v7548_v18 = vpack.c.bf16 %v7450_v40, %v7448_v36 }
 0x5a4   : > { %7872 = vst [vmem:[%s12328_s13 + $0x58] sm:$0xff] %v7809_v25  ;;  %v7189_v20 = vadd.f32 %v7035_v51, %v12132_v1  ;;  %v7124_v24 = vpop.f32.mrf.mxu1  ;;  %7761 = vmatmul.bf16.gmra.mxu2 %v7547_v49  ;;  %v6452_v1 = vadd.f32 %v12308_v43, %v12777_v60 }
 0x5a5   : > { %v7190_v54 = vadd.f32 %v7124_v24, %v12776_v59  ;;  %7850 = vmatmul.bf16.gmra.mxu3 %v7548_v18 }
 0x5a6   : > { %v7387_v17 = vadd.f32 %v12136_v52, %v7189_v20 }
 0x5a7   : > { %v7388_v4 = vadd.f32 %v12138_v32, %v7190_v54  ;;  %v7722_v23 = vpop.f32.mrf.mxu2 }
 0x5a8   : > { %v7451_v30 = vmax.f32 %v7387_v17, 0.0  ;;  %v7723_v8 = vadd.f32 %v12319_v6, %v7722_v23  ;;  %v7811_v3 = vpop.f32.mrf.mxu3 }
 0x5a9   : > { %v7452_v57 = vmax.f32 %v7388_v4, 0.0 }
 0x5aa   : > { %7515 = vst [vmem:[%s12148_s20 + $0x1e0] sm:$0xff] %v7451_v30  ;;  %v7812_v56 = vadd.f32 %v7811_v3, %v7723_v8 }
 0x5ab   : > { %7516 = vst [vmem:[%s12148_s20 + $0x1e8] sm:$0xff] %v7452_v57  ;;  %v7037_v12 = vpop.f32.mrf.mxu0 }
 0x5ac   : > { %7873 = vst [vmem:[%s12328_s13 + $0x60] sm:$0xff] %v7812_v56  ;;  %v7191_v53 = vadd.f32 %v7037_v12, %v6452_v1  ;;  %v7126_v16 = vpop.f32.mrf.mxu1 }
 0x5ad   : > { %v7192_v7 = vadd.f32 %v7126_v16, %v6453_v31 }
 0x5ae   : > { %v7389_v46 = vadd.f32 %v12136_v52, %v7191_v53 }
 0x5af   : > { %v7390_v10 = vadd.f32 %v12138_v32, %v7192_v7  ;;  %v7724_v19 = vpop.f32.mrf.mxu2 }
 0x5b0   : > { %v7453_v43 = vmax.f32 %v7389_v46, 0.0  ;;  %v7725_v38 = vadd.f32 %v12319_v6, %v7724_v19  ;;  %v7813_v55 = vpop.f32.mrf.mxu3 }
 0x5b1   : > { %v7454_v47 = vmax.f32 %v7390_v10, 0.0 }
 0x5b2   : > { %7517 = vst [vmem:[%s12148_s20 + $0x1f0] sm:$0xff] %v7453_v43  ;;  %v7814_v28 = vadd.f32 %v7813_v55, %v7725_v38  ;;  %v7549_v42 = vpack.c.bf16 %v7453_v43, %v7451_v30 }
 0x5b3   : > { %7518 = vst [vmem:[%s12148_s20 + $0x1f8] sm:$0xff] %v7454_v47  ;;  %v7550_v63 = vpack.c.bf16 %v7454_v47, %v7452_v57  ;;  %s9597_s20 = scalar_lea.hbm %s12531_s5, 1024 }
 0x5b4   : > { %7874 = vst [vmem:[%s12328_s13 + $0x68] sm:$0xff] %v7814_v28  ;;  %7766 = vmatmul.bf16.gmra.mxu2 %v7549_v42  ;;  %p9599_p3 = scmp.lt.s32.totalorder %s9597_s20, %s9593_s8 }
 0x5b5   : > { %7855 = vmatmul.bf16.gmra.mxu3 %v7550_v63 }
 0x5b6   : > { %p9600_p5 = por %p9599_p3, %p9598_p2 }
 0x5b7   : > { %v7727_v52 = vpop.f32.mrf.mxu2 }
 0x5b8   : > { %v7728_v32 = vadd.f32 %v12319_v6, %v7727_v52  ;;  %v7816_v9 = vpop.f32.mrf.mxu3  ;;  %p9601_p6 = pnand %p9600_p5, %p9596_p1 }
 0x5ba   : > { %v7817_v50 = vadd.f32 %v7816_v9, %v7728_v32 }
 0x5bc   : > { %7875 = vst [vmem:[%s12328_s13 + $0x70] sm:$0xff] %v7817_v50 }
 0x5bf   : > { %v7729_v11 = vpop.f32.mrf.mxu2 }
 0x5c0   : > { %v7730_v5 = vadd.f32 %v12319_v6, %v7729_v11  ;;  %v7818_v15 = vpop.f32.mrf.mxu3 }
 0x5c2   : > { %v7819_v34 = vadd.f32 %v7818_v15, %v7730_v5 }
 0x5c4   : > { %7876 = vst [vmem:[%s12328_s13 + $0x78] sm:$0xff] %v7819_v34 }
 0x5c7   : > { %v7732_v44 = vpop.f32.mrf.mxu2 }
 0x5c8   : > { %v7733_v48 = vadd.f32 %v12319_v6, %v7732_v44  ;;  %v7821_v0 = vpop.f32.mrf.mxu3 }
 0x5c9   : > { %9604 = shalt.err (!%p9601_p6)
}
 0x5ca   : > { %s9657_s18 = smov 256   ;;  %s9658_s15 = smov 16   ;;  %v7822_v22 = vadd.f32 %v7821_v0, %v7733_v48 }
 0x5cb   : > { %9519 = dma.vmem_to_hbm [thread:$0]  (%p9734_p4), %s7915_s19, 8192, %s7917_s27, %s7894_s28, %s9657_s18, %s9657_s18, %s9658_s15  }
 0x5cc   : > { %7877 = vst [vmem:[%s12328_s13 + $0x80] sm:$0xff] %v7822_v22 }
 0x5cf   : > { %v7734_v35 = vpop.f32.mrf.mxu2 }
 0x5d0   : > { %v7735_v36 = vadd.f32 %v12319_v6, %v7734_v35  ;;  %v7823_v61 = vpop.f32.mrf.mxu3 }
 0x5d2   : > { %v7824_v2 = vadd.f32 %v7823_v61, %v7735_v36 }
 0x5d4   : > { %7878 = vst [vmem:[%s12328_s13 + $0x88] sm:$0xff] %v7824_v2 }
 0x5d7   : > { %v7737_v13 = vpop.f32.mrf.mxu2 }
 0x5d8   : > { %v7738_v14 = vadd.f32 %v12319_v6, %v7737_v13  ;;  %v7826_v41 = vpop.f32.mrf.mxu3 }
 0x5da   : > { %v7827_v27 = vadd.f32 %v7826_v41, %v7738_v14 }
 0x5dc   : > { %7879 = vst [vmem:[%s12328_s13 + $0x90] sm:$0xff] %v7827_v27 }
 0x5df   : > { %v7739_v37 = vpop.f32.mrf.mxu2 }
 0x5e0   : > { %v7740_v29 = vadd.f32 %v12319_v6, %v7739_v37  ;;  %v7828_v45 = vpop.f32.mrf.mxu3 }
 0x5e2   : > { %v7829_v39 = vadd.f32 %v7828_v45, %v7740_v29 }
 0x5e4   : > { %7880 = vst [vmem:[%s12328_s13 + $0x98] sm:$0xff] %v7829_v39 }
 0x5e7   : > { %v7742_v62 = vpop.f32.mrf.mxu2 }
 0x5e8   : > { %v7743_v26 = vadd.f32 %v12319_v6, %v7742_v62  ;;  %v7831_v33 = vpop.f32.mrf.mxu3 }
 0x5ea   : > { %v7832_v21 = vadd.f32 %v7831_v33, %v7743_v26 }
 0x5ec   : > { %7881 = vst [vmem:[%s12328_s13 + $0xa0] sm:$0xff] %v7832_v21 }
 0x5ef   : > { %v7744_v40 = vpop.f32.mrf.mxu2 }
 0x5f0   : > { %v7745_v25 = vadd.f32 %v12319_v6, %v7744_v40  ;;  %v7833_v49 = vpop.f32.mrf.mxu3 }
 0x5f2   : > { %v7834_v51 = vadd.f32 %v7833_v49, %v7745_v25 }
 0x5f4   : > { %7882 = vst [vmem:[%s12328_s13 + $0xa8] sm:$0xff] %v7834_v51 }
 0x5f7   : > { %v7747_v18 = vpop.f32.mrf.mxu2 }
 0x5f8   : > { %v7748_v20 = vadd.f32 %v12319_v6, %v7747_v18  ;;  %v7836_v24 = vpop.f32.mrf.mxu3 }
 0x5fa   : > { %v7837_v59 = vadd.f32 %v7836_v24, %v7748_v20 }
 0x5fc   : > { %7883 = vst [vmem:[%s12328_s13 + $0xb0] sm:$0xff] %v7837_v59 }
 0x5ff   : > { %v7749_v54 = vpop.f32.mrf.mxu2 }
 0x600   : > { %v7750_v17 = vadd.f32 %v12319_v6, %v7749_v54  ;;  %v7838_v4 = vpop.f32.mrf.mxu3 }
 0x602   : > { %v7839_v23 = vadd.f32 %v7838_v4, %v7750_v17 }
 0x604   : > { %7884 = vst [vmem:[%s12328_s13 + $0xb8] sm:$0xff] %v7839_v23 }
 0x607   : > { %v7752_v30 = vpop.f32.mrf.mxu2 }
 0x608   : > { %v7753_v8 = vadd.f32 %v12319_v6, %v7752_v30  ;;  %v7841_v3 = vpop.f32.mrf.mxu3 }
 0x60a   : > { %v7842_v57 = vadd.f32 %v7841_v3, %v7753_v8 }
 0x60c   : > { %7885 = vst [vmem:[%s12328_s13 + $0xc0] sm:$0xff] %v7842_v57 }
 0x60f   : > { %v7754_v60 = vpop.f32.mrf.mxu2 }
 0x610   : > { %v7755_v1 = vadd.f32 %v12319_v6, %v7754_v60  ;;  %v7843_v56 = vpop.f32.mrf.mxu3 }
 0x612   : > { %v7844_v58 = vadd.f32 %v7843_v56, %v7755_v1 }
 0x614   : > { %7886 = vst [vmem:[%s12328_s13 + $0xc8] sm:$0xff] %v7844_v58 }
 0x617   : > { %v7757_v31 = vpop.f32.mrf.mxu2 }
 0x618   : > { %v7758_v12 = vadd.f32 %v12319_v6, %v7757_v31  ;;  %v7846_v53 = vpop.f32.mrf.mxu3 }
 0x61a   : > { %v7847_v16 = vadd.f32 %v7846_v53, %v7758_v12 }
 0x61c   : > { %7887 = vst [vmem:[%s12328_s13 + $0xd0] sm:$0xff] %v7847_v16 }
 0x61f   : > { %v7759_v7 = vpop.f32.mrf.mxu2 }
 0x620   : > { %v7760_v46 = vadd.f32 %v12319_v6, %v7759_v7  ;;  %v7848_v10 = vpop.f32.mrf.mxu3 }
 0x622   : > { %v7849_v19 = vadd.f32 %v7848_v10, %v7760_v46 }
 0x624   : > { %7888 = vst [vmem:[%s12328_s13 + $0xd8] sm:$0xff] %v7849_v19 }
 0x627   : > { %v7762_v43 = vpop.f32.mrf.mxu2 }
 0x628   : > { %v7763_v38 = vadd.f32 %v12319_v6, %v7762_v43  ;;  %v7851_v55 = vpop.f32.mrf.mxu3 }
 0x62a   : > { %v7852_v47 = vadd.f32 %v7851_v55, %v7763_v38 }
 0x62c   : > { %7889 = vst [vmem:[%s12328_s13 + $0xe0] sm:$0xff] %v7852_v47 }
 0x62f   : > { %v7764_v28 = vpop.f32.mrf.mxu2 }
 0x630   : > { %v7765_v42 = vadd.f32 %v12319_v6, %v7764_v28  ;;  %v7853_v63 = vpop.f32.mrf.mxu3 }
 0x632   : > { %v7854_v52 = vadd.f32 %v7853_v63, %v7765_v42 }
 0x634   : > { %7890 = vst [vmem:[%s12328_s13 + $0xe8] sm:$0xff] %v7854_v52 }
 0x637   : > { %v7767_v32 = vpop.f32.mrf.mxu2 }
 0x638   : > { %v7768_v9 = vadd.f32 %v12319_v6, %v7767_v32  ;;  %v7856_v50 = vpop.f32.mrf.mxu3 }
 0x63a   : > { %v7857_v11 = vadd.f32 %v7856_v50, %v7768_v9 }
 0x63c   : > { %7891 = vst [vmem:[%s12328_s13 + $0xf0] sm:$0xff] %v7857_v11 }
 0x63f   : > { %v7769_v5 = vpop.f32.mrf.mxu2 }
 0x640   : > { %v7770_v15 = vadd.f32 %v12319_v6, %v7769_v5  ;;  %v7858_v34 = vpop.f32.mrf.mxu3 }
 0x642   : > { %v7859_v44 = vadd.f32 %v7858_v34, %v7770_v15 }
 0x644   : > { %7892 = vst [vmem:[%s12328_s13 + $0xf8] sm:$0xff] %v7859_v44 }
 0x645 PF: > { %p9525_p4 = scmp.ge.s32.totalorder %s9655_s26, 2  ;;  %s7936_s7 = sand.u32 1, %s9635_s21  }
 0x646   : > { %s7937_s16 = scalar_lea.sflag [#allocation4], %s7936_s7 }
 0x647   : > { %p9522_p7 = pnand %p9525_p4, %p9741_p8 }
 0x649   : > { %p9523_p9 = pneg %p9522_p7 }
 0x64b   : > { %9630 = dma.done.wait (%p9523_p9), %s7937_s16, 8192  }
 0x64c   : > { %9632 = vsyncadd (%p9523_p9), %s7937_s16, 4294959104  ;;  %s20_s26 = sadd.s32 1, %s9655_s26   ;;  %s12779_s21 = smov %s9639_s22 }
 0x64d   : > { %p17_p10 = scmp.ge.s32.totalorder %s20_s26, 4   ;;  %s12780_s22 = smov %s9643_s23 }
 0x64e   : > { %s12781_s23 = smov %s9747_s10  ;;  %s12782_s24 = smov %s9651_s25 }
 0x64f   : > { %s12783_s25 = smov %s12785_s29  ;;  %19 = sbr.rel (!%p17_p10) target bundleno = 4 (0x4), region = 98 }
 0x654   :  { %7952 = vsyncpa [#allocation4], 1 }
 0x655   :  { %7954 = vsyncpa [#allocation4 + $0x1], 1 }

</bundles_post_ra>
